<compile_context>
chip_gen: v7x
topology: tpu7x:2x2x1
jax: 0.10.0
libtpu: 0.0.40
codegen_flags: <defaults>
</compile_context>

<pallas_src>
import functools

import jax
import jax.numpy as jnp
from jax.experimental import pallas as pl
from jax.experimental.pallas import tpu as pltpu


# ----------------------------------------------------------------------------
# Pallas kernel: fused  y = act(x @ w + b)
#   x_ref, w_ref: bf16 (MXU operands); bias + epilogue in f32 (v5e VPU/EUP have
#   no bf16); store in o_ref.dtype (bf16 for intermediates, f32 for outputs).
# ----------------------------------------------------------------------------
def _mm_bias_act_kernel(x_ref, w_ref, b_ref, o_ref, *, act):
    acc = jnp.dot(x_ref[...], w_ref[...], preferred_element_type=jnp.float32)
    acc = acc + b_ref[...]                       # (1, N) broadcasts over rows
    if act == "gelu":
        # exact erf-based GELU == torch.nn.GELU(approximate='none')
        acc = 0.5 * acc * (1.0 + jax.lax.erf(acc * 0.7071067811865476))
    elif act == "tanh":
        acc = jnp.tanh(acc)
    o_ref[...] = acc.astype(o_ref.dtype)


def _pick_tm(m):
    """Row tile: full dim when small; else largest mult-of-16 exact divisor."""
    if m <= 512:
        return m                                  # single full-dim block
    for tm in range(1024, 15, -16):               # exact divisor -> no masked
        if m % tm == 0:                           # boundary waste; grid >= 2
            return tm                             # so both v7x TCs get rows
    return 512                                    # fallback: masked boundary


def matmul_bias_act(x, w, b, act="none", out_dtype=jnp.bfloat16):
    """act(x @ w + b); rows tiled, weights/bias VMEM-resident."""
    M, K = x.shape
    Kw, N = w.shape
    assert Kw == K
    xb = x.astype(jnp.bfloat16)
    wb = w.astype(jnp.bfloat16)
    bf = b.astype(jnp.float32).reshape(1, N)

    tm = _pick_tm(M)
    grid_m = pl.cdiv(M, tm)

    out_bytes = jnp.dtype(out_dtype).itemsize
    cost = pl.CostEstimate(
        flops=2 * M * K * N,
        transcendentals=(M * N if act in ("gelu", "tanh") else 0),
        bytes_accessed=2 * M * K + 2 * K * N + 4 * N + out_bytes * M * N,
    )

    return pl.pallas_call(
        functools.partial(_mm_bias_act_kernel, act=act),
        out_shape=jax.ShapeDtypeStruct((M, N), out_dtype),
        grid=(grid_m,),
        in_specs=[
            pl.BlockSpec((tm, K), lambda i: (i, 0)),   # streamed row tiles
            pl.BlockSpec((K, N), lambda i: (0, 0)),    # weights stay resident
            pl.BlockSpec((1, N), lambda i: (0, 0)),    # bias stays resident
        ],
        out_specs=pl.BlockSpec((tm, N), lambda i: (i, 0)),
        compiler_params=pltpu.CompilerParams(
            dimension_semantics=("parallel",),         # megacore rows on v7x
            # Peak working set ~3 MiB -> 32 MiB is pure headroom on all gens.
            vmem_limit_bytes=32 * 1024 * 1024,
        ),
        cost_estimate=cost,
    )(xb, wb, bf)


# ----------------------------------------------------------------------------
# Fused bottleneck: encoder Linear + decoder Linear in ONE pallas_call
#   emb  = x @ w1 + b1                       (f32 output, the embedding)
#   feat = gelu(emb @ w2 + b2)               (bf16 output, decoder features)
# Both layers have M = batch and are launch/DMA dominated; fusing removes one
# kernel launch and the HBM round trip of the (B, 2048) / (B, 64) tensors.
# ----------------------------------------------------------------------------
def _fused_linear_kernel(x_ref, w1_ref, b1_ref, w2_ref, b2_ref,
                         emb_ref, feat_ref):
    emb = jnp.dot(x_ref[...], w1_ref[...],
                  preferred_element_type=jnp.float32) + b1_ref[...]
    emb_ref[...] = emb.astype(emb_ref.dtype)
    feat = jnp.dot(emb.astype(jnp.bfloat16), w2_ref[...],
                   preferred_element_type=jnp.float32) + b2_ref[...]
    feat = 0.5 * feat * (1.0 + jax.lax.erf(feat * 0.7071067811865476))
    feat_ref[...] = feat.astype(feat_ref.dtype)


def fused_bottleneck(x, w1, b1, w2, b2):
    B, K1 = x.shape
    _, N1 = w1.shape
    _, N2 = w2.shape
    return pl.pallas_call(
        _fused_linear_kernel,
        out_shape=(jax.ShapeDtypeStruct((B, N1), jnp.float32),
                   jax.ShapeDtypeStruct((B, N2), jnp.bfloat16)),
        grid=(1,),
        in_specs=[
            pl.BlockSpec((B, K1), lambda i: (0, 0)),
            pl.BlockSpec((K1, N1), lambda i: (0, 0)),
            pl.BlockSpec((1, N1), lambda i: (0, 0)),
            pl.BlockSpec((N1, N2), lambda i: (0, 0)),
            pl.BlockSpec((1, N2), lambda i: (0, 0)),
        ],
        out_specs=(pl.BlockSpec((B, N1), lambda i: (0, 0)),
                   pl.BlockSpec((B, N2), lambda i: (0, 0))),
        compiler_params=pltpu.CompilerParams(
            dimension_semantics=("arbitrary",),
            vmem_limit_bytes=32 * 1024 * 1024,
        ),
    )(x.astype(jnp.bfloat16),
      w1.astype(jnp.bfloat16), b1.astype(jnp.float32).reshape(1, N1),
      w2.astype(jnp.bfloat16), b2.astype(jnp.float32).reshape(1, N2))


# ----------------------------------------------------------------------------
# Patch extraction: one fused XLA op per conv (the matmul is the Pallas kernel)
# ----------------------------------------------------------------------------
def _extract_patches(x_nhwc, k, stride, pad, lhs_dilation=None):
    """im2col as a single lax.conv_general_dilated_patches call.

    pad is a (lo, hi) pair applied to both spatial dims; lhs_dilation (input
    dilation) implements transposed convolutions without an explicit
    zero-dilate scatter.
    """
    cols = jax.lax.conv_general_dilated_patches(
        x_nhwc,
        filter_shape=(k, k),
        window_strides=(stride, stride),
        padding=(pad, pad),
        lhs_dilation=lhs_dilation,
        dimension_numbers=("NHWC", "HWIO", "NHWC"),
    )
    B, Ho, Wo, CK = cols.shape
    return cols.reshape(B * Ho * Wo, CK), (B, Ho, Wo)


def _patch_col_perm(c, k):
    """Self-calibrate the patch-column ordering.

    Returns perm (length c*k*k, int32) such that patch column j corresponds to
    PyTorch flat weight index perm[j] = ch*k*k + ki*k + kj.  Computed once at
    parameter-prep time on a tiny coded image, so the kernel weight layout is
    exact regardless of how JAX orders the patch features.
    """
    code = jnp.arange(c * k * k, dtype=jnp.float32).reshape(c, k, k)
    img = jnp.transpose(code, (1, 2, 0))[None]          # (1, k, k, c) NHWC
    cols = jax.lax.conv_general_dilated_patches(
        img, filter_shape=(k, k), window_strides=(1, 1),
        padding=((0, 0), (0, 0)),
        dimension_numbers=("NHWC", "HWIO", "NHWC"))
    return jnp.asarray(jnp.round(cols.reshape(-1)), jnp.int32)


def conv2d(x_nhwc, w2d, b, cout, k=3, stride=1, padding=1,
           act="gelu", out_dtype=jnp.bfloat16):
    cols, (B, Ho, Wo) = _extract_patches(x_nhwc, k, stride, (padding, padding))
    y = matmul_bias_act(cols, w2d, b, act=act, out_dtype=out_dtype)
    return y.reshape(B, Ho, Wo, cout)


def conv_transpose2d(x_nhwc, w2d, b, cout, k=3, stride=2, padding=1,
                     output_padding=0, act="gelu", out_dtype=jnp.bfloat16):
    pad = (k - 1 - padding, k - 1 - padding + output_padding)
    # TODO(synk): sub-pixel (stride^2 sub-filter) decomposition would avoid
    # extracting patches over the zero-dilated input (4x M inflation).
    cols, (B, Ho, Wo) = _extract_patches(x_nhwc, k, 1, pad,
                                         lhs_dilation=(stride, stride))
    y = matmul_bias_act(cols, w2d, b, act=act, out_dtype=out_dtype)
    return y.reshape(B, Ho, Wo, cout)


# ----------------------------------------------------------------------------
# Deterministic parameter construction (PyTorch layout) + one-time prep
# ----------------------------------------------------------------------------
def _normal(key, shape, scale=0.05):
    return scale * jax.random.normal(key, shape, dtype=jnp.float32)


def init_cae_params(key, c_hid=64, latent_dim=64, in_ch=1):
    ks = jax.random.split(key, 24)
    p = {}
    # Encoder
    p["e_conv1_w"] = _normal(ks[0], (c_hid, in_ch, 3, 3));          p["e_conv1_b"] = _normal(ks[1], (c_hid,))
    p["e_conv2_w"] = _normal(ks[2], (c_hid, c_hid, 3, 3));          p["e_conv2_b"] = _normal(ks[3], (c_hid,))
    p["e_conv3_w"] = _normal(ks[4], (2 * c_hid, c_hid, 3, 3));      p["e_conv3_b"] = _normal(ks[5], (2 * c_hid,))
    p["e_conv4_w"] = _normal(ks[6], (2 * c_hid, 2 * c_hid, 3, 3));  p["e_conv4_b"] = _normal(ks[7], (2 * c_hid,))
    p["e_conv5_w"] = _normal(ks[8], (2 * c_hid, 2 * c_hid, 3, 3));  p["e_conv5_b"] = _normal(ks[9], (2 * c_hid,))
    p["e_lin_w"] = _normal(ks[10], (latent_dim, 2 * 16 * c_hid));   p["e_lin_b"] = _normal(ks[11], (latent_dim,))
    # Decoder
    p["d_lin_w"] = _normal(ks[12], (2 * 16 * c_hid, latent_dim));   p["d_lin_b"] = _normal(ks[13], (2 * 16 * c_hid,))
    p["d_tconv1_w"] = _normal(ks[14], (2 * c_hid, 2 * c_hid, 3, 3)); p["d_tconv1_b"] = _normal(ks[15], (2 * c_hid,))
    p["d_conv2_w"] = _normal(ks[16], (2 * c_hid, 2 * c_hid, 3, 3));  p["d_conv2_b"] = _normal(ks[17], (2 * c_hid,))
    p["d_tconv3_w"] = _normal(ks[18], (2 * c_hid, c_hid, 3, 3));     p["d_tconv3_b"] = _normal(ks[19], (c_hid,))
    p["d_conv4_w"] = _normal(ks[20], (c_hid, c_hid, 3, 3));          p["d_conv4_b"] = _normal(ks[21], (c_hid,))
    p["d_tconv5_w"] = _normal(ks[22], (c_hid, in_ch, 3, 3));         p["d_tconv5_b"] = _normal(ks[23], (in_ch,))
    return p


def _conv_w2d(w_oikk, perm):
    """PyTorch Conv2d weight (O, C, kH, kW) -> (C*kH*kW, O) bf16, patch order."""
    O = w_oikk.shape[0]
    return jnp.asarray(w_oikk.reshape(O, -1)[:, perm].T, jnp.bfloat16)


def _tconv_w2d(w_iokk, perm):
    """ConvTranspose2d weight == spatially-flipped, in/out-swapped Conv2d weight."""
    w = jnp.transpose(jnp.flip(w_iokk, axis=(2, 3)), (1, 0, 2, 3))
    return _conv_w2d(w, perm)


def prepare_params(p, c_hid=64, latent_dim=64, in_ch=1):
    """One-time conversion PyTorch layout -> kernel layout (bit-identical math)."""
    perm_in = _patch_col_perm(in_ch, 3)
    perm_c = _patch_col_perm(c_hid, 3)
    perm_2c = _patch_col_perm(2 * c_hid, 3)

    kp = {}
    kp["e_conv1_w"] = _conv_w2d(p["e_conv1_w"], perm_in)
    kp["e_conv2_w"] = _conv_w2d(p["e_conv2_w"], perm_c)
    kp["e_conv3_w"] = _conv_w2d(p["e_conv3_w"], perm_c)
    kp["e_conv4_w"] = _conv_w2d(p["e_conv4_w"], perm_2c)
    kp["e_conv5_w"] = _conv_w2d(p["e_conv5_w"], perm_2c)
    kp["d_tconv1_w"] = _tconv_w2d(p["d_tconv1_w"], perm_2c)
    kp["d_conv2_w"] = _conv_w2d(p["d_conv2_w"], perm_2c)
    kp["d_tconv3_w"] = _tconv_w2d(p["d_tconv3_w"], perm_2c)
    kp["d_conv4_w"] = _conv_w2d(p["d_conv4_w"], perm_c)
    kp["d_tconv5_w"] = _tconv_w2d(p["d_tconv5_w"], perm_c)
    for name in ("e_conv1_b", "e_conv2_b", "e_conv3_b", "e_conv4_b", "e_conv5_b",
                 "d_tconv1_b", "d_conv2_b", "d_tconv3_b", "d_conv4_b", "d_tconv5_b",
                 "e_lin_b"):
        kp[name] = jnp.asarray(p[name], jnp.float32)

    # Encoder Linear: fold the NCHW Flatten permutation into the weight columns
    # so the kernel consumes the NHWC-flattened conv output directly.
    w = p["e_lin_w"].reshape(latent_dim, 2 * c_hid, 4, 4)          # (L, c, h, w)
    w = jnp.transpose(w, (0, 2, 3, 1)).reshape(latent_dim, -1)     # (L, h*w*c)
    kp["e_lin_w"] = jnp.asarray(w.T, jnp.bfloat16)                 # (2048, L)

    # Decoder Linear: produce features already in NHWC-flattened order, so the
    # reshape to (B, 4, 4, 2*c_hid) needs no runtime transpose.
    w = p["d_lin_w"].reshape(2 * c_hid, 4, 4, latent_dim)          # (c, h, w, L)
    w = jnp.transpose(w, (1, 2, 0, 3)).reshape(-1, latent_dim)     # (h*w*c, L)
    kp["d_lin_w"] = jnp.asarray(w.T, jnp.bfloat16)                 # (L, 2048)
    b = p["d_lin_b"].reshape(2 * c_hid, 4, 4)
    kp["d_lin_b"] = jnp.asarray(jnp.transpose(b, (1, 2, 0)).reshape(-1), jnp.float32)
    return kp


# ----------------------------------------------------------------------------
# Forward passes (mirror the PyTorch module exactly)
# ----------------------------------------------------------------------------
def encoder_forward(kp, x_nchw, c_hid=64):
    x = jnp.transpose(x_nchw, (0, 2, 3, 1)).astype(jnp.bfloat16)    # NHWC bf16
    x = conv2d(x, kp["e_conv1_w"], kp["e_conv1_b"], c_hid, stride=2)       # 28->14
    x = conv2d(x, kp["e_conv2_w"], kp["e_conv2_b"], c_hid, stride=1)
    x = conv2d(x, kp["e_conv3_w"], kp["e_conv3_b"], 2 * c_hid, stride=2)   # 14->7
    x = conv2d(x, kp["e_conv4_w"], kp["e_conv4_b"], 2 * c_hid, stride=1)
    x = conv2d(x, kp["e_conv5_w"], kp["e_conv5_b"], 2 * c_hid, stride=2)   # 7->4
    # NHWC flatten; the NCHW Flatten permutation is folded into e_lin_w.
    return x.reshape(x.shape[0], -1)


def decoder_forward(kp, feat_nhwc_flat, c_hid=64):
    B = feat_nhwc_flat.shape[0]
    x = feat_nhwc_flat.reshape(B, 4, 4, 2 * c_hid)                  # NHWC directly
    x = conv_transpose2d(x, kp["d_tconv1_w"], kp["d_tconv1_b"], 2 * c_hid,
                         stride=2, padding=1, output_padding=0)     # 4 -> 7
    x = conv2d(x, kp["d_conv2_w"], kp["d_conv2_b"], 2 * c_hid, stride=1)
    x = conv_transpose2d(x, kp["d_tconv3_w"], kp["d_tconv3_b"], c_hid,
                         stride=2, padding=1, output_padding=1)     # 7 -> 14
    x = conv2d(x, kp["d_conv4_w"], kp["d_conv4_b"], c_hid, stride=1)
    # TODO(synk): Cout=1 makes this layer's store lane-sparse (N=1); make the
    # spatial width land on the lane dim once the per-tap in-kernel conv lands.
    x = conv_transpose2d(x, kp["d_tconv5_w"], kp["d_tconv5_b"], 1,
                         stride=2, padding=1, output_padding=1,
                         act="tanh", out_dtype=jnp.float32)         # 14 -> 28
    return jnp.transpose(x, (0, 3, 1, 2))                           # back to NCHW


def cae_forward(kp, inputs, c_hid=64):
    lead = inputs.shape[:-3]
    chw = inputs.shape[-3:]
    x = inputs.reshape((-1,) + chw)                                 # inputs.view(-1, C, H, W)
    feats = encoder_forward(kp, x, c_hid)
    # Encoder Linear + Decoder Linear fused into one pallas_call.
    emb, dfeat = fused_bottleneck(feats, kp["e_lin_w"], kp["e_lin_b"],
                                  kp["d_lin_w"], kp["d_lin_b"])
    rec = decoder_forward(kp, dfeat, c_hid)
    return emb.reshape(lead + (emb.shape[-1],)), rec.reshape(inputs.shape)


if __name__ == "__main__":
    key = jax.random.PRNGKey(0)
    pkey, xkey = jax.random.split(key)
    params = init_cae_params(pkey)          # PyTorch-layout parameters
    kparams = prepare_params(params)        # one-time layout fold (outside jit)

    # CAE(in_channels=1) expects (..., 1, 28, 28) images (MNIST-like).
    inputs = jax.random.normal(xkey, (2, 1, 28, 28), dtype=jnp.float32)

    fwd = jax.jit(cae_forward)
    emb, rec = fwd(kparams, inputs)
    jax.block_until_ready((emb, rec))

    assert emb.shape == (2, 64), emb.shape
    assert rec.shape == inputs.shape, rec.shape
    assert bool(jnp.all(jnp.isfinite(emb))) and bool(jnp.all(jnp.isfinite(rec)))
    print("KERNEL_OK")
</pallas_src>

<mosaic_0001>
module attributes {stable_mosaic.version = 11 : i64} {
  func.func @_mm_bias_act_kernel(%arg0: i32, %arg1: memref<392x9xbf16, #tpu.memory_space<vmem>>, %arg2: memref<9x64xbf16, #tpu.memory_space<vmem>>, %arg3: memref<1x64xf32, #tpu.memory_space<vmem>>, %arg4: memref<392x64xbf16, #tpu.memory_space<vmem>>) attributes {dimension_semantics = [#tpu.dimension_semantics<parallel>], iteration_bounds = array<i64: 1>, scalar_prefetch = 0 : i64, scratch_operands = 0 : i64, tpu.core_type = #tpu.core_type<tc>, window_params = [{transform_indices = @transform_0, window_bounds = array<i64: 392, 9>}, {pipeline_mode = #tpu.pipeline_mode<synchronous>, transform_indices = @transform_1, window_bounds = array<i64: 9, 64>}, {pipeline_mode = #tpu.pipeline_mode<synchronous>, transform_indices = @transform_2, window_bounds = array<i64: 1, 64>}, {transform_indices = @transform_3, window_bounds = array<i64: 392, 64>}]} {
    %c0 = arith.constant 0 : index
    %c0_0 = arith.constant 0 : index
    %0 = vector.load %arg1[%c0, %c0_0] : memref<392x9xbf16, #tpu.memory_space<vmem>>, vector<392x9xbf16>
    %c0_1 = arith.constant 0 : index
    %c0_2 = arith.constant 0 : index
    %1 = vector.load %arg2[%c0_1, %c0_2] : memref<9x64xbf16, #tpu.memory_space<vmem>>, vector<9x64xbf16>
    %cst = arith.constant dense<0.000000e+00> : vector<392x64xf32>
    %2 = tpu.matmul %0, %1, %cst {dimension_numbers = #tpu.dot_dimension_numbers<[1], [0], [0], [1], [0, 0, 1, 1], [], []>} : vector<392x9xbf16>, vector<9x64xbf16>, vector<392x64xf32> -> vector<392x64xf32>
    %c0_3 = arith.constant 0 : index
    %c0_4 = arith.constant 0 : index
    %3 = vector.load %arg3[%c0_3, %c0_4] : memref<1x64xf32, #tpu.memory_space<vmem>>, vector<1x64xf32>
    %4 = vector.broadcast %3 : vector<1x64xf32> to vector<392x64xf32>
    %5 = arith.addf %2, %4 : vector<392x64xf32>
    %cst_5 = arith.constant 5.000000e-01 : f32
    %6 = vector.broadcast %cst_5 : f32 to vector<392x64xf32>
    %7 = arith.mulf %6, %5 : vector<392x64xf32>
    %cst_6 = arith.constant 0.707106769 : f32
    %8 = vector.broadcast %cst_6 : f32 to vector<392x64xf32>
    %9 = arith.mulf %5, %8 : vector<392x64xf32>
    %10 = math.erf %9 : vector<392x64xf32>
    %cst_7 = arith.constant 1.000000e+00 : f32
    %11 = vector.broadcast %cst_7 : f32 to vector<392x64xf32>
    %12 = arith.addf %11, %10 : vector<392x64xf32>
    %13 = arith.mulf %7, %12 : vector<392x64xf32>
    %14 = arith.truncf %13 : vector<392x64xf32> to vector<392x64xbf16>
    %c0_8 = arith.constant 0 : index
    %c0_9 = arith.constant 0 : index
    %15 = vector.load %arg4[%c0_8, %c0_9] : memref<392x64xbf16, #tpu.memory_space<vmem>>, vector<392x64xbf16>
    tpu.vector_store %arg4[%c0_8, %c0_9], %14 {strides = array<i32>} : memref<392x64xbf16, #tpu.memory_space<vmem>>, vector<392x64xbf16>,
    return
  }
  func.func @transform_0(%arg0: i32) -> (i32, i32) {
    %c0_i32 = arith.constant 0 : i32
    %c0_i32_0 = arith.constant 0 : i32
    return %arg0, %c0_i32 : i32, i32
  }
  func.func @transform_1(%arg0: i32) -> (i32, i32) {
    %c0_i32 = arith.constant 0 : i32
    %c0_i32_0 = arith.constant 0 : i32
    %c0_i32_1 = arith.constant 0 : i32
    return %c0_i32, %c0_i32_0 : i32, i32
  }
  func.func @transform_2(%arg0: i32) -> (i32, i32) {
    %c0_i32 = arith.constant 0 : i32
    %c0_i32_0 = arith.constant 0 : i32
    %c0_i32_1 = arith.constant 0 : i32
    return %c0_i32, %c0_i32_0 : i32, i32
  }
  func.func @transform_3(%arg0: i32) -> (i32, i32) {
    %c0_i32 = arith.constant 0 : i32
    %c0_i32_0 = arith.constant 0 : i32
    return %arg0, %c0_i32 : i32, i32
  }
}

module attributes {stable_mosaic.version = 11 : i64} {
  func.func @_mm_bias_act_kernel(%arg0: i32, %arg1: memref<392x576xbf16, #tpu.memory_space<vmem>>, %arg2: memref<576x64xbf16, #tpu.memory_space<vmem>>, %arg3: memref<1x64xf32, #tpu.memory_space<vmem>>, %arg4: memref<392x64xbf16, #tpu.memory_space<vmem>>) attributes {dimension_semantics = [#tpu.dimension_semantics<parallel>], iteration_bounds = array<i64: 1>, scalar_prefetch = 0 : i64, scratch_operands = 0 : i64, tpu.core_type = #tpu.core_type<tc>, window_params = [{transform_indices = @transform_0, window_bounds = array<i64: 392, 576>}, {pipeline_mode = #tpu.pipeline_mode<synchronous>, transform_indices = @transform_1, window_bounds = array<i64: 576, 64>}, {pipeline_mode = #tpu.pipeline_mode<synchronous>, transform_indices = @transform_2, window_bounds = array<i64: 1, 64>}, {transform_indices = @transform_3, window_bounds = array<i64: 392, 64>}]} {
    %c0 = arith.constant 0 : index
    %c0_0 = arith.constant 0 : index
    %0 = vector.load %arg1[%c0, %c0_0] : memref<392x576xbf16, #tpu.memory_space<vmem>>, vector<392x576xbf16>
    %c0_1 = arith.constant 0 : index
    %c0_2 = arith.constant 0 : index
    %1 = vector.load %arg2[%c0_1, %c0_2] : memref<576x64xbf16, #tpu.memory_space<vmem>>, vector<576x64xbf16>
    %cst = arith.constant dense<0.000000e+00> : vector<392x64xf32>
    %2 = tpu.matmul %0, %1, %cst {dimension_numbers = #tpu.dot_dimension_numbers<[1], [0], [0], [1], [0, 0, 1, 1], [], []>} : vector<392x576xbf16>, vector<576x64xbf16>, vector<392x64xf32> -> vector<392x64xf32>
    %c0_3 = arith.constant 0 : index
    %c0_4 = arith.constant 0 : index
    %3 = vector.load %arg3[%c0_3, %c0_4] : memref<1x64xf32, #tpu.memory_space<vmem>>, vector<1x64xf32>
    %4 = vector.broadcast %3 : vector<1x64xf32> to vector<392x64xf32>
    %5 = arith.addf %2, %4 : vector<392x64xf32>
    %cst_5 = arith.constant 5.000000e-01 : f32
    %6 = vector.broadcast %cst_5 : f32 to vector<392x64xf32>
    %7 = arith.mulf %6, %5 : vector<392x64xf32>
    %cst_6 = arith.constant 0.707106769 : f32
    %8 = vector.broadcast %cst_6 : f32 to vector<392x64xf32>
    %9 = arith.mulf %5, %8 : vector<392x64xf32>
    %10 = math.erf %9 : vector<392x64xf32>
    %cst_7 = arith.constant 1.000000e+00 : f32
    %11 = vector.broadcast %cst_7 : f32 to vector<392x64xf32>
    %12 = arith.addf %11, %10 : vector<392x64xf32>
    %13 = arith.mulf %7, %12 : vector<392x64xf32>
    %14 = arith.truncf %13 : vector<392x64xf32> to vector<392x64xbf16>
    %c0_8 = arith.constant 0 : index
    %c0_9 = arith.constant 0 : index
    %15 = vector.load %arg4[%c0_8, %c0_9] : memref<392x64xbf16, #tpu.memory_space<vmem>>, vector<392x64xbf16>
    tpu.vector_store %arg4[%c0_8, %c0_9], %14 {strides = array<i32>} : memref<392x64xbf16, #tpu.memory_space<vmem>>, vector<392x64xbf16>,
    return
  }
  func.func @transform_0(%arg0: i32) -> (i32, i32) {
    %c0_i32 = arith.constant 0 : i32
    %c0_i32_0 = arith.constant 0 : i32
    return %arg0, %c0_i32 : i32, i32
  }
  func.func @transform_1(%arg0: i32) -> (i32, i32) {
    %c0_i32 = arith.constant 0 : i32
    %c0_i32_0 = arith.constant 0 : i32
    %c0_i32_1 = arith.constant 0 : i32
    return %c0_i32, %c0_i32_0 : i32, i32
  }
  func.func @transform_2(%arg0: i32) -> (i32, i32) {
    %c0_i32 = arith.constant 0 : i32
    %c0_i32_0 = arith.constant 0 : i32
    %c0_i32_1 = arith.constant 0 : i32
    return %c0_i32, %c0_i32_0 : i32, i32
  }
  func.func @transform_3(%arg0: i32) -> (i32, i32) {
    %c0_i32 = arith.constant 0 : i32
    %c0_i32_0 = arith.constant 0 : i32
    return %arg0, %c0_i32 : i32, i32
  }
}

module attributes {stable_mosaic.version = 11 : i64} {
  func.func @_mm_bias_act_kernel(%arg0: i32, %arg1: memref<98x576xbf16, #tpu.memory_space<vmem>>, %arg2: memref<576x128xbf16, #tpu.memory_space<vmem>>, %arg3: memref<1x128xf32, #tpu.memory_space<vmem>>, %arg4: memref<98x128xbf16, #tpu.memory_space<vmem>>) attributes {dimension_semantics = [#tpu.dimension_semantics<parallel>], iteration_bounds = array<i64: 1>, scalar_prefetch = 0 : i64, scratch_operands = 0 : i64, tpu.core_type = #tpu.core_type<tc>, window_params = [{transform_indices = @transform_0, window_bounds = array<i64: 98, 576>}, {pipeline_mode = #tpu.pipeline_mode<synchronous>, transform_indices = @transform_1, window_bounds = array<i64: 576, 128>}, {pipeline_mode = #tpu.pipeline_mode<synchronous>, transform_indices = @transform_2, window_bounds = array<i64: 1, 128>}, {transform_indices = @transform_3, window_bounds = array<i64: 98, 128>}]} {
    %c0 = arith.constant 0 : index
    %c0_0 = arith.constant 0 : index
    %0 = vector.load %arg1[%c0, %c0_0] : memref<98x576xbf16, #tpu.memory_space<vmem>>, vector<98x576xbf16>
    %c0_1 = arith.constant 0 : index
    %c0_2 = arith.constant 0 : index
    %1 = vector.load %arg2[%c0_1, %c0_2] : memref<576x128xbf16, #tpu.memory_space<vmem>>, vector<576x128xbf16>
    %cst = arith.constant dense<0.000000e+00> : vector<98x128xf32>
    %2 = tpu.matmul %0, %1, %cst {dimension_numbers = #tpu.dot_dimension_numbers<[1], [0], [0], [1], [0, 0, 1, 1], [], []>} : vector<98x576xbf16>, vector<576x128xbf16>, vector<98x128xf32> -> vector<98x128xf32>
    %c0_3 = arith.constant 0 : index
    %c0_4 = arith.constant 0 : index
    %3 = vector.load %arg3[%c0_3, %c0_4] : memref<1x128xf32, #tpu.memory_space<vmem>>, vector<1x128xf32>
    %4 = vector.broadcast %3 : vector<1x128xf32> to vector<98x128xf32>
    %5 = arith.addf %2, %4 : vector<98x128xf32>
    %cst_5 = arith.constant 5.000000e-01 : f32
    %6 = vector.broadcast %cst_5 : f32 to vector<98x128xf32>
    %7 = arith.mulf %6, %5 : vector<98x128xf32>
    %cst_6 = arith.constant 0.707106769 : f32
    %8 = vector.broadcast %cst_6 : f32 to vector<98x128xf32>
    %9 = arith.mulf %5, %8 : vector<98x128xf32>
    %10 = math.erf %9 : vector<98x128xf32>
    %cst_7 = arith.constant 1.000000e+00 : f32
    %11 = vector.broadcast %cst_7 : f32 to vector<98x128xf32>
    %12 = arith.addf %11, %10 : vector<98x128xf32>
    %13 = arith.mulf %7, %12 : vector<98x128xf32>
    %14 = arith.truncf %13 : vector<98x128xf32> to vector<98x128xbf16>
    %c0_8 = arith.constant 0 : index
    %c0_9 = arith.constant 0 : index
    %15 = vector.load %arg4[%c0_8, %c0_9] : memref<98x128xbf16, #tpu.memory_space<vmem>>, vector<98x128xbf16>
    tpu.vector_store %arg4[%c0_8, %c0_9], %14 {strides = array<i32>} : memref<98x128xbf16, #tpu.memory_space<vmem>>, vector<98x128xbf16>,
    return
  }
  func.func @transform_0(%arg0: i32) -> (i32, i32) {
    %c0_i32 = arith.constant 0 : i32
    %c0_i32_0 = arith.constant 0 : i32
    return %arg0, %c0_i32 : i32, i32
  }
  func.func @transform_1(%arg0: i32) -> (i32, i32) {
    %c0_i32 = arith.constant 0 : i32
    %c0_i32_0 = arith.constant 0 : i32
    %c0_i32_1 = arith.constant 0 : i32
    return %c0_i32, %c0_i32_0 : i32, i32
  }
  func.func @transform_2(%arg0: i32) -> (i32, i32) {
    %c0_i32 = arith.constant 0 : i32
    %c0_i32_0 = arith.constant 0 : i32
    %c0_i32_1 = arith.constant 0 : i32
    return %c0_i32, %c0_i32_0 : i32, i32
  }
  func.func @transform_3(%arg0: i32) -> (i32, i32) {
    %c0_i32 = arith.constant 0 : i32
    %c0_i32_0 = arith.constant 0 : i32
    return %arg0, %c0_i32 : i32, i32
  }
}

module attributes {stable_mosaic.version = 11 : i64} {
  func.func @_mm_bias_act_kernel(%arg0: i32, %arg1: memref<98x1152xbf16, #tpu.memory_space<vmem>>, %arg2: memref<1152x128xbf16, #tpu.memory_space<vmem>>, %arg3: memref<1x128xf32, #tpu.memory_space<vmem>>, %arg4: memref<98x128xbf16, #tpu.memory_space<vmem>>) attributes {dimension_semantics = [#tpu.dimension_semantics<parallel>], iteration_bounds = array<i64: 1>, scalar_prefetch = 0 : i64, scratch_operands = 0 : i64, tpu.core_type = #tpu.core_type<tc>, window_params = [{transform_indices = @transform_0, window_bounds = array<i64: 98, 1152>}, {pipeline_mode = #tpu.pipeline_mode<synchronous>, transform_indices = @transform_1, window_bounds = array<i64: 1152, 128>}, {pipeline_mode = #tpu.pipeline_mode<synchronous>, transform_indices = @transform_2, window_bounds = array<i64: 1, 128>}, {transform_indices = @transform_3, window_bounds = array<i64: 98, 128>}]} {
    %c0 = arith.constant 0 : index
    %c0_0 = arith.constant 0 : index
    %0 = vector.load %arg1[%c0, %c0_0] : memref<98x1152xbf16, #tpu.memory_space<vmem>>, vector<98x1152xbf16>
    %c0_1 = arith.constant 0 : index
    %c0_2 = arith.constant 0 : index
    %1 = vector.load %arg2[%c0_1, %c0_2] : memref<1152x128xbf16, #tpu.memory_space<vmem>>, vector<1152x128xbf16>
    %cst = arith.constant dense<0.000000e+00> : vector<98x128xf32>
    %2 = tpu.matmul %0, %1, %cst {dimension_numbers = #tpu.dot_dimension_numbers<[1], [0], [0], [1], [0, 0, 1, 1], [], []>} : vector<98x1152xbf16>, vector<1152x128xbf16>, vector<98x128xf32> -> vector<98x128xf32>
    %c0_3 = arith.constant 0 : index
    %c0_4 = arith.constant 0 : index
    %3 = vector.load %arg3[%c0_3, %c0_4] : memref<1x128xf32, #tpu.memory_space<vmem>>, vector<1x128xf32>
    %4 = vector.broadcast %3 : vector<1x128xf32> to vector<98x128xf32>
    %5 = arith.addf %2, %4 : vector<98x128xf32>
    %cst_5 = arith.constant 5.000000e-01 : f32
    %6 = vector.broadcast %cst_5 : f32 to vector<98x128xf32>
    %7 = arith.mulf %6, %5 : vector<98x128xf32>
    %cst_6 = arith.constant 0.707106769 : f32
    %8 = vector.broadcast %cst_6 : f32 to vector<98x128xf32>
    %9 = arith.mulf %5, %8 : vector<98x128xf32>
    %10 = math.erf %9 : vector<98x128xf32>
    %cst_7 = arith.constant 1.000000e+00 : f32
    %11 = vector.broadcast %cst_7 : f32 to vector<98x128xf32>
    %12 = arith.addf %11, %10 : vector<98x128xf32>
    %13 = arith.mulf %7, %12 : vector<98x128xf32>
    %14 = arith.truncf %13 : vector<98x128xf32> to vector<98x128xbf16>
    %c0_8 = arith.constant 0 : index
    %c0_9 = arith.constant 0 : index
    %15 = vector.load %arg4[%c0_8, %c0_9] : memref<98x128xbf16, #tpu.memory_space<vmem>>, vector<98x128xbf16>
    tpu.vector_store %arg4[%c0_8, %c0_9], %14 {strides = array<i32>} : memref<98x128xbf16, #tpu.memory_space<vmem>>, vector<98x128xbf16>,
    return
  }
  func.func @transform_0(%arg0: i32) -> (i32, i32) {
    %c0_i32 = arith.constant 0 : i32
    %c0_i32_0 = arith.constant 0 : i32
    return %arg0, %c0_i32 : i32, i32
  }
  func.func @transform_1(%arg0: i32) -> (i32, i32) {
    %c0_i32 = arith.constant 0 : i32
    %c0_i32_0 = arith.constant 0 : i32
    %c0_i32_1 = arith.constant 0 : i32
    return %c0_i32, %c0_i32_0 : i32, i32
  }
  func.func @transform_2(%arg0: i32) -> (i32, i32) {
    %c0_i32 = arith.constant 0 : i32
    %c0_i32_0 = arith.constant 0 : i32
    %c0_i32_1 = arith.constant 0 : i32
    return %c0_i32, %c0_i32_0 : i32, i32
  }
  func.func @transform_3(%arg0: i32) -> (i32, i32) {
    %c0_i32 = arith.constant 0 : i32
    %c0_i32_0 = arith.constant 0 : i32
    return %arg0, %c0_i32 : i32, i32
  }
}

module attributes {stable_mosaic.version = 11 : i64} {
  func.func @_mm_bias_act_kernel(%arg0: i32, %arg1: memref<32x1152xbf16, #tpu.memory_space<vmem>>, %arg2: memref<1152x128xbf16, #tpu.memory_space<vmem>>, %arg3: memref<1x128xf32, #tpu.memory_space<vmem>>, %arg4: memref<32x128xbf16, #tpu.memory_space<vmem>>) attributes {dimension_semantics = [#tpu.dimension_semantics<parallel>], iteration_bounds = array<i64: 1>, scalar_prefetch = 0 : i64, scratch_operands = 0 : i64, tpu.core_type = #tpu.core_type<tc>, window_params = [{transform_indices = @transform_0, window_bounds = array<i64: 32, 1152>}, {pipeline_mode = #tpu.pipeline_mode<synchronous>, transform_indices = @transform_1, window_bounds = array<i64: 1152, 128>}, {pipeline_mode = #tpu.pipeline_mode<synchronous>, transform_indices = @transform_2, window_bounds = array<i64: 1, 128>}, {transform_indices = @transform_3, window_bounds = array<i64: 32, 128>}]} {
    %c0 = arith.constant 0 : index
    %c0_0 = arith.constant 0 : index
    %0 = vector.load %arg1[%c0, %c0_0] : memref<32x1152xbf16, #tpu.memory_space<vmem>>, vector<32x1152xbf16>
    %c0_1 = arith.constant 0 : index
    %c0_2 = arith.constant 0 : index
    %1 = vector.load %arg2[%c0_1, %c0_2] : memref<1152x128xbf16, #tpu.memory_space<vmem>>, vector<1152x128xbf16>
    %cst = arith.constant dense<0.000000e+00> : vector<32x128xf32>
    %2 = tpu.matmul %0, %1, %cst {dimension_numbers = #tpu.dot_dimension_numbers<[1], [0], [0], [1], [0, 0, 1, 1], [], []>} : vector<32x1152xbf16>, vector<1152x128xbf16>, vector<32x128xf32> -> vector<32x128xf32>
    %c0_3 = arith.constant 0 : index
    %c0_4 = arith.constant 0 : index
    %3 = vector.load %arg3[%c0_3, %c0_4] : memref<1x128xf32, #tpu.memory_space<vmem>>, vector<1x128xf32>
    %4 = vector.broadcast %3 : vector<1x128xf32> to vector<32x128xf32>
    %5 = arith.addf %2, %4 : vector<32x128xf32>
    %cst_5 = arith.constant 5.000000e-01 : f32
    %6 = vector.broadcast %cst_5 : f32 to vector<32x128xf32>
    %7 = arith.mulf %6, %5 : vector<32x128xf32>
    %cst_6 = arith.constant 0.707106769 : f32
    %8 = vector.broadcast %cst_6 : f32 to vector<32x128xf32>
    %9 = arith.mulf %5, %8 : vector<32x128xf32>
    %10 = math.erf %9 : vector<32x128xf32>
    %cst_7 = arith.constant 1.000000e+00 : f32
    %11 = vector.broadcast %cst_7 : f32 to vector<32x128xf32>
    %12 = arith.addf %11, %10 : vector<32x128xf32>
    %13 = arith.mulf %7, %12 : vector<32x128xf32>
    %14 = arith.truncf %13 : vector<32x128xf32> to vector<32x128xbf16>
    %c0_8 = arith.constant 0 : index
    %c0_9 = arith.constant 0 : index
    %15 = vector.load %arg4[%c0_8, %c0_9] : memref<32x128xbf16, #tpu.memory_space<vmem>>, vector<32x128xbf16>
    tpu.vector_store %arg4[%c0_8, %c0_9], %14 {strides = array<i32>} : memref<32x128xbf16, #tpu.memory_space<vmem>>, vector<32x128xbf16>,
    return
  }
  func.func @transform_0(%arg0: i32) -> (i32, i32) {
    %c0_i32 = arith.constant 0 : i32
    %c0_i32_0 = arith.constant 0 : i32
    return %arg0, %c0_i32 : i32, i32
  }
  func.func @transform_1(%arg0: i32) -> (i32, i32) {
    %c0_i32 = arith.constant 0 : i32
    %c0_i32_0 = arith.constant 0 : i32
    %c0_i32_1 = arith.constant 0 : i32
    return %c0_i32, %c0_i32_0 : i32, i32
  }
  func.func @transform_2(%arg0: i32) -> (i32, i32) {
    %c0_i32 = arith.constant 0 : i32
    %c0_i32_0 = arith.constant 0 : i32
    %c0_i32_1 = arith.constant 0 : i32
    return %c0_i32, %c0_i32_0 : i32, i32
  }
  func.func @transform_3(%arg0: i32) -> (i32, i32) {
    %c0_i32 = arith.constant 0 : i32
    %c0_i32_0 = arith.constant 0 : i32
    return %arg0, %c0_i32 : i32, i32
  }
}

module attributes {stable_mosaic.version = 11 : i64} {
  func.func @_fused_linear_kernel(%arg0: i32, %arg1: memref<2x2048xbf16, #tpu.memory_space<vmem>>, %arg2: memref<2048x64xbf16, #tpu.memory_space<vmem>>, %arg3: memref<1x64xf32, #tpu.memory_space<vmem>>, %arg4: memref<64x2048xbf16, #tpu.memory_space<vmem>>, %arg5: memref<1x2048xf32, #tpu.memory_space<vmem>>, %arg6: memref<2x64xf32, #tpu.memory_space<vmem>>, %arg7: memref<2x2048xbf16, #tpu.memory_space<vmem>>) attributes {dimension_semantics = [#tpu.dimension_semantics<arbitrary>], iteration_bounds = array<i64: 1>, scalar_prefetch = 0 : i64, scratch_operands = 0 : i64, tpu.core_type = #tpu.core_type<tc>, window_params = [{pipeline_mode = #tpu.pipeline_mode<synchronous>, transform_indices = @transform_0, window_bounds = array<i64: 2, 2048>}, {pipeline_mode = #tpu.pipeline_mode<synchronous>, transform_indices = @transform_1, window_bounds = array<i64: 2048, 64>}, {pipeline_mode = #tpu.pipeline_mode<synchronous>, transform_indices = @transform_2, window_bounds = array<i64: 1, 64>}, {pipeline_mode = #tpu.pipeline_mode<synchronous>, transform_indices = @transform_3, window_bounds = array<i64: 64, 2048>}, {pipeline_mode = #tpu.pipeline_mode<synchronous>, transform_indices = @transform_4, window_bounds = array<i64: 1, 2048>}, {pipeline_mode = #tpu.pipeline_mode<synchronous>, transform_indices = @transform_5, window_bounds = array<i64: 2, 64>}, {pipeline_mode = #tpu.pipeline_mode<synchronous>, transform_indices = @transform_6, window_bounds = array<i64: 2, 2048>}]} {
    %c0 = arith.constant 0 : index
    %c0_0 = arith.constant 0 : index
    %0 = vector.load %arg1[%c0, %c0_0] : memref<2x2048xbf16, #tpu.memory_space<vmem>>, vector<2x2048xbf16>
    %c0_1 = arith.constant 0 : index
    %c0_2 = arith.constant 0 : index
    %1 = vector.load %arg2[%c0_1, %c0_2] : memref<2048x64xbf16, #tpu.memory_space<vmem>>, vector<2048x64xbf16>
    %cst = arith.constant dense<0.000000e+00> : vector<2x64xf32>
    %2 = tpu.matmul %0, %1, %cst {dimension_numbers = #tpu.dot_dimension_numbers<[1], [0], [0], [1], [0, 0, 1, 1], [], []>} : vector<2x2048xbf16>, vector<2048x64xbf16>, vector<2x64xf32> -> vector<2x64xf32>
    %c0_3 = arith.constant 0 : index
    %c0_4 = arith.constant 0 : index
    %3 = vector.load %arg3[%c0_3, %c0_4] : memref<1x64xf32, #tpu.memory_space<vmem>>, vector<1x64xf32>
    %4 = vector.broadcast %3 : vector<1x64xf32> to vector<2x64xf32>
    %5 = arith.addf %2, %4 : vector<2x64xf32>
    %c0_5 = arith.constant 0 : index
    %c0_6 = arith.constant 0 : index
    %6 = vector.load %arg6[%c0_5, %c0_6] : memref<2x64xf32, #tpu.memory_space<vmem>>, vector<2x64xf32>
    tpu.vector_store %arg6[%c0_5, %c0_6], %5 {strides = array<i32>} : memref<2x64xf32, #tpu.memory_space<vmem>>, vector<2x64xf32>,
    %7 = arith.truncf %5 : vector<2x64xf32> to vector<2x64xbf16>
    %c0_7 = arith.constant 0 : index
    %c0_8 = arith.constant 0 : index
    %8 = vector.load %arg4[%c0_7, %c0_8] : memref<64x2048xbf16, #tpu.memory_space<vmem>>, vector<64x2048xbf16>
    %cst_9 = arith.constant dense<0.000000e+00> : vector<2x2048xf32>
    %9 = tpu.matmul %7, %8, %cst_9 {dimension_numbers = #tpu.dot_dimension_numbers<[1], [0], [0], [1], [0, 0, 1, 1], [], []>} : vector<2x64xbf16>, vector<64x2048xbf16>, vector<2x2048xf32> -> vector<2x2048xf32>
    %c0_10 = arith.constant 0 : index
    %c0_11 = arith.constant 0 : index
    %10 = vector.load %arg5[%c0_10, %c0_11] : memref<1x2048xf32, #tpu.memory_space<vmem>>, vector<1x2048xf32>
    %11 = vector.broadcast %10 : vector<1x2048xf32> to vector<2x2048xf32>
    %12 = arith.addf %9, %11 : vector<2x2048xf32>
    %cst_12 = arith.constant 5.000000e-01 : f32
    %13 = vector.broadcast %cst_12 : f32 to vector<2x2048xf32>
    %14 = arith.mulf %13, %12 : vector<2x2048xf32>
    %cst_13 = arith.constant 0.707106769 : f32
    %15 = vector.broadcast %cst_13 : f32 to vector<2x2048xf32>
    %16 = arith.mulf %12, %15 : vector<2x2048xf32>
    %17 = math.erf %16 : vector<2x2048xf32>
    %cst_14 = arith.constant 1.000000e+00 : f32
    %18 = vector.broadcast %cst_14 : f32 to vector<2x2048xf32>
    %19 = arith.addf %18, %17 : vector<2x2048xf32>
    %20 = arith.mulf %14, %19 : vector<2x2048xf32>
    %21 = arith.truncf %20 : vector<2x2048xf32> to vector<2x2048xbf16>
    %c0_15 = arith.constant 0 : index
    %c0_16 = arith.constant 0 : index
    %22 = vector.load %arg7[%c0_15, %c0_16] : memref<2x2048xbf16, #tpu.memory_space<vmem>>, vector<2x2048xbf16>
    tpu.vector_store %arg7[%c0_15, %c0_16], %21 {strides = array<i32>} : memref<2x2048xbf16, #tpu.memory_space<vmem>>, vector<2x2048xbf16>,
    return
  }
  func.func @transform_0(%arg0: i32) -> (i32, i32) {
    %c0_i32 = arith.constant 0 : i32
    %c0_i32_0 = arith.constant 0 : i32
    %c0_i32_1 = arith.constant 0 : i32
    return %c0_i32, %c0_i32_0 : i32, i32
  }
  func.func @transform_1(%arg0: i32) -> (i32, i32) {
    %c0_i32 = arith.constant 0 : i32
    %c0_i32_0 = arith.constant 0 : i32
    %c0_i32_1 = arith.constant 0 : i32
    return %c0_i32, %c0_i32_0 : i32, i32
  }
  func.func @transform_2(%arg0: i32) -> (i32, i32) {
    %c0_i32 = arith.constant 0 : i32
    %c0_i32_0 = arith.constant 0 : i32
    %c0_i32_1 = arith.constant 0 : i32
    return %c0_i32, %c0_i32_0 : i32, i32
  }
  func.func @transform_3(%arg0: i32) -> (i32, i32) {
    %c0_i32 = arith.constant 0 : i32
    %c0_i32_0 = arith.constant 0 : i32
    %c0_i32_1 = arith.constant 0 : i32
    return %c0_i32, %c0_i32_0 : i32, i32
  }
  func.func @transform_4(%arg0: i32) -> (i32, i32) {
    %c0_i32 = arith.constant 0 : i32
    %c0_i32_0 = arith.constant 0 : i32
    %c0_i32_1 = arith.constant 0 : i32
    return %c0_i32, %c0_i32_0 : i32, i32
  }
  func.func @transform_5(%arg0: i32) -> (i32, i32) {
    %c0_i32 = arith.constant 0 : i32
    %c0_i32_0 = arith.constant 0 : i32
    %c0_i32_1 = arith.constant 0 : i32
    return %c0_i32, %c0_i32_0 : i32, i32
  }
  func.func @transform_6(%arg0: i32) -> (i32, i32) {
    %c0_i32 = arith.constant 0 : i32
    %c0_i32_0 = arith.constant 0 : i32
    %c0_i32_1 = arith.constant 0 : i32
    return %c0_i32, %c0_i32_0 : i32, i32
  }
}

module attributes {stable_mosaic.version = 11 : i64} {
  func.func @_mm_bias_act_kernel(%arg0: i32, %arg1: memref<392x1152xbf16, #tpu.memory_space<vmem>>, %arg2: memref<1152x64xbf16, #tpu.memory_space<vmem>>, %arg3: memref<1x64xf32, #tpu.memory_space<vmem>>, %arg4: memref<392x64xbf16, #tpu.memory_space<vmem>>) attributes {dimension_semantics = [#tpu.dimension_semantics<parallel>], iteration_bounds = array<i64: 1>, scalar_prefetch = 0 : i64, scratch_operands = 0 : i64, tpu.core_type = #tpu.core_type<tc>, window_params = [{transform_indices = @transform_0, window_bounds = array<i64: 392, 1152>}, {pipeline_mode = #tpu.pipeline_mode<synchronous>, transform_indices = @transform_1, window_bounds = array<i64: 1152, 64>}, {pipeline_mode = #tpu.pipeline_mode<synchronous>, transform_indices = @transform_2, window_bounds = array<i64: 1, 64>}, {transform_indices = @transform_3, window_bounds = array<i64: 392, 64>}]} {
    %c0 = arith.constant 0 : index
    %c0_0 = arith.constant 0 : index
    %0 = vector.load %arg1[%c0, %c0_0] : memref<392x1152xbf16, #tpu.memory_space<vmem>>, vector<392x1152xbf16>
    %c0_1 = arith.constant 0 : index
    %c0_2 = arith.constant 0 : index
    %1 = vector.load %arg2[%c0_1, %c0_2] : memref<1152x64xbf16, #tpu.memory_space<vmem>>, vector<1152x64xbf16>
    %cst = arith.constant dense<0.000000e+00> : vector<392x64xf32>
    %2 = tpu.matmul %0, %1, %cst {dimension_numbers = #tpu.dot_dimension_numbers<[1], [0], [0], [1], [0, 0, 1, 1], [], []>} : vector<392x1152xbf16>, vector<1152x64xbf16>, vector<392x64xf32> -> vector<392x64xf32>
    %c0_3 = arith.constant 0 : index
    %c0_4 = arith.constant 0 : index
    %3 = vector.load %arg3[%c0_3, %c0_4] : memref<1x64xf32, #tpu.memory_space<vmem>>, vector<1x64xf32>
    %4 = vector.broadcast %3 : vector<1x64xf32> to vector<392x64xf32>
    %5 = arith.addf %2, %4 : vector<392x64xf32>
    %cst_5 = arith.constant 5.000000e-01 : f32
    %6 = vector.broadcast %cst_5 : f32 to vector<392x64xf32>
    %7 = arith.mulf %6, %5 : vector<392x64xf32>
    %cst_6 = arith.constant 0.707106769 : f32
    %8 = vector.broadcast %cst_6 : f32 to vector<392x64xf32>
    %9 = arith.mulf %5, %8 : vector<392x64xf32>
    %10 = math.erf %9 : vector<392x64xf32>
    %cst_7 = arith.constant 1.000000e+00 : f32
    %11 = vector.broadcast %cst_7 : f32 to vector<392x64xf32>
    %12 = arith.addf %11, %10 : vector<392x64xf32>
    %13 = arith.mulf %7, %12 : vector<392x64xf32>
    %14 = arith.truncf %13 : vector<392x64xf32> to vector<392x64xbf16>
    %c0_8 = arith.constant 0 : index
    %c0_9 = arith.constant 0 : index
    %15 = vector.load %arg4[%c0_8, %c0_9] : memref<392x64xbf16, #tpu.memory_space<vmem>>, vector<392x64xbf16>
    tpu.vector_store %arg4[%c0_8, %c0_9], %14 {strides = array<i32>} : memref<392x64xbf16, #tpu.memory_space<vmem>>, vector<392x64xbf16>,
    return
  }
  func.func @transform_0(%arg0: i32) -> (i32, i32) {
    %c0_i32 = arith.constant 0 : i32
    %c0_i32_0 = arith.constant 0 : i32
    return %arg0, %c0_i32 : i32, i32
  }
  func.func @transform_1(%arg0: i32) -> (i32, i32) {
    %c0_i32 = arith.constant 0 : i32
    %c0_i32_0 = arith.constant 0 : i32
    %c0_i32_1 = arith.constant 0 : i32
    return %c0_i32, %c0_i32_0 : i32, i32
  }
  func.func @transform_2(%arg0: i32) -> (i32, i32) {
    %c0_i32 = arith.constant 0 : i32
    %c0_i32_0 = arith.constant 0 : i32
    %c0_i32_1 = arith.constant 0 : i32
    return %c0_i32, %c0_i32_0 : i32, i32
  }
  func.func @transform_3(%arg0: i32) -> (i32, i32) {
    %c0_i32 = arith.constant 0 : i32
    %c0_i32_0 = arith.constant 0 : i32
    return %arg0, %c0_i32 : i32, i32
  }
}

module attributes {stable_mosaic.version = 11 : i64} {
  func.func @_mm_bias_act_kernel(%arg0: i32, %arg1: memref<784x576xbf16, #tpu.memory_space<vmem>>, %arg2: memref<576x1xbf16, #tpu.memory_space<vmem>>, %arg3: memref<1x1xf32, #tpu.memory_space<vmem>>, %arg4: memref<784x1xf32, #tpu.memory_space<vmem>>) attributes {dimension_semantics = [#tpu.dimension_semantics<parallel>], iteration_bounds = array<i64: 2>, scalar_prefetch = 0 : i64, scratch_operands = 0 : i64, tpu.core_type = #tpu.core_type<tc>, window_params = [{transform_indices = @transform_0, window_bounds = array<i64: 784, 576>}, {pipeline_mode = #tpu.pipeline_mode<synchronous>, transform_indices = @transform_1, window_bounds = array<i64: 576, 1>}, {pipeline_mode = #tpu.pipeline_mode<synchronous>, transform_indices = @transform_2, window_bounds = array<i64: 1, 1>}, {transform_indices = @transform_3, window_bounds = array<i64: 784, 1>}]} {
    %c0 = arith.constant 0 : index
    %c0_0 = arith.constant 0 : index
    %0 = vector.load %arg1[%c0, %c0_0] : memref<784x576xbf16, #tpu.memory_space<vmem>>, vector<784x576xbf16>
    %c0_1 = arith.constant 0 : index
    %c0_2 = arith.constant 0 : index
    %1 = vector.load %arg2[%c0_1, %c0_2] : memref<576x1xbf16, #tpu.memory_space<vmem>>, vector<576x1xbf16>
    %cst = arith.constant dense<0.000000e+00> : vector<784x1xf32>
    %2 = tpu.matmul %0, %1, %cst {dimension_numbers = #tpu.dot_dimension_numbers<[1], [0], [0], [1], [0, 0, 1, 1], [], []>} : vector<784x576xbf16>, vector<576x1xbf16>, vector<784x1xf32> -> vector<784x1xf32>
    %c0_3 = arith.constant 0 : index
    %c0_4 = arith.constant 0 : index
    %3 = vector.load %arg3[%c0_3, %c0_4] : memref<1x1xf32, #tpu.memory_space<vmem>>, vector<1x1xf32>
    %4 = vector.broadcast %3 : vector<1x1xf32> to vector<784x1xf32>
    %5 = arith.addf %2, %4 : vector<784x1xf32>
    %6 = math.tanh %5 : vector<784x1xf32>
    %c0_5 = arith.constant 0 : index
    %c0_6 = arith.constant 0 : index
    %7 = vector.load %arg4[%c0_5, %c0_6] : memref<784x1xf32, #tpu.memory_space<vmem>>, vector<784x1xf32>
    tpu.vector_store %arg4[%c0_5, %c0_6], %6 {strides = array<i32>} : memref<784x1xf32, #tpu.memory_space<vmem>>, vector<784x1xf32>,
    return
  }
  func.func @transform_0(%arg0: i32) -> (i32, i32) {
    %c0_i32 = arith.constant 0 : i32
    %c0_i32_0 = arith.constant 0 : i32
    return %arg0, %c0_i32 : i32, i32
  }
  func.func @transform_1(%arg0: i32) -> (i32, i32) {
    %c0_i32 = arith.constant 0 : i32
    %c0_i32_0 = arith.constant 0 : i32
    %c0_i32_1 = arith.constant 0 : i32
    return %c0_i32, %c0_i32_0 : i32, i32
  }
  func.func @transform_2(%arg0: i32) -> (i32, i32) {
    %c0_i32 = arith.constant 0 : i32
    %c0_i32_0 = arith.constant 0 : i32
    %c0_i32_1 = arith.constant 0 : i32
    return %c0_i32, %c0_i32_0 : i32, i32
  }
  func.func @transform_3(%arg0: i32) -> (i32, i32) {
    %c0_i32 = arith.constant 0 : i32
    %c0_i32_0 = arith.constant 0 : i32
    return %arg0, %c0_i32 : i32, i32
  }
}

</mosaic_0001>

<bundles_post_ra>
// kernel: cae_forward.11
= control target key start
LH: loop header
LB: loop body
LE: loop exit
PB: predicated region body
PF: predicated region fallthrough
CT: control target
= control target key end

     0   :  { %vm277_vm0 = vcmask 1043456   ;;  %vm278_vm1 = vcmask 1044480   ;;  %v1419_v0 = vmov 0.0   ;;  %v1420_v2 = vmov 65535   ;;  %s2011_s1 = inlined_call_operand.vmem [shape: bf16[9,64], index: 1, kind: input, shape index: {}]   ;;  %s2012_s0 = inlined_call_operand.vmem [shape: bf16[392,9], index: 0, kind: input, shape index: {}]   ;;  %s2013_s2 = inlined_call_operand.vmem [shape: f32[1,64], index: 2, kind: input, shape index: {}]   ;;  %s2014_s3 = inlined_call_operand.vmem [shape: bf16[392,64], index: 3, kind: output, shape index: {}]  }
   0x1   :  { %1188 = vmatprep.subr.bf16.mxu0 %v1419_v0  ;;  %1290 = vmatprep.subr.bf16.mxu1 %v1419_v0  ;;  %v1295_v1 = vld [vmem:[%s2011_s1] sm:$0x1f]   ;;  %v279_v3 = vsel %vm277_vm0, 4294967295, %v1420_v2  ;;  %vm1421_vm2 = vmmov 0   ;;  %v1297_v7 = vld [vmem:[%s2012_s0 + $0x68] sm:$0xff]   ;;  %vm201_vm3 = vcmask 72704  }
   0x2   :  { %v280_v4 = vsel %vm278_vm1, %v279_v3, 0  ;;  %1190 = vmatprep.mubr.msk.bf16.mxu0 %vm1421_vm2, %v1419_v0  ;;  %1242 = vmatprep.mubr.msk.bf16.mxu1 %vm1421_vm2, %v1419_v0  ;;  %v1296_v5 = vld [vmem:[%s2012_s0] sm:$0xff]   ;;  %v1298_v8 = vld [vmem:[%s2012_s0 + $0x8] sm:$0xff]   ;;  %v1299_v9 = vld [vmem:[%s2012_s0 + $0x70] sm:$0xff]   ;;  %vm958_vm4 = vcmask 519168  }
   0x3   :  { %v282_v6 = vand.u32 %v1295_v1, %v280_v4  ;;  %v1300_v10 = vld [vmem:[%s2012_s0 + $0x10] sm:$0xff]   ;;  %v1301_v11 = vld [vmem:[%s2012_s0 + $0x78] sm:$0xff]   ;;  %v1303_v13 = vld [vmem:[%s2012_s0 + $0x80] sm:$0xff]  }
   0x4   :  { %v1302_v12 = vld [vmem:[%s2012_s0 + $0x18] sm:$0xff]   ;;  %v1304_v14 = vld [vmem:[%s2012_s0 + $0x20] sm:$0xff]   ;;  %v1305_v15 = vld [vmem:[%s2012_s0 + $0x88] sm:$0xff]  }
   0x5   :  { %1189 = vmatpush3.bf16.msra.mxu0 %v282_v6  ;;  %1291 = vmatpush3.bf16.msra.mxu1 %v282_v6  ;;  %v1306_v16 = vld [vmem:[%s2012_s0 + $0x28] sm:$0xff]   ;;  %v1307_v17 = vld [vmem:[%s2012_s0 + $0x90] sm:$0xff]   ;;  %v1309_v19 = vld [vmem:[%s2012_s0 + $0x98] sm:$0xff]  }
   0x6   :  { %v1308_v18 = vld [vmem:[%s2012_s0 + $0x30] sm:$0xff]   ;;  %v1310_v20 = vld [vmem:[%s2012_s0 + $0x38] sm:$0xff]   ;;  %v1311_v21 = vld [vmem:[%s2012_s0 + $0xa0] sm:$0xff]  }
   0x7   :  { %v1312_v22 = vld [vmem:[%s2012_s0 + $0x40] sm:$0xff]   ;;  %v1313_v23 = vld [vmem:[%s2012_s0 + $0xa8] sm:$0xff]   ;;  %v1315_v25 = vld [vmem:[%s2012_s0 + $0xb0] sm:$0xff]  }
   0x8   :  { %1191 = vmatmul.mubr.msk.bf16.vlgmr.msra.gmra.mrb[0].mxu0 %vm201_vm3, %v1296_v5  ;;  %1243 = vmatmul.mubr.msk.bf16.vlgmr.msra.gmra.mrb[0].mxu1 %vm201_vm3, %v1297_v7  ;;  %v1314_v24 = vld [vmem:[%s2012_s0 + $0x48] sm:$0xff]   ;;  %v1316_v26 = vld [vmem:[%s2012_s0 + $0x50] sm:$0xff]   ;;  %v1317_v27 = vld [vmem:[%s2012_s0 + $0xb8] sm:$0xff]  }
   0x9   :  { %1194 = vmatprep.mubr.msk.bf16.mxu0 %vm1421_vm2, %v1419_v0  ;;  %1246 = vmatprep.mubr.msk.bf16.mxu1 %vm1421_vm2, %v1419_v0  ;;  %v1318_v28 = vld [vmem:[%s2012_s0 + $0x58] sm:$0xff]   ;;  %v1319_v29 = vld [vmem:[%s2012_s0 + $0xc0] ss:$0 sps:$4 sm:$0xff]  }
   0xa   :  { %v1320_v30 = vld [vmem:[%s2012_s0 + $0x60] sm:$0xff]  }
   0xb   :  { %v1600_v31 = vld [vmem:[%s2013_s2] ss:$0 sm:$0xff] }
  0x10   :  { %1195 = vmatmul.mubr.msk.bf16.gmra.mrb[4].mxu0 %vm201_vm3, %v1298_v8  ;;  %1247 = vmatmul.mubr.msk.bf16.gmra.mrb[4].mxu1 %vm201_vm3, %v1299_v9 }
  0x11   :  { %1198 = vmatprep.mubr.msk.bf16.mxu0 %vm1421_vm2, %v1419_v0  ;;  %1250 = vmatprep.mubr.msk.bf16.mxu1 %vm1421_vm2, %v1419_v0 }
  0x18   :  { %1199 = vmatmul.mubr.msk.bf16.gmra.mrb[8].mxu0 %vm201_vm3, %v1300_v10  ;;  %1251 = vmatmul.mubr.msk.bf16.gmra.mrb[8].mxu1 %vm201_vm3, %v1301_v11 }
  0x19   :  { %1202 = vmatprep.mubr.msk.bf16.mxu0 %vm1421_vm2, %v1419_v0  ;;  %1254 = vmatprep.mubr.msk.bf16.mxu1 %vm1421_vm2, %v1419_v0 }
  0x20   :  { %1203 = vmatmul.mubr.msk.bf16.gmra.mrb[12].mxu0 %vm201_vm3, %v1302_v12  ;;  %1255 = vmatmul.mubr.msk.bf16.gmra.mrb[12].mxu1 %vm201_vm3, %v1303_v13 }
  0x21   :  { %1206 = vmatprep.mubr.msk.bf16.mxu0 %vm1421_vm2, %v1419_v0  ;;  %1258 = vmatprep.mubr.msk.bf16.mxu1 %vm1421_vm2, %v1419_v0 }
  0x28   :  { %1207 = vmatmul.mubr.msk.bf16.gmra.mrb[16].mxu0 %vm201_vm3, %v1304_v14  ;;  %1259 = vmatmul.mubr.msk.bf16.gmra.mrb[16].mxu1 %vm201_vm3, %v1305_v15 }
  0x29   :  { %1210 = vmatprep.mubr.msk.bf16.mxu0 %vm1421_vm2, %v1419_v0  ;;  %1262 = vmatprep.mubr.msk.bf16.mxu1 %vm1421_vm2, %v1419_v0 }
  0x30   :  { %1211 = vmatmul.mubr.msk.bf16.gmra.mrb[20].mxu0 %vm201_vm3, %v1306_v16  ;;  %1263 = vmatmul.mubr.msk.bf16.gmra.mrb[20].mxu1 %vm201_vm3, %v1307_v17 }
  0x31   :  { %1214 = vmatprep.mubr.msk.bf16.mxu0 %vm1421_vm2, %v1419_v0  ;;  %1266 = vmatprep.mubr.msk.bf16.mxu1 %vm1421_vm2, %v1419_v0 }
  0x38   :  { %1215 = vmatmul.mubr.msk.bf16.gmra.mrb[24].mxu0 %vm201_vm3, %v1308_v18  ;;  %1267 = vmatmul.mubr.msk.bf16.gmra.mrb[24].mxu1 %vm201_vm3, %v1309_v19 }
  0x39   :  { %1218 = vmatprep.mubr.msk.bf16.mxu0 %vm1421_vm2, %v1419_v0  ;;  %1270 = vmatprep.mubr.msk.bf16.mxu1 %vm1421_vm2, %v1419_v0 }
  0x40   :  { %1219 = vmatmul.mubr.msk.bf16.gmra.mrb[28].mxu0 %vm201_vm3, %v1310_v20  ;;  %1271 = vmatmul.mubr.msk.bf16.gmra.mrb[28].mxu1 %vm201_vm3, %v1311_v21 }
  0x41   :  { %1222 = vmatprep.mubr.msk.bf16.mxu0 %vm1421_vm2, %v1419_v0  ;;  %1274 = vmatprep.mubr.msk.bf16.mxu1 %vm1421_vm2, %v1419_v0 }
  0x48   :  { %1223 = vmatmul.mubr.msk.bf16.gmra.mrb[32].mxu0 %vm201_vm3, %v1312_v22  ;;  %1275 = vmatmul.mubr.msk.bf16.gmra.mrb[32].mxu1 %vm201_vm3, %v1313_v23 }
  0x49   :  { %1226 = vmatprep.mubr.msk.bf16.mxu0 %vm1421_vm2, %v1419_v0  ;;  %1278 = vmatprep.mubr.msk.bf16.mxu1 %vm1421_vm2, %v1419_v0 }
  0x50   :  { %1227 = vmatmul.mubr.msk.bf16.gmra.mrb[36].mxu0 %vm201_vm3, %v1314_v24  ;;  %1279 = vmatmul.mubr.msk.bf16.gmra.mrb[36].mxu1 %vm201_vm3, %v1315_v25 }
  0x51   :  { %1230 = vmatprep.mubr.msk.bf16.mxu0 %vm1421_vm2, %v1419_v0  ;;  %1282 = vmatprep.mubr.msk.bf16.mxu1 %vm1421_vm2, %v1419_v0 }
  0x58   :  { %1231 = vmatmul.mubr.msk.bf16.gmra.mrb[40].mxu0 %vm201_vm3, %v1316_v26  ;;  %1283 = vmatmul.mubr.msk.bf16.gmra.mrb[40].mxu1 %vm201_vm3, %v1317_v27 }
  0x59   :  { %1234 = vmatprep.mubr.msk.bf16.mxu0 %vm1421_vm2, %v1419_v0  ;;  %1286 = vmatprep.mubr.msk.bf16.mxu1 %vm1421_vm2, %v1419_v0 }
  0x60   :  { %1235 = vmatmul.mubr.msk.bf16.gmra.mrb[44].mxu0 %vm201_vm3, %v1318_v28  ;;  %1287 = vmatmul.mubr.msk.bf16.gmra.mrb[44].mxu1 %vm201_vm3, %v1319_v29 }
  0x61   :  { %1238 = vmatprep.mubr.msk.bf16.mxu0 %vm1421_vm2, %v1419_v0 }
  0x68   :  { %1239 = vmatmul.mubr.msk.bf16.gmra.mrb[48].mxu0 %vm201_vm3, %v1320_v30 }
  0xdb   :  { %v318_v32 = vpop.f32.mrb[0].mxu0  ;;  %v422_v33 = vpop.f32.mrb[0].mxu1 }
  0xdc   :  { %v319_v34 = vadd.f32 %v1600_v31, %v318_v32  ;;  %v423_v35 = vadd.f32 %v1600_v31, %v422_v33  ;;  %v1192_v36 = vpop.f32.mrb[1].mxu0  ;;  %v1244_v37 = vpop.f32.mrb[1].mxu1 }
  0xdd   :  { %v321_v38 = vpop.f32.mrb[2].mxu0  ;;  %v425_v39 = vpop.f32.mrb[2].mxu1 }
  0xde   :  { %v565_v40 = vmul.f32 0.70710677, %v319_v34  ;;  %v591_v41 = vmul.f32 0.70710677, %v423_v35  ;;  %v322_v42 = vadd.f32 %v1600_v31, %v321_v38  ;;  %v426_v43 = vadd.f32 %v1600_v31, %v425_v39  ;;  %v1193_v44 = vpop.f32.mrb[3].mxu0  ;;  %v1245_v45 = vpop.f32.mrb[3].mxu1 }
  0xdf   :  { %v516_v2 = vmul.f32 0.5, %v319_v34  ;;  %v542_v4 = vmul.f32 0.5, %v423_v35 }
  0xe0   :  { %1321 = verf.f32 %v565_v40  ;;  %v566_v46 = vmul.f32 0.70710677, %v322_v42  ;;  %v592_v47 = vmul.f32 0.70710677, %v426_v43  ;;  %v517_v18 = vmul.f32 0.5, %v322_v42 }
  0xe1   :  { %1323 = verf.f32 %v591_v41  ;;  %v543_v24 = vmul.f32 0.5, %v426_v43 }
  0xe2   :  { %1325 = verf.f32 %v566_v46 }
  0xe3   :  { %v326_v48 = vpop.f32.mrb[4].mxu0  ;;  %v430_v49 = vpop.f32.mrb[4].mxu1  ;;  %1327 = verf.f32 %v592_v47 }
  0xe4   :  { %v327_v50 = vadd.f32 %v1600_v31, %v326_v48  ;;  %v431_v51 = vadd.f32 %v1600_v31, %v430_v49  ;;  %v1196_v52 = vpop.f32.mrb[5].mxu0  ;;  %v1248_v53 = vpop.f32.mrb[5].mxu1 }
  0xe5   :  { %v329_v54 = vpop.f32.mrb[6].mxu0  ;;  %v433_v55 = vpop.f32.mrb[6].mxu1 }
  0xe6   :  { %v567_v56 = vmul.f32 0.70710677, %v327_v50  ;;  %v593_v57 = vmul.f32 0.70710677, %v431_v51  ;;  %v1609_v58 = vadd.f32 %v1600_v31, %v329_v54  ;;  %v1612_v59 = vadd.f32 %v1600_v31, %v433_v55  ;;  %v1197_v60 = vpop.f32.mrb[7].mxu0  ;;  %v1249_v61 = vpop.f32.mrb[7].mxu1 }
  0xe7   :  { %v518_v35 = vmul.f32 0.5, %v327_v50  ;;  %v544_v40 = vmul.f32 0.5, %v431_v51 }
  0xe8   :  { %1329 = verf.f32 %v567_v56  ;;  %v568_v62 = vmul.f32 0.70710677, %v1609_v58  ;;  %v594_v0 = vmul.f32 0.70710677, %v1612_v59  ;;  %v519_v55 = vmul.f32 0.5, %v1609_v58 }
  0xe9   :  { %1331 = verf.f32 %v593_v57 }
  0xea   :  { %v1322_v63 = vpop.eup %1321  ;;  %1333 = verf.f32 %v568_v62 }
  0xeb   :  { %v1324_v1 = vpop.eup %1323  ;;  %v663_v3 = vadd.f32 1.0, %v1322_v63  ;;  %v334_v5 = vpop.f32.mrb[8].mxu0  ;;  %1335 = verf.f32 %v594_v0  ;;  %v545_v63 = vmul.f32 0.5, %v1612_v59 }
  0xec   :  { %v438_v6 = vpop.f32.mrb[8].mxu1  ;;  %v689_v7 = vadd.f32 1.0, %v1324_v1  ;;  %v1617_v8 = vadd.f32 %v1600_v31, %v334_v5  ;;  %v1200_v10 = vpop.f32.mrb[9].mxu0 }
  0xed   :  { %v1620_v9 = vadd.f32 %v1600_v31, %v438_v6  ;;  %v1252_v11 = vpop.f32.mrb[9].mxu1  ;;  %v1326_v12 = vpop.eup %1325  ;;  %v712_v13 = vmul.f32 %v663_v3, %v516_v2 }
  0xee   :  { %v337_v14 = vpop.f32.mrb[10].mxu0  ;;  %v441_v15 = vpop.f32.mrb[10].mxu1  ;;  %v738_v17 = vmul.f32 %v689_v7, %v542_v4  ;;  %v664_v19 = vadd.f32 1.0, %v1326_v12  ;;  %v569_v20 = vmul.f32 0.70710677, %v1617_v8  ;;  %v520_v7 = vmul.f32 0.5, %v1617_v8 }
  0xef   :  { %v1328_v16 = vpop.eup %1327  ;;  %v1201_v21 = vpop.f32.mrb[11].mxu0  ;;  %v1113_v23 = vpack.c.bf16 %v712_v13, %v712_v13  ;;  %v595_v26 = vmul.f32 0.70710677, %v1620_v9  ;;  %v1625_v29 = vadd.f32 %v1600_v31, %v337_v14  ;;  %v1632_v32 = vadd.f32 %v1600_v31, %v441_v15 }
  0xf0   :  { %v1253_v22 = vpop.f32.mrb[11].mxu1  ;;  %v690_v25 = vadd.f32 1.0, %v1328_v16  ;;  %v1139_v27 = vpack.c.bf16 %v738_v17, %v738_v17  ;;  %v713_v28 = vmul.f32 %v664_v19, %v517_v18  ;;  %1337 = verf.f32 %v569_v20 }
  0xf1   :  { %959 = vst.msk [vmem:[%s2014_s3] sm:$0xf] %vm958_vm4, %v1113_v23  ;;  %1339 = verf.f32 %v595_v26  ;;  %v570_v36 = vmul.f32 0.70710677, %v1625_v29  ;;  %v596_v41 = vmul.f32 0.70710677, %v1632_v32 }
  0xf2   :  { %v739_v30 = vmul.f32 %v690_v25, %v543_v24  ;;  %v1330_v33 = vpop.eup %1329  ;;  %985 = vst.msk [vmem:[%s2014_s3 + $0x68] sm:$0xf] %vm958_vm4, %v1139_v27  ;;  %v1114_v34 = vpack.c.bf16 %v713_v28, %v713_v28  ;;  %v546_v14 = vmul.f32 0.5, %v1620_v9  ;;  %v521_v26 = vmul.f32 0.5, %v1625_v29 }
  0xf3   :  { %v1332_v37 = vpop.eup %1331  ;;  %v665_v39 = vadd.f32 1.0, %v1330_v33  ;;  %v342_v42 = vpop.f32.mrb[12].mxu0  ;;  %1341 = verf.f32 %v570_v36  ;;  %v547_v27 = vmul.f32 0.5, %v1632_v32 }
  0xf4   :  { %v1140_v38 = vpack.c.bf16 %v739_v30, %v739_v30  ;;  %v446_v43 = vpop.f32.mrb[12].mxu1  ;;  %960 = vst.msk [vmem:[%s2014_s3 + $0x4] sm:$0xf] %vm958_vm4, %v1114_v34  ;;  %v691_v44 = vadd.f32 1.0, %v1332_v37  ;;  %v1645_v45 = vadd.f32 %v1600_v31, %v342_v42  ;;  %v1204_v47 = vpop.f32.mrb[13].mxu0  ;;  %1343 = verf.f32 %v596_v41 }
  0xf5   :  { %v1648_v46 = vadd.f32 %v1600_v31, %v446_v43  ;;  %v1256_v48 = vpop.f32.mrb[13].mxu1  ;;  %v1334_v49 = vpop.eup %1333  ;;  %v714_v50 = vmul.f32 %v665_v39, %v518_v35 }
  0xf6   :  { %986 = vst.msk [vmem:[%s2014_s3 + $0x6c] sm:$0xf] %vm958_vm4, %v1140_v38  ;;  %v345_v51 = vpop.f32.mrb[14].mxu0  ;;  %v449_v52 = vpop.f32.mrb[14].mxu1  ;;  %v740_v54 = vmul.f32 %v691_v44, %v544_v40  ;;  %v666_v56 = vadd.f32 1.0, %v1334_v49  ;;  %v522_v44 = vmul.f32 0.5, %v1645_v45 }
  0xf7   :  { %v1336_v53 = vpop.eup %1335  ;;  %v571_v57 = vmul.f32 0.70710677, %v1645_v45  ;;  %v1205_v60 = vpop.f32.mrb[15].mxu0  ;;  %v1115_v62 = vpack.c.bf16 %v714_v50, %v714_v50  ;;  %v597_v1 = vmul.f32 0.70710677, %v1648_v46  ;;  %v1659_v4 = vadd.f32 %v1600_v31, %v345_v51 }
  0xf8   :  { %v1257_v61 = vpop.f32.mrb[15].mxu1  ;;  %v692_v0 = vadd.f32 1.0, %v1336_v53  ;;  %v1141_v2 = vpack.c.bf16 %v740_v54, %v740_v54  ;;  %v715_v3 = vmul.f32 %v666_v56, %v519_v55  ;;  %v1666_v5 = vadd.f32 %v1600_v31, %v449_v52 }
  0xf9   :  { %1345 = verf.f32 %v571_v57  ;;  %961 = vst.msk [vmem:[%s2014_s3 + $0x8] sm:$0xf] %vm958_vm4, %v1115_v62  ;;  %v572_v10 = vmul.f32 0.70710677, %v1659_v4  ;;  %v548_v51 = vmul.f32 0.5, %v1648_v46 }
  0xfa   :  { %v741_v58 = vmul.f32 %v692_v0, %v545_v63  ;;  %1347 = verf.f32 %v597_v1  ;;  %v1338_v59 = vpop.eup %1337  ;;  %987 = vst.msk [vmem:[%s2014_s3 + $0x70] sm:$0xf] %vm958_vm4, %v1141_v2  ;;  %v1116_v6 = vpack.c.bf16 %v715_v3, %v715_v3  ;;  %v598_v15 = vmul.f32 0.70710677, %v1666_v5 }
  0xfb   :  { %v1340_v11 = vpop.eup %1339  ;;  %v667_v13 = vadd.f32 1.0, %v1338_v59  ;;  %v350_v16 = vpop.f32.mrb[16].mxu0  ;;  %1349 = verf.f32 %v572_v10 }
  0xfc   :  { %v1142_v12 = vpack.c.bf16 %v741_v58, %v741_v58  ;;  %v454_v17 = vpop.f32.mrb[16].mxu1  ;;  %962 = vst.msk [vmem:[%s2014_s3 + $0xc] sm:$0xf] %vm958_vm4, %v1116_v6  ;;  %v693_v18 = vadd.f32 1.0, %v1340_v11  ;;  %v1681_v8 = vadd.f32 %v1600_v31, %v350_v16  ;;  %v1208_v20 = vpop.f32.mrb[17].mxu0  ;;  %1351 = verf.f32 %v598_v15 }
  0xfd   :  { %v1684_v19 = vadd.f32 %v1600_v31, %v454_v17  ;;  %v1260_v21 = vpop.f32.mrb[17].mxu1  ;;  %v716_v9 = vmul.f32 %v667_v13, %v520_v7  ;;  %v353_v22 = vpop.f32.mrb[18].mxu0  ;;  %v523_v7 = vmul.f32 0.5, %v1659_v4  ;;  %v549_v13 = vmul.f32 0.5, %v1666_v5 }
  0xfe   :  { %988 = vst.msk [vmem:[%s2014_s3 + $0x74] sm:$0xf] %vm958_vm4, %v1142_v12  ;;  %v457_v23 = vpop.f32.mrb[18].mxu1  ;;  %v1342_v24 = vpop.eup %1341  ;;  %v742_v25 = vmul.f32 %v693_v18, %v546_v14  ;;  %v573_v28 = vmul.f32 0.70710677, %v1681_v8  ;;  %v1695_v38 = vadd.f32 %v1600_v31, %v353_v22  ;;  %v524_v18 = vmul.f32 0.5, %v1681_v8 }
  0xff   :  { %v1209_v30 = vpop.f32.mrb[19].mxu0  ;;  %v1261_v33 = vpop.f32.mrb[19].mxu1  ;;  %v1117_v35 = vpack.c.bf16 %v716_v9, %v716_v9  ;;  %v668_v36 = vadd.f32 1.0, %v1342_v24  ;;  %v599_v37 = vmul.f32 0.70710677, %v1684_v19  ;;  %v1698_v41 = vadd.f32 %v1600_v31, %v457_v23 }
 0x100   :  { %v1344_v34 = vpop.eup %1343  ;;  %v1143_v39 = vpack.c.bf16 %v742_v25, %v742_v25  ;;  %1353 = verf.f32 %v573_v28  ;;  %v574_v32 = vmul.f32 0.70710677, %v1695_v38  ;;  %v550_v22 = vmul.f32 0.5, %v1684_v19 }
 0x101   :  { %v694_v40 = vadd.f32 1.0, %v1344_v34  ;;  %963 = vst.msk [vmem:[%s2014_s3 + $0x10] sm:$0xf] %vm958_vm4, %v1117_v35  ;;  %v717_v29 = vmul.f32 %v668_v36, %v521_v26  ;;  %1355 = verf.f32 %v599_v37  ;;  %v600_v47 = vmul.f32 0.70710677, %v1698_v41 }
 0x102   :  { %989 = vst.msk [vmem:[%s2014_s3 + $0x78] sm:$0xf] %vm958_vm4, %v1143_v39  ;;  %1357 = verf.f32 %v574_v32 }
 0x103   :  { %v1346_v42 = vpop.eup %1345  ;;  %v743_v43 = vmul.f32 %v694_v40, %v547_v27  ;;  %v1118_v49 = vpack.c.bf16 %v717_v29, %v717_v29  ;;  %v358_v52 = vpop.f32.mrb[20].mxu0  ;;  %1359 = verf.f32 %v600_v47  ;;  %v525_v40 = vmul.f32 0.5, %v1695_v38 }
 0x104   :  { %v1348_v48 = vpop.eup %1347  ;;  %v669_v50 = vadd.f32 1.0, %v1346_v42  ;;  %v462_v53 = vpop.f32.mrb[20].mxu1  ;;  %v1713_v56 = vadd.f32 %v1600_v31, %v358_v52 }
 0x105   :  { %v1144_v54 = vpack.c.bf16 %v743_v43, %v743_v43  ;;  %v695_v55 = vadd.f32 1.0, %v1348_v48  ;;  %v1212_v57 = vpop.f32.mrb[21].mxu0  ;;  %v1264_v60 = vpop.f32.mrb[21].mxu1  ;;  %964 = vst.msk [vmem:[%s2014_s3 + $0x14] sm:$0xf] %vm958_vm4, %v1118_v49  ;;  %v1720_v61 = vadd.f32 %v1600_v31, %v462_v53 }
 0x106   :  { %v718_v45 = vmul.f32 %v669_v50, %v522_v44  ;;  %v361_v46 = vpop.f32.mrb[22].mxu0  ;;  %v465_v62 = vpop.f32.mrb[22].mxu1  ;;  %v575_v1 = vmul.f32 0.70710677, %v1713_v56  ;;  %v551_v44 = vmul.f32 0.5, %v1698_v41 }
 0x107   :  { %v1350_v63 = vpop.eup %1349  ;;  %990 = vst.msk [vmem:[%s2014_s3 + $0x7c] sm:$0xf] %vm958_vm4, %v1144_v54  ;;  %v744_v0 = vmul.f32 %v695_v55, %v548_v51  ;;  %v1728_v2 = vadd.f32 %v1600_v31, %v361_v46  ;;  %v1213_v3 = vpop.f32.mrb[23].mxu0  ;;  %v601_v11 = vmul.f32 0.70710677, %v1720_v61  ;;  %v1739_v17 = vadd.f32 %v1600_v31, %v465_v62 }
 0x108   :  { %v1265_v58 = vpop.f32.mrb[23].mxu1  ;;  %v1352_v59 = vpop.eup %1351  ;;  %v1119_v6 = vpack.c.bf16 %v718_v45, %v718_v45  ;;  %v670_v10 = vadd.f32 1.0, %v1350_v63  ;;  %1361 = verf.f32 %v575_v1  ;;  %v526_v55 = vmul.f32 0.5, %v1713_v56 }
 0x109   :  { %v1145_v12 = vpack.c.bf16 %v744_v0, %v744_v0  ;;  %v696_v14 = vadd.f32 1.0, %v1352_v59  ;;  %1363 = verf.f32 %v601_v11  ;;  %v576_v16 = vmul.f32 0.70710677, %v1728_v2 }
 0x10a   :  { %965 = vst.msk [vmem:[%s2014_s3 + $0x18] sm:$0xf] %vm958_vm4, %v1119_v6  ;;  %v719_v15 = vmul.f32 %v670_v10, %v523_v7  ;;  %v1354_v4 = vpop.eup %1353  ;;  %v602_v27 = vmul.f32 0.70710677, %v1739_v17  ;;  %v552_v62 = vmul.f32 0.5, %v1720_v61 }
 0x10b   :  { %991 = vst.msk [vmem:[%s2014_s3 + $0x80] sm:$0xf] %vm958_vm4, %v1145_v12  ;;  %v745_v5 = vmul.f32 %v696_v14, %v549_v13  ;;  %v1356_v20 = vpop.eup %1355  ;;  %v671_v9 = vadd.f32 1.0, %v1354_v4  ;;  %1365 = verf.f32 %v576_v16  ;;  %v366_v23 = vpop.f32.mrb[24].mxu0  ;;  %v527_v13 = vmul.f32 0.5, %v1728_v2 }
 0x10c   :  { %v1120_v21 = vpack.c.bf16 %v719_v15, %v719_v15  ;;  %v470_v24 = vpop.f32.mrb[24].mxu1  ;;  %v697_v26 = vadd.f32 1.0, %v1356_v20  ;;  %v1749_v28 = vadd.f32 %v1600_v31, %v366_v23  ;;  %v1216_v30 = vpop.f32.mrb[25].mxu0  ;;  %1367 = verf.f32 %v602_v27 }
 0x10d   :  { %v1146_v25 = vpack.c.bf16 %v745_v5, %v745_v5  ;;  %v1268_v33 = vpop.f32.mrb[25].mxu1  ;;  %v1358_v34 = vpop.eup %1357  ;;  %v720_v8 = vmul.f32 %v671_v9, %v524_v18  ;;  %v1756_v19 = vadd.f32 %v1600_v31, %v470_v24  ;;  %v553_v2 = vmul.f32 0.5, %v1739_v17 }
 0x10e   :  { %966 = vst.msk [vmem:[%s2014_s3 + $0x1c] sm:$0xf] %vm958_vm4, %v1120_v21  ;;  %v369_v35 = vpop.f32.mrb[26].mxu0  ;;  %v473_v36 = vpop.f32.mrb[26].mxu1  ;;  %v746_v39 = vmul.f32 %v697_v26, %v550_v22  ;;  %v672_v29 = vadd.f32 1.0, %v1358_v34  ;;  %v528_v34 = vmul.f32 0.5, %v1749_v28 }
 0x10f   :  { %v1360_v37 = vpop.eup %1359  ;;  %992 = vst.msk [vmem:[%s2014_s3 + $0x84] sm:$0xf] %vm958_vm4, %v1146_v25  ;;  %v1217_v32 = vpop.f32.mrb[27].mxu0  ;;  %v1121_v43 = vpack.c.bf16 %v720_v8, %v720_v8  ;;  %v577_v48 = vmul.f32 0.70710677, %v1749_v28  ;;  %v1767_v52 = vadd.f32 %v1600_v31, %v369_v35  ;;  %v1774_v53 = vadd.f32 %v1600_v31, %v473_v36 }
 0x110   :  { %v1269_v42 = vpop.f32.mrb[27].mxu1  ;;  %v698_v47 = vadd.f32 1.0, %v1360_v37  ;;  %v1147_v49 = vpack.c.bf16 %v746_v39, %v746_v39  ;;  %v721_v50 = vmul.f32 %v672_v29, %v525_v40  ;;  %v603_v51 = vmul.f32 0.70710677, %v1756_v19 }
 0x111   :  { %967 = vst.msk [vmem:[%s2014_s3 + $0x20] sm:$0xf] %vm958_vm4, %v1121_v43  ;;  %1369 = verf.f32 %v577_v48  ;;  %v578_v57 = vmul.f32 0.70710677, %v1767_v52  ;;  %v604_v63 = vmul.f32 0.70710677, %v1774_v53 }
 0x112   :  { %v747_v38 = vmul.f32 %v698_v47, %v551_v44  ;;  %v1362_v41 = vpop.eup %1361  ;;  %993 = vst.msk [vmem:[%s2014_s3 + $0x88] sm:$0xf] %vm958_vm4, %v1147_v49  ;;  %v1122_v54 = vpack.c.bf16 %v721_v50, %v721_v50  ;;  %1371 = verf.f32 %v603_v51  ;;  %v554_v32 = vmul.f32 0.5, %v1756_v19 }
 0x113   :  { %v1364_v60 = vpop.eup %1363  ;;  %v673_v46 = vadd.f32 1.0, %v1362_v41  ;;  %v374_v0 = vpop.f32.mrb[28].mxu0  ;;  %1373 = verf.f32 %v578_v57  ;;  %v529_v49 = vmul.f32 0.5, %v1767_v52  ;;  %v555_v50 = vmul.f32 0.5, %v1774_v53 }
 0x114   :  { %v1148_v45 = vpack.c.bf16 %v747_v38, %v747_v38  ;;  %v478_v1 = vpop.f32.mrb[28].mxu1  ;;  %968 = vst.msk [vmem:[%s2014_s3 + $0x24] sm:$0xf] %vm958_vm4, %v1122_v54  ;;  %v699_v3 = vadd.f32 1.0, %v1364_v60  ;;  %v1789_v56 = vadd.f32 %v1600_v31, %v374_v0  ;;  %v1220_v59 = vpop.f32.mrb[29].mxu0  ;;  %1375 = verf.f32 %v604_v63 }
 0x115   :  { %v1792_v58 = vadd.f32 %v1600_v31, %v478_v1  ;;  %v1272_v6 = vpop.f32.mrb[29].mxu1  ;;  %v1366_v61 = vpop.eup %1365  ;;  %v722_v7 = vmul.f32 %v673_v46, %v526_v55 }
 0x116   :  { %994 = vst.msk [vmem:[%s2014_s3 + $0x8c] sm:$0xf] %vm958_vm4, %v1148_v45  ;;  %v377_v10 = vpop.f32.mrb[30].mxu0  ;;  %v481_v11 = vpop.f32.mrb[30].mxu1  ;;  %v748_v12 = vmul.f32 %v699_v3, %v552_v62  ;;  %v674_v14 = vadd.f32 1.0, %v1366_v61  ;;  %v530_v61 = vmul.f32 0.5, %v1789_v56 }
 0x117   :  { %v579_v15 = vmul.f32 0.70710677, %v1789_v56  ;;  %v1221_v16 = vpop.f32.mrb[31].mxu0  ;;  %v1273_v4 = vpop.f32.mrb[31].mxu1  ;;  %v1123_v5 = vpack.c.bf16 %v722_v7, %v722_v7  ;;  %v605_v18 = vmul.f32 0.70710677, %v1792_v58  ;;  %v1802_v20 = vadd.f32 %v1600_v31, %v377_v10 }
 0x118   :  { %v1368_v21 = vpop.eup %1367  ;;  %v1149_v9 = vpack.c.bf16 %v748_v12, %v748_v12  ;;  %v723_v22 = vmul.f32 %v674_v14, %v527_v13  ;;  %v1805_v23 = vadd.f32 %v1600_v31, %v481_v11  ;;  %v556_v10 = vmul.f32 0.5, %v1792_v58 }
 0x119   :  { %1377 = verf.f32 %v579_v15  ;;  %969 = vst.msk [vmem:[%s2014_s3 + $0x28] sm:$0xf] %vm958_vm4, %v1123_v5  ;;  %v700_v24 = vadd.f32 1.0, %v1368_v21  ;;  %v580_v25 = vmul.f32 0.70710677, %v1802_v20 }
 0x11a   :  { %1379 = verf.f32 %v605_v18  ;;  %995 = vst.msk [vmem:[%s2014_s3 + $0x90] sm:$0xf] %vm958_vm4, %v1149_v9  ;;  %v1124_v26 = vpack.c.bf16 %v723_v22, %v723_v22  ;;  %v606_v27 = vmul.f32 0.70710677, %v1805_v23 }
 0x11b   :  { %v1370_v30 = vpop.eup %1369  ;;  %v749_v33 = vmul.f32 %v700_v24, %v553_v2  ;;  %1381 = verf.f32 %v580_v25  ;;  %v382_v8 = vpop.f32.mrb[32].mxu0  ;;  %v531_v2 = vmul.f32 0.5, %v1802_v20 }
 0x11c   :  { %v486_v35 = vpop.f32.mrb[32].mxu1  ;;  %v1372_v17 = vpop.eup %1371  ;;  %970 = vst.msk [vmem:[%s2014_s3 + $0x2c] sm:$0xf] %vm958_vm4, %v1124_v26  ;;  %v675_v36 = vadd.f32 1.0, %v1370_v30  ;;  %1383 = verf.f32 %v606_v27  ;;  %v1824_v37 = vadd.f32 %v1600_v31, %v382_v8 }
 0x11d   :  { %v1827_v39 = vadd.f32 %v1600_v31, %v486_v35  ;;  %v1224_v40 = vpop.f32.mrb[33].mxu0  ;;  %v1276_v29 = vpop.f32.mrb[33].mxu1  ;;  %v1150_v28 = vpack.c.bf16 %v749_v33, %v749_v33  ;;  %v701_v42 = vadd.f32 1.0, %v1372_v17  ;;  %v557_v33 = vmul.f32 0.5, %v1805_v23 }
 0x11e   :  { %v385_v43 = vpop.f32.mrb[34].mxu0  ;;  %v489_v44 = vpop.f32.mrb[34].mxu1  ;;  %v724_v48 = vmul.f32 %v675_v36, %v528_v34  ;;  %v581_v51 = vmul.f32 0.70710677, %v1824_v37 }
 0x11f   :  { %v1374_v47 = vpop.eup %1373  ;;  %v1225_v38 = vpop.f32.mrb[35].mxu0  ;;  %996 = vst.msk [vmem:[%s2014_s3 + $0x94] sm:$0xf] %vm958_vm4, %v1150_v28  ;;  %v750_v19 = vmul.f32 %v701_v42, %v554_v32  ;;  %v607_v57 = vmul.f32 0.70710677, %v1827_v39  ;;  %v1839_v60 = vadd.f32 %v1600_v31, %v385_v43  ;;  %v1842_v53 = vadd.f32 %v1600_v31, %v489_v44 }
 0x120   :  { %v1277_v41 = vpop.f32.mrb[35].mxu1  ;;  %v1376_v54 = vpop.eup %1375  ;;  %v676_v55 = vadd.f32 1.0, %v1374_v47  ;;  %v1125_v52 = vpack.c.bf16 %v724_v48, %v724_v48  ;;  %1385 = verf.f32 %v581_v51  ;;  %v532_v28 = vmul.f32 0.5, %v1824_v37 }
 0x121   :  { %v702_v45 = vadd.f32 1.0, %v1376_v54  ;;  %v1151_v46 = vpack.c.bf16 %v750_v19, %v750_v19  ;;  %1387 = verf.f32 %v607_v57  ;;  %v582_v1 = vmul.f32 0.70710677, %v1839_v60 }
 0x122   :  { %v725_v62 = vmul.f32 %v676_v55, %v529_v49  ;;  %971 = vst.msk [vmem:[%s2014_s3 + $0x30] sm:$0xf] %vm958_vm4, %v1125_v52  ;;  %v608_v3 = vmul.f32 0.70710677, %v1842_v53  ;;  %v558_v47 = vmul.f32 0.5, %v1827_v39 }
 0x123   :  { %v1378_v63 = vpop.eup %1377  ;;  %v751_v0 = vmul.f32 %v702_v45, %v555_v50  ;;  %997 = vst.msk [vmem:[%s2014_s3 + $0x98] sm:$0xf] %vm958_vm4, %v1151_v46  ;;  %v390_v11 = vpop.f32.mrb[36].mxu0  ;;  %1389 = verf.f32 %v582_v1  ;;  %v533_v45 = vmul.f32 0.5, %v1839_v60  ;;  %v559_v46 = vmul.f32 0.5, %v1842_v53 }
 0x124   :  { %v1380_v59 = vpop.eup %1379  ;;  %v1126_v6 = vpack.c.bf16 %v725_v62, %v725_v62  ;;  %v677_v7 = vadd.f32 1.0, %v1378_v63  ;;  %v494_v12 = vpop.f32.mrb[36].mxu1  ;;  %v1857_v15 = vadd.f32 %v1600_v31, %v390_v11  ;;  %1391 = verf.f32 %v608_v3 }
 0x125   :  { %v1152_v13 = vpack.c.bf16 %v751_v0, %v751_v0  ;;  %v703_v14 = vadd.f32 1.0, %v1380_v59  ;;  %v1228_v16 = vpop.f32.mrb[37].mxu0  ;;  %v1280_v4 = vpop.f32.mrb[37].mxu1  ;;  %v1864_v58 = vadd.f32 %v1600_v31, %v494_v12 }
 0x126   :  { %v1382_v5 = vpop.eup %1381  ;;  %972 = vst.msk [vmem:[%s2014_s3 + $0x34] sm:$0xf] %vm958_vm4, %v1126_v6  ;;  %v726_v56 = vmul.f32 %v677_v7, %v530_v61  ;;  %v393_v18 = vpop.f32.mrb[38].mxu0  ;;  %v583_v25 = vmul.f32 0.70710677, %v1857_v15 }
 0x127   :  { %v497_v21 = vpop.f32.mrb[38].mxu1  ;;  %v1384_v9 = vpop.eup %1383  ;;  %998 = vst.msk [vmem:[%s2014_s3 + $0x9c] sm:$0xf] %vm958_vm4, %v1152_v13  ;;  %v752_v22 = vmul.f32 %v703_v14, %v556_v10  ;;  %v678_v24 = vadd.f32 1.0, %v1382_v5  ;;  %v609_v8 = vmul.f32 0.70710677, %v1864_v58  ;;  %v1875_v36 = vadd.f32 %v1600_v31, %v393_v18 }
 0x128   :  { %v1229_v26 = vpop.f32.mrb[39].mxu0  ;;  %v1281_v27 = vpop.f32.mrb[39].mxu1  ;;  %v1127_v30 = vpack.c.bf16 %v726_v56, %v726_v56  ;;  %v704_v34 = vadd.f32 1.0, %v1384_v9  ;;  %1393 = verf.f32 %v583_v25  ;;  %v1882_v40 = vadd.f32 %v1600_v31, %v497_v21 }
 0x129   :  { %v1153_v35 = vpack.c.bf16 %v752_v22, %v752_v22  ;;  %v727_v17 = vmul.f32 %v678_v24, %v531_v2  ;;  %1395 = verf.f32 %v609_v8  ;;  %v584_v32 = vmul.f32 0.70710677, %v1875_v36 }
 0x12a   :  { %973 = vst.msk [vmem:[%s2014_s3 + $0x38] sm:$0xf] %vm958_vm4, %v1127_v30  ;;  %v753_v20 = vmul.f32 %v704_v34, %v557_v33  ;;  %v1386_v23 = vpop.eup %1385  ;;  %v610_v48 = vmul.f32 0.70710677, %v1882_v40  ;;  %v534_v14 = vmul.f32 0.5, %v1857_v15  ;;  %v560_v18 = vmul.f32 0.5, %v1864_v58 }
 0x12b   :  { %999 = vst.msk [vmem:[%s2014_s3 + $0xa0] sm:$0xf] %vm958_vm4, %v1153_v35  ;;  %v1128_v29 = vpack.c.bf16 %v727_v17, %v727_v17  ;;  %v1388_v42 = vpop.eup %1387  ;;  %v679_v44 = vadd.f32 1.0, %v1386_v23  ;;  %v398_v49 = vpop.f32.mrb[40].mxu0  ;;  %1397 = verf.f32 %v584_v32 }
 0x12c   :  { %v1154_v43 = vpack.c.bf16 %v753_v20, %v753_v20  ;;  %v502_v50 = vpop.f32.mrb[40].mxu1  ;;  %v705_v51 = vadd.f32 1.0, %v1388_v42  ;;  %v1897_v37 = vadd.f32 %v1600_v31, %v398_v49  ;;  %v1232_v41 = vpop.f32.mrb[41].mxu0  ;;  %1399 = verf.f32 %v610_v48 }
 0x12d   :  { %974 = vst.msk [vmem:[%s2014_s3 + $0x3c] sm:$0xf] %vm958_vm4, %v1128_v29  ;;  %v1900_v38 = vadd.f32 %v1600_v31, %v502_v50  ;;  %v1284_v54 = vpop.f32.mrb[41].mxu1  ;;  %v728_v39 = vmul.f32 %v679_v44, %v532_v28  ;;  %v401_v19 = vpop.f32.mrb[42].mxu0  ;;  %v535_v28 = vmul.f32 0.5, %v1875_v36  ;;  %v561_v44 = vmul.f32 0.5, %v1882_v40 }
 0x12e   :  { %1000 = vst.msk [vmem:[%s2014_s3 + $0xa4] sm:$0xf] %vm958_vm4, %v1154_v43  ;;  %v505_v55 = vpop.f32.mrb[42].mxu1  ;;  %v1390_v57 = vpop.eup %1389  ;;  %v754_v52 = vmul.f32 %v705_v51, %v558_v47  ;;  %v585_v62 = vmul.f32 0.70710677, %v1897_v37  ;;  %v1911_v61 = vadd.f32 %v1600_v31, %v401_v19  ;;  %v536_v41 = vmul.f32 0.5, %v1897_v37 }
 0x12f   :  { %v1233_v63 = vpop.f32.mrb[43].mxu0  ;;  %v1285_v0 = vpop.f32.mrb[43].mxu1  ;;  %v1129_v3 = vpack.c.bf16 %v728_v39, %v728_v39  ;;  %v680_v59 = vadd.f32 1.0, %v1390_v57  ;;  %v611_v6 = vmul.f32 0.70710677, %v1900_v38  ;;  %v1914_v11 = vadd.f32 %v1600_v31, %v505_v55 }
 0x130   :  { %v1392_v1 = vpop.eup %1391  ;;  %v1155_v7 = vpack.c.bf16 %v754_v52, %v754_v52  ;;  %1401 = verf.f32 %v585_v62  ;;  %v586_v53 = vmul.f32 0.70710677, %v1911_v61  ;;  %v562_v55 = vmul.f32 0.5, %v1900_v38 }
 0x131   :  { %v706_v10 = vadd.f32 1.0, %v1392_v1  ;;  %975 = vst.msk [vmem:[%s2014_s3 + $0x40] sm:$0xf] %vm958_vm4, %v1129_v3  ;;  %v729_v60 = vmul.f32 %v680_v59, %v533_v45  ;;  %1403 = verf.f32 %v611_v6  ;;  %v612_v16 = vmul.f32 0.70710677, %v1914_v11 }
 0x132   :  { %v1394_v12 = vpop.eup %1393  ;;  %1001 = vst.msk [vmem:[%s2014_s3 + $0xa8] sm:$0xf] %vm958_vm4, %v1155_v7  ;;  %1405 = verf.f32 %v586_v53  ;;  %v537_v38 = vmul.f32 0.5, %v1911_v61  ;;  %v563_v7 = vmul.f32 0.5, %v1914_v11 }
 0x133   :  { %v755_v13 = vmul.f32 %v706_v10, %v559_v46  ;;  %v1396_v4 = vpop.eup %1395  ;;  %v1130_v5 = vpack.c.bf16 %v729_v60, %v729_v60  ;;  %v681_v56 = vadd.f32 1.0, %v1394_v12  ;;  %v406_v21 = vpop.f32.mrb[44].mxu0  ;;  %1407 = verf.f32 %v612_v16 }
 0x134   :  { %v510_v9 = vpop.f32.mrb[44].mxu1  ;;  %v707_v2 = vadd.f32 1.0, %v1396_v4  ;;  %v1929_v24 = vadd.f32 %v1600_v31, %v406_v21  ;;  %v1236_v25 = vpop.f32.mrb[45].mxu0 }
 0x135   :  { %v1156_v22 = vpack.c.bf16 %v755_v13, %v755_v13  ;;  %v1288_v26 = vpop.f32.mrb[45].mxu1  ;;  %976 = vst.msk [vmem:[%s2014_s3 + $0x44] sm:$0xf] %vm958_vm4, %v1130_v5  ;;  %v730_v15 = vmul.f32 %v681_v56, %v534_v14  ;;  %v1936_v27 = vadd.f32 %v1600_v31, %v510_v9  ;;  %v409_v58 = vpop.f32.mrb[46].mxu0 }
 0x136   :  { %v513_v30 = vpop.f32.mrb[46].mxu1  ;;  %v1398_v33 = vpop.eup %1397  ;;  %v756_v34 = vmul.f32 %v707_v2, %v560_v18  ;;  %v587_v8 = vmul.f32 0.70710677, %v1929_v24  ;;  %v1944_v35 = vadd.f32 %v1600_v31, %v409_v58 }
 0x137   :  { %1002 = vst.msk [vmem:[%s2014_s3 + $0xac] sm:$0xf] %vm958_vm4, %v1156_v22  ;;  %v1237_v17 = vpop.f32.mrb[47].mxu0  ;;  %v1289_v20 = vpop.f32.mrb[47].mxu1  ;;  %v1131_v29 = vpack.c.bf16 %v730_v15, %v730_v15  ;;  %v682_v32 = vadd.f32 1.0, %v1398_v33  ;;  %v564_v56 = vmul.f32 0.5, %v1936_v27 }
 0x138   :  { %v1400_v23 = vpop.eup %1399  ;;  %v613_v42 = vmul.f32 0.70710677, %v1936_v27  ;;  %v1157_v43 = vpack.c.bf16 %v756_v34, %v756_v34  ;;  %1409 = verf.f32 %v587_v8  ;;  %v588_v49 = vmul.f32 0.70710677, %v1944_v35 }
 0x139   :  { %v708_v47 = vadd.f32 1.0, %v1400_v23  ;;  %977 = vst.msk [vmem:[%s2014_s3 + $0x48] sm:$0xf] %vm958_vm4, %v1131_v29  ;;  %v731_v48 = vmul.f32 %v682_v32, %v535_v28  ;;  %v539_v2 = vmul.f32 0.5, %v1944_v35 }
 0x13a   :  { %1411 = verf.f32 %v613_v42  ;;  %v1402_v50 = vpop.eup %1401  ;;  %1003 = vst.msk [vmem:[%s2014_s3 + $0xb0] sm:$0xf] %vm958_vm4, %v1157_v43 }
 0x13b   :  { %v757_v36 = vmul.f32 %v708_v47, %v561_v44  ;;  %v1404_v51 = vpop.eup %1403  ;;  %v1132_v40 = vpack.c.bf16 %v731_v48, %v731_v48  ;;  %v683_v54 = vadd.f32 1.0, %v1402_v50  ;;  %1413 = verf.f32 %v588_v49  ;;  %v414_v39 = vpop.f32.mrb[48].mxu0 }
 0x13c   :  { %v709_v57 = vadd.f32 1.0, %v1404_v51  ;;  %v415_v52 = vadd.f32 %v1600_v31, %v414_v39  ;;  %v1240_v45 = vpop.f32.mrb[49].mxu0  ;;  %v1406_v46 = vpop.eup %1405 }
 0x13d   :  { %v1158_v19 = vpack.c.bf16 %v757_v36, %v757_v36  ;;  %978 = vst.msk [vmem:[%s2014_s3 + $0x4c] sm:$0xf] %vm958_vm4, %v1132_v40  ;;  %v732_v62 = vmul.f32 %v683_v54, %v536_v41  ;;  %v417_v63 = vpop.f32.mrb[50].mxu0  ;;  %v1408_v0 = vpop.eup %1407  ;;  %v684_v1 = vadd.f32 1.0, %v1406_v46 }
 0x13e   :  { %v758_v37 = vmul.f32 %v709_v57, %v562_v55  ;;  %v589_v3 = vmul.f32 0.70710677, %v415_v52  ;;  %v1241_v59 = vpop.f32.mrb[51].mxu0  ;;  %v710_v10 = vadd.f32 1.0, %v1408_v0  ;;  %v418_v60 = vadd.f32 %v1600_v31, %v417_v63 }
 0x13f   :  { %1004 = vst.msk [vmem:[%s2014_s3 + $0xb4] sm:$0xf] %vm958_vm4, %v1158_v19  ;;  %v1133_v6 = vpack.c.bf16 %v732_v62, %v732_v62  ;;  %v733_v12 = vmul.f32 %v684_v1, %v537_v38  ;;  %v538_v31 = vmul.f32 0.5, %v1929_v24  ;;  %v540_v30 = vmul.f32 0.5, %v415_v52 }
 0x140   :  { %v1159_v53 = vpack.c.bf16 %v758_v37, %v758_v37  ;;  %1415 = verf.f32 %v589_v3  ;;  %v759_v13 = vmul.f32 %v710_v10, %v563_v7  ;;  %v590_v14 = vmul.f32 0.70710677, %v418_v60 }
 0x141   :  { %979 = vst.msk [vmem:[%s2014_s3 + $0x50] sm:$0xf] %vm958_vm4, %v1133_v6  ;;  %v1134_v11 = vpack.c.bf16 %v733_v12, %v733_v12  ;;  %v541_v35 = vmul.f32 0.5, %v418_v60 }
 0x142   :  { %v1410_v61 = vpop.eup %1409  ;;  %1005 = vst.msk [vmem:[%s2014_s3 + $0xb8] sm:$0xf] %vm958_vm4, %v1159_v53  ;;  %v1160_v4 = vpack.c.bf16 %v759_v13, %v759_v13  ;;  %1417 = verf.f32 %v590_v14 }
 0x143   :  { %v685_v5 = vadd.f32 1.0, %v1410_v61  ;;  %980 = vst.msk [vmem:[%s2014_s3 + $0x54] sm:$0xf] %vm958_vm4, %v1134_v11 }
 0x144   :  { %v1412_v16 = vpop.eup %1411  ;;  %1006 = vst.msk [vmem:[%s2014_s3 + $0xbc] sm:$0xf] %vm958_vm4, %v1160_v4 }
 0x145   :  { %v711_v18 = vadd.f32 1.0, %v1412_v16  ;;  %v1414_v21 = vpop.eup %1413  ;;  %v734_v9 = vmul.f32 %v685_v5, %v538_v31 }
 0x146   :  { %v686_v24 = vadd.f32 1.0, %v1414_v21 }
 0x147   :  { %v760_v22 = vmul.f32 %v711_v18, %v564_v56  ;;  %v1135_v25 = vpack.c.bf16 %v734_v9, %v734_v9 }
 0x148   :  { %v735_v15 = vmul.f32 %v686_v24, %v539_v2 }
 0x149   :  { %v1161_v26 = vpack.c.bf16 %v760_v22, %v760_v22  ;;  %981 = vst.msk [vmem:[%s2014_s3 + $0x58] sm:$0xf] %vm958_vm4, %v1135_v25 }
 0x14a   :  { %v1416_v27 = vpop.eup %1415  ;;  %v1136_v58 = vpack.c.bf16 %v735_v15, %v735_v15 }
 0x14b   :  { %1007 = vst.msk [vmem:[%s2014_s3 + $0xc0] sm:$0xf] %vm958_vm4, %v1161_v26  ;;  %v687_v33 = vadd.f32 1.0, %v1416_v27 }
 0x14c   :  { %982 = vst.msk [vmem:[%s2014_s3 + $0x5c] sm:$0xf] %vm958_vm4, %v1136_v58  ;;  %v1418_v34 = vpop.eup %1417 }
 0x14d   :  { %v736_v8 = vmul.f32 %v687_v33, %v540_v30  ;;  %v688_v17 = vadd.f32 1.0, %v1418_v34 }
 0x14f   :  { %v1137_v20 = vpack.c.bf16 %v736_v8, %v736_v8  ;;  %v737_v23 = vmul.f32 %v688_v17, %v541_v35 }
 0x151   :  { %983 = vst.msk [vmem:[%s2014_s3 + $0x60] sm:$0xf] %vm958_vm4, %v1137_v20  ;;  %v1138_v29 = vpack.c.bf16 %v737_v23, %v737_v23 }
 0x153   :  { %984 = vst.msk [vmem:[%s2014_s3 + $0x64] sm:$0xf] %vm958_vm4, %v1138_v29 }

// kernel: cae_forward.12
= control target key start
LH: loop header
LB: loop body
LE: loop exit
PB: predicated region body
PF: predicated region fallthrough
CT: control target
= control target key end

     0   :  { %v3305_v0 = vmov 0   ;;  %v3306_v39 = vmov 0.0   ;;  %vm3307_vm0 = vmmov 0   ;;  %vm1074_vm1 = vcmask 523264   ;;  %s4329_s1 = inlined_call_operand.vmem [shape: bf16[576,64], index: 1, kind: input, shape index: {}]   ;;  %s4330_s0 = inlined_call_operand.vmem [shape: bf16[392,576], index: 0, kind: input, shape index: {}]   ;;  %s4331_s2 = inlined_call_operand.vmem [shape: f32[1,64], index: 2, kind: input, shape index: {}]   ;;  %s4332_s3 = inlined_call_operand.vmem [shape: bf16[392,64], index: 3, kind: output, shape index: {}]  }
   0x1   :  { %1150 = vmatprep.subr.bf16.mxu1 %v3305_v0  ;;  %1382 = vmatprep.subr.bf16.mxu0 %v3305_v0  ;;  %v2997_v1 = vld [vmem:[%s4329_s1] sm:$0xff]   ;;  %v2999_v3 = vld [vmem:[%s4329_s1 + $0x8] sm:$0xff]   ;;  %v3001_v5 = vld [vmem:[%s4329_s1 + $0x10] sm:$0xff]   ;;  %vm2288_vm2 = vcmask 519168  }
   0x2   :  { %v3336_v2 = vld [vmem:[%s4329_s1 + $0x80] sm:$0xff]   ;;  %1151 = vmatpush1.bf16.msra.mxu1 %v2997_v1  ;;  %v3346_v4 = vld [vmem:[%s4329_s1 + $0x88] sm:$0xff]   ;;  %v3357_v6 = vld [vmem:[%s4329_s1 + $0x90] sm:$0xff]  }
   0x3   :  { %1383 = vmatpush1.bf16.msra.mxu0 %v3336_v2  ;;  %1152 = vmatprep.subr.bf16.mxu1 %v3305_v0  ;;  %v3003_v7 = vld [vmem:[%s4329_s1 + $0x18] sm:$0xff]   ;;  %v3005_v9 = vld [vmem:[%s4329_s1 + $0x20] sm:$0xff]   ;;  %v3007_v11 = vld [vmem:[%s4329_s1 + $0x28] sm:$0xff]  }
   0x4   :  { %1384 = vmatprep.subr.bf16.mxu0 %v3305_v0  ;;  %v3368_v8 = vld [vmem:[%s4329_s1 + $0x98] sm:$0xff]   ;;  %v3379_v10 = vld [vmem:[%s4329_s1 + $0xa0] sm:$0xff]   ;;  %v3390_v12 = vld [vmem:[%s4329_s1 + $0xa8] sm:$0xff]  }
   0x5   :  { %v3009_v13 = vld [vmem:[%s4329_s1 + $0x30] sm:$0xff]   ;;  %v3011_v15 = vld [vmem:[%s4329_s1 + $0x38] sm:$0xff]   ;;  %v3013_v17 = vld [vmem:[%s4329_s1 + $0x40] sm:$0xff]  }
   0x6   :  { %1153 = vmatpush1.bf16.msra.mxu1 %v2999_v3  ;;  %v3401_v14 = vld [vmem:[%s4329_s1 + $0xb0] sm:$0xff]   ;;  %v3412_v16 = vld [vmem:[%s4329_s1 + $0xb8] sm:$0xff]   ;;  %v3423_v18 = vld [vmem:[%s4329_s1 + $0xc0] sm:$0xff]  }
   0x7   :  { %1385 = vmatpush1.bf16.msra.mxu0 %v3346_v4  ;;  %1154 = vmatprep.subr.bf16.mxu1 %v3305_v0  ;;  %v3031_v19 = vld [vmem:[%s4330_s0 + $0x4] ss:$20 sps:$4 sm:$0xff]   ;;  %v3015_v20 = vld [vmem:[%s4329_s1 + $0x48] sm:$0xff]   ;;  %v3017_v23 = vld [vmem:[%s4329_s1 + $0x50] sm:$0xff]  }
   0x8   :  { %1386 = vmatprep.subr.bf16.mxu0 %v3305_v0  ;;  %v3034_v21 = vld [vmem:[%s4330_s0 + $0xc] ss:$20 sps:$4 sm:$0xff]   ;;  %1182 = vmatprep.mubr.bf16.mxu1 %v3031_v19  ;;  %v3451_v24 = vld [vmem:[%s4329_s1 + $0xd0] sm:$0xff]   ;;  %v3019_v25 = vld [vmem:[%s4329_s1 + $0x58] sm:$0xff]  }
   0x9   :  { %v3440_v22 = vld [vmem:[%s4329_s1 + $0xc8] sm:$0xff]   ;;  %1414 = vmatprep.mubr.bf16.mxu0 %v3034_v21  ;;  %v3462_v26 = vld [vmem:[%s4329_s1 + $0xd8] sm:$0xff]   ;;  %v3021_v27 = vld [vmem:[%s4329_s1 + $0x60] sm:$0xff]  }
   0xa   :  { %1155 = vmatpush1.bf16.msra.mxu1 %v3001_v5  ;;  %v3473_v28 = vld [vmem:[%s4329_s1 + $0xe0] sm:$0xff]   ;;  %v3023_v29 = vld [vmem:[%s4329_s1 + $0x68] sm:$0xff]   ;;  %v3025_v31 = vld [vmem:[%s4329_s1 + $0x70] sm:$0xff]  }
   0xb   :  { %1387 = vmatpush1.bf16.msra.mxu0 %v3357_v6  ;;  %1156 = vmatprep.subr.bf16.mxu1 %v3305_v0  ;;  %v3484_v30 = vld [vmem:[%s4329_s1 + $0xe8] sm:$0xff]   ;;  %v3495_v32 = vld [vmem:[%s4329_s1 + $0xf0] sm:$0xff]   ;;  %v3027_v33 = vld [vmem:[%s4329_s1 + $0x78] sm:$0xff]  }
   0xc   :  { %1388 = vmatprep.subr.bf16.mxu0 %v3305_v0  ;;  %v3506_v34 = vld [vmem:[%s4329_s1 + $0xf8] sm:$0xff]   ;;  %v3029_v35 = vld [vmem:[%s4330_s0] ss:$20 sps:$4 sm:$0xff]   ;;  %v3054_v41 = vld [vmem:[%s4329_s1 + $0x108] sm:$0xff]  }
   0xd   :  { %v3032_v36 = vld [vmem:[%s4330_s0 + $0x8] ss:$20 sps:$4 sm:$0xff]   ;;  %v3036_v37 = vld [vmem:[%s4330_s0 + $0x2c] ss:$20 sps:$4 sm:$0xff]   ;;  %v3041_v43 = vld [vmem:[%s4330_s0 + $0x30] ss:$20 sps:$4 sm:$0xff]  }
   0xe   :  { %1157 = vmatpush1.bf16.msra.mxu1 %v3003_v7  ;;  %v3035_v38 = vld [vmem:[%s4329_s1 + $0x100] sm:$0xff]   ;;  %v3038_v40 = vld [vmem:[%s4330_s0 + $0x34] ss:$20 sps:$4 sm:$0xff]   ;;  %v3044_v45 = vld [vmem:[%s4330_s0 + $0x5c] ss:$20 sps:$4 sm:$0xff]  }
   0xf   :  { %1389 = vmatpush1.bf16.msra.mxu0 %v3368_v8  ;;  %1158 = vmatprep.subr.bf16.mxu1 %v3305_v0  ;;  %v3040_v42 = vld [vmem:[%s4330_s0 + $0x28] ss:$20 sps:$4 sm:$0xff]   ;;  %v3073_v46 = vld [vmem:[%s4329_s1 + $0x110] sm:$0xff]   ;;  %v3047_v49 = vld [vmem:[%s4330_s0 + $0x58] ss:$20 sps:$4 sm:$0xff]  }
  0x10   :  { %1390 = vmatprep.subr.bf16.mxu0 %v3305_v0  ;;  %v3042_v44 = vld [vmem:[%s4330_s0 + $0x54] ss:$20 sps:$4 sm:$0xff]   ;;  %v3096_v47 = vld [vmem:[%s4329_s1 + $0x118] sm:$0xff]   ;;  %v3046_v48 = vld [vmem:[%s4330_s0 + $0x50] ss:$20 sps:$4 sm:$0xff]  }
  0x11   :  { %v3048_v50 = vld [vmem:[%s4330_s0 + $0x7c] ss:$20 sps:$4 sm:$0xff]   ;;  %v3050_v51 = vld [vmem:[%s4330_s0 + $0x84] ss:$20 sps:$4 sm:$0xff]   ;;  %v3053_v53 = vld [vmem:[%s4330_s0 + $0x80] ss:$20 sps:$4 sm:$0xff]  }
  0x12   :  { %1159 = vmatpush1.bf16.msra.mxu1 %v3005_v9  ;;  %v3052_v52 = vld [vmem:[%s4330_s0 + $0x78] ss:$20 sps:$4 sm:$0xff]   ;;  %v3059_v56 = vld [vmem:[%s4330_s0 + $0xa0] ss:$20 sps:$4 sm:$0xff]   ;;  %v3060_v57 = vld [vmem:[%s4330_s0 + $0xa8] ss:$20 sps:$4 sm:$0xff]  }
  0x13   :  { %1391 = vmatpush1.bf16.msra.mxu0 %v3379_v10  ;;  %1160 = vmatprep.subr.bf16.mxu1 %v3305_v0  ;;  %v3055_v54 = vld [vmem:[%s4330_s0 + $0xa4] ss:$20 sps:$4 sm:$0xff]   ;;  %v3057_v55 = vld [vmem:[%s4330_s0 + $0xac] ss:$20 sps:$4 sm:$0xff]   ;;  %v3063_v59 = vld [vmem:[%s4330_s0 + $0xd4] ss:$20 sps:$4 sm:$0xff]  }
  0x14   :  { %1392 = vmatprep.subr.bf16.mxu0 %v3305_v0  ;;  %v3061_v58 = vld [vmem:[%s4330_s0 + $0xcc] ss:$20 sps:$4 sm:$0xff]   ;;  %v3065_v60 = vld [vmem:[%s4330_s0 + $0xc8] ss:$20 sps:$4 sm:$0xff]   ;;  %v3066_v61 = vld [vmem:[%s4330_s0 + $0xd0] ss:$20 sps:$4 sm:$0xff]  }
  0x15   :  { %v3067_v62 = vld [vmem:[%s4330_s0 + $0xf4] ss:$20 sps:$4 sm:$0xff]   ;;  %v3069_v63 = vld [vmem:[%s4330_s0 + $0xfc] ss:$20 sps:$4 sm:$0xff]   ;;  %v3078_v5 = vld [vmem:[%s4330_s0 + $0x118] ss:$20 sps:$4 sm:$0xff]  }
  0x16   :  { %1161 = vmatpush1.bf16.msra.mxu1 %v3007_v11  ;;  %v3071_v1 = vld [vmem:[%s4330_s0 + $0xf0] ss:$20 sps:$4 sm:$0xff]   ;;  %v3084_v9 = vld [vmem:[%s4330_s0 + $0x140] ss:$20 sps:$4 sm:$0xff]  }
  0x17   :  { %1393 = vmatpush1.bf16.msra.mxu0 %v3390_v12  ;;  %1162 = vmatprep.subr.bf16.mxu1 %v3305_v0  ;;  %v3074_v3 = vld [vmem:[%s4330_s0 + $0x11c] ss:$20 sps:$4 sm:$0xff]   ;;  %v3080_v7 = vld [vmem:[%s4330_s0 + $0x144] ss:$20 sps:$4 sm:$0xff]   ;;  %v3086_v11 = vld [vmem:[%s4330_s0 + $0x16c] ss:$20 sps:$4 sm:$0xff]  }
  0x18   :  { %1394 = vmatprep.subr.bf16.mxu0 %v3305_v0  ;;  %v3101_v19 = vld [vmem:[%s4330_s0 + $0x1c4] ss:$20 sps:$4 sm:$0xff]   ;;  %v3104_v21 = vld [vmem:[%s4330_s0 + $0x1c0] ss:$20 sps:$4 sm:$0xff]  }
  0x1a   :  { %1163 = vmatpush1.bf16.msra.mxu1 %v3009_v13  ;;  %v3091_v13 = vld [vmem:[%s4330_s0 + $0x170] ss:$20 sps:$4 sm:$0xff]  }
  0x1b   :  { %1395 = vmatpush1.bf16.msra.mxu0 %v3401_v14  ;;  %1164 = vmatprep.subr.bf16.mxu1 %v3305_v0 }
  0x1c   :  { %1396 = vmatprep.subr.bf16.mxu0 %v3305_v0 }
  0x1e   :  { %1165 = vmatpush1.bf16.msra.mxu1 %v3011_v15  ;;  %v3094_v15 = vld [vmem:[%s4330_s0 + $0x19c] ss:$20 sps:$4 sm:$0xff]  }
  0x1f   :  { %1397 = vmatpush1.bf16.msra.mxu0 %v3412_v16  ;;  %1166 = vmatprep.subr.bf16.mxu1 %v3305_v0 }
  0x20   :  { %1398 = vmatprep.subr.bf16.mxu0 %v3305_v0 }
  0x22   :  { %1167 = vmatpush1.bf16.msra.mxu1 %v3013_v17  ;;  %v3098_v17 = vld [vmem:[%s4330_s0 + $0x198] ss:$20 sps:$4 sm:$0xff]  }
  0x23   :  { %1399 = vmatpush1.bf16.msra.mxu0 %v3423_v18  ;;  %1168 = vmatprep.subr.bf16.mxu1 %v3305_v0 }
  0x24   :  { %1400 = vmatprep.subr.bf16.mxu0 %v3305_v0 }
  0x26   :  { %1169 = vmatpush1.bf16.msra.mxu1 %v3015_v20  ;;  %v3103_v20 = vld [vmem:[%s4330_s0 + $0x1b8] ss:$20 sps:$4 sm:$0xff]  }
  0x27   :  { %1401 = vmatpush1.bf16.msra.mxu0 %v3440_v22  ;;  %1170 = vmatprep.subr.bf16.mxu1 %v3305_v0 }
  0x28   :  { %1402 = vmatprep.subr.bf16.mxu0 %v3305_v0 }
  0x2a   :  { %1171 = vmatpush1.bf16.msra.mxu1 %v3017_v23  ;;  %v3107_v23 = vld [vmem:[%s4330_s0 + $0x1ec] ss:$20 sps:$4 sm:$0xff]  }
  0x2b   :  { %1403 = vmatpush1.bf16.msra.mxu0 %v3451_v24  ;;  %1172 = vmatprep.subr.bf16.mxu1 %v3305_v0 }
  0x2c   :  { %1404 = vmatprep.subr.bf16.mxu0 %v3305_v0 }
  0x2e   :  { %1173 = vmatpush1.bf16.msra.mxu1 %v3019_v25  ;;  %v3110_v25 = vld [vmem:[%s4330_s0 + $0x1e8] ss:$20 sps:$4 sm:$0xff]  }
  0x2f   :  { %1405 = vmatpush1.bf16.msra.mxu0 %v3462_v26  ;;  %1174 = vmatprep.subr.bf16.mxu1 %v3305_v0 }
  0x30   :  { %1406 = vmatprep.subr.bf16.mxu0 %v3305_v0 }
  0x32   :  { %1175 = vmatpush1.bf16.msra.mxu1 %v3021_v27  ;;  %v3113_v27 = vld [vmem:[%s4330_s0 + $0x208] ss:$20 sps:$4 sm:$0xff]  }
  0x33   :  { %1407 = vmatpush1.bf16.msra.mxu0 %v3473_v28  ;;  %1176 = vmatprep.subr.bf16.mxu1 %v3305_v0 }
  0x34   :  { %1408 = vmatprep.subr.bf16.mxu0 %v3305_v0 }
  0x36   :  { %1177 = vmatpush1.bf16.msra.mxu1 %v3023_v29  ;;  %v3115_v29 = vld [vmem:[%s4330_s0 + $0x234] ss:$20 sps:$4 sm:$0xff]  }
  0x37   :  { %1409 = vmatpush1.bf16.msra.mxu0 %v3484_v30  ;;  %1178 = vmatprep.subr.bf16.mxu1 %v3305_v0 }
  0x38   :  { %1410 = vmatprep.subr.bf16.mxu0 %v3305_v0 }
  0x3a   :  { %1179 = vmatpush1.bf16.msra.mxu1 %v3025_v31  ;;  %v3118_v31 = vld [vmem:[%s4330_s0 + $0x38] ss:$20 sps:$4 sm:$0xff]  }
  0x3b   :  { %1411 = vmatpush1.bf16.msra.mxu0 %v3495_v32  ;;  %1180 = vmatprep.subr.bf16.mxu1 %v3305_v0 }
  0x3c   :  { %1412 = vmatprep.subr.bf16.mxu0 %v3305_v0 }
  0x3e   :  { %1181 = vmatpush1.bf16.msra.mxu1 %v3027_v33  ;;  %v3121_v33 = vld [vmem:[%s4330_s0 + $0x258] ss:$20 sps:$4 sm:$0xff]  }
  0x3f   :  { %1413 = vmatpush1.bf16.msra.mxu0 %v3506_v34  ;;  %2764 = vmatprep.subr.bf16.mxu1 %v3305_v0 }
  0x40   :  { %2656 = vmatprep.subr.bf16.mxu0 %v3306_v39 }
  0x41   :  { %1183 = vmatmul.mubr.bf16.vlgmr.msra.gmra.mrb[0].mxu1 %v3029_v35  ;;  %v3123_v35 = vld [vmem:[%s4330_s0 + $0x284] ss:$20 sps:$4 sm:$0xff]  }
  0x42   :  { %1415 = vmatmul.mubr.bf16.vlgmr.msra.gmra.mrb[0].mxu0 %v3032_v36  ;;  %1190 = vmatprep.mubr.bf16.mxu1 %v3036_v37  ;;  %v3125_v36 = vld [vmem:[%s4330_s0 + $0x280] ss:$20 sps:$4 sm:$0xff]   ;;  %v3126_v37 = vld [vmem:[%s4330_s0 + $0x88] ss:$20 sps:$4 sm:$0xff]  }
  0x43   :  { %2657 = vmatpush3.bf16.msra.mxu0 %v3035_v38  ;;  %2780 = vmatpush1.bf16.msra.mxu1 %v3336_v2  ;;  %v3072_v2 = vld [vmem:[%s4330_s0 + $0xf8] ss:$20 sps:$4 sm:$0xff]  }
  0x44   :  { %1422 = vmatprep.mubr.bf16.mxu0 %v3038_v40  ;;  %2765 = vmatprep.subr.bf16.mxu1 %v3305_v0  ;;  %v3127_v38 = vld [vmem:[%s4330_s0 + $0x2ac] ss:$20 sps:$4 sm:$0xff]   ;;  %v3129_v40 = vld [vmem:[%s4330_s0 + $0x2a8] ss:$20 sps:$4 sm:$0xff]  }
  0x45   :  { %2658 = vmatprep.subr.bf16.mxu0 %v3306_v39 }
  0x47   :  { %2781 = vmatpush1.bf16.msra.mxu1 %v3346_v4  ;;  %2659 = vmatpush3.bf16.msra.mxu0 %v3054_v41  ;;  %v3076_v4 = vld [vmem:[%s4330_s0 + $0x124] ss:$20 sps:$4 sm:$0xff]  }
  0x48   :  { %2766 = vmatprep.subr.bf16.mxu1 %v3305_v0  ;;  %2660 = vmatprep.subr.bf16.mxu0 %v3306_v39  ;;  %v3130_v41 = vld [vmem:[%s4330_s0 + $0xb0] ss:$20 sps:$4 sm:$0xff]  }
  0x49   :  { %1191 = vmatmul.mubr.bf16.gmra.mrb[4].mxu1 %v3040_v42  ;;  %v3131_v42 = vld [vmem:[%s4330_s0 + $0x2d4] ss:$20 sps:$4 sm:$0xff]  }
  0x4a   :  { %1423 = vmatmul.mubr.bf16.gmra.mrb[4].mxu0 %v3041_v43  ;;  %1198 = vmatprep.mubr.bf16.mxu1 %v3042_v44  ;;  %v3133_v43 = vld [vmem:[%s4330_s0 + $0x2d0] ss:$20 sps:$4 sm:$0xff]   ;;  %v3134_v44 = vld [vmem:[%s4330_s0 + $0xd8] ss:$20 sps:$4 sm:$0xff]  }
  0x4b   :  { %1430 = vmatprep.mubr.bf16.mxu0 %v3044_v45  ;;  %2782 = vmatpush1.bf16.msra.mxu1 %v3357_v6  ;;  %v3079_v6 = vld [vmem:[%s4330_s0 + $0x120] ss:$20 sps:$4 sm:$0xff]   ;;  %v3135_v45 = vld [vmem:[%s4330_s0 + $0x2fc] ss:$20 sps:$4 sm:$0xff]  }
  0x4c   :  { %2767 = vmatprep.subr.bf16.mxu1 %v3305_v0  ;;  %2661 = vmatpush3.bf16.msra.mxu0 %v3073_v46  ;;  %v3137_v46 = vld [vmem:[%s4330_s0 + $0x2f8] ss:$20 sps:$4 sm:$0xff]  }
  0x4d   :  { %2662 = vmatprep.subr.bf16.mxu0 %v3306_v39 }
  0x4f   :  { %2783 = vmatpush1.bf16.msra.mxu1 %v3368_v8  ;;  %v3082_v8 = vld [vmem:[%s4330_s0 + $0x14c] ss:$20 sps:$4 sm:$0xff]  }
  0x50   :  { %2768 = vmatprep.subr.bf16.mxu1 %v3305_v0  ;;  %2663 = vmatpush3.bf16.msra.mxu0 %v3096_v47  ;;  %v3138_v47 = vld [vmem:[%s4330_s0 + $0x100] ss:$20 sps:$4 sm:$0xff]  }
  0x51   :  { %1199 = vmatmul.mubr.bf16.gmra.mrb[8].mxu1 %v3046_v48  ;;  %v3139_v48 = vld [vmem:[%s4330_s0 + $0x324] ss:$20 sps:$4 sm:$0xff]  }
  0x52   :  { %1431 = vmatmul.mubr.bf16.gmra.mrb[8].mxu0 %v3047_v49  ;;  %1206 = vmatprep.mubr.bf16.mxu1 %v3048_v50  ;;  %v3141_v49 = vld [vmem:[%s4330_s0 + $0x320] ss:$20 sps:$4 sm:$0xff]   ;;  %v3142_v50 = vld [vmem:[%s4330_s0 + $0x128] ss:$20 sps:$4 sm:$0xff]  }
  0x53   :  { %1438 = vmatprep.mubr.bf16.mxu0 %v3050_v51  ;;  %2784 = vmatpush1.bf16.msra.mxu1 %v3379_v10  ;;  %v3085_v10 = vld [vmem:[%s4330_s0 + $0x148] ss:$20 sps:$4 sm:$0xff]   ;;  %v3143_v51 = vld [vmem:[%s4330_s0 + $0x34c] ss:$20 sps:$4 sm:$0xff]  }
  0x54   :  { %2769 = vmatprep.subr.bf16.mxu1 %v3305_v0 }
  0x57   :  { %2785 = vmatpush1.bf16.msra.mxu1 %v3390_v12  ;;  %v3088_v12 = vld [vmem:[%s4330_s0 + $0x174] ss:$20 sps:$4 sm:$0xff]  }
  0x58   :  { %2770 = vmatprep.subr.bf16.mxu1 %v3305_v0 }
  0x59   :  { %1207 = vmatmul.mubr.bf16.gmra.mrb[12].mxu1 %v3052_v52  ;;  %v3145_v52 = vld [vmem:[%s4330_s0 + $0x348] ss:$20 sps:$4 sm:$0xff]  }
  0x5a   :  { %1439 = vmatmul.mubr.bf16.gmra.mrb[12].mxu0 %v3053_v53  ;;  %1214 = vmatprep.mubr.bf16.mxu1 %v3055_v54  ;;  %v3146_v53 = vld [vmem:[%s4330_s0 + $0x150] ss:$20 sps:$4 sm:$0xff]   ;;  %v3147_v54 = vld [vmem:[%s4330_s0 + $0x374] ss:$20 sps:$4 sm:$0xff]  }
  0x5b   :  { %1446 = vmatprep.mubr.bf16.mxu0 %v3057_v55  ;;  %2786 = vmatpush1.bf16.msra.mxu1 %v3401_v14  ;;  %v3092_v14 = vld [vmem:[%s4330_s0 + $0x194] ss:$20 sps:$4 sm:$0xff]   ;;  %v3149_v55 = vld [vmem:[%s4330_s0 + $0x370] ss:$20 sps:$4 sm:$0xff]  }
  0x5c   :  { %2771 = vmatprep.subr.bf16.mxu1 %v3305_v0 }
  0x5f   :  { %2787 = vmatpush1.bf16.msra.mxu1 %v3412_v16  ;;  %v3097_v16 = vld [vmem:[%s4330_s0 + $0x190] ss:$20 sps:$4 sm:$0xff]  }
  0x60   :  { %2772 = vmatprep.subr.bf16.mxu1 %v3305_v0 }
  0x61   :  { %1215 = vmatmul.mubr.bf16.gmra.mrb[16].mxu1 %v3059_v56  ;;  %v3150_v56 = vld [vmem:[%s4330_s0 + $0x178] ss:$20 sps:$4 sm:$0xff]  }
  0x62   :  { %1447 = vmatmul.mubr.bf16.gmra.mrb[16].mxu0 %v3060_v57  ;;  %1222 = vmatprep.mubr.bf16.mxu1 %v3061_v58  ;;  %v3151_v57 = vld [vmem:[%s4330_s0 + $0x39c] ss:$20 sps:$4 sm:$0xff]   ;;  %v159_v58 = vld [vmem:[%s4330_s0 + $0x3c0] sm:$0xff] }
  0x63   :  { %1454 = vmatprep.mubr.bf16.mxu0 %v3063_v59  ;;  %2788 = vmatpush1.bf16.msra.mxu1 %v3423_v18  ;;  %v3099_v18 = vld [vmem:[%s4330_s0 + $0x1bc] ss:$20 sps:$4 sm:$0xff]   ;;  %v3153_v59 = vld [vmem:[%s4330_s0 + $0x398] ss:$20 sps:$4 sm:$0xff]  }
  0x64   :  { %2773 = vmatprep.subr.bf16.mxu1 %v3305_v0 }
  0x67   :  { %2789 = vmatpush1.bf16.msra.mxu1 %v3440_v22  ;;  %v3105_v22 = vld [vmem:[%s4330_s0 + $0x1e4] ss:$20 sps:$4 sm:$0xff]  }
  0x68   :  { %2774 = vmatprep.subr.bf16.mxu1 %v3305_v0 }
  0x69   :  { %1223 = vmatmul.mubr.bf16.gmra.mrb[20].mxu1 %v3065_v60  ;;  %v3154_v60 = vld [vmem:[%s4330_s0 + $0x1a0] ss:$20 sps:$4 sm:$0xff]  }
  0x6a   :  { %1455 = vmatmul.mubr.bf16.gmra.mrb[20].mxu0 %v3066_v61  ;;  %1230 = vmatprep.mubr.bf16.mxu1 %v3067_v62  ;;  %v2464_v61 = vcombine.high %v159_v58, %v159_v58  ;;  %v2463_v62 = vcombine.low %v159_v58, %v159_v58 }
  0x6b   :  { %1462 = vmatprep.mubr.bf16.mxu0 %v3069_v63  ;;  %2790 = vmatpush1.bf16.msra.mxu1 %v3451_v24  ;;  %v3109_v24 = vld [vmem:[%s4330_s0 + $0x1e0] ss:$20 sps:$4 sm:$0xff]   ;;  %v3157_v63 = vld [vmem:[%s4330_s0 + $0x1c8] ss:$20 sps:$4 sm:$0xff]  }
  0x6c   :  { %2775 = vmatprep.subr.bf16.mxu1 %v3305_v0 }
  0x6f   :  { %2791 = vmatpush1.bf16.msra.mxu1 %v3462_v26  ;;  %v3111_v26 = vld [vmem:[%s4330_s0 + $0x20c] ss:$20 sps:$4 sm:$0xff]  }
  0x70   :  { %2776 = vmatprep.subr.bf16.mxu1 %v3305_v0 }
  0x71   :  { %1231 = vmatmul.mubr.bf16.gmra.mrb[24].mxu1 %v3071_v1  ;;  %v3160_v1 = vld [vmem:[%s4330_s0 + $0x214] ss:$20 sps:$4 sm:$0xff]  }
  0x72   :  { %1463 = vmatmul.mubr.bf16.gmra.mrb[24].mxu0 %v3072_v2  ;;  %1238 = vmatprep.mubr.bf16.mxu1 %v3074_v3  ;;  %v3158_v2 = vld [vmem:[%s4330_s0 + $0x210] ss:$20 sps:$4 sm:$0xff]  }
  0x73   :  { %1470 = vmatprep.mubr.bf16.mxu0 %v3076_v4  ;;  %2792 = vmatpush1.bf16.msra.mxu1 %v3473_v28  ;;  %v3114_v28 = vld [vmem:[%s4330_s0 + $0x10] ss:$20 sps:$4 sm:$0xff]  }
  0x74   :  { %2777 = vmatprep.subr.bf16.mxu1 %v3305_v0  ;;  %v3161_v3 = vld [vmem:[%s4330_s0 + $0x1f0] ss:$20 sps:$4 sm:$0xff]  }
  0x75   :  { %v3162_v4 = vld [vmem:[%s4330_s0 + $0x23c] ss:$20 sps:$4 sm:$0xff]  }
  0x77   :  { %2793 = vmatpush1.bf16.msra.mxu1 %v3484_v30  ;;  %v3117_v30 = vld [vmem:[%s4330_s0 + $0x230] ss:$20 sps:$4 sm:$0xff]  }
  0x78   :  { %2778 = vmatprep.subr.bf16.mxu1 %v3305_v0 }
  0x79   :  { %1239 = vmatmul.mubr.bf16.gmra.mrb[28].mxu1 %v3078_v5  ;;  %v3164_v5 = vld [vmem:[%s4330_s0 + $0x238] ss:$20 sps:$4 sm:$0xff]  }
  0x7a   :  { %1471 = vmatmul.mubr.bf16.gmra.mrb[28].mxu0 %v3079_v6  ;;  %1246 = vmatprep.mubr.bf16.mxu1 %v3080_v7  ;;  %v3165_v6 = vld [vmem:[%s4330_s0 + $0x218] ss:$20 sps:$4 sm:$0xff]  }
  0x7b   :  { %1478 = vmatprep.mubr.bf16.mxu0 %v3082_v8  ;;  %2794 = vmatpush1.bf16.msra.mxu1 %v3495_v32  ;;  %v3119_v32 = vld [vmem:[%s4330_s0 + $0x25c] ss:$20 sps:$4 sm:$0xff]   ;;  %v3166_v7 = vld [vmem:[%s4330_s0 + $0x264] ss:$20 sps:$4 sm:$0xff]  }
  0x7c   :  { %2779 = vmatprep.subr.bf16.mxu1 %v3305_v0  ;;  %v3090_v0 = vld [vmem:[%s4330_s0 + $0x168] ss:$20 sps:$4 sm:$0xff]  }
  0x7f   :  { %2795 = vmatpush1.bf16.msra.mxu1 %v3506_v34  ;;  %v3122_v34 = vld [vmem:[%s4330_s0 + $0x60] ss:$20 sps:$4 sm:$0xff]  }
  0x81   :  { %1247 = vmatmul.mubr.bf16.gmra.mrb[32].mxu1 %v3084_v9 }
  0x82   :  { %1479 = vmatmul.mubr.bf16.gmra.mrb[32].mxu0 %v3085_v10  ;;  %1254 = vmatprep.mubr.bf16.mxu1 %v3086_v11  ;;  %v3168_v10 = vld [vmem:[%s4330_s0 + $0x260] ss:$20 sps:$4 sm:$0xff]  }
  0x83   :  { %1486 = vmatprep.mubr.bf16.mxu0 %v3088_v12  ;;  %v3169_v11 = vld [vmem:[%s4330_s0 + $0x240] ss:$20 sps:$4 sm:$0xff]  }
  0x89   :  { %1255 = vmatmul.mubr.bf16.gmra.mrb[36].mxu1 %v3090_v0  ;;  %v3170_v0 = vld [vmem:[%s4330_s0 + $0x28c] ss:$20 sps:$4 sm:$0xff]  }
  0x8a   :  { %1487 = vmatmul.mubr.bf16.gmra.mrb[36].mxu0 %v3091_v13  ;;  %1262 = vmatprep.mubr.bf16.mxu1 %v3092_v14 }
  0x8b   :  { %1494 = vmatprep.mubr.bf16.mxu0 %v3094_v15 }
  0x91   :  { %1263 = vmatmul.mubr.bf16.gmra.mrb[40].mxu1 %v3097_v16  ;;  %v3172_v16 = vld [vmem:[%s4330_s0 + $0x288] ss:$20 sps:$4 sm:$0xff]  }
  0x92   :  { %1495 = vmatmul.mubr.bf16.gmra.mrb[40].mxu0 %v3098_v17  ;;  %1270 = vmatprep.mubr.bf16.mxu1 %v3099_v18  ;;  %v3173_v17 = vld [vmem:[%s4330_s0 + $0x268] ss:$20 sps:$4 sm:$0xff]  }
  0x93   :  { %1502 = vmatprep.mubr.bf16.mxu0 %v3101_v19  ;;  %v3174_v19 = vld [vmem:[%s4330_s0 + $0x2b4] ss:$20 sps:$4 sm:$0xff]  }
  0x99   :  { %1271 = vmatmul.mubr.bf16.gmra.mrb[44].mxu1 %v3103_v20 }
  0x9a   :  { %1503 = vmatmul.mubr.bf16.gmra.mrb[44].mxu0 %v3104_v21  ;;  %1278 = vmatprep.mubr.bf16.mxu1 %v3105_v22 }
  0x9b   :  { %1510 = vmatprep.mubr.bf16.mxu0 %v3107_v23  ;;  %v3176_v23 = vld [vmem:[%s4330_s0 + $0x2b0] ss:$20 sps:$4 sm:$0xff]  }
  0xa1   :  { %1279 = vmatmul.mubr.bf16.gmra.mrb[48].mxu1 %v3109_v24  ;;  %v3177_v24 = vld [vmem:[%s4330_s0 + $0x290] ss:$20 sps:$4 sm:$0xff]  }
  0xa2   :  { %1511 = vmatmul.mubr.bf16.gmra.mrb[48].mxu0 %v3110_v25  ;;  %1286 = vmatprep.mubr.bf16.mxu1 %v3111_v26  ;;  %v3178_v26 = vld [vmem:[%s4330_s0 + $0x2dc] ss:$20 sps:$4 sm:$0xff]  }
  0xa3   :  { %2664 = vmatprep.mubr.msk.bf16.mxu0 %vm3307_vm0, %v3306_v39 }
  0xa9   :  { %1287 = vmatmul.mubr.bf16.gmra.mrb[52].mxu1 %v3113_v27 }
  0xaa   :  { %2665 = vmatmul.mubr.msk.bf16.vlgmr.msra.gmra.mrb[0].mxu0 %vm1074_vm1, %v3114_v28  ;;  %1294 = vmatprep.mubr.bf16.mxu1 %v3115_v29 }
  0xab   :  { %2668 = vmatprep.mubr.msk.bf16.mxu0 %vm3307_vm0, %v3306_v39 }
  0xb1   :  { %1295 = vmatmul.mubr.bf16.gmra.mrb[56].mxu1 %v3117_v30  ;;  %v3180_v30 = vld [vmem:[%s4330_s0 + $0x2d8] ss:$20 sps:$4 sm:$0xff]  }
  0xb2   :  { %2669 = vmatmul.mubr.msk.bf16.gmra.mrb[4].mxu0 %vm1074_vm1, %v3118_v31  ;;  %1302 = vmatprep.mubr.bf16.mxu1 %v3119_v32  ;;  %v3181_v31 = vld [vmem:[%s4330_s0 + $0x2b8] ss:$20 sps:$4 sm:$0xff]  }
  0xb3   :  { %2672 = vmatprep.mubr.msk.bf16.mxu0 %vm3307_vm0, %v3306_v39 }
  0xb9   :  { %1303 = vmatmul.mubr.bf16.gmra.mrb[60].mxu1 %v3121_v33  ;;  %v3182_v33 = vld [vmem:[%s4330_s0 + $0x304] ss:$20 sps:$4 sm:$0xff]  }
  0xba   :  { %2673 = vmatmul.mubr.msk.bf16.gmra.mrb[8].mxu0 %vm1074_vm1, %v3122_v34  ;;  %1310 = vmatprep.mubr.bf16.mxu1 %v3123_v35 }
  0xbb   :  { %2676 = vmatprep.mubr.msk.bf16.mxu0 %vm3307_vm0, %v3306_v39 }
  0xc1   :  { %1311 = vmatmul.mubr.bf16.gmra.mrb[64].mxu1 %v3125_v36 }
  0xc2   :  { %2677 = vmatmul.mubr.msk.bf16.gmra.mrb[12].mxu0 %vm1074_vm1, %v3126_v37  ;;  %1318 = vmatprep.mubr.bf16.mxu1 %v3127_v38  ;;  %v3184_v37 = vld [vmem:[%s4330_s0 + $0x300] ss:$20 sps:$4 sm:$0xff]  }
  0xc3   :  { %2680 = vmatprep.mubr.msk.bf16.mxu0 %vm3307_vm0, %v3306_v39  ;;  %v3185_v38 = vld [vmem:[%s4330_s0 + $0x2e0] ss:$20 sps:$4 sm:$0xff]  }
  0xc9   :  { %1319 = vmatmul.mubr.bf16.gmra.mrb[68].mxu1 %v3129_v40 }
  0xca   :  { %2681 = vmatmul.mubr.msk.bf16.gmra.mrb[16].mxu0 %vm1074_vm1, %v3130_v41  ;;  %1326 = vmatprep.mubr.bf16.mxu1 %v3131_v42  ;;  %v3186_v41 = vld [vmem:[%s4330_s0 + $0x32c] ss:$20 sps:$4 sm:$0xff]  }
  0xcb   :  { %2684 = vmatprep.mubr.msk.bf16.mxu0 %vm3307_vm0, %v3306_v39 }
  0xd1   :  { %1327 = vmatmul.mubr.bf16.gmra.mrb[72].mxu1 %v3133_v43 }
  0xd2   :  { %2685 = vmatmul.mubr.msk.bf16.gmra.mrb[20].mxu0 %vm1074_vm1, %v3134_v44  ;;  %1334 = vmatprep.mubr.bf16.mxu1 %v3135_v45  ;;  %v3188_v45 = vld [vmem:[%s4330_s0 + $0x328] ss:$20 sps:$4 sm:$0xff]  }
  0xd3   :  { %2688 = vmatprep.mubr.msk.bf16.mxu0 %vm3307_vm0, %v3306_v39 }
  0xd9   :  { %1335 = vmatmul.mubr.bf16.gmra.mrb[76].mxu1 %v3137_v46  ;;  %v3189_v46 = vld [vmem:[%s4330_s0 + $0x308] ss:$20 sps:$4 sm:$0xff]  }
  0xda   :  { %2689 = vmatmul.mubr.msk.bf16.gmra.mrb[24].mxu0 %vm1074_vm1, %v3138_v47  ;;  %1342 = vmatprep.mubr.bf16.mxu1 %v3139_v48  ;;  %v3190_v48 = vld [vmem:[%s4330_s0 + $0x354] ss:$20 sps:$4 sm:$0xff]  }
  0xdb   :  { %2692 = vmatprep.mubr.msk.bf16.mxu0 %vm3307_vm0, %v3306_v39 }
  0xe1   :  { %1343 = vmatmul.mubr.bf16.gmra.mrb[80].mxu1 %v3141_v49 }
  0xe2   :  { %2693 = vmatmul.mubr.msk.bf16.gmra.mrb[28].mxu0 %vm1074_vm1, %v3142_v50  ;;  %1350 = vmatprep.mubr.bf16.mxu1 %v3143_v51 }
  0xe3   :  { %2696 = vmatprep.mubr.msk.bf16.mxu0 %vm3307_vm0, %v3306_v39 }
  0xe9   :  { %1351 = vmatmul.mubr.bf16.gmra.mrb[84].mxu1 %v3145_v52  ;;  %v3192_v52 = vld [vmem:[%s4330_s0 + $0x350] ss:$20 sps:$4 sm:$0xff]  }
  0xea   :  { %2697 = vmatmul.mubr.msk.bf16.gmra.mrb[32].mxu0 %vm1074_vm1, %v3146_v53  ;;  %1358 = vmatprep.mubr.bf16.mxu1 %v3147_v54  ;;  %v3193_v53 = vld [vmem:[%s4330_s0 + $0x330] ss:$20 sps:$4 sm:$0xff]  }
  0xeb   :  { %2700 = vmatprep.mubr.msk.bf16.mxu0 %vm3307_vm0, %v3306_v39 }
  0xf1   :  { %1359 = vmatmul.mubr.bf16.gmra.mrb[88].mxu1 %v3149_v55  ;;  %v3194_v55 = vld [vmem:[%s4330_s0 + $0x37c] ss:$20 sps:$4 sm:$0xff]  }
  0xf2   :  { %2701 = vmatmul.mubr.msk.bf16.gmra.mrb[36].mxu0 %vm1074_vm1, %v3150_v56  ;;  %1366 = vmatprep.mubr.bf16.mxu1 %v3151_v57 }
  0xf3   :  { %2704 = vmatprep.mubr.msk.bf16.mxu0 %vm3307_vm0, %v3306_v39 }
  0xf9   :  { %1367 = vmatmul.mubr.bf16.gmra.mrb[92].mxu1 %v3153_v59  ;;  %v3196_v59 = vld [vmem:[%s4330_s0 + $0x378] ss:$20 sps:$4 sm:$0xff]  }
  0xfa   :  { %2705 = vmatmul.mubr.msk.bf16.gmra.mrb[40].mxu0 %vm1074_vm1, %v3154_v60  ;;  %1374 = vmatprep.mubr.bf16.mxu1 %v2464_v61  ;;  %v3197_v60 = vld [vmem:[%s4330_s0 + $0x358] ss:$20 sps:$4 sm:$0xff]  }
  0xfb   :  { %2708 = vmatprep.mubr.msk.bf16.mxu0 %vm3307_vm0, %v3306_v39 }
 0x101   :  { %1375 = vmatmul.mubr.bf16.gmra.mrb[96].mxu1 %v2463_v62  ;;  %v3198_v62 = vld [vmem:[%s4330_s0 + $0x3a4] ss:$20 sps:$4 sm:$0xff]  }
 0x102   :  { %2709 = vmatmul.mubr.msk.bf16.gmra.mrb[44].mxu0 %vm1074_vm1, %v3157_v63  ;;  %1518 = vmatprep.mubr.bf16.mxu1 %v3160_v1  ;;  %v160_v1 = vld [vmem:[%s4330_s0 + $0x3c8] sm:$0xff] }
 0x103   :  { %2712 = vmatprep.mubr.msk.bf16.mxu0 %vm3307_vm0, %v3306_v39 }
 0x109   :  { %1519 = vmatmul.mubr.bf16.vlgmr.msra.gmra.mrb[52].mxu1 %v3158_v2 }
 0x10a   :  { %2713 = vmatmul.mubr.msk.bf16.gmra.mrb[48].mxu0 %vm1074_vm1, %v3161_v3  ;;  %1526 = vmatprep.mubr.bf16.mxu1 %v3162_v4  ;;  %v3200_v4 = vld [vmem:[%s4330_s0 + $0x3a0] ss:$20 sps:$4 sm:$0xff]  }
 0x10b   :  { %2716 = vmatprep.mubr.msk.bf16.mxu0 %vm3307_vm0, %v3306_v39 }
 0x111   :  { %1527 = vmatmul.mubr.bf16.gmra.mrb[56].mxu1 %v3164_v5  ;;  %v3201_v5 = vld [vmem:[%s4330_s0 + $0x380] ss:$20 sps:$4 sm:$0xff]  }
 0x112   :  { %2717 = vmatmul.mubr.msk.bf16.gmra.mrb[52].mxu0 %vm1074_vm1, %v3165_v6  ;;  %1534 = vmatprep.mubr.bf16.mxu1 %v3166_v7  ;;  %v2466_v7 = vcombine.high %v160_v1, %v160_v1 }
 0x113   :  { %2720 = vmatprep.mubr.msk.bf16.mxu0 %vm3307_vm0, %v3306_v39 }
 0x114   :  { %v3878_v8 = vpop.f32.mrb[0].mxu1 }
 0x115   :  { %v1186_v9 = vpop.f32.mrb[1].mxu1 }
 0x116   :  { %v3886_v12 = vpop.f32.mrb[2].mxu1 }
 0x117   :  { %v1189_v13 = vpop.f32.mrb[3].mxu1 }
 0x118   :  { %v3204_v13 = vld [vmem:[%s4330_s0 + $0x3a8] ss:$20 sps:$4 sm:$0xff]  }
 0x119   :  { %1535 = vmatmul.mubr.bf16.gmra.mrb[60].mxu1 %v3168_v10 }
 0x11a   :  { %2721 = vmatmul.mubr.msk.bf16.gmra.mrb[56].mxu0 %vm1074_vm1, %v3169_v11  ;;  %1542 = vmatprep.mubr.bf16.mxu1 %v3170_v0  ;;  %v2465_v0 = vcombine.low %v160_v1, %v160_v1 }
 0x11b   :  { %2724 = vmatprep.mubr.msk.bf16.mxu0 %vm3307_vm0, %v3306_v39 }
 0x11c   :  { %v3894_v14 = vpop.f32.mrb[4].mxu1 }
 0x11d   :  { %v1194_v15 = vpop.f32.mrb[5].mxu1 }
 0x11e   :  { %v3902_v18 = vpop.f32.mrb[6].mxu1 }
 0x11f   :  { %v1197_v20 = vpop.f32.mrb[7].mxu1 }
 0x120   :  { %v3205_v20 = vld [vmem:[%s4330_s0 + $0x3d0] ss:$0 sps:$4 sm:$0xff]  }
 0x121   :  { %1543 = vmatmul.mubr.bf16.gmra.mrb[64].mxu1 %v3172_v16 }
 0x122   :  { %2725 = vmatmul.mubr.msk.bf16.gmra.mrb[60].mxu0 %vm1074_vm1, %v3173_v17  ;;  %1550 = vmatprep.mubr.bf16.mxu1 %v3174_v19 }
 0x123   :  { %2728 = vmatprep.mubr.msk.bf16.mxu0 %vm3307_vm0, %v3306_v39 }
 0x124   :  { %v3910_v21 = vpop.f32.mrb[8].mxu1 }
 0x125   :  { %v1202_v22 = vpop.f32.mrb[9].mxu1 }
 0x126   :  { %v3918_v25 = vpop.f32.mrb[10].mxu1 }
 0x127   :  { %v1205_v27 = vpop.f32.mrb[11].mxu1 }
 0x129   :  { %1551 = vmatmul.mubr.bf16.gmra.mrb[68].mxu1 %v3176_v23 }
 0x12a   :  { %2729 = vmatmul.mubr.msk.bf16.gmra.mrb[64].mxu0 %vm1074_vm1, %v3177_v24  ;;  %1558 = vmatprep.mubr.bf16.mxu1 %v3178_v26 }
 0x12b   :  { %2732 = vmatprep.mubr.msk.bf16.mxu0 %vm3307_vm0, %v3306_v39 }
 0x12c   :  { %v3926_v28 = vpop.f32.mrb[12].mxu1 }
 0x12d   :  { %v1210_v29 = vpop.f32.mrb[13].mxu1 }
 0x12e   :  { %v3934_v32 = vpop.f32.mrb[14].mxu1 }
 0x12f   :  { %v1213_v34 = vpop.f32.mrb[15].mxu1 }
 0x130   :  { %v4051_v34 = vld [vmem:[%s4331_s2] ss:$0 sm:$0xff] }
 0x131   :  { %1559 = vmatmul.mubr.bf16.gmra.mrb[72].mxu1 %v3180_v30 }
 0x132   :  { %2733 = vmatmul.mubr.msk.bf16.gmra.mrb[68].mxu0 %vm1074_vm1, %v3181_v31  ;;  %1566 = vmatprep.mubr.bf16.mxu1 %v3182_v33 }
 0x133   :  { %2736 = vmatprep.mubr.msk.bf16.mxu0 %vm3307_vm0, %v3306_v39 }
 0x134   :  { %v3942_v35 = vpop.f32.mrb[16].mxu1 }
 0x135   :  { %v1218_v36 = vpop.f32.mrb[17].mxu1 }
 0x136   :  { %v3950_v40 = vpop.f32.mrb[18].mxu1  ;;  %v1185_v36 = vadd.f32 %v4051_v34, %v3878_v8  ;;  %v1196_v8 = vadd.f32 %v4051_v34, %v3902_v18  ;;  %v1204_v18 = vadd.f32 %v4051_v34, %v3918_v25 }
 0x137   :  { %v1221_v42 = vpop.f32.mrb[19].mxu1 }
 0x139   :  { %1567 = vmatmul.mubr.bf16.gmra.mrb[76].mxu1 %v3184_v37 }
 0x13a   :  { %2737 = vmatmul.mubr.msk.bf16.gmra.mrb[72].mxu0 %vm1074_vm1, %v3185_v38  ;;  %1574 = vmatprep.mubr.bf16.mxu1 %v3186_v41  ;;  %v1188_v38 = vadd.f32 %v4051_v34, %v3886_v12 }
 0x13b   :  { %2740 = vmatprep.mubr.msk.bf16.mxu0 %vm3307_vm0, %v3306_v39 }
 0x13c   :  { %v3958_v43 = vpop.f32.mrb[20].mxu1 }
 0x13d   :  { %v1226_v44 = vpop.f32.mrb[21].mxu1 }
 0x13e   :  { %v3966_v47 = vpop.f32.mrb[22].mxu1 }
 0x13f   :  { %v1229_v49 = vpop.f32.mrb[23].mxu1 }
 0x141   :  { %1575 = vmatmul.mubr.bf16.gmra.mrb[80].mxu1 %v3188_v45 }
 0x142   :  { %2741 = vmatmul.mubr.msk.bf16.gmra.mrb[76].mxu0 %vm1074_vm1, %v3189_v46  ;;  %1582 = vmatprep.mubr.bf16.mxu1 %v3190_v48 }
 0x143   :  { %2744 = vmatprep.mubr.msk.bf16.mxu0 %vm3307_vm0, %v3306_v39 }
 0x144   :  { %v3974_v50 = vpop.f32.mrb[24].mxu1 }
 0x145   :  { %v1234_v51 = vpop.f32.mrb[25].mxu1 }
 0x146   :  { %v3982_v54 = vpop.f32.mrb[26].mxu1  ;;  %v1193_v51 = vadd.f32 %v4051_v34, %v3894_v14 }
 0x147   :  { %v1237_v56 = vpop.f32.mrb[27].mxu1 }
 0x149   :  { %1583 = vmatmul.mubr.bf16.gmra.mrb[84].mxu1 %v3192_v52 }
 0x14a   :  { %2745 = vmatmul.mubr.msk.bf16.gmra.mrb[80].mxu0 %vm1074_vm1, %v3193_v53  ;;  %1590 = vmatprep.mubr.bf16.mxu1 %v3194_v55 }
 0x14b   :  { %2748 = vmatprep.mubr.msk.bf16.mxu0 %vm3307_vm0, %v3306_v39 }
 0x14c   :  { %v3990_v57 = vpop.f32.mrb[28].mxu1 }
 0x14d   :  { %v1242_v58 = vpop.f32.mrb[29].mxu1 }
 0x14e   :  { %v3998_v61 = vpop.f32.mrb[30].mxu1 }
 0x14f   :  { %v1245_v63 = vpop.f32.mrb[31].mxu1 }
 0x150   :  { %v1201_v63 = vadd.f32 %v4051_v34, %v3910_v21 }
 0x151   :  { %1591 = vmatmul.mubr.bf16.gmra.mrb[88].mxu1 %v3196_v59 }
 0x152   :  { %2749 = vmatmul.mubr.msk.bf16.gmra.mrb[84].mxu0 %vm1074_vm1, %v3197_v60  ;;  %1598 = vmatprep.mubr.bf16.mxu1 %v3198_v62 }
 0x153   :  { %2752 = vmatprep.mubr.msk.bf16.mxu0 %vm3307_vm0, %v3306_v39 }
 0x154   :  { %v4009_v2 = vpop.f32.mrb[32].mxu1 }
 0x155   :  { %v1250_v3 = vpop.f32.mrb[33].mxu1 }
 0x156   :  { %v4017_v6 = vpop.f32.mrb[34].mxu1 }
 0x157   :  { %v1253_v9 = vpop.f32.mrb[35].mxu1 }
 0x159   :  { %1599 = vmatmul.mubr.bf16.gmra.mrb[92].mxu1 %v3200_v4 }
 0x15a   :  { %2753 = vmatmul.mubr.msk.bf16.gmra.mrb[88].mxu0 %vm1074_vm1, %v3201_v5  ;;  %1606 = vmatprep.mubr.bf16.mxu1 %v2466_v7 }
 0x15b   :  { %2756 = vmatprep.mubr.msk.bf16.mxu0 %vm3307_vm0, %v3306_v39 }
 0x15c   :  { %v4022_v10 = vpop.f32.mrb[36].mxu1 }
 0x15d   :  { %v1258_v11 = vpop.f32.mrb[37].mxu1 }
 0x15e   :  { %v4027_v15 = vpop.f32.mrb[38].mxu1 }
 0x15f   :  { %v1261_v16 = vpop.f32.mrb[39].mxu1 }
 0x161   :  { %1607 = vmatmul.mubr.bf16.gmra.mrb[96].mxu1 %v2465_v0 }
 0x162   :  { %2757 = vmatmul.mubr.msk.bf16.gmra.mrb[92].mxu0 %vm1074_vm1, %v3204_v13 }
 0x163   :  { %2760 = vmatprep.mubr.msk.bf16.mxu0 %vm3307_vm0, %v3306_v39 }
 0x164   :  { %v4032_v17 = vpop.f32.mrb[40].mxu1 }
 0x165   :  { %v1266_v19 = vpop.f32.mrb[41].mxu1 }
 0x166   :  { %v4037_v22 = vpop.f32.mrb[42].mxu1 }
 0x167   :  { %v1269_v23 = vpop.f32.mrb[43].mxu1 }
 0x16a   :  { %2761 = vmatmul.mubr.msk.bf16.gmra.mrb[96].mxu0 %vm1074_vm1, %v3205_v20 }
 0x16c   :  { %v4040_v24 = vpop.f32.mrb[44].mxu1 }
 0x16d   :  { %v1274_v26 = vpop.f32.mrb[45].mxu1 }
 0x16e   :  { %v4042_v27 = vpop.f32.mrb[46].mxu1 }
 0x16f   :  { %v1277_v29 = vpop.f32.mrb[47].mxu1 }
 0x174   :  { %v4044_v30 = vpop.f32.mrb[48].mxu1 }
 0x175   :  { %v1282_v39 = vpop.f32.mrb[49].mxu1 }
 0x176   :  { %v4046_v31 = vpop.f32.mrb[50].mxu1  ;;  %v1209_v39 = vadd.f32 %v4051_v34, %v3926_v28 }
 0x177   :  { %v1285_v33 = vpop.f32.mrb[51].mxu1 }
 0x17d   :  { %v1648_v37 = vpop.f32.mrb[0].mxu0 }
 0x17e   :  { %v2797_v41 = vadd.f32 %v1648_v37, %v1185_v36  ;;  %v2666_v42 = vpop.f32.mrb[1].mxu0 }
 0x17f   :  { %v1651_v44 = vpop.f32.mrb[2].mxu0 }
 0x180   :  { %v1895_v45 = vmul.f32 0.70710677, %v2797_v41  ;;  %v2799_v46 = vadd.f32 %v1651_v44, %v1188_v38  ;;  %v2667_v48 = vpop.f32.mrb[3].mxu0  ;;  %v1846_v1 = vmul.f32 0.5, %v2797_v41  ;;  %v1212_v41 = vadd.f32 %v4051_v34, %v3934_v32 }
 0x182   :  { %3206 = verf.f32 %v1895_v45  ;;  %v1896_v49 = vmul.f32 0.70710677, %v2799_v46  ;;  %v1847_v11 = vmul.f32 0.5, %v2799_v46 }
 0x184   :  { %3208 = verf.f32 %v1896_v49 }
 0x185   :  { %v1656_v52 = vpop.f32.mrb[4].mxu0 }
 0x186   :  { %v2801_v53 = vadd.f32 %v1656_v52, %v1193_v51  ;;  %v2670_v55 = vpop.f32.mrb[5].mxu0 }
 0x187   :  { %v1659_v56 = vpop.f32.mrb[6].mxu0 }
 0x188   :  { %v1897_v12 = vmul.f32 0.70710677, %v2801_v53  ;;  %v2803_v58 = vadd.f32 %v1659_v56, %v1196_v8  ;;  %v2671_v59 = vpop.f32.mrb[7].mxu0  ;;  %v1848_v33 = vmul.f32 0.5, %v2801_v53 }
 0x18a   :  { %3210 = verf.f32 %v1897_v12  ;;  %v1898_v60 = vmul.f32 0.70710677, %v2803_v58  ;;  %v1849_v46 = vmul.f32 0.5, %v2803_v58  ;;  %v1217_v12 = vadd.f32 %v4051_v34, %v3942_v35 }
 0x18c   :  { %v3207_v62 = vpop.eup %3206  ;;  %3212 = verf.f32 %v1898_v60 }
 0x18d   :  { %v1993_v14 = vadd.f32 1.0, %v3207_v62  ;;  %v1664_v3 = vpop.f32.mrb[8].mxu0 }
 0x18e   :  { %v3209_v4 = vpop.eup %3208  ;;  %v2805_v5 = vadd.f32 %v1664_v3, %v1201_v63  ;;  %v2674_v7 = vpop.f32.mrb[9].mxu0  ;;  %v1220_v63 = vadd.f32 %v4051_v34, %v3950_v40 }
 0x18f   :  { %v2042_v9 = vmul.f32 %v1993_v14, %v1846_v1  ;;  %v1994_v0 = vadd.f32 1.0, %v3209_v4  ;;  %v1667_v13 = vpop.f32.mrb[10].mxu0 }
 0x190   :  { %v1899_v16 = vmul.f32 0.70710677, %v2805_v5  ;;  %v2807_v19 = vadd.f32 %v1667_v13, %v1204_v18  ;;  %v2675_v20 = vpop.f32.mrb[11].mxu0  ;;  %v1850_v58 = vmul.f32 0.5, %v2805_v5 }
 0x191   :  { %v2578_v23 = vpack.c.bf16 %v2042_v9, %v2042_v9  ;;  %v2043_v21 = vmul.f32 %v1994_v0, %v1847_v11  ;;  %v1225_v20 = vadd.f32 %v4051_v34, %v3958_v43 }
 0x192   :  { %3214 = verf.f32 %v1899_v16  ;;  %v1900_v26 = vmul.f32 0.70710677, %v2807_v19  ;;  %v1851_v4 = vmul.f32 0.5, %v2807_v19 }
 0x193   :  { %2289 = vst.msk [vmem:[%s4332_s3] sm:$0xf] %vm2288_vm2, %v2578_v23  ;;  %v2579_v25 = vpack.c.bf16 %v2043_v21, %v2043_v21 }
 0x194   :  { %v3211_v29 = vpop.eup %3210  ;;  %3216 = verf.f32 %v1900_v26 }
 0x195   :  { %2290 = vst.msk [vmem:[%s4332_s3 + $0x4] sm:$0xf] %vm2288_vm2, %v2579_v25  ;;  %v1995_v36 = vadd.f32 1.0, %v3211_v29  ;;  %v1672_v37 = vpop.f32.mrb[12].mxu0  ;;  %v1228_v25 = vadd.f32 %v4051_v34, %v3966_v47 }
 0x196   :  { %v3213_v38 = vpop.eup %3212  ;;  %v2809_v42 = vadd.f32 %v1672_v37, %v1209_v39  ;;  %v2678_v44 = vpop.f32.mrb[13].mxu0 }
 0x197   :  { %v2044_v45 = vmul.f32 %v1995_v36, %v1848_v33  ;;  %v1996_v48 = vadd.f32 1.0, %v3213_v38  ;;  %v1675_v49 = vpop.f32.mrb[14].mxu0 }
 0x198   :  { %v1901_v28 = vmul.f32 0.70710677, %v2809_v42  ;;  %v2811_v51 = vadd.f32 %v1675_v49, %v1212_v41  ;;  %v2679_v52 = vpop.f32.mrb[15].mxu0  ;;  %v1852_v19 = vmul.f32 0.5, %v2809_v42  ;;  %v1233_v49 = vadd.f32 %v4051_v34, %v3974_v50 }
 0x199   :  { %v2580_v8 = vpack.c.bf16 %v2044_v45, %v2044_v45  ;;  %v2045_v55 = vmul.f32 %v1996_v48, %v1849_v46 }
 0x19a   :  { %3218 = verf.f32 %v1901_v28  ;;  %v1902_v56 = vmul.f32 0.70710677, %v2811_v51  ;;  %v1853_v36 = vmul.f32 0.5, %v2811_v51 }
 0x19b   :  { %2291 = vst.msk [vmem:[%s4332_s3 + $0x8] sm:$0xf] %vm2288_vm2, %v2580_v8  ;;  %v2581_v53 = vpack.c.bf16 %v2045_v55, %v2045_v55  ;;  %v1236_v55 = vadd.f32 %v4051_v34, %v3982_v54 }
 0x19c   :  { %v3215_v32 = vpop.eup %3214  ;;  %3220 = verf.f32 %v1902_v56 }
 0x19d   :  { %2292 = vst.msk [vmem:[%s4332_s3 + $0xc] sm:$0xf] %vm2288_vm2, %v2581_v53  ;;  %v1997_v59 = vadd.f32 1.0, %v3215_v32  ;;  %v1680_v60 = vpop.f32.mrb[16].mxu0 }
 0x19e   :  { %v3217_v62 = vpop.eup %3216  ;;  %v2813_v1 = vadd.f32 %v1680_v60, %v1217_v12  ;;  %v2682_v14 = vpop.f32.mrb[17].mxu0 }
 0x19f   :  { %v2046_v3 = vmul.f32 %v1997_v59, %v1850_v58  ;;  %v1998_v18 = vadd.f32 1.0, %v3217_v62  ;;  %v1683_v7 = vpop.f32.mrb[18].mxu0 }
 0x1a0   :  { %v1903_v35 = vmul.f32 0.70710677, %v2813_v1  ;;  %v2815_v9 = vadd.f32 %v1683_v7, %v1220_v63  ;;  %v2683_v11 = vpop.f32.mrb[19].mxu0  ;;  %v1854_v28 = vmul.f32 0.5, %v2813_v1 }
 0x1a1   :  { %v2582_v0 = vpack.c.bf16 %v2046_v3, %v2046_v3  ;;  %v2047_v13 = vmul.f32 %v1998_v18, %v1851_v4  ;;  %v1241_v4 = vadd.f32 %v4051_v34, %v3990_v57  ;;  %v1244_v11 = vadd.f32 %v4051_v34, %v3998_v61 }
 0x1a2   :  { %3222 = verf.f32 %v1903_v35  ;;  %v1904_v16 = vmul.f32 0.70710677, %v2815_v9  ;;  %v1855_v12 = vmul.f32 0.5, %v2815_v9 }
 0x1a3   :  { %2293 = vst.msk [vmem:[%s4332_s3 + $0x10] sm:$0xf] %vm2288_vm2, %v2582_v0  ;;  %v2583_v5 = vpack.c.bf16 %v2047_v13, %v2047_v13 }
 0x1a4   :  { %v3219_v40 = vpop.eup %3218  ;;  %3224 = verf.f32 %v1904_v16 }
 0x1a5   :  { %2294 = vst.msk [vmem:[%s4332_s3 + $0x14] sm:$0xf] %vm2288_vm2, %v2583_v5  ;;  %v1999_v23 = vadd.f32 1.0, %v3219_v40  ;;  %v1688_v21 = vpop.f32.mrb[20].mxu0 }
 0x1a6   :  { %v3221_v26 = vpop.eup %3220  ;;  %v2817_v29 = vadd.f32 %v1688_v21, %v1225_v20  ;;  %v2686_v39 = vpop.f32.mrb[21].mxu0 }
 0x1a7   :  { %v2048_v33 = vmul.f32 %v1999_v23, %v1852_v19  ;;  %v2000_v37 = vadd.f32 1.0, %v3221_v26  ;;  %v1691_v38 = vpop.f32.mrb[22].mxu0  ;;  %v1249_v39 = vadd.f32 %v4051_v34, %v4009_v2 }
 0x1a8   :  { %v1905_v43 = vmul.f32 0.70710677, %v2817_v29  ;;  %v2819_v41 = vadd.f32 %v1691_v38, %v1228_v25  ;;  %v2687_v44 = vpop.f32.mrb[23].mxu0  ;;  %v1856_v18 = vmul.f32 0.5, %v2817_v29 }
 0x1a9   :  { %v2584_v45 = vpack.c.bf16 %v2048_v33, %v2048_v33  ;;  %v2049_v46 = vmul.f32 %v2000_v37, %v1853_v36 }
 0x1aa   :  { %3226 = verf.f32 %v1905_v43  ;;  %v1906_v48 = vmul.f32 0.70710677, %v2819_v41  ;;  %v1857_v5 = vmul.f32 0.5, %v2819_v41  ;;  %v1252_v43 = vadd.f32 %v4051_v34, %v4017_v6 }
 0x1ab   :  { %2295 = vst.msk [vmem:[%s4332_s3 + $0x18] sm:$0xf] %vm2288_vm2, %v2584_v45  ;;  %v2585_v42 = vpack.c.bf16 %v2049_v46, %v2049_v46 }
 0x1ac   :  { %v3223_v47 = vpop.eup %3222  ;;  %3228 = verf.f32 %v1906_v48 }
 0x1ad   :  { %2296 = vst.msk [vmem:[%s4332_s3 + $0x1c] sm:$0xf] %vm2288_vm2, %v2585_v42  ;;  %v2001_v51 = vadd.f32 1.0, %v3223_v47  ;;  %v1696_v52 = vpop.f32.mrb[24].mxu0 }
 0x1ae   :  { %v3225_v8 = vpop.eup %3224  ;;  %v2821_v56 = vadd.f32 %v1696_v52, %v1233_v49  ;;  %v2690_v53 = vpop.f32.mrb[25].mxu0 }
 0x1af   :  { %v2050_v32 = vmul.f32 %v2001_v51, %v1854_v28  ;;  %v2002_v58 = vadd.f32 1.0, %v3225_v8  ;;  %v1699_v59 = vpop.f32.mrb[26].mxu0 }
 0x1b0   :  { %v1907_v50 = vmul.f32 0.70710677, %v2821_v56  ;;  %v2823_v60 = vadd.f32 %v1699_v59, %v1236_v55  ;;  %v2691_v62 = vpop.f32.mrb[27].mxu0  ;;  %v1858_v33 = vmul.f32 0.5, %v2821_v56  ;;  %v1257_v55 = vadd.f32 %v4051_v34, %v4022_v10 }
 0x1b1   :  { %v2586_v63 = vpack.c.bf16 %v2050_v32, %v2050_v32  ;;  %v2051_v14 = vmul.f32 %v2002_v58, %v1855_v12  ;;  %v1260_v58 = vadd.f32 %v4051_v34, %v4027_v15 }
 0x1b2   :  { %3230 = verf.f32 %v1907_v50  ;;  %v1908_v3 = vmul.f32 0.70710677, %v2823_v60  ;;  %v1859_v46 = vmul.f32 0.5, %v2823_v60 }
 0x1b3   :  { %2297 = vst.msk [vmem:[%s4332_s3 + $0x20] sm:$0xf] %vm2288_vm2, %v2586_v63  ;;  %v2587_v1 = vpack.c.bf16 %v2051_v14, %v2051_v14 }
 0x1b4   :  { %v3227_v54 = vpop.eup %3226  ;;  %3232 = verf.f32 %v1908_v3 }
 0x1b5   :  { %2298 = vst.msk [vmem:[%s4332_s3 + $0x24] sm:$0xf] %vm2288_vm2, %v2587_v1  ;;  %v2003_v7 = vadd.f32 1.0, %v3227_v54  ;;  %v1704_v35 = vpop.f32.mrb[28].mxu0 }
 0x1b6   :  { %v3229_v9 = vpop.eup %3228  ;;  %v2825_v0 = vadd.f32 %v1704_v35, %v1241_v4  ;;  %v2694_v13 = vpop.f32.mrb[29].mxu0  ;;  %v1265_v35 = vadd.f32 %v4051_v34, %v4032_v17 }
 0x1b7   :  { %v2052_v16 = vmul.f32 %v2003_v7, %v1856_v18  ;;  %v2004_v40 = vadd.f32 1.0, %v3229_v9  ;;  %v1707_v20 = vpop.f32.mrb[30].mxu0 }
 0x1b8   :  { %v1909_v57 = vmul.f32 0.70710677, %v2825_v0  ;;  %v2827_v19 = vadd.f32 %v1707_v20, %v1244_v11  ;;  %v2695_v23 = vpop.f32.mrb[31].mxu0  ;;  %v1860_v56 = vmul.f32 0.5, %v2825_v0 }
 0x1b9   :  { %v2588_v21 = vpack.c.bf16 %v2052_v16, %v2052_v16  ;;  %v2053_v26 = vmul.f32 %v2004_v40, %v1857_v5  ;;  %v1268_v16 = vadd.f32 %v4051_v34, %v4037_v22 }
 0x1ba   :  { %3234 = verf.f32 %v1909_v57  ;;  %v1910_v25 = vmul.f32 0.70710677, %v2827_v19  ;;  %v1861_v62 = vmul.f32 0.5, %v2827_v19 }
 0x1bb   :  { %2299 = vst.msk [vmem:[%s4332_s3 + $0x28] sm:$0xf] %vm2288_vm2, %v2588_v21  ;;  %v2589_v29 = vpack.c.bf16 %v2053_v26, %v2053_v26 }
 0x1bc   :  { %v3231_v61 = vpop.eup %3230  ;;  %3236 = verf.f32 %v1910_v25 }
 0x1bd   :  { %2300 = vst.msk [vmem:[%s4332_s3 + $0x2c] sm:$0xf] %vm2288_vm2, %v2589_v29  ;;  %v2005_v36 = vadd.f32 1.0, %v3231_v61  ;;  %v1712_v37 = vpop.f32.mrb[32].mxu0 }
 0x1be   :  { %v3233_v38 = vpop.eup %3232  ;;  %v2829_v41 = vadd.f32 %v1712_v37, %v1249_v39  ;;  %v2698_v44 = vpop.f32.mrb[33].mxu0 }
 0x1bf   :  { %v2054_v45 = vmul.f32 %v2005_v36, %v1858_v33  ;;  %v2006_v48 = vadd.f32 1.0, %v3233_v38  ;;  %v1715_v42 = vpop.f32.mrb[34].mxu0  ;;  %v1273_v33 = vadd.f32 %v4051_v34, %v4040_v24 }
 0x1c0   :  { %v1911_v2 = vmul.f32 0.70710677, %v2829_v41  ;;  %v2831_v47 = vadd.f32 %v1715_v42, %v1252_v43  ;;  %v2699_v49 = vpop.f32.mrb[35].mxu0  ;;  %v1862_v9 = vmul.f32 0.5, %v2829_v41  ;;  %v1276_v41 = vadd.f32 %v4051_v34, %v4042_v27 }
 0x1c1   :  { %v2590_v28 = vpack.c.bf16 %v2054_v45, %v2054_v45  ;;  %v2055_v51 = vmul.f32 %v2006_v48, %v1859_v46 }
 0x1c2   :  { %3238 = verf.f32 %v1911_v2  ;;  %v1912_v52 = vmul.f32 0.70710677, %v2831_v47  ;;  %v1863_v57 = vmul.f32 0.5, %v2831_v47 }
 0x1c3   :  { %2301 = vst.msk [vmem:[%s4332_s3 + $0x30] sm:$0xf] %vm2288_vm2, %v2590_v28  ;;  %v2591_v8 = vpack.c.bf16 %v2055_v51, %v2055_v51 }
 0x1c4   :  { %v3235_v6 = vpop.eup %3234  ;;  %3240 = verf.f32 %v1912_v52 }
 0x1c5   :  { %2302 = vst.msk [vmem:[%s4332_s3 + $0x34] sm:$0xf] %vm2288_vm2, %v2591_v8  ;;  %v2007_v53 = vadd.f32 1.0, %v3235_v6  ;;  %v1720_v32 = vpop.f32.mrb[36].mxu0  ;;  %v1281_v6 = vadd.f32 %v4051_v34, %v4044_v30 }
 0x1c6   :  { %v3237_v12 = vpop.eup %3236  ;;  %v2833_v59 = vadd.f32 %v1720_v32, %v1257_v55  ;;  %v2702_v50 = vpop.f32.mrb[37].mxu0 }
 0x1c7   :  { %v2056_v60 = vmul.f32 %v2007_v53, %v1860_v56  ;;  %v2008_v63 = vadd.f32 1.0, %v3237_v12  ;;  %v1723_v14 = vpop.f32.mrb[38].mxu0 }
 0x1c8   :  { %v1913_v10 = vmul.f32 0.70710677, %v2833_v59  ;;  %v2835_v3 = vadd.f32 %v1723_v14, %v1260_v58  ;;  %v2703_v1 = vpop.f32.mrb[39].mxu0  ;;  %v1864_v36 = vmul.f32 0.5, %v2833_v59  ;;  %v1284_v59 = vadd.f32 %v4051_v34, %v4046_v31 }
 0x1c9   :  { %v2592_v54 = vpack.c.bf16 %v2056_v60, %v2056_v60  ;;  %v2057_v4 = vmul.f32 %v2008_v63, %v1861_v62 }
 0x1ca   :  { %3242 = verf.f32 %v1913_v10  ;;  %v1914_v18 = vmul.f32 0.70710677, %v2835_v3  ;;  %v1865_v48 = vmul.f32 0.5, %v2835_v3 }
 0x1cb   :  { %2303 = vst.msk [vmem:[%s4332_s3 + $0x38] sm:$0xf] %vm2288_vm2, %v2592_v54  ;;  %v2593_v7 = vpack.c.bf16 %v2057_v4, %v2057_v4 }
 0x1cc   :  { %v3239_v15 = vpop.eup %3238  ;;  %3244 = verf.f32 %v1914_v18 }
 0x1cd   :  { %2304 = vst.msk [vmem:[%s4332_s3 + $0x3c] sm:$0xf] %vm2288_vm2, %v2593_v7  ;;  %v2009_v11 = vadd.f32 1.0, %v3239_v15  ;;  %v1728_v0 = vpop.f32.mrb[40].mxu0 }
 0x1ce   :  { %v3241_v13 = vpop.eup %3240  ;;  %v2837_v5 = vadd.f32 %v1728_v0, %v1265_v35  ;;  %v2706_v40 = vpop.f32.mrb[41].mxu0 }
 0x1cf   :  { %v2058_v20 = vmul.f32 %v2009_v11, %v1862_v9  ;;  %v2010_v19 = vadd.f32 1.0, %v3241_v13  ;;  %v1731_v23 = vpop.f32.mrb[42].mxu0 }
 0x1d0   :  { %v1915_v17 = vmul.f32 0.70710677, %v2837_v5  ;;  %v2839_v21 = vadd.f32 %v1731_v23, %v1268_v16  ;;  %v2707_v26 = vpop.f32.mrb[43].mxu0  ;;  %v1866_v56 = vmul.f32 0.5, %v2837_v5 }
 0x1d1   :  { %v2594_v25 = vpack.c.bf16 %v2058_v20, %v2058_v20  ;;  %v2059_v29 = vmul.f32 %v2010_v19, %v1863_v57 }
 0x1d2   :  { %3246 = verf.f32 %v1915_v17  ;;  %v1916_v61 = vmul.f32 0.70710677, %v2839_v21  ;;  %v1867_v30 = vmul.f32 0.5, %v2839_v21 }
 0x1d3   :  { %2305 = vst.msk [vmem:[%s4332_s3 + $0x40] sm:$0xf] %vm2288_vm2, %v2594_v25  ;;  %v2595_v39 = vpack.c.bf16 %v2059_v29, %v2059_v29 }
 0x1d4   :  { %v3243_v22 = vpop.eup %3242  ;;  %3248 = verf.f32 %v1916_v61 }
 0x1d5   :  { %2306 = vst.msk [vmem:[%s4332_s3 + $0x44] sm:$0xf] %vm2288_vm2, %v2595_v39  ;;  %v2011_v37 = vadd.f32 1.0, %v3243_v22  ;;  %v1736_v38 = vpop.f32.mrb[44].mxu0 }
 0x1d6   :  { %v3245_v43 = vpop.eup %3244  ;;  %v2841_v44 = vadd.f32 %v1736_v38, %v1273_v33  ;;  %v2710_v45 = vpop.f32.mrb[45].mxu0 }
 0x1d7   :  { %v2060_v46 = vmul.f32 %v2011_v37, %v1864_v36  ;;  %v2012_v42 = vadd.f32 1.0, %v3245_v43  ;;  %v1739_v2 = vpop.f32.mrb[46].mxu0 }
 0x1d8   :  { %v1917_v24 = vmul.f32 0.70710677, %v2841_v44  ;;  %v2843_v47 = vadd.f32 %v1739_v2, %v1276_v41  ;;  %v2711_v49 = vpop.f32.mrb[47].mxu0  ;;  %v1868_v0 = vmul.f32 0.5, %v2841_v44 }
 0x1d9   :  { %v2596_v28 = vpack.c.bf16 %v2060_v46, %v2060_v46  ;;  %v2061_v51 = vmul.f32 %v2012_v42, %v1865_v48 }
 0x1da   :  { %3250 = verf.f32 %v1917_v24  ;;  %v1918_v52 = vmul.f32 0.70710677, %v2843_v47  ;;  %v1869_v21 = vmul.f32 0.5, %v2843_v47 }
 0x1db   :  { %2307 = vst.msk [vmem:[%s4332_s3 + $0x48] sm:$0xf] %vm2288_vm2, %v2596_v28  ;;  %v2597_v8 = vpack.c.bf16 %v2061_v51, %v2061_v51 }
 0x1dc   :  { %v3247_v27 = vpop.eup %3246  ;;  %3252 = verf.f32 %v1918_v52  ;;  %v1520_v55 = vpop.f32.mrb[52].mxu1 }
 0x1dd   :  { %2308 = vst.msk [vmem:[%s4332_s3 + $0x4c] sm:$0xf] %vm2288_vm2, %v2597_v8  ;;  %v2013_v53 = vadd.f32 1.0, %v3247_v27  ;;  %v1744_v32 = vpop.f32.mrb[48].mxu0  ;;  %v1522_v12 = vpop.f32.mrb[53].mxu1  ;;  %v2848_v9 = vadd.f32 %v4051_v34, %v1520_v55 }
 0x1de   :  { %v3249_v58 = vpop.eup %3248  ;;  %v2845_v50 = vadd.f32 %v1744_v32, %v1281_v6  ;;  %v2714_v60 = vpop.f32.mrb[49].mxu0 }
 0x1df   :  { %v1523_v62 = vpop.f32.mrb[54].mxu1  ;;  %v2062_v63 = vmul.f32 %v2013_v53, %v1866_v56  ;;  %v2014_v14 = vadd.f32 1.0, %v3249_v58  ;;  %v1747_v10 = vpop.f32.mrb[50].mxu0 }
 0x1e0   :  { %v1525_v3 = vpop.f32.mrb[55].mxu1  ;;  %v1919_v1 = vmul.f32 0.70710677, %v2845_v50  ;;  %v2847_v54 = vadd.f32 %v1747_v10, %v1284_v59  ;;  %v2715_v4 = vpop.f32.mrb[51].mxu0  ;;  %v2850_v20 = vadd.f32 %v4051_v34, %v1523_v62  ;;  %v1870_v45 = vmul.f32 0.5, %v2845_v50 }
 0x1e1   :  { %v2598_v18 = vpack.c.bf16 %v2062_v63, %v2062_v63  ;;  %v2063_v7 = vmul.f32 %v2014_v14, %v1867_v30 }
 0x1e2   :  { %3254 = verf.f32 %v1919_v1  ;;  %v1920_v15 = vmul.f32 0.70710677, %v2847_v54  ;;  %v1871_v52 = vmul.f32 0.5, %v2847_v54 }
 0x1e3   :  { %2309 = vst.msk [vmem:[%s4332_s3 + $0x50] sm:$0xf] %vm2288_vm2, %v2598_v18  ;;  %v2599_v31 = vpack.c.bf16 %v2063_v7, %v2063_v7 }
 0x1e4   :  { %v3251_v35 = vpop.eup %3250  ;;  %3256 = verf.f32 %v1920_v15  ;;  %v1528_v11 = vpop.f32.mrb[56].mxu1 }
 0x1e5   :  { %2310 = vst.msk [vmem:[%s4332_s3 + $0x54] sm:$0xf] %vm2288_vm2, %v2599_v31  ;;  %v2015_v13 = vadd.f32 1.0, %v3251_v35  ;;  %v1752_v16 = vpop.f32.mrb[52].mxu0  ;;  %v1530_v5 = vpop.f32.mrb[57].mxu1  ;;  %v2852_v41 = vadd.f32 %v4051_v34, %v1528_v11 }
 0x1e6   :  { %v3253_v40 = vpop.eup %3252  ;;  %v2849_v57 = vadd.f32 %v2848_v9, %v1752_v16  ;;  %v2718_v19 = vpop.f32.mrb[53].mxu0 }
 0x1e7   :  { %v1531_v23 = vpop.f32.mrb[58].mxu1  ;;  %v2064_v17 = vmul.f32 %v2015_v13, %v1868_v0  ;;  %v2016_v26 = vadd.f32 1.0, %v3253_v40  ;;  %v1755_v25 = vpop.f32.mrb[54].mxu0 }
 0x1e8   :  { %v1533_v29 = vpop.f32.mrb[59].mxu1  ;;  %v1921_v61 = vmul.f32 0.70710677, %v2849_v57  ;;  %v2851_v39 = vadd.f32 %v2850_v20, %v1755_v25  ;;  %v2719_v22 = vpop.f32.mrb[55].mxu0  ;;  %v2854_v24 = vadd.f32 %v4051_v34, %v1531_v23  ;;  %v1872_v63 = vmul.f32 0.5, %v2849_v57 }
 0x1e9   :  { %v2600_v33 = vpack.c.bf16 %v2064_v17, %v2064_v17  ;;  %v2065_v36 = vmul.f32 %v2016_v26, %v1869_v21 }
 0x1ea   :  { %3258 = verf.f32 %v1921_v61  ;;  %v1922_v37 = vmul.f32 0.70710677, %v2851_v39  ;;  %v1873_v15 = vmul.f32 0.5, %v2851_v39 }
 0x1eb   :  { %2311 = vst.msk [vmem:[%s4332_s3 + $0x58] sm:$0xf] %vm2288_vm2, %v2600_v33  ;;  %v2601_v38 = vpack.c.bf16 %v2065_v36, %v2065_v36 }
 0x1ec   :  { %v3255_v43 = vpop.eup %3254  ;;  %3260 = verf.f32 %v1922_v37  ;;  %v1536_v44 = vpop.f32.mrb[60].mxu1 }
 0x1ed   :  { %2312 = vst.msk [vmem:[%s4332_s3 + $0x5c] sm:$0xf] %vm2288_vm2, %v2601_v38  ;;  %v2017_v46 = vadd.f32 1.0, %v3255_v43  ;;  %v1760_v48 = vpop.f32.mrb[56].mxu0  ;;  %v1538_v42 = vpop.f32.mrb[61].mxu1  ;;  %v2856_v60 = vadd.f32 %v4051_v34, %v1536_v44 }
 0x1ee   :  { %v3257_v2 = vpop.eup %3256  ;;  %v2853_v47 = vadd.f32 %v2852_v41, %v1760_v48  ;;  %v2722_v49 = vpop.f32.mrb[57].mxu0 }
 0x1ef   :  { %v1539_v28 = vpop.f32.mrb[62].mxu1  ;;  %v2066_v51 = vmul.f32 %v2017_v46, %v1870_v45  ;;  %v2018_v8 = vadd.f32 1.0, %v3257_v2  ;;  %v1763_v27 = vpop.f32.mrb[58].mxu0 }
 0x1f0   :  { %v1541_v6 = vpop.f32.mrb[63].mxu1  ;;  %v1923_v55 = vmul.f32 0.70710677, %v2853_v47  ;;  %v2855_v56 = vadd.f32 %v2854_v24, %v1763_v27  ;;  %v2723_v53 = vpop.f32.mrb[59].mxu0  ;;  %v2858_v1 = vadd.f32 %v4051_v34, %v1539_v28  ;;  %v1874_v17 = vmul.f32 0.5, %v2853_v47 }
 0x1f1   :  { %v2602_v32 = vpack.c.bf16 %v2066_v51, %v2066_v51  ;;  %v2067_v12 = vmul.f32 %v2018_v8, %v1871_v52 }
 0x1f2   :  { %3262 = verf.f32 %v1923_v55  ;;  %v1924_v58 = vmul.f32 0.70710677, %v2855_v56  ;;  %v1875_v37 = vmul.f32 0.5, %v2855_v56 }
 0x1f3   :  { %2313 = vst.msk [vmem:[%s4332_s3 + $0x60] sm:$0xf] %vm2288_vm2, %v2602_v32  ;;  %v2603_v59 = vpack.c.bf16 %v2067_v12, %v2067_v12 }
 0x1f4   :  { %v3259_v50 = vpop.eup %3258  ;;  %3264 = verf.f32 %v1924_v58  ;;  %v1544_v62 = vpop.f32.mrb[64].mxu1 }
 0x1f5   :  { %2314 = vst.msk [vmem:[%s4332_s3 + $0x64] sm:$0xf] %vm2288_vm2, %v2603_v59  ;;  %v2019_v30 = vadd.f32 1.0, %v3259_v50  ;;  %v1768_v14 = vpop.f32.mrb[60].mxu0  ;;  %v1546_v10 = vpop.f32.mrb[65].mxu1  ;;  %v2860_v19 = vadd.f32 %v4051_v34, %v1544_v62 }
 0x1f6   :  { %v3261_v3 = vpop.eup %3260  ;;  %v2857_v54 = vadd.f32 %v2856_v60, %v1768_v14  ;;  %v2726_v4 = vpop.f32.mrb[61].mxu0 }
 0x1f7   :  { %v1547_v18 = vpop.f32.mrb[66].mxu1  ;;  %v2068_v7 = vmul.f32 %v2019_v30, %v1872_v63  ;;  %v2020_v31 = vadd.f32 1.0, %v3261_v3  ;;  %v1771_v35 = vpop.f32.mrb[62].mxu0 }
 0x1f8   :  { %v1549_v9 = vpop.f32.mrb[67].mxu1  ;;  %v1925_v11 = vmul.f32 0.70710677, %v2857_v54  ;;  %v2859_v0 = vadd.f32 %v2858_v1, %v1771_v35  ;;  %v2727_v13 = vpop.f32.mrb[63].mxu0  ;;  %v2862_v61 = vadd.f32 %v4051_v34, %v1547_v18  ;;  %v1876_v51 = vmul.f32 0.5, %v2857_v54 }
 0x1f9   :  { %v2604_v16 = vpack.c.bf16 %v2068_v7, %v2068_v7  ;;  %v2069_v5 = vmul.f32 %v2020_v31, %v1873_v15 }
 0x1fa   :  { %3266 = verf.f32 %v1925_v11  ;;  %v1926_v40 = vmul.f32 0.70710677, %v2859_v0  ;;  %v1877_v58 = vmul.f32 0.5, %v2859_v0 }
 0x1fb   :  { %2315 = vst.msk [vmem:[%s4332_s3 + $0x68] sm:$0xf] %vm2288_vm2, %v2604_v16  ;;  %v2605_v20 = vpack.c.bf16 %v2069_v5, %v2069_v5 }
 0x1fc   :  { %v3263_v57 = vpop.eup %3262  ;;  %3268 = verf.f32 %v1926_v40  ;;  %v1552_v23 = vpop.f32.mrb[68].mxu1 }
 0x1fd   :  { %2316 = vst.msk [vmem:[%s4332_s3 + $0x6c] sm:$0xf] %vm2288_vm2, %v2605_v20  ;;  %v2021_v21 = vadd.f32 1.0, %v3263_v57  ;;  %v1776_v26 = vpop.f32.mrb[64].mxu0  ;;  %v1554_v25 = vpop.f32.mrb[69].mxu1  ;;  %v2864_v49 = vadd.f32 %v4051_v34, %v1552_v23 }
 0x1fe   :  { %v3265_v29 = vpop.eup %3264  ;;  %v2861_v39 = vadd.f32 %v2860_v19, %v1776_v26  ;;  %v2730_v22 = vpop.f32.mrb[65].mxu0 }
 0x1ff   :  { %v1555_v33 = vpop.f32.mrb[70].mxu1  ;;  %v2070_v36 = vmul.f32 %v2021_v21, %v1874_v17  ;;  %v2022_v38 = vadd.f32 1.0, %v3265_v29  ;;  %v1779_v43 = vpop.f32.mrb[66].mxu0 }
 0x200   :  { %v1557_v41 = vpop.f32.mrb[71].mxu1  ;;  %v1927_v44 = vmul.f32 0.70710677, %v2861_v39  ;;  %v2863_v45 = vadd.f32 %v2862_v61, %v1779_v43  ;;  %v2731_v46 = vpop.f32.mrb[67].mxu0  ;;  %v2866_v55 = vadd.f32 %v4051_v34, %v1555_v33  ;;  %v1878_v7 = vmul.f32 0.5, %v2861_v39 }
 0x201   :  { %v2606_v48 = vpack.c.bf16 %v2070_v36, %v2070_v36  ;;  %v2071_v42 = vmul.f32 %v2022_v38, %v1875_v37 }
 0x202   :  { %3270 = verf.f32 %v1927_v44  ;;  %v1928_v2 = vmul.f32 0.70710677, %v2863_v45  ;;  %v1879_v40 = vmul.f32 0.5, %v2863_v45 }
 0x203   :  { %2317 = vst.msk [vmem:[%s4332_s3 + $0x70] sm:$0xf] %vm2288_vm2, %v2606_v48  ;;  %v2607_v24 = vpack.c.bf16 %v2071_v42, %v2071_v42 }
 0x204   :  { %v3267_v47 = vpop.eup %3266  ;;  %3272 = verf.f32 %v1928_v2  ;;  %v1560_v28 = vpop.f32.mrb[72].mxu1 }
 0x205   :  { %2318 = vst.msk [vmem:[%s4332_s3 + $0x74] sm:$0xf] %vm2288_vm2, %v2607_v24  ;;  %v2023_v52 = vadd.f32 1.0, %v3267_v47  ;;  %v1784_v8 = vpop.f32.mrb[68].mxu0  ;;  %v1562_v27 = vpop.f32.mrb[73].mxu1  ;;  %v2868_v4 = vadd.f32 %v4051_v34, %v1560_v28 }
 0x206   :  { %v3269_v6 = vpop.eup %3268  ;;  %v2865_v56 = vadd.f32 %v2864_v49, %v1784_v8  ;;  %v2734_v53 = vpop.f32.mrb[69].mxu0 }
 0x207   :  { %v1563_v32 = vpop.f32.mrb[74].mxu1  ;;  %v2072_v12 = vmul.f32 %v2023_v52, %v1876_v51  ;;  %v2024_v59 = vadd.f32 1.0, %v3269_v6  ;;  %v1787_v50 = vpop.f32.mrb[70].mxu0 }
 0x208   :  { %v1565_v60 = vpop.f32.mrb[75].mxu1  ;;  %v1929_v62 = vmul.f32 0.70710677, %v2865_v56  ;;  %v2867_v63 = vadd.f32 %v2866_v55, %v1787_v50  ;;  %v2735_v30 = vpop.f32.mrb[71].mxu0  ;;  %v2870_v11 = vadd.f32 %v4051_v34, %v1563_v32  ;;  %v1880_v36 = vmul.f32 0.5, %v2865_v56 }
 0x209   :  { %v2608_v14 = vpack.c.bf16 %v2072_v12, %v2072_v12  ;;  %v2073_v10 = vmul.f32 %v2024_v59, %v1877_v58 }
 0x20a   :  { %3274 = verf.f32 %v1929_v62  ;;  %v1930_v3 = vmul.f32 0.70710677, %v2867_v63  ;;  %v1881_v2 = vmul.f32 0.5, %v2867_v63 }
 0x20b   :  { %2319 = vst.msk [vmem:[%s4332_s3 + $0x78] sm:$0xf] %vm2288_vm2, %v2608_v14  ;;  %v2609_v1 = vpack.c.bf16 %v2073_v10, %v2073_v10 }
 0x20c   :  { %v3271_v54 = vpop.eup %3270  ;;  %3276 = verf.f32 %v1930_v3  ;;  %v1568_v18 = vpop.f32.mrb[76].mxu1 }
 0x20d   :  { %2320 = vst.msk [vmem:[%s4332_s3 + $0x7c] sm:$0xf] %vm2288_vm2, %v2609_v1  ;;  %v2025_v15 = vadd.f32 1.0, %v3271_v54  ;;  %v1792_v31 = vpop.f32.mrb[72].mxu0  ;;  %v1570_v35 = vpop.f32.mrb[77].mxu1  ;;  %v2872_v22 = vadd.f32 %v4051_v34, %v1568_v18 }
 0x20e   :  { %v3273_v9 = vpop.eup %3272  ;;  %v2869_v0 = vadd.f32 %v2868_v4, %v1792_v31  ;;  %v2738_v13 = vpop.f32.mrb[73].mxu0 }
 0x20f   :  { %v1571_v16 = vpop.f32.mrb[78].mxu1  ;;  %v2074_v5 = vmul.f32 %v2025_v15, %v1878_v7  ;;  %v2026_v20 = vadd.f32 1.0, %v3273_v9  ;;  %v1795_v57 = vpop.f32.mrb[74].mxu0 }
 0x210   :  { %v1573_v19 = vpop.f32.mrb[79].mxu1  ;;  %v1931_v23 = vmul.f32 0.70710677, %v2869_v0  ;;  %v2871_v17 = vadd.f32 %v2870_v11, %v1795_v57  ;;  %v2739_v21 = vpop.f32.mrb[75].mxu0  ;;  %v2874_v44 = vadd.f32 %v4051_v34, %v1571_v16  ;;  %v1882_v12 = vmul.f32 0.5, %v2869_v0 }
 0x211   :  { %v2610_v26 = vpack.c.bf16 %v2074_v5, %v2074_v5  ;;  %v2075_v25 = vmul.f32 %v2026_v20, %v1879_v40  ;;  %v4272_v0 = vld [vmem:[%s4331_s2] ss:$0 sm:$0xff] }
 0x212   :  { %3278 = verf.f32 %v1931_v23  ;;  %v1932_v29 = vmul.f32 0.70710677, %v2871_v17  ;;  %v1883_v3 = vmul.f32 0.5, %v2871_v17 }
 0x213   :  { %2321 = vst.msk [vmem:[%s4332_s3 + $0x80] sm:$0xf] %vm2288_vm2, %v2610_v26  ;;  %v2611_v61 = vpack.c.bf16 %v2075_v25, %v2075_v25 }
 0x214   :  { %v3275_v39 = vpop.eup %3274  ;;  %3280 = verf.f32 %v1932_v29  ;;  %v1576_v33 = vpop.f32.mrb[80].mxu1 }
 0x215   :  { %2322 = vst.msk [vmem:[%s4332_s3 + $0x84] sm:$0xf] %vm2288_vm2, %v2611_v61  ;;  %v2027_v37 = vadd.f32 1.0, %v3275_v39  ;;  %v1800_v38 = vpop.f32.mrb[76].mxu0  ;;  %v1578_v43 = vpop.f32.mrb[81].mxu1  ;;  %v2876_v53 = vadd.f32 %v4051_v34, %v1576_v33 }
 0x216   :  { %v3277_v41 = vpop.eup %3276  ;;  %v2873_v45 = vadd.f32 %v2872_v22, %v1800_v38  ;;  %v2742_v46 = vpop.f32.mrb[77].mxu0 }
 0x217   :  { %v1579_v48 = vpop.f32.mrb[82].mxu1  ;;  %v2076_v42 = vmul.f32 %v2027_v37, %v1880_v36  ;;  %v2028_v24 = vadd.f32 1.0, %v3277_v41  ;;  %v1803_v47 = vpop.f32.mrb[78].mxu0 }
 0x218   :  { %v1581_v49 = vpop.f32.mrb[83].mxu1  ;;  %v1933_v28 = vmul.f32 0.70710677, %v2873_v45  ;;  %v2875_v51 = vadd.f32 %v2874_v44, %v1803_v47  ;;  %v2743_v52 = vpop.f32.mrb[79].mxu0  ;;  %v2878_v62 = vadd.f32 %v4051_v34, %v1579_v48  ;;  %v1884_v5 = vmul.f32 0.5, %v2873_v45 }
 0x219   :  { %v2612_v8 = vpack.c.bf16 %v2076_v42, %v2076_v42  ;;  %v2077_v27 = vmul.f32 %v2028_v24, %v1881_v2 }
 0x21a   :  { %3282 = verf.f32 %v1933_v28  ;;  %v1934_v6 = vmul.f32 0.70710677, %v2875_v51  ;;  %v1885_v29 = vmul.f32 0.5, %v2875_v51 }
 0x21b   :  { %2323 = vst.msk [vmem:[%s4332_s3 + $0x88] sm:$0xf] %vm2288_vm2, %v2612_v8  ;;  %v2613_v55 = vpack.c.bf16 %v2077_v27, %v2077_v27 }
 0x21c   :  { %v3279_v56 = vpop.eup %3278  ;;  %3284 = verf.f32 %v1934_v6  ;;  %v1584_v32 = vpop.f32.mrb[84].mxu1 }
 0x21d   :  { %2324 = vst.msk [vmem:[%s4332_s3 + $0x8c] sm:$0xf] %vm2288_vm2, %v2613_v55  ;;  %v2029_v58 = vadd.f32 1.0, %v3279_v56  ;;  %v1808_v59 = vpop.f32.mrb[80].mxu0  ;;  %v1586_v50 = vpop.f32.mrb[85].mxu1  ;;  %v2880_v13 = vadd.f32 %v4272_v0, %v1584_v32 }
 0x21e   :  { %v3281_v60 = vpop.eup %3280  ;;  %v2877_v63 = vadd.f32 %v2876_v53, %v1808_v59  ;;  %v2746_v30 = vpop.f32.mrb[81].mxu0 }
 0x21f   :  { %v1587_v14 = vpop.f32.mrb[86].mxu1  ;;  %v2078_v10 = vmul.f32 %v2029_v58, %v1882_v12  ;;  %v2030_v1 = vadd.f32 1.0, %v3281_v60  ;;  %v1811_v54 = vpop.f32.mrb[82].mxu0 }
 0x220   :  { %v1589_v4 = vpop.f32.mrb[87].mxu1  ;;  %v1935_v18 = vmul.f32 0.70710677, %v2877_v63  ;;  %v2879_v7 = vadd.f32 %v2878_v62, %v1811_v54  ;;  %v2747_v15 = vpop.f32.mrb[83].mxu0  ;;  %v2882_v23 = vadd.f32 %v4272_v0, %v1587_v14  ;;  %v1886_v42 = vmul.f32 0.5, %v2877_v63 }
 0x221   :  { %v2614_v31 = vpack.c.bf16 %v2078_v10, %v2078_v10  ;;  %v2079_v35 = vmul.f32 %v2030_v1, %v1883_v3 }
 0x222   :  { %3286 = verf.f32 %v1935_v18  ;;  %v1936_v9 = vmul.f32 0.70710677, %v2879_v7  ;;  %v1887_v6 = vmul.f32 0.5, %v2879_v7 }
 0x223   :  { %2325 = vst.msk [vmem:[%s4332_s3 + $0x90] sm:$0xf] %vm2288_vm2, %v2614_v31  ;;  %v2615_v34 = vpack.c.bf16 %v2079_v35, %v2079_v35 }
 0x224   :  { %v3283_v11 = vpop.eup %3282  ;;  %3288 = verf.f32 %v1936_v9  ;;  %v1592_v16 = vpop.f32.mrb[88].mxu1 }
 0x225   :  { %2326 = vst.msk [vmem:[%s4332_s3 + $0x94] sm:$0xf] %vm2288_vm2, %v2615_v34  ;;  %v2031_v40 = vadd.f32 1.0, %v3283_v11  ;;  %v1816_v20 = vpop.f32.mrb[84].mxu0  ;;  %v1594_v57 = vpop.f32.mrb[89].mxu1  ;;  %v2884_v46 = vadd.f32 %v4272_v0, %v1592_v16 }
 0x226   :  { %v3285_v19 = vpop.eup %3284  ;;  %v2881_v17 = vadd.f32 %v2880_v13, %v1816_v20  ;;  %v2750_v21 = vpop.f32.mrb[85].mxu0 }
 0x227   :  { %v1595_v26 = vpop.f32.mrb[90].mxu1  ;;  %v2080_v25 = vmul.f32 %v2031_v40, %v1884_v5  ;;  %v2032_v61 = vadd.f32 1.0, %v3285_v19  ;;  %v1819_v39 = vpop.f32.mrb[86].mxu0 }
 0x228   :  { %v1597_v22 = vpop.f32.mrb[91].mxu1  ;;  %v1937_v33 = vmul.f32 0.70710677, %v2881_v17  ;;  %v2883_v36 = vadd.f32 %v2882_v23, %v1819_v39  ;;  %v2751_v37 = vpop.f32.mrb[87].mxu0  ;;  %v2886_v28 = vadd.f32 %v4272_v0, %v1595_v26  ;;  %v1888_v10 = vmul.f32 0.5, %v2881_v17 }
 0x229   :  { %v2616_v38 = vpack.c.bf16 %v2080_v25, %v2080_v25  ;;  %v2081_v43 = vmul.f32 %v2032_v61, %v1885_v29 }
 0x22a   :  { %3290 = verf.f32 %v1937_v33  ;;  %v1938_v41 = vmul.f32 0.70710677, %v2883_v36  ;;  %v1889_v9 = vmul.f32 0.5, %v2883_v36 }
 0x22b   :  { %2327 = vst.msk [vmem:[%s4332_s3 + $0x98] sm:$0xf] %vm2288_vm2, %v2616_v38  ;;  %v2617_v44 = vpack.c.bf16 %v2081_v43, %v2081_v43 }
 0x22c   :  { %v3287_v45 = vpop.eup %3286  ;;  %3292 = verf.f32 %v1938_v41  ;;  %v1600_v48 = vpop.f32.mrb[92].mxu1 }
 0x22d   :  { %2328 = vst.msk [vmem:[%s4332_s3 + $0x9c] sm:$0xf] %vm2288_vm2, %v2617_v44  ;;  %v2033_v2 = vadd.f32 1.0, %v3287_v45  ;;  %v1824_v24 = vpop.f32.mrb[88].mxu0  ;;  %v1602_v47 = vpop.f32.mrb[93].mxu1  ;;  %v2888_v30 = vadd.f32 %v4272_v0, %v1600_v48 }
 0x22e   :  { %v3289_v49 = vpop.eup %3288  ;;  %v2885_v51 = vadd.f32 %v2884_v46, %v1824_v24  ;;  %v2754_v52 = vpop.f32.mrb[89].mxu0 }
 0x22f   :  { %v1603_v8 = vpop.f32.mrb[94].mxu1  ;;  %v2082_v27 = vmul.f32 %v2033_v2, %v1886_v42  ;;  %v2034_v55 = vadd.f32 1.0, %v3289_v49  ;;  %v1827_v56 = vpop.f32.mrb[90].mxu0 }
 0x230   :  { %v1605_v53 = vpop.f32.mrb[95].mxu1  ;;  %v1939_v32 = vmul.f32 0.70710677, %v2885_v51  ;;  %v2887_v12 = vadd.f32 %v2886_v28, %v1827_v56  ;;  %v2755_v58 = vpop.f32.mrb[91].mxu0  ;;  %v2890_v18 = vadd.f32 %v4272_v0, %v1603_v8  ;;  %v1890_v26 = vmul.f32 0.5, %v2885_v51 }
 0x231   :  { %v2618_v59 = vpack.c.bf16 %v2082_v27, %v2082_v27  ;;  %v2083_v50 = vmul.f32 %v2034_v55, %v1887_v6 }
 0x232   :  { %3294 = verf.f32 %v1939_v32  ;;  %v1940_v60 = vmul.f32 0.70710677, %v2887_v12  ;;  %v1891_v36 = vmul.f32 0.5, %v2887_v12 }
 0x233   :  { %2329 = vst.msk [vmem:[%s4332_s3 + $0xa0] sm:$0xf] %vm2288_vm2, %v2618_v59  ;;  %v2619_v62 = vpack.c.bf16 %v2083_v50, %v2083_v50 }
 0x234   :  { %v3291_v63 = vpop.eup %3290  ;;  %3296 = verf.f32 %v1940_v60  ;;  %v1608_v14 = vpop.f32.mrb[96].mxu1 }
 0x235   :  { %2330 = vst.msk [vmem:[%s4332_s3 + $0xa4] sm:$0xf] %vm2288_vm2, %v2619_v62  ;;  %v2035_v3 = vadd.f32 1.0, %v3291_v63  ;;  %v1832_v1 = vpop.f32.mrb[92].mxu0  ;;  %v1610_v54 = vpop.f32.mrb[97].mxu1  ;;  %v2892_v21 = vadd.f32 %v4272_v0, %v1608_v14 }
 0x236   :  { %v3293_v4 = vpop.eup %3292  ;;  %v2889_v7 = vadd.f32 %v2888_v30, %v1832_v1  ;;  %v2758_v15 = vpop.f32.mrb[93].mxu0 }
 0x237   :  { %v1611_v31 = vpop.f32.mrb[98].mxu1  ;;  %v2084_v35 = vmul.f32 %v2035_v3, %v1888_v10  ;;  %v2036_v34 = vadd.f32 1.0, %v3293_v4  ;;  %v1835_v11 = vpop.f32.mrb[94].mxu0 }
 0x238   :  { %v1612_v13 = vpop.f32.mrb[99].mxu1  ;;  %v1941_v16 = vmul.f32 0.70710677, %v2889_v7  ;;  %v2891_v5 = vadd.f32 %v2890_v18, %v1835_v11  ;;  %v2759_v40 = vpop.f32.mrb[95].mxu0  ;;  %v1892_v48 = vmul.f32 0.5, %v2889_v7 }
 0x239   :  { %v2620_v20 = vpack.c.bf16 %v2084_v35, %v2084_v35  ;;  %v2085_v57 = vmul.f32 %v2036_v34, %v1889_v9 }
 0x23a   :  { %3298 = verf.f32 %v1941_v16  ;;  %v1942_v19 = vmul.f32 0.70710677, %v2891_v5  ;;  %v1893_v47 = vmul.f32 0.5, %v2891_v5 }
 0x23b   :  { %2331 = vst.msk [vmem:[%s4332_s3 + $0xa8] sm:$0xf] %vm2288_vm2, %v2620_v20  ;;  %v2621_v23 = vpack.c.bf16 %v2085_v57, %v2085_v57 }
 0x23c   :  { %v3295_v17 = vpop.eup %3294  ;;  %3300 = verf.f32 %v1942_v19 }
 0x23d   :  { %2332 = vst.msk [vmem:[%s4332_s3 + $0xac] sm:$0xf] %vm2288_vm2, %v2621_v23  ;;  %v2037_v25 = vadd.f32 1.0, %v3295_v17  ;;  %v1840_v29 = vpop.f32.mrb[96].mxu0 }
 0x23e   :  { %v3297_v61 = vpop.eup %3296  ;;  %v2893_v39 = vadd.f32 %v2892_v21, %v1840_v29  ;;  %v2762_v22 = vpop.f32.mrb[97].mxu0 }
 0x23f   :  { %v2086_v33 = vmul.f32 %v2037_v25, %v1890_v26  ;;  %v2038_v37 = vadd.f32 1.0, %v3297_v61  ;;  %v1843_v38 = vpop.f32.mrb[98].mxu0 }
 0x240   :  { %v1943_v43 = vmul.f32 0.70710677, %v2893_v39  ;;  %v2763_v41 = vpop.f32.mrb[99].mxu0  ;;  %v1894_v27 = vmul.f32 0.5, %v2893_v39 }
 0x241   :  { %v2622_v44 = vpack.c.bf16 %v2086_v33, %v2086_v33  ;;  %v2087_v0 = vmul.f32 %v2038_v37, %v1891_v36 }
 0x242   :  { %3302 = verf.f32 %v1943_v43 }
 0x243   :  { %2333 = vst.msk [vmem:[%s4332_s3 + $0xb0] sm:$0xf] %vm2288_vm2, %v2622_v44  ;;  %v2623_v45 = vpack.c.bf16 %v2087_v0, %v2087_v0 }
 0x244   :  { %v3299_v46 = vpop.eup %3298 }
 0x245   :  { %2334 = vst.msk [vmem:[%s4332_s3 + $0xb4] sm:$0xf] %vm2288_vm2, %v2623_v45  ;;  %v2039_v42 = vadd.f32 1.0, %v3299_v46 }
 0x246   :  { %v3301_v2 = vpop.eup %3300 }
 0x247   :  { %v2088_v24 = vmul.f32 %v2039_v42, %v1892_v48  ;;  %v2040_v49 = vadd.f32 1.0, %v3301_v2 }
 0x249   :  { %v2624_v28 = vpack.c.bf16 %v2088_v24, %v2088_v24  ;;  %v2089_v51 = vmul.f32 %v2040_v49, %v1893_v47 }
 0x24b   :  { %2335 = vst.msk [vmem:[%s4332_s3 + $0xb8] sm:$0xf] %vm2288_vm2, %v2624_v28  ;;  %v2625_v52 = vpack.c.bf16 %v2089_v51, %v2089_v51 }
 0x24c   :  { %v3303_v8 = vpop.eup %3302 }
 0x24d   :  { %2336 = vst.msk [vmem:[%s4332_s3 + $0xbc] sm:$0xf] %vm2288_vm2, %v2625_v52  ;;  %v2041_v6 = vadd.f32 1.0, %v3303_v8 }
 0x24f   :  { %v2090_v55 = vmul.f32 %v2041_v6, %v1894_v27 }
 0x251   :  { %v2626_v56 = vpack.c.bf16 %v2090_v55, %v2090_v55 }
 0x253   :  { %2337 = vst.msk [vmem:[%s4332_s3 + $0xc0] sm:$0xf] %vm2288_vm2, %v2626_v56 }

// kernel: cae_forward.13
= control target key start
LH: loop header
LB: loop body
LE: loop exit
PB: predicated region body
PF: predicated region fallthrough
CT: control target
= control target key end

     0   :  { %v1359_v34 = vmov 0.0   ;;  %vm1360_vm0 = vmmov 0   ;;  %vm516_vm1 = vcmask 523264   ;;  %s1692_s1 = inlined_call_operand.vmem [shape: bf16[576,128], index: 1, kind: input, shape index: {}]   ;;  %s1693_s0 = inlined_call_operand.vmem [shape: bf16[98,576], index: 0, kind: input, shape index: {}]   ;;  %s1694_s2 = inlined_call_operand.vmem [shape: f32[1,128], index: 2, kind: input, shape index: {}]   ;;  %s1695_s3 = inlined_call_operand.vmem [shape: bf16[98,128], index: 3, kind: output, shape index: {}]  }
   0x1   :  { %v1250_v0 = vld [vmem:[%s1692_s1 + $0x40] sm:$0xff]   ;;  %v1254_v4 = vld [vmem:[%s1692_s1 + $0x48] sm:$0xff]   ;;  %v1258_v8 = vld [vmem:[%s1692_s1 + $0x50] sm:$0xff]  }
   0x2   :  { %v1251_v1 = vld [vmem:[%s1692_s1 + $0xc0] sm:$0xff]   ;;  %1077 = vmatprep.subr.bf16.mxu0 %v1250_v0  ;;  %v1255_v5 = vld [vmem:[%s1692_s1 + $0xc8] sm:$0xff]   ;;  %v1259_v9 = vld [vmem:[%s1692_s1 + $0xd0] sm:$0xff]  }
   0x3   :  { %v1252_v2 = vld [vmem:[%s1692_s1] sm:$0xff]   ;;  %1135 = vmatprep.subr.bf16.mxu1 %v1251_v1  ;;  %v1256_v6 = vld [vmem:[%s1692_s1 + $0x8] sm:$0xff]   ;;  %v1260_v10 = vld [vmem:[%s1692_s1 + $0x10] sm:$0xff]  }
   0x4   :  { %v1253_v3 = vld [vmem:[%s1692_s1 + $0x80] sm:$0xff]   ;;  %1078 = vmatpush3.bf16.msra.mxu0 %v1252_v2  ;;  %v1257_v7 = vld [vmem:[%s1692_s1 + $0x88] sm:$0xff]   ;;  %v1261_v11 = vld [vmem:[%s1692_s1 + $0x90] sm:$0xff]  }
   0x5   :  { %1136 = vmatpush3.bf16.msra.mxu1 %v1253_v3  ;;  %1079 = vmatprep.subr.bf16.mxu0 %v1254_v4  ;;  %v1262_v12 = vld [vmem:[%s1692_s1 + $0x58] sm:$0xff]   ;;  %v1266_v16 = vld [vmem:[%s1692_s1 + $0x60] sm:$0xff]   ;;  %v1270_v20 = vld [vmem:[%s1692_s1 + $0x68] sm:$0xff]  }
   0x6   :  { %1137 = vmatprep.subr.bf16.mxu1 %v1255_v5  ;;  %v1263_v13 = vld [vmem:[%s1692_s1 + $0xd8] sm:$0xff]   ;;  %v1267_v17 = vld [vmem:[%s1692_s1 + $0xe0] sm:$0xff]   ;;  %v1271_v21 = vld [vmem:[%s1692_s1 + $0xe8] sm:$0xff]  }
   0x7   :  { %v1264_v14 = vld [vmem:[%s1692_s1 + $0x18] sm:$0xff]   ;;  %v1268_v18 = vld [vmem:[%s1692_s1 + $0x20] sm:$0xff]   ;;  %v1272_v22 = vld [vmem:[%s1692_s1 + $0x28] sm:$0xff]  }
   0x8   :  { %1080 = vmatpush3.bf16.msra.mxu0 %v1256_v6  ;;  %v1265_v15 = vld [vmem:[%s1692_s1 + $0x98] sm:$0xff]   ;;  %v1269_v19 = vld [vmem:[%s1692_s1 + $0xa0] sm:$0xff]   ;;  %v1273_v23 = vld [vmem:[%s1692_s1 + $0xa8] sm:$0xff]  }
   0x9   :  { %1138 = vmatpush3.bf16.msra.mxu1 %v1257_v7  ;;  %1081 = vmatprep.subr.bf16.mxu0 %v1258_v8  ;;  %v1274_v24 = vld [vmem:[%s1692_s1 + $0x70] sm:$0xff]   ;;  %v1278_v28 = vld [vmem:[%s1692_s1 + $0x78] sm:$0xff]   ;;  %v1287_v36 = vld [vmem:[%s1693_s0 + $0xc] ss:$20 sps:$4 sm:$0xff]  }
   0xa   :  { %1139 = vmatprep.subr.bf16.mxu1 %v1259_v9  ;;  %v1275_v25 = vld [vmem:[%s1692_s1 + $0xf0] sm:$0xff]   ;;  %v1279_v29 = vld [vmem:[%s1692_s1 + $0xf8] sm:$0xff]   ;;  %v1288_v37 = vld [vmem:[%s1692_s1 + $0x100] sm:$0xff]   ;;  %658 = vmatprep.mubr.bf16.mxu1 %v1287_v36 }
   0xb   :  { %v1276_v26 = vld [vmem:[%s1692_s1 + $0x30] sm:$0xff]   ;;  %v1280_v30 = vld [vmem:[%s1692_s1 + $0x38] sm:$0xff]   ;;  %v1289_v38 = vld [vmem:[%s1693_s0 + $0x2c] ss:$20 sps:$4 sm:$0xff]  }
   0xc   :  { %1082 = vmatpush3.bf16.msra.mxu0 %v1260_v10  ;;  %v1277_v27 = vld [vmem:[%s1692_s1 + $0xb0] sm:$0xff]   ;;  %v1281_v31 = vld [vmem:[%s1692_s1 + $0xb8] sm:$0xff]   ;;  %v1299_v43 = vld [vmem:[%s1692_s1 + $0x108] sm:$0xff]  }
   0xd   :  { %1140 = vmatpush3.bf16.msra.mxu1 %v1261_v11  ;;  %1083 = vmatprep.subr.bf16.mxu0 %v1262_v12  ;;  %v1282_v32 = vld [vmem:[%s1693_s0] ss:$20 sps:$4 sm:$0xff]   ;;  %v1284_v33 = vld [vmem:[%s1693_s0 + $0x4] ss:$20 sps:$4 sm:$0xff]   ;;  %v1285_v35 = vld [vmem:[%s1693_s0 + $0x8] ss:$20 sps:$4 sm:$0xff]  }
   0xe   :  { %1141 = vmatprep.subr.bf16.mxu1 %v1263_v13  ;;  %570 = vmatprep.mubr.bf16.mxu0 %v1284_v33  ;;  %v1291_v39 = vld [vmem:[%s1693_s0 + $0x34] ss:$20 sps:$4 sm:$0xff]   ;;  %v1294_v41 = vld [vmem:[%s1693_s0 + $0x30] ss:$20 sps:$4 sm:$0xff]   ;;  %v1301_v47 = vld [vmem:[%s1693_s0 + $0x58] ss:$20 sps:$4 sm:$0xff]  }
   0xf   :  { %v1293_v40 = vld [vmem:[%s1693_s0 + $0x28] ss:$20 sps:$4 sm:$0xff]   ;;  %v1308_v45 = vld [vmem:[%s1692_s1 + $0x110] sm:$0xff]   ;;  %v1304_v49 = vld [vmem:[%s1693_s0 + $0x84] ss:$20 sps:$4 sm:$0xff]  }
  0x10   :  { %1084 = vmatpush3.bf16.msra.mxu0 %v1264_v14  ;;  %v1295_v42 = vld [vmem:[%s1693_s0 + $0x54] ss:$20 sps:$4 sm:$0xff]   ;;  %v1297_v44 = vld [vmem:[%s1693_s0 + $0x5c] ss:$20 sps:$4 sm:$0xff]   ;;  %v1306_v51 = vld [vmem:[%s1693_s0 + $0x78] ss:$20 sps:$4 sm:$0xff]  }
  0x11   :  { %1142 = vmatpush3.bf16.msra.mxu1 %v1265_v15  ;;  %1085 = vmatprep.subr.bf16.mxu0 %v1266_v16  ;;  %v1300_v46 = vld [vmem:[%s1693_s0 + $0x50] ss:$20 sps:$4 sm:$0xff]   ;;  %v1321_v50 = vld [vmem:[%s1692_s1 + $0x118] sm:$0xff]   ;;  %v1307_v52 = vld [vmem:[%s1693_s0 + $0x80] ss:$20 sps:$4 sm:$0xff]  }
  0x12   :  { %1143 = vmatprep.subr.bf16.mxu1 %v1267_v17  ;;  %v1302_v48 = vld [vmem:[%s1693_s0 + $0x7c] ss:$20 sps:$4 sm:$0xff]   ;;  %v1309_v53 = vld [vmem:[%s1693_s0 + $0xa4] ss:$20 sps:$4 sm:$0xff]   ;;  %v1311_v54 = vld [vmem:[%s1693_s0 + $0xac] ss:$20 sps:$4 sm:$0xff]  }
  0x13   :  { %v1313_v55 = vld [vmem:[%s1693_s0 + $0xa0] ss:$20 sps:$4 sm:$0xff]   ;;  %v1314_v56 = vld [vmem:[%s1693_s0 + $0xa8] ss:$20 sps:$4 sm:$0xff]   ;;  %v1320_v62 = vld [vmem:[%s1693_s0 + $0xd0] ss:$20 sps:$4 sm:$0xff]  }
  0x14   :  { %1086 = vmatpush3.bf16.msra.mxu0 %v1268_v18  ;;  %v1315_v57 = vld [vmem:[%s1693_s0 + $0xcc] ss:$20 sps:$4 sm:$0xff]   ;;  %v1317_v58 = vld [vmem:[%s1693_s0 + $0xd4] ss:$20 sps:$4 sm:$0xff]   ;;  %v52_v60 = vld [vmem:[%s1693_s0 + $0xf8] sm:$0x11] }
  0x15   :  { %1144 = vmatpush3.bf16.msra.mxu1 %v1269_v19  ;;  %1087 = vmatprep.subr.bf16.mxu0 %v1270_v20  ;;  %v51_v59 = vld [vmem:[%s1693_s0 + $0xf0] sm:$0x11]  ;;  %v1319_v61 = vld [vmem:[%s1693_s0 + $0xc8] ss:$20 sps:$4 sm:$0xff]   ;;  %v971_v0 = vcombine.high %v52_v60, %v52_v60  ;;  %v970_v2 = vcombine.low %v52_v60, %v52_v60  ;;  %v1328_v5 = vld [vmem:[%s1693_s0 + $0x38] ss:$20 sps:$4 sm:$0xff]  }
  0x16   :  { %1145 = vmatprep.subr.bf16.mxu1 %v1271_v21  ;;  %v969_v63 = vcombine.high %v51_v59, %v51_v59  ;;  %v968_v1 = vcombine.low %v51_v59, %v51_v59  ;;  %v1326_v3 = vld [vmem:[%s1693_s0 + $0x10] ss:$20 sps:$4 sm:$0xff]   ;;  %v1329_v6 = vld [vmem:[%s1693_s0 + $0xd8] ss:$20 sps:$4 sm:$0xff]   ;;  %v1330_v7 = vld [vmem:[%s1693_s0 + $0x60] ss:$20 sps:$4 sm:$0xff]  }
  0x17   :  { %v1327_v4 = vld [vmem:[%s1693_s0 + $0xb0] ss:$20 sps:$4 sm:$0xff]   ;;  %v1331_v8 = vld [vmem:[%s1693_s0 + $0x100] ss:$0 sps:$4 sm:$0x11]  }
  0x18   :  { %1088 = vmatpush3.bf16.msra.mxu0 %v1272_v22  ;;  %v1332_v9 = vld [vmem:[%s1693_s0 + $0x88] ss:$20 sps:$4 sm:$0xff]   ;;  %v1620_v11 = vld [vmem:[%s1694_s2] ss:$0 sm:$0xff] }
  0x19   :  { %1146 = vmatpush3.bf16.msra.mxu1 %v1273_v23  ;;  %1089 = vmatprep.subr.bf16.mxu0 %v1274_v24 }
  0x1a   :  { %1147 = vmatprep.subr.bf16.mxu1 %v1275_v25 }
  0x1c   :  { %1090 = vmatpush3.bf16.msra.mxu0 %v1276_v26 }
  0x1d   :  { %1148 = vmatpush3.bf16.msra.mxu1 %v1277_v27  ;;  %1091 = vmatprep.subr.bf16.mxu0 %v1278_v28 }
  0x1e   :  { %1149 = vmatprep.subr.bf16.mxu1 %v1279_v29 }
  0x20   :  { %1092 = vmatpush3.bf16.msra.mxu0 %v1280_v30 }
  0x21   :  { %1150 = vmatpush3.bf16.msra.mxu1 %v1281_v31  ;;  %1204 = vmatprep.subr.bf16.mxu0 %v1359_v34 }
  0x22   :  { %1240 = vmatprep.subr.bf16.mxu1 %v1359_v34 }
  0x23   :  { %571 = vmatmul.mubr.bf16.vlgmr.msra.gmra.mrb[0].mxu0 %v1282_v32 }
  0x24   :  { %659 = vmatmul.mubr.bf16.vlgmr.msra.gmra.mrb[0].mxu1 %v1285_v35  ;;  %1205 = vmatpush3.bf16.msra.mxu0 %v1288_v37 }
  0x25   :  { %578 = vmatprep.mubr.bf16.mxu0 %v1289_v38  ;;  %1244 = vmatpush3.bf16.msra.mxu1 %v1288_v37 }
  0x26   :  { %666 = vmatprep.mubr.bf16.mxu1 %v1291_v39  ;;  %1206 = vmatprep.subr.bf16.mxu0 %v1359_v34 }
  0x27   :  { %1241 = vmatprep.subr.bf16.mxu1 %v1359_v34 }
  0x28   :  { %1207 = vmatpush3.bf16.msra.mxu0 %v1299_v43 }
  0x29   :  { %1245 = vmatpush3.bf16.msra.mxu1 %v1299_v43  ;;  %1208 = vmatprep.subr.bf16.mxu0 %v1359_v34 }
  0x2a   :  { %1242 = vmatprep.subr.bf16.mxu1 %v1359_v34 }
  0x2b   :  { %579 = vmatmul.mubr.bf16.gmra.mrb[4].mxu0 %v1293_v40 }
  0x2c   :  { %667 = vmatmul.mubr.bf16.gmra.mrb[4].mxu1 %v1294_v41  ;;  %586 = vmatprep.mubr.bf16.mxu0 %v1295_v42 }
  0x2d   :  { %674 = vmatprep.mubr.bf16.mxu1 %v1297_v44  ;;  %1209 = vmatpush3.bf16.msra.mxu0 %v1308_v45 }
  0x2e   :  { %1246 = vmatpush3.bf16.msra.mxu1 %v1308_v45  ;;  %1210 = vmatprep.subr.bf16.mxu0 %v1359_v34 }
  0x2f   :  { %1243 = vmatprep.subr.bf16.mxu1 %v1359_v34 }
  0x31   :  { %1211 = vmatpush3.bf16.msra.mxu0 %v1321_v50 }
  0x32   :  { %1247 = vmatpush3.bf16.msra.mxu1 %v1321_v50 }
  0x33   :  { %587 = vmatmul.mubr.bf16.gmra.mrb[8].mxu0 %v1300_v46 }
  0x34   :  { %675 = vmatmul.mubr.bf16.gmra.mrb[8].mxu1 %v1301_v47  ;;  %594 = vmatprep.mubr.bf16.mxu0 %v1302_v48 }
  0x35   :  { %682 = vmatprep.mubr.bf16.mxu1 %v1304_v49 }
  0x3b   :  { %595 = vmatmul.mubr.bf16.gmra.mrb[12].mxu0 %v1306_v51 }
  0x3c   :  { %683 = vmatmul.mubr.bf16.gmra.mrb[12].mxu1 %v1307_v52  ;;  %602 = vmatprep.mubr.bf16.mxu0 %v1309_v53 }
  0x3d   :  { %690 = vmatprep.mubr.bf16.mxu1 %v1311_v54 }
  0x43   :  { %603 = vmatmul.mubr.bf16.gmra.mrb[16].mxu0 %v1313_v55 }
  0x44   :  { %691 = vmatmul.mubr.bf16.gmra.mrb[16].mxu1 %v1314_v56  ;;  %610 = vmatprep.mubr.bf16.mxu0 %v1315_v57 }
  0x45   :  { %698 = vmatprep.mubr.bf16.mxu1 %v1317_v58 }
  0x4b   :  { %611 = vmatmul.mubr.bf16.gmra.mrb[20].mxu0 %v1319_v61 }
  0x4c   :  { %699 = vmatmul.mubr.bf16.gmra.mrb[20].mxu1 %v1320_v62  ;;  %618 = vmatprep.mubr.bf16.mxu0 %v969_v63 }
  0x4d   :  { %706 = vmatprep.mubr.bf16.mxu1 %v971_v0 }
  0x53   :  { %619 = vmatmul.mubr.bf16.gmra.mrb[24].mxu0 %v968_v1 }
  0x54   :  { %707 = vmatmul.mubr.bf16.gmra.mrb[24].mxu1 %v970_v2  ;;  %1212 = vmatprep.mubr.msk.bf16.mxu0 %vm1360_vm0, %v1359_v34 }
  0x55   :  { %1228 = vmatprep.mubr.msk.bf16.mxu1 %vm1360_vm0, %v1359_v34 }
  0x5b   :  { %1213 = vmatmul.mubr.msk.bf16.vlgmr.msra.gmra.mrb[28].mxu0 %vm516_vm1, %v1326_v3 }
  0x5c   :  { %1229 = vmatmul.mubr.msk.bf16.vlgmr.msra.gmra.mrb[28].mxu1 %vm516_vm1, %v1327_v4  ;;  %1216 = vmatprep.mubr.msk.bf16.mxu0 %vm1360_vm0, %v1359_v34 }
  0x5d   :  { %1232 = vmatprep.mubr.msk.bf16.mxu1 %vm1360_vm0, %v1359_v34 }
  0x63   :  { %1217 = vmatmul.mubr.msk.bf16.gmra.mrb[32].mxu0 %vm516_vm1, %v1328_v5 }
  0x64   :  { %1233 = vmatmul.mubr.msk.bf16.gmra.mrb[32].mxu1 %vm516_vm1, %v1329_v6  ;;  %1220 = vmatprep.mubr.msk.bf16.mxu0 %vm1360_vm0, %v1359_v34 }
  0x65   :  { %1236 = vmatprep.mubr.msk.bf16.mxu1 %vm1360_vm0, %v1359_v34 }
  0x6b   :  { %1221 = vmatmul.mubr.msk.bf16.gmra.mrb[36].mxu0 %vm516_vm1, %v1330_v7 }
  0x6c   :  { %1237 = vmatmul.mubr.msk.bf16.gmra.mrb[36].mxu1 %vm516_vm1, %v1331_v8  ;;  %1224 = vmatprep.mubr.msk.bf16.mxu0 %vm1360_vm0, %v1359_v34 }
  0x73   :  { %1225 = vmatmul.mubr.msk.bf16.gmra.mrb[40].mxu0 %vm516_vm1, %v1332_v9 }
  0xf6   :  { %v1093_v10 = vpop.f32.mrb[0].mxu0 }
  0xf7   :  { %v1094_v12 = vpop.f32.mrb[1].mxu0  ;;  %v1151_v13 = vpop.f32.mrb[0].mxu1 }
  0xf8   :  { %v1095_v14 = vadd.f32 %v1094_v12, %v1093_v10  ;;  %v1096_v15 = vpop.f32.mrb[2].mxu0  ;;  %v1152_v16 = vpop.f32.mrb[1].mxu1 }
  0xf9   :  { %v1097_v17 = vpop.f32.mrb[3].mxu0  ;;  %v1153_v18 = vadd.f32 %v1152_v16, %v1151_v13  ;;  %v1154_v19 = vpop.f32.mrb[2].mxu1 }
  0xfa   :  { %v573_v20 = vadd.f32 %v1095_v14, %v1620_v11  ;;  %v1098_v21 = vadd.f32 %v1097_v17, %v1096_v15  ;;  %v1155_v22 = vpop.f32.mrb[3].mxu1 }
  0xfb   :  { %v1156_v23 = vadd.f32 %v1155_v22, %v1154_v19 }
  0xfc   :  { %v576_v24 = vadd.f32 %v1098_v21, %v1620_v11  ;;  %v1624_v25 = vadd.f32 %v1153_v18, %v573_v20 }
  0xfe   :  { %v1099_v26 = vpop.f32.mrb[4].mxu0  ;;  %v1626_v27 = vadd.f32 %v1156_v23, %v576_v24 }
  0xff   :  { %v1100_v28 = vpop.f32.mrb[5].mxu0  ;;  %v1157_v29 = vpop.f32.mrb[4].mxu1 }
 0x100   :  { %v1101_v30 = vadd.f32 %v1100_v28, %v1099_v26  ;;  %v1102_v31 = vpop.f32.mrb[6].mxu0  ;;  %v1158_v32 = vpop.f32.mrb[5].mxu1 }
 0x101   :  { %v1103_v33 = vpop.f32.mrb[7].mxu0  ;;  %v1159_v34 = vadd.f32 %v1158_v32, %v1157_v29  ;;  %v1160_v35 = vpop.f32.mrb[6].mxu1 }
 0x102   :  { %v581_v36 = vadd.f32 %v1101_v30, %v1620_v11  ;;  %v1104_v37 = vadd.f32 %v1103_v33, %v1102_v31  ;;  %v1161_v38 = vpop.f32.mrb[7].mxu1 }
 0x103   :  { %v1162_v39 = vadd.f32 %v1161_v38, %v1160_v35 }
 0x104   :  { %v584_v40 = vadd.f32 %v1104_v37, %v1620_v11  ;;  %v1630_v41 = vadd.f32 %v1159_v34, %v581_v36 }
 0x106   :  { %v1105_v42 = vpop.f32.mrb[8].mxu0  ;;  %v1632_v43 = vadd.f32 %v1162_v39, %v584_v40 }
 0x107   :  { %v1106_v44 = vpop.f32.mrb[9].mxu0  ;;  %v1163_v45 = vpop.f32.mrb[8].mxu1 }
 0x108   :  { %v1107_v46 = vadd.f32 %v1106_v44, %v1105_v42  ;;  %v1108_v47 = vpop.f32.mrb[10].mxu0  ;;  %v1164_v48 = vpop.f32.mrb[9].mxu1 }
 0x109   :  { %v1109_v49 = vpop.f32.mrb[11].mxu0  ;;  %v1165_v50 = vadd.f32 %v1164_v48, %v1163_v45  ;;  %v1166_v51 = vpop.f32.mrb[10].mxu1 }
 0x10a   :  { %v589_v52 = vadd.f32 %v1107_v46, %v1620_v11  ;;  %v1110_v53 = vadd.f32 %v1109_v49, %v1108_v47  ;;  %v1167_v54 = vpop.f32.mrb[11].mxu1 }
 0x10b   :  { %v1168_v55 = vadd.f32 %v1167_v54, %v1166_v51 }
 0x10c   :  { %v592_v56 = vadd.f32 %v1110_v53, %v1620_v11  ;;  %v1636_v57 = vadd.f32 %v1165_v50, %v589_v52 }
 0x10e   :  { %v1111_v58 = vpop.f32.mrb[12].mxu0  ;;  %v1638_v59 = vadd.f32 %v1168_v55, %v592_v56 }
 0x10f   :  { %v1112_v60 = vpop.f32.mrb[13].mxu0  ;;  %v1169_v61 = vpop.f32.mrb[12].mxu1 }
 0x110   :  { %v1113_v62 = vadd.f32 %v1112_v60, %v1111_v58  ;;  %v1114_v63 = vpop.f32.mrb[14].mxu0  ;;  %v1170_v0 = vpop.f32.mrb[13].mxu1 }
 0x111   :  { %v1115_v1 = vpop.f32.mrb[15].mxu0  ;;  %v1171_v2 = vadd.f32 %v1170_v0, %v1169_v61  ;;  %v1172_v3 = vpop.f32.mrb[14].mxu1 }
 0x112   :  { %v597_v4 = vadd.f32 %v1113_v62, %v1620_v11  ;;  %v1116_v5 = vadd.f32 %v1115_v1, %v1114_v63  ;;  %v1173_v6 = vpop.f32.mrb[15].mxu1 }
 0x113   :  { %v1174_v7 = vadd.f32 %v1173_v6, %v1172_v3 }
 0x114   :  { %v600_v8 = vadd.f32 %v1116_v5, %v1620_v11  ;;  %v1642_v9 = vadd.f32 %v1171_v2, %v597_v4 }
 0x116   :  { %v1117_v10 = vpop.f32.mrb[16].mxu0  ;;  %v1644_v12 = vadd.f32 %v1174_v7, %v600_v8 }
 0x117   :  { %v1118_v13 = vpop.f32.mrb[17].mxu0  ;;  %v1175_v14 = vpop.f32.mrb[16].mxu1 }
 0x118   :  { %v1119_v15 = vadd.f32 %v1118_v13, %v1117_v10  ;;  %v1120_v16 = vpop.f32.mrb[18].mxu0  ;;  %v1176_v17 = vpop.f32.mrb[17].mxu1 }
 0x119   :  { %v1121_v18 = vpop.f32.mrb[19].mxu0  ;;  %v1177_v19 = vadd.f32 %v1176_v17, %v1175_v14  ;;  %v1178_v20 = vpop.f32.mrb[18].mxu1 }
 0x11a   :  { %v605_v21 = vadd.f32 %v1119_v15, %v1620_v11  ;;  %v1122_v22 = vadd.f32 %v1121_v18, %v1120_v16  ;;  %v1179_v23 = vpop.f32.mrb[19].mxu1 }
 0x11b   :  { %v1180_v24 = vadd.f32 %v1179_v23, %v1178_v20 }
 0x11c   :  { %v608_v26 = vadd.f32 %v1122_v22, %v1620_v11  ;;  %v693_v28 = vadd.f32 %v1177_v19, %v605_v21 }
 0x11e   :  { %v1123_v29 = vpop.f32.mrb[20].mxu0  ;;  %v696_v30 = vadd.f32 %v1180_v24, %v608_v26 }
 0x11f   :  { %v1124_v31 = vpop.f32.mrb[21].mxu0  ;;  %v1181_v32 = vpop.f32.mrb[20].mxu1 }
 0x120   :  { %v1125_v33 = vadd.f32 %v1124_v31, %v1123_v29  ;;  %v1126_v34 = vpop.f32.mrb[22].mxu0  ;;  %v1182_v35 = vpop.f32.mrb[21].mxu1 }
 0x121   :  { %v1127_v36 = vpop.f32.mrb[23].mxu0  ;;  %v1183_v37 = vadd.f32 %v1182_v35, %v1181_v32  ;;  %v1184_v38 = vpop.f32.mrb[22].mxu1 }
 0x122   :  { %v613_v39 = vadd.f32 %v1125_v33, %v1620_v11  ;;  %v1128_v40 = vadd.f32 %v1127_v36, %v1126_v34  ;;  %v1185_v42 = vpop.f32.mrb[23].mxu1 }
 0x123   :  { %v1186_v44 = vadd.f32 %v1185_v42, %v1184_v38 }
 0x124   :  { %v616_v45 = vadd.f32 %v1128_v40, %v1620_v11  ;;  %v701_v46 = vadd.f32 %v1183_v37, %v613_v39 }
 0x126   :  { %v1129_v47 = vpop.f32.mrb[24].mxu0  ;;  %v704_v48 = vadd.f32 %v1186_v44, %v616_v45 }
 0x127   :  { %v1130_v49 = vpop.f32.mrb[25].mxu0  ;;  %v1187_v50 = vpop.f32.mrb[24].mxu1 }
 0x128   :  { %v1131_v51 = vadd.f32 %v1130_v49, %v1129_v47  ;;  %v1132_v52 = vpop.f32.mrb[26].mxu0  ;;  %v1188_v53 = vpop.f32.mrb[25].mxu1 }
 0x129   :  { %v1133_v54 = vpop.f32.mrb[27].mxu0  ;;  %v1189_v55 = vadd.f32 %v1188_v53, %v1187_v50  ;;  %v1190_v56 = vpop.f32.mrb[26].mxu1 }
 0x12a   :  { %v621_v58 = vadd.f32 %v1131_v51, %v1620_v11  ;;  %v1191_v60 = vpop.f32.mrb[27].mxu1 }
 0x12c   :  { %v709_v61 = vadd.f32 %v1189_v55, %v621_v58 }
 0x12e   :  { %v748_v62 = vpop.f32.mrb[28].mxu0 }
 0x12f   :  { %v749_v63 = vadd.f32 %v748_v62, %v1624_v25  ;;  %v780_v0 = vpop.f32.mrb[28].mxu1  ;;  %v1214_v1 = vpop.f32.mrb[29].mxu0 }
 0x130   :  { %v781_v2 = vadd.f32 %v780_v0, %v693_v28  ;;  %v1230_v3 = vpop.f32.mrb[29].mxu1  ;;  %v751_v4 = vpop.f32.mrb[30].mxu0 }
 0x131   :  { %v815_v5 = vmul.f32 0.70710677, %v749_v63  ;;  %v752_v6 = vadd.f32 %v751_v4, %v1626_v27  ;;  %v783_v7 = vpop.f32.mrb[30].mxu1  ;;  %v1215_v8 = vpop.f32.mrb[31].mxu0  ;;  %v802_v36 = vmul.f32 0.5, %v749_v63 }
 0x132   :  { %v823_v10 = vmul.f32 0.70710677, %v781_v2  ;;  %v784_v13 = vadd.f32 %v783_v7, %v696_v30  ;;  %v1231_v14 = vpop.f32.mrb[31].mxu1  ;;  %v810_v42 = vmul.f32 0.5, %v781_v2 }
 0x133   :  { %1333 = verf.f32 %v815_v5  ;;  %v816_v11 = vmul.f32 0.70710677, %v752_v6  ;;  %v803_v44 = vmul.f32 0.5, %v752_v6 }
 0x134   :  { %1335 = verf.f32 %v823_v10  ;;  %v824_v15 = vmul.f32 0.70710677, %v784_v13  ;;  %v811_v49 = vmul.f32 0.5, %v784_v13 }
 0x135   :  { %1337 = verf.f32 %v816_v11 }
 0x136   :  { %1339 = verf.f32 %v824_v15  ;;  %v756_v25 = vpop.f32.mrb[32].mxu0 }
 0x137   :  { %v1654_v16 = vadd.f32 %v756_v25, %v1630_v41  ;;  %v788_v17 = vpop.f32.mrb[32].mxu1  ;;  %v1218_v18 = vpop.f32.mrb[33].mxu0 }
 0x138   :  { %v1656_v19 = vadd.f32 %v788_v17, %v701_v46  ;;  %v1234_v27 = vpop.f32.mrb[33].mxu1  ;;  %v759_v20 = vpop.f32.mrb[34].mxu0 }
 0x139   :  { %v817_v21 = vmul.f32 0.70710677, %v1654_v16  ;;  %v760_v22 = vadd.f32 %v759_v20, %v1632_v43  ;;  %v791_v23 = vpop.f32.mrb[34].mxu1  ;;  %v1219_v24 = vpop.f32.mrb[35].mxu0  ;;  %v804_v10 = vmul.f32 0.5, %v1654_v16 }
 0x13a   :  { %v825_v26 = vmul.f32 0.70710677, %v1656_v19  ;;  %v792_v28 = vadd.f32 %v791_v23, %v704_v48  ;;  %v1235_v29 = vpop.f32.mrb[35].mxu1  ;;  %v812_v15 = vmul.f32 0.5, %v1656_v19 }
 0x13b   :  { %1341 = verf.f32 %v817_v21  ;;  %v818_v30 = vmul.f32 0.70710677, %v760_v22  ;;  %v805_v13 = vmul.f32 0.5, %v760_v22 }
 0x13c   :  { %1343 = verf.f32 %v825_v26  ;;  %v826_v41 = vmul.f32 0.70710677, %v792_v28  ;;  %v813_v25 = vmul.f32 0.5, %v792_v28 }
 0x13d   :  { %v1334_v31 = vpop.eup %1333  ;;  %1345 = verf.f32 %v818_v30 }
 0x13e   :  { %v1336_v32 = vpop.eup %1335  ;;  %v841_v33 = vadd.f32 1.0, %v1334_v31  ;;  %1347 = verf.f32 %v826_v41  ;;  %v764_v34 = vpop.f32.mrb[36].mxu0 }
 0x13f   :  { %v1338_v35 = vpop.eup %1337  ;;  %v849_v37 = vadd.f32 1.0, %v1336_v32  ;;  %v1662_v43 = vadd.f32 %v764_v34, %v1636_v57  ;;  %v796_v38 = vpop.f32.mrb[36].mxu1 }
 0x140   :  { %v1222_v39 = vpop.f32.mrb[37].mxu0  ;;  %v1340_v40 = vpop.eup %1339  ;;  %v842_v45 = vadd.f32 1.0, %v1338_v35  ;;  %v797_v46 = vadd.f32 %v796_v38, %v709_v61  ;;  %v854_v54 = vmul.f32 %v841_v33, %v802_v36 }
 0x141   :  { %v767_v47 = vpop.f32.mrb[38].mxu0  ;;  %v1238_v48 = vpop.f32.mrb[37].mxu1  ;;  %v850_v50 = vadd.f32 1.0, %v1340_v40  ;;  %v819_v51 = vmul.f32 0.70710677, %v1662_v43  ;;  %v862_v60 = vmul.f32 %v849_v37, %v810_v42  ;;  %v806_v31 = vmul.f32 0.5, %v1662_v43 }
 0x142   :  { %v1223_v52 = vpop.f32.mrb[39].mxu0  ;;  %v799_v53 = vpop.f32.mrb[38].mxu1  ;;  %v855_v55 = vmul.f32 %v842_v45, %v803_v44  ;;  %v827_v56 = vmul.f32 0.70710677, %v797_v46  ;;  %v768_v57 = vadd.f32 %v767_v47, %v1638_v59  ;;  %v814_v28 = vmul.f32 0.5, %v797_v46 }
 0x143   :  { %v1239_v58 = vpop.f32.mrb[39].mxu1  ;;  %v863_v62 = vmul.f32 %v850_v50, %v811_v49  ;;  %1349 = verf.f32 %v819_v51 }
 0x144   :  { %v1045_v63 = vpack.c.bf16 %v855_v55, %v854_v54  ;;  %1351 = verf.f32 %v827_v56  ;;  %v820_v61 = vmul.f32 0.70710677, %v768_v57  ;;  %v807_v33 = vmul.f32 0.5, %v768_v57 }
 0x145   :  { %v1342_v0 = vpop.eup %1341  ;;  %v1065_v1 = vpack.c.bf16 %v863_v62, %v862_v60 }
 0x146   :  { %v1344_v2 = vpop.eup %1343  ;;  %1046 = vst [vmem:[%s1695_s3] sm:$0xff] %v1045_v63   ;;  %v843_v3 = vadd.f32 1.0, %v1342_v0  ;;  %1353 = verf.f32 %v820_v61  ;;  %v772_v4 = vpop.f32.mrb[40].mxu0 }
 0x147   :  { %v1346_v5 = vpop.eup %1345  ;;  %1075 = vst [vmem:[%s1695_s3 + $0x20] sm:$0xff] %v1065_v1   ;;  %v851_v59 = vadd.f32 1.0, %v1344_v2  ;;  %v773_v6 = vadd.f32 %v772_v4, %v1642_v9  ;;  %v1226_v7 = vpop.f32.mrb[41].mxu0 }
 0x148   :  { %v1348_v8 = vpop.eup %1347  ;;  %v844_v14 = vadd.f32 1.0, %v1346_v5  ;;  %v775_v11 = vpop.f32.mrb[42].mxu0  ;;  %v856_v20 = vmul.f32 %v843_v3, %v804_v10 }
 0x149   :  { %v852_v17 = vadd.f32 1.0, %v1348_v8  ;;  %v821_v18 = vmul.f32 0.70710677, %v773_v6  ;;  %v1227_v27 = vpop.f32.mrb[43].mxu0  ;;  %v776_v23 = vadd.f32 %v775_v11, %v1644_v12  ;;  %v864_v24 = vmul.f32 %v851_v59, %v812_v15 }
 0x14a   :  { %v857_v21 = vmul.f32 %v844_v14, %v805_v13  ;;  %v808_v44 = vmul.f32 0.5, %v773_v6 }
 0x14b   :  { %v865_v26 = vmul.f32 %v852_v17, %v813_v25  ;;  %1355 = verf.f32 %v821_v18  ;;  %v822_v29 = vmul.f32 0.70710677, %v776_v23  ;;  %v809_v43 = vmul.f32 0.5, %v776_v23 }
 0x14c   :  { %v1050_v9 = vpack.c.bf16 %v857_v21, %v856_v20 }
 0x14d   :  { %v1350_v30 = vpop.eup %1349  ;;  %v1070_v16 = vpack.c.bf16 %v865_v26, %v864_v24  ;;  %1357 = verf.f32 %v822_v29 }
 0x14e   :  { %v1352_v22 = vpop.eup %1351  ;;  %1072 = vst [vmem:[%s1695_s3 + $0x8] sm:$0xff] %v1050_v9   ;;  %v845_v19 = vadd.f32 1.0, %v1350_v30 }
 0x14f   :  { %1076 = vst [vmem:[%s1695_s3 + $0x28] sm:$0xff] %v1070_v16   ;;  %v853_v12 = vadd.f32 1.0, %v1352_v22 }
 0x150   :  { %v1354_v41 = vpop.eup %1353  ;;  %v858_v35 = vmul.f32 %v845_v19, %v806_v31 }
 0x151   :  { %v866_v32 = vmul.f32 %v853_v12, %v814_v28  ;;  %v846_v34 = vadd.f32 1.0, %v1354_v41 }
 0x153   :  { %v1041_v36 = vpack.c.bf16 %v866_v32, %v866_v32  ;;  %v859_v37 = vmul.f32 %v846_v34, %v807_v33 }
 0x155   :  { %v1356_v38 = vpop.eup %1355  ;;  %932 = vst [vmem:[%s1695_s3 + $0x30] sm:$0x1] %v1041_v36  ;;  %v1055_v39 = vpack.c.bf16 %v859_v37, %v858_v35 }
 0x156   :  { %v847_v40 = vadd.f32 1.0, %v1356_v38 }
 0x157   :  { %1073 = vst [vmem:[%s1695_s3 + $0x10] sm:$0xff] %v1055_v39   ;;  %v1358_v42 = vpop.eup %1357 }
 0x158   :  { %v848_v45 = vadd.f32 1.0, %v1358_v42  ;;  %v860_v46 = vmul.f32 %v847_v40, %v808_v44 }
 0x15a   :  { %v861_v47 = vmul.f32 %v848_v45, %v809_v43 }
 0x15c   :  { %v1060_v48 = vpack.c.bf16 %v861_v47, %v860_v46 }
 0x15e   :  { %1074 = vst [vmem:[%s1695_s3 + $0x18] sm:$0xff] %v1060_v48  }

// kernel: cae_forward.14
= control target key start
LH: loop header
LB: loop body
LE: loop exit
PB: predicated region body
PF: predicated region fallthrough
CT: control target
= control target key end

     0   :  { %vm2238_vm0 = vmmov 0   ;;  %s2773_s1 = inlined_call_operand.vmem [shape: bf16[1152,128], index: 1, kind: input, shape index: {}]   ;;  %s2774_s0 = inlined_call_operand.vmem [shape: bf16[98,1152], index: 0, kind: input, shape index: {}]   ;;  %s2775_s2 = inlined_call_operand.vmem [shape: f32[1,128], index: 2, kind: input, shape index: {}]   ;;  %s2776_s3 = inlined_call_operand.vmem [shape: bf16[98,128], index: 3, kind: output, shape index: {}]  }
   0x1   :  { %v2052_v0 = vld [vmem:[%s2773_s1 + $0x40] sm:$0xff]   ;;  %v2054_v2 = vld [vmem:[%s2773_s1 + $0x48] sm:$0xff]   ;;  %v2056_v4 = vld [vmem:[%s2773_s1 + $0x50] sm:$0xff]  }
   0x2   :  { %v2053_v1 = vld [vmem:[%s2773_s1] sm:$0xff]   ;;  %2034 = vmatprep.subr.bf16.mxu1 %v2052_v0  ;;  %1743 = vmatprep.subr.bf16.mxu0 %v2052_v0  ;;  %v2055_v3 = vld [vmem:[%s2773_s1 + $0x8] sm:$0xff]   ;;  %v2057_v5 = vld [vmem:[%s2773_s1 + $0x10] sm:$0xff]  }
   0x3   :  { %2042 = vmatpush3.bf16.msra.mxu1 %v2053_v1  ;;  %1744 = vmatpush3.bf16.msra.mxu0 %v2053_v1  ;;  %v2058_v6 = vld [vmem:[%s2773_s1 + $0x58] sm:$0xff]   ;;  %v2060_v8 = vld [vmem:[%s2773_s1 + $0x60] sm:$0xff]   ;;  %v2062_v10 = vld [vmem:[%s2773_s1 + $0x68] sm:$0xff]  }
   0x4   :  { %2035 = vmatprep.subr.bf16.mxu1 %v2054_v2  ;;  %1745 = vmatprep.subr.bf16.mxu0 %v2054_v2  ;;  %v2059_v7 = vld [vmem:[%s2773_s1 + $0x18] sm:$0xff]   ;;  %v2061_v9 = vld [vmem:[%s2773_s1 + $0x20] sm:$0xff]   ;;  %v2063_v12 = vld [vmem:[%s2773_s1 + $0x28] sm:$0xff]  }
   0x5   :  { %v2070_v11 = vld [vmem:[%s2774_s0 + $0x124] ss:$36 sps:$4 sm:$0xff]   ;;  %v2064_v14 = vld [vmem:[%s2773_s1 + $0x70] sm:$0xff]   ;;  %v2066_v16 = vld [vmem:[%s2773_s1 + $0x78] sm:$0xff]  }
   0x6   :  { %v2074_v13 = vld [vmem:[%s2774_s0 + $0x4] ss:$36 sps:$4 sm:$0xff]   ;;  %1035 = vmatprep.mubr.bf16.mxu1 %v2070_v11  ;;  %v2065_v15 = vld [vmem:[%s2773_s1 + $0x30] sm:$0xff]   ;;  %v2067_v17 = vld [vmem:[%s2773_s1 + $0x38] sm:$0xff]  }
   0x7   :  { %2043 = vmatpush3.bf16.msra.mxu1 %v2055_v3  ;;  %1746 = vmatpush3.bf16.msra.mxu0 %v2055_v3  ;;  %v2071_v18 = vld [vmem:[%s2773_s1 + $0xc0] sm:$0xff]   ;;  %v2078_v24 = vld [vmem:[%s2773_s1 + $0xc8] sm:$0xff]   ;;  %v2082_v30 = vld [vmem:[%s2773_s1 + $0xd0] sm:$0xff]  }
   0x8   :  { %2036 = vmatprep.subr.bf16.mxu1 %v2056_v4  ;;  %1747 = vmatprep.subr.bf16.mxu0 %v2056_v4  ;;  %v2068_v19 = vld [vmem:[%s2774_s0 + $0x120] ss:$36 sps:$4 sm:$0xff]   ;;  %v2080_v25 = vld [vmem:[%s2773_s1 + $0x148] sm:$0xff]   ;;  %v2087_v31 = vld [vmem:[%s2773_s1 + $0x150] sm:$0xff]  }
   0x9   :  { %1003 = vmatprep.mubr.bf16.mxu0 %v2074_v13  ;;  %v2072_v20 = vld [vmem:[%s2774_s0] ss:$36 sps:$4 sm:$0xff]   ;;  %v2083_v26 = vld [vmem:[%s2774_s0 + $0x4c] ss:$36 sps:$4 sm:$0xff]   ;;  %v2089_v36 = vld [vmem:[%s2773_s1 + $0xd8] sm:$0xff]  }
   0xa   :  { %v2076_v21 = vld [vmem:[%s2773_s1 + $0x140] sm:$0xff]   ;;  %v2079_v27 = vld [vmem:[%s2773_s1 + $0x88] sm:$0xff]   ;;  %v2085_v32 = vld [vmem:[%s2773_s1 + $0x90] sm:$0xff]  }
   0xb   :  { %2044 = vmatpush3.bf16.msra.mxu1 %v2057_v5  ;;  %1748 = vmatpush3.bf16.msra.mxu0 %v2057_v5  ;;  %v2075_v22 = vld [vmem:[%s2773_s1 + $0x80] sm:$0xff]   ;;  %v2090_v28 = vld [vmem:[%s2774_s0 + $0x16c] ss:$36 sps:$4 sm:$0xff]   ;;  %v2094_v37 = vld [vmem:[%s2773_s1 + $0x158] sm:$0xff]  }
   0xc   :  { %2037 = vmatprep.subr.bf16.mxu1 %v2058_v6  ;;  %1749 = vmatprep.subr.bf16.mxu0 %v2058_v6  ;;  %v2077_v23 = vld [vmem:[%s2773_s1 + $0x100] sm:$0xff]   ;;  %v2081_v29 = vld [vmem:[%s2773_s1 + $0x108] sm:$0xff]   ;;  %v2088_v35 = vld [vmem:[%s2773_s1 + $0x110] sm:$0xff]  }
   0xd   :  { %v2086_v33 = vld [vmem:[%s2774_s0 + $0x48] ss:$36 sps:$4 sm:$0xff]   ;;  %v2092_v38 = vld [vmem:[%s2773_s1 + $0x98] sm:$0xff]   ;;  %v2096_v41 = vld [vmem:[%s2773_s1 + $0xe0] sm:$0xff]  }
   0xe   :  { %v2093_v34 = vld [vmem:[%s2774_s0 + $0x168] ss:$36 sps:$4 sm:$0xff]   ;;  %v2097_v39 = vld [vmem:[%s2774_s0 + $0x94] ss:$36 sps:$4 sm:$0xff]   ;;  %v2101_v43 = vld [vmem:[%s2773_s1 + $0x160] sm:$0xff]  }
   0xf   :  { %2045 = vmatpush3.bf16.msra.mxu1 %v2059_v7  ;;  %1750 = vmatpush3.bf16.msra.mxu0 %v2059_v7  ;;  %v2095_v40 = vld [vmem:[%s2773_s1 + $0x118] sm:$0xff]   ;;  %v75_v42 = vld [vmem:[%s2774_s0 + $0x1b0] sm:$0x11]  ;;  %v2099_v45 = vld [vmem:[%s2773_s1 + $0xa0] sm:$0xff]   ;;  %v2237_v7 = vmov 0.0  }
  0x10   :  { %2038 = vmatprep.subr.bf16.mxu1 %v2060_v8  ;;  %1751 = vmatprep.subr.bf16.mxu0 %v2060_v8  ;;  %v1602_v44 = vcombine.high %v75_v42, %v75_v42  ;;  %v2100_v46 = vld [vmem:[%s2774_s0 + $0x90] ss:$36 sps:$4 sm:$0xff]   ;;  %v2102_v47 = vld [vmem:[%s2773_s1 + $0x120] sm:$0xff]   ;;  %v1601_v48 = vcombine.low %v75_v42, %v75_v42  ;;  %v2103_v49 = vld [vmem:[%s2773_s1 + $0xe8] sm:$0xff]  }
  0x11   :  { %v2107_v50 = vld [vmem:[%s2773_s1 + $0x168] sm:$0xff]   ;;  %v2110_v52 = vld [vmem:[%s2774_s0 + $0xdc] ss:$36 sps:$4 sm:$0xff]   ;;  %v2109_v54 = vld [vmem:[%s2773_s1 + $0xf0] sm:$0xff]  }
  0x12   :  { %v2105_v51 = vld [vmem:[%s2773_s1 + $0xa8] sm:$0xff]   ;;  %v2114_v55 = vld [vmem:[%s2773_s1 + $0x170] sm:$0xff]   ;;  %v2113_v57 = vld [vmem:[%s2774_s0 + $0xd8] ss:$36 sps:$4 sm:$0xff]  }
  0x13   :  { %2046 = vmatpush3.bf16.msra.mxu1 %v2061_v9  ;;  %1752 = vmatpush3.bf16.msra.mxu0 %v2061_v9  ;;  %v2108_v53 = vld [vmem:[%s2773_s1 + $0x128] sm:$0xff]   ;;  %v2112_v56 = vld [vmem:[%s2773_s1 + $0xb0] sm:$0xff]   ;;  %v2116_v59 = vld [vmem:[%s2773_s1 + $0xf8] sm:$0xff]  }
  0x14   :  { %2039 = vmatprep.subr.bf16.mxu1 %v2062_v10  ;;  %1753 = vmatprep.subr.bf16.mxu0 %v2062_v10  ;;  %v2115_v58 = vld [vmem:[%s2773_s1 + $0x130] sm:$0xff]   ;;  %v2118_v60 = vld [vmem:[%s2773_s1 + $0x178] sm:$0xff]   ;;  %v2123_v0 = vld [vmem:[%s2773_s1 + $0x1c0] sm:$0xff]  }
  0x15   :  { %v2121_v61 = vld [vmem:[%s2774_s0 + $0xc] ss:$36 sps:$4 sm:$0xff]   ;;  %v2117_v62 = vld [vmem:[%s2773_s1 + $0xb8] sm:$0xff]   ;;  %v2127_v4 = vld [vmem:[%s2773_s1 + $0x180] sm:$0xff]  }
  0x16   :  { %v2122_v63 = vld [vmem:[%s2773_s1 + $0x138] sm:$0xff]   ;;  %v2119_v2 = vld [vmem:[%s2774_s0 + $0x8] ss:$36 sps:$4 sm:$0xff]   ;;  %v2124_v3 = vld [vmem:[%s2774_s0 + $0x10] ss:$36 sps:$4 sm:$0xff]  }
  0x17   :  { %2047 = vmatpush3.bf16.msra.mxu1 %v2063_v12  ;;  %1754 = vmatpush3.bf16.msra.mxu0 %v2063_v12  ;;  %v2126_v1 = vld [vmem:[%s2774_s0 + $0x14] ss:$36 sps:$4 sm:$0xff]   ;;  %v2128_v5 = vld [vmem:[%s2773_s1 + $0x200] sm:$0xff]   ;;  %v2131_v8 = vld [vmem:[%s2773_s1 + $0x1c8] sm:$0xff]  }
  0x18   :  { %2040 = vmatprep.subr.bf16.mxu1 %v2064_v14  ;;  %1755 = vmatprep.subr.bf16.mxu0 %v2064_v14  ;;  %v2129_v6 = vld [vmem:[%s2774_s0 + $0x54] ss:$36 sps:$4 sm:$0xff]   ;;  %v2133_v9 = vld [vmem:[%s2773_s1 + $0x188] sm:$0xff]   ;;  %v2134_v10 = vld [vmem:[%s2774_s0 + $0x5c] ss:$36 sps:$4 sm:$0xff]  }
  0x19   :  { %v2137_v11 = vld [vmem:[%s2773_s1 + $0x208] sm:$0xff]   ;;  %v2138_v12 = vld [vmem:[%s2773_s1 + $0x1d0] sm:$0xff]   ;;  %v2136_v14 = vld [vmem:[%s2774_s0 + $0x58] ss:$36 sps:$4 sm:$0xff]  }
  0x1a   :  { %v2132_v13 = vld [vmem:[%s2774_s0 + $0x50] ss:$36 sps:$4 sm:$0xff]   ;;  %v2180_v42 = vld [vmem:[%s2773_s1 + $0x1f8] sm:$0xff]  }
  0x1b   :  { %2048 = vmatpush3.bf16.msra.mxu1 %v2065_v15  ;;  %1756 = vmatpush3.bf16.msra.mxu0 %v2065_v15  ;;  %v2139_v15 = vld [vmem:[%s2774_s0 + $0x9c] ss:$36 sps:$4 sm:$0xff]  }
  0x1c   :  { %2041 = vmatprep.subr.bf16.mxu1 %v2066_v16  ;;  %1757 = vmatprep.subr.bf16.mxu0 %v2066_v16  ;;  %v2141_v16 = vld [vmem:[%s2773_s1 + $0x190] sm:$0xff]  }
  0x1f   :  { %2049 = vmatpush3.bf16.msra.mxu1 %v2067_v17  ;;  %1758 = vmatpush3.bf16.msra.mxu0 %v2067_v17  ;;  %v2143_v17 = vld [vmem:[%s2774_s0 + $0xa4] ss:$36 sps:$4 sm:$0xff]  }
  0x20   :  { %1801 = vmatprep.subr.bf16.mxu1 %v2071_v18  ;;  %1859 = vmatprep.subr.bf16.mxu0 %v2076_v21  ;;  %v2146_v18 = vld [vmem:[%s2773_s1 + $0x210] sm:$0xff]   ;;  %v2142_v21 = vld [vmem:[%s2774_s0 + $0x98] ss:$36 sps:$4 sm:$0xff]  }
  0x22   :  { %1036 = vmatmul.mubr.bf16.vlgmr.msra.gmra.mrb[0].mxu1 %v2068_v19  ;;  %1004 = vmatmul.mubr.bf16.vlgmr.msra.gmra.mrb[0].mxu0 %v2072_v20  ;;  %v2147_v19 = vld [vmem:[%s2773_s1 + $0x1d8] sm:$0xff]  }
  0x23   :  { %1802 = vmatpush3.bf16.msra.mxu1 %v2075_v22  ;;  %1860 = vmatpush3.bf16.msra.mxu0 %v2077_v23  ;;  %v2148_v20 = vld [vmem:[%s2773_s1 + $0x198] sm:$0xff]   ;;  %v2145_v22 = vld [vmem:[%s2774_s0 + $0xa0] ss:$36 sps:$4 sm:$0xff]  }
  0x24   :  { %1803 = vmatprep.subr.bf16.mxu1 %v2078_v24  ;;  %1861 = vmatprep.subr.bf16.mxu0 %v2080_v25  ;;  %v2149_v23 = vld [vmem:[%s2774_s0 + $0xe4] ss:$36 sps:$4 sm:$0xff]   ;;  %v2152_v24 = vld [vmem:[%s2774_s0 + $0xec] ss:$36 sps:$4 sm:$0xff]   ;;  %v2155_v25 = vld [vmem:[%s2773_s1 + $0x218] sm:$0xff]  }
  0x25   :  { %1011 = vmatprep.mubr.bf16.mxu0 %v2083_v26  ;;  %1043 = vmatprep.mubr.bf16.mxu1 %v2090_v28  ;;  %v2156_v26 = vld [vmem:[%s2773_s1 + $0x1e0] sm:$0xff]  }
  0x26   :  { %v2151_v28 = vld [vmem:[%s2774_s0 + $0xe0] ss:$36 sps:$4 sm:$0xff]  }
  0x27   :  { %1804 = vmatpush3.bf16.msra.mxu1 %v2079_v27  ;;  %1862 = vmatpush3.bf16.msra.mxu0 %v2081_v29  ;;  %v2157_v27 = vld [vmem:[%s2773_s1 + $0x1a0] sm:$0xff]   ;;  %v2154_v29 = vld [vmem:[%s2774_s0 + $0xe8] ss:$36 sps:$4 sm:$0xff]  }
  0x28   :  { %1805 = vmatprep.subr.bf16.mxu1 %v2082_v30  ;;  %1863 = vmatprep.subr.bf16.mxu0 %v2087_v31  ;;  %v2164_v30 = vld [vmem:[%s2773_s1 + $0x220] sm:$0xff]   ;;  %v2165_v31 = vld [vmem:[%s2773_s1 + $0x1e8] sm:$0xff]  }
  0x2a   :  { %1012 = vmatmul.mubr.bf16.gmra.mrb[4].mxu0 %v2086_v33  ;;  %1044 = vmatmul.mubr.bf16.gmra.mrb[4].mxu1 %v2093_v34  ;;  %v2158_v33 = vld [vmem:[%s2774_s0 + $0x12c] ss:$36 sps:$4 sm:$0xff]   ;;  %v2161_v34 = vld [vmem:[%s2774_s0 + $0x134] ss:$36 sps:$4 sm:$0xff]  }
  0x2b   :  { %1806 = vmatpush3.bf16.msra.mxu1 %v2085_v32  ;;  %1864 = vmatpush3.bf16.msra.mxu0 %v2088_v35  ;;  %v2166_v32 = vld [vmem:[%s2773_s1 + $0x1a8] sm:$0xff]  }
  0x2c   :  { %1807 = vmatprep.subr.bf16.mxu1 %v2089_v36  ;;  %1865 = vmatprep.subr.bf16.mxu0 %v2094_v37  ;;  %v2172_v35 = vld [vmem:[%s2773_s1 + $0x228] sm:$0xff]   ;;  %v2174_v36 = vld [vmem:[%s2773_s1 + $0x1f0] sm:$0xff]  }
  0x2d   :  { %1019 = vmatprep.mubr.bf16.mxu0 %v2097_v39  ;;  %1051 = vmatprep.mubr.bf16.mxu1 %v1602_v44  ;;  %v2160_v37 = vld [vmem:[%s2774_s0 + $0x128] ss:$36 sps:$4 sm:$0xff]   ;;  %v2175_v39 = vld [vmem:[%s2773_s1 + $0x1b0] sm:$0xff]   ;;  %v2182_v44 = vld [vmem:[%s2773_s1 + $0x1b8] sm:$0xff]  }
  0x2f   :  { %1808 = vmatpush3.bf16.msra.mxu1 %v2092_v38  ;;  %1866 = vmatpush3.bf16.msra.mxu0 %v2095_v40  ;;  %v2163_v38 = vld [vmem:[%s2774_s0 + $0x130] ss:$36 sps:$4 sm:$0xff]  }
  0x30   :  { %1809 = vmatprep.subr.bf16.mxu1 %v2096_v41  ;;  %1867 = vmatprep.subr.bf16.mxu0 %v2101_v43  ;;  %v2167_v40 = vld [vmem:[%s2774_s0 + $0x174] ss:$36 sps:$4 sm:$0xff]   ;;  %v2170_v43 = vld [vmem:[%s2774_s0 + $0x17c] ss:$36 sps:$4 sm:$0xff]  }
  0x31   :  { %v2178_v41 = vld [vmem:[%s2773_s1 + $0x230] sm:$0xff]  }
  0x32   :  { %1020 = vmatmul.mubr.bf16.gmra.mrb[8].mxu0 %v2100_v46  ;;  %1052 = vmatmul.mubr.bf16.gmra.mrb[8].mxu1 %v1601_v48  ;;  %v76_v46 = vld [vmem:[%s2774_s0 + $0x1b8] sm:$0x11]  ;;  %v2169_v48 = vld [vmem:[%s2774_s0 + $0x170] ss:$36 sps:$4 sm:$0xff]  }
  0x33   :  { %1810 = vmatpush3.bf16.msra.mxu1 %v2099_v45  ;;  %1868 = vmatpush3.bf16.msra.mxu0 %v2102_v47  ;;  %v2186_v45 = vld [vmem:[%s2773_s1 + $0x238] sm:$0xff]   ;;  %v77_v47 = vld [vmem:[%s2774_s0 + $0x1c0] sm:$0x11] }
  0x34   :  { %1811 = vmatprep.subr.bf16.mxu1 %v2103_v49  ;;  %1869 = vmatprep.subr.bf16.mxu0 %v2107_v50  ;;  %v2173_v49 = vld [vmem:[%s2774_s0 + $0x178] ss:$36 sps:$4 sm:$0xff]   ;;  %v1604_v50 = vcombine.high %v76_v46, %v76_v46 }
  0x35   :  { %1027 = vmatprep.mubr.bf16.mxu0 %v2110_v52  ;;  %1091 = vmatprep.mubr.bf16.mxu1 %v2121_v61  ;;  %v1603_v52 = vcombine.low %v76_v46, %v76_v46  ;;  %v2194_v61 = vld [vmem:[%s2774_s0 + $0xa8] ss:$36 sps:$4 sm:$0xff]  }
  0x37   :  { %1812 = vmatpush3.bf16.msra.mxu1 %v2105_v51  ;;  %1870 = vmatpush3.bf16.msra.mxu0 %v2108_v53  ;;  %v1606_v51 = vcombine.high %v77_v47, %v77_v47  ;;  %v1605_v53 = vcombine.low %v77_v47, %v77_v47 }
  0x38   :  { %1813 = vmatprep.subr.bf16.mxu1 %v2109_v54  ;;  %1871 = vmatprep.subr.bf16.mxu0 %v2114_v55  ;;  %v2185_v54 = vld [vmem:[%s2774_s0 + $0x1c] ss:$36 sps:$4 sm:$0xff]  }
  0x39   :  { %v2183_v55 = vld [vmem:[%s2774_s0 + $0x18] ss:$36 sps:$4 sm:$0xff]  }
  0x3a   :  { %1028 = vmatmul.mubr.bf16.gmra.mrb[12].mxu0 %v2113_v57  ;;  %v2188_v57 = vld [vmem:[%s2774_s0 + $0x64] ss:$36 sps:$4 sm:$0xff]  }
  0x3b   :  { %1814 = vmatpush3.bf16.msra.mxu1 %v2112_v56  ;;  %1872 = vmatpush3.bf16.msra.mxu0 %v2115_v58  ;;  %v2187_v56 = vld [vmem:[%s2774_s0 + $0x20] ss:$36 sps:$4 sm:$0xff]  }
  0x3c   :  { %1815 = vmatprep.subr.bf16.mxu1 %v2116_v59  ;;  %1873 = vmatprep.subr.bf16.mxu0 %v2118_v60  ;;  %v2190_v58 = vld [vmem:[%s2774_s0 + $0x60] ss:$36 sps:$4 sm:$0xff]   ;;  %v2191_v59 = vld [vmem:[%s2774_s0 + $0x68] ss:$36 sps:$4 sm:$0xff]  }
  0x3d   :  { %1179 = vmatprep.mubr.bf16.mxu0 %v2126_v1  ;;  %v2192_v60 = vld [vmem:[%s2774_s0 + $0xac] ss:$36 sps:$4 sm:$0xff]   ;;  %v2199_v1 = vld [vmem:[%s2774_s0 + $0xf8] ss:$36 sps:$4 sm:$0xff]  }
  0x3f   :  { %1816 = vmatpush3.bf16.msra.mxu1 %v2117_v62  ;;  %1874 = vmatpush3.bf16.msra.mxu0 %v2122_v63  ;;  %v2195_v62 = vld [vmem:[%s2774_s0 + $0xb0] ss:$36 sps:$4 sm:$0xff]  }
  0x40   :  { %1917 = vmatprep.subr.bf16.mxu1 %v2123_v0  ;;  %1990 = vmatprep.subr.bf16.mxu0 %v2237_v7  ;;  %v2196_v63 = vld [vmem:[%s2774_s0 + $0xf4] ss:$36 sps:$4 sm:$0xff]  }
  0x41   :  { %v2198_v0 = vld [vmem:[%s2774_s0 + $0xf0] ss:$36 sps:$4 sm:$0xff]  }
  0x42   :  { %1092 = vmatmul.mubr.bf16.vlgmr.msra.gmra.mrb[12].mxu1 %v2119_v2  ;;  %1180 = vmatmul.mubr.bf16.vlgmr.msra.gmra.mrb[16].mxu0 %v2124_v3  ;;  %v2200_v2 = vld [vmem:[%s2774_s0 + $0x13c] ss:$36 sps:$4 sm:$0xff]  }
  0x43   :  { %1918 = vmatpush3.bf16.msra.mxu1 %v2127_v4  ;;  %1991 = vmatpush3.bf16.msra.mxu0 %v2128_v5  ;;  %v2202_v3 = vld [vmem:[%s2774_s0 + $0x138] ss:$36 sps:$4 sm:$0xff]   ;;  %v2203_v4 = vld [vmem:[%s2774_s0 + $0x140] ss:$36 sps:$4 sm:$0xff]  }
  0x44   :  { %1099 = vmatprep.mubr.bf16.mxu1 %v2129_v6  ;;  %1919 = vmatprep.subr.bf16.mxu1 %v2131_v8  ;;  %v2204_v5 = vld [vmem:[%s2774_s0 + $0x184] ss:$36 sps:$4 sm:$0xff]  }
  0x45   :  { %1187 = vmatprep.mubr.bf16.mxu0 %v2134_v10  ;;  %1992 = vmatprep.subr.bf16.mxu0 %v2237_v7  ;;  %v78_v6 = vld [vmem:[%s2774_s0 + $0x1c8] sm:$0x11]  ;;  %v2206_v8 = vld [vmem:[%s2774_s0 + $0x180] ss:$36 sps:$4 sm:$0xff]  }
  0x46   :  { %v1608_v10 = vcombine.high %v78_v6, %v78_v6 }
  0x47   :  { %1920 = vmatpush3.bf16.msra.mxu1 %v2133_v9  ;;  %1993 = vmatpush3.bf16.msra.mxu0 %v2137_v11  ;;  %v2207_v9 = vld [vmem:[%s2774_s0 + $0x188] ss:$36 sps:$4 sm:$0xff]   ;;  %v1607_v11 = vcombine.low %v78_v6, %v78_v6 }
  0x48   :  { %1921 = vmatprep.subr.bf16.mxu1 %v2138_v12  ;;  %1994 = vmatprep.subr.bf16.mxu0 %v2237_v7  ;;  %v2210_v12 = vld [vmem:[%s2774_s0 + $0x1d0] ss:$0 sps:$4 sm:$0x11]  }
  0x4a   :  { %1100 = vmatmul.mubr.bf16.gmra.mrb[16].mxu1 %v2132_v13  ;;  %1188 = vmatmul.mubr.bf16.gmra.mrb[20].mxu0 %v2136_v14 }
  0x4b   :  { %1107 = vmatprep.mubr.bf16.mxu1 %v2139_v15  ;;  %1922 = vmatpush3.bf16.msra.mxu1 %v2141_v16 }
  0x4c   :  { %1195 = vmatprep.mubr.bf16.mxu0 %v2143_v17  ;;  %1995 = vmatpush3.bf16.msra.mxu0 %v2146_v18 }
  0x4d   :  { %1923 = vmatprep.subr.bf16.mxu1 %v2147_v19  ;;  %1996 = vmatprep.subr.bf16.mxu0 %v2237_v7 }
  0x4f   :  { %1924 = vmatpush3.bf16.msra.mxu1 %v2148_v20 }
  0x50   :  { %1997 = vmatpush3.bf16.msra.mxu0 %v2155_v25  ;;  %1925 = vmatprep.subr.bf16.mxu1 %v2156_v26 }
  0x51   :  { %1998 = vmatprep.subr.bf16.mxu0 %v2237_v7 }
  0x52   :  { %1108 = vmatmul.mubr.bf16.gmra.mrb[20].mxu1 %v2142_v21  ;;  %1196 = vmatmul.mubr.bf16.gmra.mrb[24].mxu0 %v2145_v22 }
  0x53   :  { %1115 = vmatprep.mubr.bf16.mxu1 %v2149_v23  ;;  %1203 = vmatprep.mubr.bf16.mxu0 %v2152_v24 }
  0x54   :  { %1926 = vmatpush3.bf16.msra.mxu1 %v2157_v27  ;;  %1999 = vmatpush3.bf16.msra.mxu0 %v2164_v30 }
  0x55   :  { %1927 = vmatprep.subr.bf16.mxu1 %v2165_v31  ;;  %2000 = vmatprep.subr.bf16.mxu0 %v2237_v7 }
  0x58   :  { %1928 = vmatpush3.bf16.msra.mxu1 %v2166_v32  ;;  %2001 = vmatpush3.bf16.msra.mxu0 %v2172_v35 }
  0x59   :  { %1929 = vmatprep.subr.bf16.mxu1 %v2174_v36  ;;  %2002 = vmatprep.subr.bf16.mxu0 %v2237_v7 }
  0x5a   :  { %1116 = vmatmul.mubr.bf16.gmra.mrb[24].mxu1 %v2151_v28  ;;  %1204 = vmatmul.mubr.bf16.gmra.mrb[28].mxu0 %v2154_v29 }
  0x5b   :  { %1123 = vmatprep.mubr.bf16.mxu1 %v2158_v33  ;;  %1211 = vmatprep.mubr.bf16.mxu0 %v2161_v34 }
  0x5c   :  { %1930 = vmatpush3.bf16.msra.mxu1 %v2175_v39  ;;  %2003 = vmatpush3.bf16.msra.mxu0 %v2178_v41 }
  0x5d   :  { %1931 = vmatprep.subr.bf16.mxu1 %v2180_v42  ;;  %2004 = vmatprep.subr.bf16.mxu0 %v2237_v7 }
  0x60   :  { %1932 = vmatpush3.bf16.msra.mxu1 %v2182_v44  ;;  %2005 = vmatpush3.bf16.msra.mxu0 %v2186_v45 }
  0x62   :  { %1124 = vmatmul.mubr.bf16.gmra.mrb[28].mxu1 %v2160_v37  ;;  %1212 = vmatmul.mubr.bf16.gmra.mrb[32].mxu0 %v2163_v38 }
  0x63   :  { %1131 = vmatprep.mubr.bf16.mxu1 %v2167_v40  ;;  %1219 = vmatprep.mubr.bf16.mxu0 %v2170_v43 }
  0x6a   :  { %1132 = vmatmul.mubr.bf16.gmra.mrb[32].mxu1 %v2169_v48  ;;  %1220 = vmatmul.mubr.bf16.gmra.mrb[36].mxu0 %v2173_v49 }
  0x6b   :  { %1139 = vmatprep.mubr.bf16.mxu1 %v1604_v50  ;;  %1227 = vmatprep.mubr.bf16.mxu0 %v1606_v51 }
  0x72   :  { %1140 = vmatmul.mubr.bf16.gmra.mrb[36].mxu1 %v1603_v52  ;;  %1228 = vmatmul.mubr.bf16.gmra.mrb[40].mxu0 %v1605_v53 }
  0x73   :  { %1267 = vmatprep.mubr.bf16.mxu1 %v2185_v54  ;;  %2006 = vmatprep.mubr.msk.bf16.mxu0 %vm2238_vm0, %v2237_v7 }
  0x7a   :  { %1268 = vmatmul.mubr.bf16.vlgmr.msra.gmra.mrb[40].mxu1 %v2183_v55  ;;  %2007 = vmatmul.mubr.bf16.vlgmr.msra.gmra.mrb[44].mxu0 %v2187_v56  ;;  %v2691_v55 = vld [vmem:[%s2775_s2] ss:$0 sm:$0xff] }
  0x7b   :  { %1275 = vmatprep.mubr.bf16.mxu1 %v2188_v57  ;;  %2010 = vmatprep.mubr.msk.bf16.mxu0 %vm2238_vm0, %v2237_v7 }
  0x82   :  { %1276 = vmatmul.mubr.bf16.gmra.mrb[44].mxu1 %v2190_v58  ;;  %2011 = vmatmul.mubr.bf16.gmra.mrb[48].mxu0 %v2191_v59 }
  0x83   :  { %1283 = vmatprep.mubr.bf16.mxu1 %v2192_v60  ;;  %2014 = vmatprep.mubr.msk.bf16.mxu0 %vm2238_vm0, %v2237_v7 }
  0x8a   :  { %1284 = vmatmul.mubr.bf16.gmra.mrb[48].mxu1 %v2194_v61  ;;  %2015 = vmatmul.mubr.bf16.gmra.mrb[52].mxu0 %v2195_v62 }
  0x8b   :  { %1291 = vmatprep.mubr.bf16.mxu1 %v2196_v63  ;;  %2018 = vmatprep.mubr.msk.bf16.mxu0 %vm2238_vm0, %v2237_v7 }
  0x92   :  { %1292 = vmatmul.mubr.bf16.gmra.mrb[52].mxu1 %v2198_v0  ;;  %2019 = vmatmul.mubr.bf16.gmra.mrb[56].mxu0 %v2199_v1 }
  0x93   :  { %1299 = vmatprep.mubr.bf16.mxu1 %v2200_v2  ;;  %2022 = vmatprep.mubr.msk.bf16.mxu0 %vm2238_vm0, %v2237_v7 }
  0x9a   :  { %1300 = vmatmul.mubr.bf16.gmra.mrb[56].mxu1 %v2202_v3  ;;  %2023 = vmatmul.mubr.bf16.gmra.mrb[60].mxu0 %v2203_v4 }
  0x9b   :  { %1307 = vmatprep.mubr.bf16.mxu1 %v2204_v5  ;;  %2026 = vmatprep.mubr.msk.bf16.mxu0 %vm2238_vm0, %v2237_v7 }
  0xa2   :  { %1308 = vmatmul.mubr.bf16.gmra.mrb[60].mxu1 %v2206_v8  ;;  %2027 = vmatmul.mubr.bf16.gmra.mrb[64].mxu0 %v2207_v9 }
  0xa3   :  { %1315 = vmatprep.mubr.bf16.mxu1 %v1608_v10  ;;  %2030 = vmatprep.mubr.msk.bf16.mxu0 %vm2238_vm0, %v2237_v7 }
  0xaa   :  { %1316 = vmatmul.mubr.bf16.gmra.mrb[64].mxu1 %v1607_v11  ;;  %2031 = vmatmul.mubr.bf16.gmra.mrb[68].mxu0 %v2210_v12 }
  0xf5   :  { %v1783_v13 = vpop.f32.mrb[0].mxu1  ;;  %v1759_v14 = vpop.f32.mrb[0].mxu0 }
  0xf6   :  { %v1784_v15 = vpop.f32.mrb[1].mxu1  ;;  %v1760_v16 = vpop.f32.mrb[1].mxu0 }
  0xf7   :  { %v2674_v17 = vadd.f32 %v1784_v15, %v1783_v13  ;;  %v1786_v18 = vpop.f32.mrb[2].mxu1  ;;  %v1761_v19 = vadd.f32 %v1760_v16, %v1759_v14  ;;  %v1762_v20 = vpop.f32.mrb[2].mxu0 }
  0xf8   :  { %v1787_v21 = vpop.f32.mrb[3].mxu1  ;;  %v1763_v22 = vpop.f32.mrb[3].mxu0 }
  0xf9   :  { %v2676_v23 = vadd.f32 %v1787_v21, %v1786_v18  ;;  %v1764_v7 = vadd.f32 %v1763_v22, %v1762_v20  ;;  %v1006_v58 = vadd.f32 %v1761_v19, %v2691_v55 }
  0xfb   :  { %v1009_v1 = vadd.f32 %v1764_v7, %v2691_v55 }
  0xfd   :  { %v1765_v24 = vpop.f32.mrb[4].mxu0  ;;  %v1789_v25 = vpop.f32.mrb[4].mxu1 }
  0xfe   :  { %v1766_v26 = vpop.f32.mrb[5].mxu0  ;;  %v1790_v27 = vpop.f32.mrb[5].mxu1 }
  0xff   :  { %v1767_v28 = vadd.f32 %v1766_v26, %v1765_v24  ;;  %v1768_v29 = vpop.f32.mrb[6].mxu0  ;;  %v2678_v30 = vadd.f32 %v1790_v27, %v1789_v25  ;;  %v1792_v31 = vpop.f32.mrb[6].mxu1 }
 0x100   :  { %v1769_v32 = vpop.f32.mrb[7].mxu0  ;;  %v1793_v33 = vpop.f32.mrb[7].mxu1 }
 0x101   :  { %v1770_v34 = vadd.f32 %v1769_v32, %v1768_v29  ;;  %v2680_v35 = vadd.f32 %v1793_v33, %v1792_v31  ;;  %v1014_v13 = vadd.f32 %v1767_v28, %v2691_v55 }
 0x103   :  { %v1017_v21 = vadd.f32 %v1770_v34, %v2691_v55 }
 0x105   :  { %v1771_v36 = vpop.f32.mrb[8].mxu0  ;;  %v1795_v37 = vpop.f32.mrb[8].mxu1 }
 0x106   :  { %v1772_v38 = vpop.f32.mrb[9].mxu0  ;;  %v1796_v39 = vpop.f32.mrb[9].mxu1 }
 0x107   :  { %v1773_v40 = vadd.f32 %v1772_v38, %v1771_v36  ;;  %v1774_v41 = vpop.f32.mrb[10].mxu0  ;;  %v2682_v42 = vadd.f32 %v1796_v39, %v1795_v37  ;;  %v1798_v43 = vpop.f32.mrb[10].mxu1 }
 0x108   :  { %v1775_v44 = vpop.f32.mrb[11].mxu0  ;;  %v1799_v45 = vpop.f32.mrb[11].mxu1 }
 0x109   :  { %v1776_v46 = vadd.f32 %v1775_v44, %v1774_v41  ;;  %v1022_v33 = vadd.f32 %v1773_v40, %v2691_v55 }
 0x10b   :  { %v1025_v43 = vadd.f32 %v1776_v46, %v2691_v55 }
 0x10d   :  { %v1777_v47 = vpop.f32.mrb[12].mxu0 }
 0x10e   :  { %v1778_v48 = vpop.f32.mrb[13].mxu0 }
 0x10f   :  { %v2684_v49 = vadd.f32 %v1778_v48, %v1777_v47  ;;  %v1780_v50 = vpop.f32.mrb[14].mxu0 }
 0x110   :  { %v1781_v51 = vpop.f32.mrb[15].mxu0 }
 0x111   :  { %v2686_v52 = vadd.f32 %v1781_v51, %v1780_v50 }
 0x115   :  { %v1817_v53 = vpop.f32.mrb[12].mxu1  ;;  %v1875_v54 = vpop.f32.mrb[16].mxu0 }
 0x116   :  { %v1818_v56 = vpop.f32.mrb[13].mxu1  ;;  %v1876_v57 = vpop.f32.mrb[17].mxu0 }
 0x117   :  { %v1819_v59 = vadd.f32 %v1818_v56, %v1817_v53  ;;  %v1820_v60 = vpop.f32.mrb[14].mxu1  ;;  %v1877_v61 = vadd.f32 %v1876_v57, %v1875_v54  ;;  %v1878_v62 = vpop.f32.mrb[18].mxu0  ;;  %v1030_v57 = vadd.f32 %v2684_v49, %v2691_v55 }
 0x118   :  { %v1821_v63 = vpop.f32.mrb[15].mxu1  ;;  %v1879_v0 = vpop.f32.mrb[19].mxu0 }
 0x119   :  { %v1094_v2 = vadd.f32 %v1819_v59, %v1006_v58  ;;  %v1822_v3 = vadd.f32 %v1821_v63, %v1820_v60  ;;  %v1880_v4 = vadd.f32 %v1879_v0, %v1878_v62  ;;  %v1033_v63 = vadd.f32 %v2686_v52, %v2691_v55 }
 0x11b   :  { %v1097_v5 = vadd.f32 %v1822_v3, %v1009_v1  ;;  %v2695_v6 = vadd.f32 %v1877_v61, %v1094_v2 }
 0x11d   :  { %v2697_v8 = vadd.f32 %v1880_v4, %v1097_v5  ;;  %v1823_v9 = vpop.f32.mrb[16].mxu1  ;;  %v1881_v10 = vpop.f32.mrb[20].mxu0 }
 0x11e   :  { %v1824_v11 = vpop.f32.mrb[17].mxu1  ;;  %v1882_v12 = vpop.f32.mrb[21].mxu0 }
 0x11f   :  { %v1825_v14 = vadd.f32 %v1824_v11, %v1823_v9  ;;  %v1826_v15 = vpop.f32.mrb[18].mxu1  ;;  %v1883_v16 = vadd.f32 %v1882_v12, %v1881_v10  ;;  %v1884_v18 = vpop.f32.mrb[22].mxu0  ;;  %v1038_v12 = vadd.f32 %v2674_v17, %v2691_v55 }
 0x120   :  { %v1827_v19 = vpop.f32.mrb[19].mxu1  ;;  %v1885_v20 = vpop.f32.mrb[23].mxu0 }
 0x121   :  { %v1102_v22 = vadd.f32 %v1825_v14, %v1014_v13  ;;  %v1828_v7 = vadd.f32 %v1827_v19, %v1826_v15  ;;  %v1886_v24 = vadd.f32 %v1885_v20, %v1884_v18  ;;  %v1041_v19 = vadd.f32 %v2676_v23, %v2691_v55 }
 0x123   :  { %v1105_v25 = vadd.f32 %v1828_v7, %v1017_v21  ;;  %v2701_v26 = vadd.f32 %v1883_v16, %v1102_v22 }
 0x125   :  { %v2703_v27 = vadd.f32 %v1886_v24, %v1105_v25  ;;  %v1829_v29 = vpop.f32.mrb[20].mxu1  ;;  %v1887_v31 = vpop.f32.mrb[24].mxu0 }
 0x126   :  { %v1830_v32 = vpop.f32.mrb[21].mxu1  ;;  %v1888_v28 = vpop.f32.mrb[25].mxu0 }
 0x127   :  { %v1831_v36 = vadd.f32 %v1830_v32, %v1829_v29  ;;  %v1832_v37 = vpop.f32.mrb[22].mxu1  ;;  %v1889_v38 = vadd.f32 %v1888_v28, %v1887_v31  ;;  %v1890_v39 = vpop.f32.mrb[26].mxu0  ;;  %v1046_v28 = vadd.f32 %v2678_v30, %v2691_v55 }
 0x128   :  { %v1833_v41 = vpop.f32.mrb[23].mxu1  ;;  %v1891_v34 = vpop.f32.mrb[27].mxu0 }
 0x129   :  { %v1110_v44 = vadd.f32 %v1831_v36, %v1022_v33  ;;  %v1834_v45 = vadd.f32 %v1833_v41, %v1832_v37  ;;  %v1892_v47 = vadd.f32 %v1891_v34, %v1890_v39  ;;  %v1049_v41 = vadd.f32 %v2680_v35, %v2691_v55 }
 0x12b   :  { %v1113_v48 = vadd.f32 %v1834_v45, %v1025_v43  ;;  %v2707_v50 = vadd.f32 %v1889_v38, %v1110_v44 }
 0x12d   :  { %v2709_v51 = vadd.f32 %v1892_v47, %v1113_v48  ;;  %v1835_v53 = vpop.f32.mrb[24].mxu1  ;;  %v1893_v54 = vpop.f32.mrb[28].mxu0 }
 0x12e   :  { %v1836_v56 = vpop.f32.mrb[25].mxu1  ;;  %v1894_v40 = vpop.f32.mrb[29].mxu0 }
 0x12f   :  { %v1837_v58 = vadd.f32 %v1836_v56, %v1835_v53  ;;  %v1838_v59 = vpop.f32.mrb[26].mxu1  ;;  %v1895_v60 = vadd.f32 %v1894_v40, %v1893_v54  ;;  %v1896_v61 = vpop.f32.mrb[30].mxu0  ;;  %v1054_v40 = vadd.f32 %v2682_v42, %v2691_v55 }
 0x130   :  { %v1839_v46 = vpop.f32.mrb[27].mxu1  ;;  %v1897_v62 = vpop.f32.mrb[31].mxu0 }
 0x131   :  { %v1118_v0 = vadd.f32 %v1837_v58, %v1030_v57  ;;  %v1840_v1 = vadd.f32 %v1839_v46, %v1838_v59  ;;  %v1898_v2 = vadd.f32 %v1897_v62, %v1896_v61 }
 0x133   :  { %v1121_v3 = vadd.f32 %v1840_v1, %v1033_v63  ;;  %v2715_v4 = vadd.f32 %v1895_v60, %v1118_v0 }
 0x135   :  { %v2717_v5 = vadd.f32 %v1898_v2, %v1121_v3  ;;  %v1841_v9 = vpop.f32.mrb[28].mxu1  ;;  %v1899_v10 = vpop.f32.mrb[32].mxu0 }
 0x136   :  { %v1842_v49 = vpop.f32.mrb[29].mxu1  ;;  %v1900_v11 = vpop.f32.mrb[33].mxu0 }
 0x137   :  { %v1843_v13 = vadd.f32 %v1842_v49, %v1841_v9  ;;  %v1844_v14 = vpop.f32.mrb[30].mxu1  ;;  %v1901_v15 = vadd.f32 %v1900_v11, %v1899_v10  ;;  %v1902_v16 = vpop.f32.mrb[34].mxu0 }
 0x138   :  { %v1845_v52 = vpop.f32.mrb[31].mxu1  ;;  %v1903_v18 = vpop.f32.mrb[35].mxu0 }
 0x139   :  { %v1126_v20 = vadd.f32 %v1843_v13, %v1038_v12  ;;  %v1846_v21 = vadd.f32 %v1845_v52, %v1844_v14  ;;  %v1904_v22 = vadd.f32 %v1903_v18, %v1902_v16 }
 0x13b   :  { %v1129_v7 = vadd.f32 %v1846_v21, %v1041_v19  ;;  %v2723_v24 = vadd.f32 %v1901_v15, %v1126_v20 }
 0x13d   :  { %v2725_v25 = vadd.f32 %v1904_v22, %v1129_v7  ;;  %v1847_v29 = vpop.f32.mrb[32].mxu1  ;;  %v1905_v31 = vpop.f32.mrb[36].mxu0 }
 0x13e   :  { %v1848_v17 = vpop.f32.mrb[33].mxu1  ;;  %v1906_v32 = vpop.f32.mrb[37].mxu0 }
 0x13f   :  { %v1849_v33 = vadd.f32 %v1848_v17, %v1847_v29  ;;  %v1850_v36 = vpop.f32.mrb[34].mxu1  ;;  %v1907_v37 = vadd.f32 %v1906_v32, %v1905_v31  ;;  %v1908_v38 = vpop.f32.mrb[38].mxu0 }
 0x140   :  { %v1851_v23 = vpop.f32.mrb[35].mxu1  ;;  %v1909_v39 = vpop.f32.mrb[39].mxu0 }
 0x141   :  { %v1134_v34 = vadd.f32 %v1849_v33, %v1046_v28  ;;  %v1852_v43 = vadd.f32 %v1851_v23, %v1850_v36  ;;  %v1910_v44 = vadd.f32 %v1909_v39, %v1908_v38 }
 0x143   :  { %v1137_v45 = vadd.f32 %v1852_v43, %v1049_v41  ;;  %v2731_v47 = vadd.f32 %v1907_v37, %v1134_v34 }
 0x145   :  { %v2733_v48 = vadd.f32 %v1910_v44, %v1137_v45  ;;  %v1853_v53 = vpop.f32.mrb[36].mxu1  ;;  %v1911_v54 = vpop.f32.mrb[40].mxu0 }
 0x146   :  { %v1854_v30 = vpop.f32.mrb[37].mxu1  ;;  %v1912_v56 = vpop.f32.mrb[41].mxu0 }
 0x147   :  { %v1855_v57 = vadd.f32 %v1854_v30, %v1853_v53  ;;  %v1856_v58 = vpop.f32.mrb[38].mxu1  ;;  %v1913_v59 = vadd.f32 %v1912_v56, %v1911_v54  ;;  %v1914_v60 = vpop.f32.mrb[42].mxu0 }
 0x148   :  { %v1857_v35 = vpop.f32.mrb[39].mxu1  ;;  %v1915_v61 = vpop.f32.mrb[43].mxu0 }
 0x149   :  { %v1142_v46 = vadd.f32 %v1855_v57, %v1054_v40 }
 0x14b   :  { %v2737_v62 = vadd.f32 %v1913_v59, %v1142_v46 }
 0x14d   :  { %v1933_v63 = vpop.f32.mrb[40].mxu1  ;;  %v1357_v0 = vpop.f32.mrb[44].mxu0 }
 0x14e   :  { %v1934_v1 = vpop.f32.mrb[41].mxu1  ;;  %v2008_v2 = vpop.f32.mrb[45].mxu0 }
 0x14f   :  { %v1935_v3 = vadd.f32 %v1934_v1, %v1933_v63  ;;  %v1936_v9 = vpop.f32.mrb[42].mxu1  ;;  %v1360_v10 = vpop.f32.mrb[46].mxu0 }
 0x150   :  { %v1937_v49 = vpop.f32.mrb[43].mxu1  ;;  %v2009_v11 = vpop.f32.mrb[47].mxu0 }
 0x151   :  { %v1938_v12 = vadd.f32 %v1937_v49, %v1936_v9  ;;  %v1270_v42 = vadd.f32 %v1935_v3, %v2695_v6 }
 0x153   :  { %v1358_v55 = vadd.f32 %v1357_v0, %v1270_v42  ;;  %v1273_v13 = vadd.f32 %v1938_v12, %v2697_v8 }
 0x155   :  { %v1424_v14 = vmul.f32 0.70710677, %v1358_v55  ;;  %v1361_v15 = vadd.f32 %v1360_v10, %v1273_v13  ;;  %v1939_v16 = vpop.f32.mrb[44].mxu1  ;;  %v1365_v52 = vpop.f32.mrb[48].mxu0  ;;  %v1411_v57 = vmul.f32 0.5, %v1358_v55 }
 0x156   :  { %v1940_v18 = vpop.f32.mrb[45].mxu1  ;;  %v2012_v19 = vpop.f32.mrb[49].mxu0 }
 0x157   :  { %2211 = verf.f32 %v1424_v14  ;;  %v1425_v20 = vmul.f32 0.70710677, %v1361_v15  ;;  %v1941_v21 = vadd.f32 %v1940_v18, %v1939_v16  ;;  %v1942_v22 = vpop.f32.mrb[46].mxu1  ;;  %v1368_v7 = vpop.f32.mrb[50].mxu0  ;;  %v1412_v58 = vmul.f32 0.5, %v1361_v15 }
 0x158   :  { %v1943_v29 = vpop.f32.mrb[47].mxu1  ;;  %v2013_v31 = vpop.f32.mrb[51].mxu0 }
 0x159   :  { %2213 = verf.f32 %v1425_v20  ;;  %v1944_v17 = vadd.f32 %v1943_v29, %v1942_v22  ;;  %v1278_v6 = vadd.f32 %v1941_v21, %v2701_v26 }
 0x15b   :  { %v1366_v32 = vadd.f32 %v1365_v52, %v1278_v6  ;;  %v1281_v8 = vadd.f32 %v1944_v17, %v2703_v27 }
 0x15d   :  { %v1426_v28 = vmul.f32 0.70710677, %v1366_v32  ;;  %v1369_v33 = vadd.f32 %v1368_v7, %v1281_v8  ;;  %v1945_v36 = vpop.f32.mrb[48].mxu1  ;;  %v1373_v37 = vpop.f32.mrb[52].mxu0  ;;  %v1413_v52 = vmul.f32 0.5, %v1366_v32 }
 0x15e   :  { %v1946_v38 = vpop.f32.mrb[49].mxu1  ;;  %v2016_v23 = vpop.f32.mrb[53].mxu0 }
 0x15f   :  { %2215 = verf.f32 %v1426_v28  ;;  %v1427_v39 = vmul.f32 0.70710677, %v1369_v33  ;;  %v1947_v41 = vadd.f32 %v1946_v38, %v1945_v36  ;;  %v1948_v34 = vpop.f32.mrb[50].mxu1  ;;  %v1376_v43 = vpop.f32.mrb[54].mxu0  ;;  %v1414_v18 = vmul.f32 0.5, %v1369_v33 }
 0x160   :  { %v1949_v44 = vpop.f32.mrb[51].mxu1  ;;  %v2017_v45 = vpop.f32.mrb[55].mxu0 }
 0x161   :  { %v2212_v53 = vpop.eup %2211  ;;  %2217 = verf.f32 %v1427_v39  ;;  %v1950_v54 = vadd.f32 %v1949_v44, %v1948_v34  ;;  %v1286_v26 = vadd.f32 %v1947_v41, %v2707_v50 }
 0x162   :  { %v1450_v30 = vadd.f32 1.0, %v2212_v53 }
 0x163   :  { %v2214_v27 = vpop.eup %2213  ;;  %v1374_v56 = vadd.f32 %v1373_v37, %v1286_v26  ;;  %v1289_v40 = vadd.f32 %v1950_v54, %v2709_v51 }
 0x164   :  { %v1451_v59 = vadd.f32 1.0, %v2214_v27  ;;  %v1463_v63 = vmul.f32 %v1450_v30, %v1411_v57 }
 0x165   :  { %v1428_v60 = vmul.f32 0.70710677, %v1374_v56  ;;  %v1377_v35 = vadd.f32 %v1376_v43, %v1289_v40  ;;  %v1951_v61 = vpop.f32.mrb[52].mxu1  ;;  %v1381_v46 = vpop.f32.mrb[56].mxu0  ;;  %v1415_v44 = vmul.f32 0.5, %v1374_v56 }
 0x166   :  { %v1464_v0 = vmul.f32 %v1451_v59, %v1412_v58  ;;  %v1952_v1 = vpop.f32.mrb[53].mxu1  ;;  %v2020_v2 = vpop.f32.mrb[57].mxu0 }
 0x167   :  { %2219 = verf.f32 %v1428_v60  ;;  %v1429_v3 = vmul.f32 0.70710677, %v1377_v35  ;;  %v1953_v9 = vadd.f32 %v1952_v1, %v1951_v61  ;;  %v1954_v50 = vpop.f32.mrb[54].mxu1  ;;  %v1384_v10 = vpop.f32.mrb[58].mxu0  ;;  %v1416_v45 = vmul.f32 0.5, %v1377_v35 }
 0x168   :  { %v1711_v49 = vpack.c.bf16 %v1464_v0, %v1463_v63  ;;  %v1955_v11 = vpop.f32.mrb[55].mxu1  ;;  %v2021_v12 = vpop.f32.mrb[59].mxu0 }
 0x169   :  { %v2216_v51 = vpop.eup %2215  ;;  %2221 = verf.f32 %v1429_v3  ;;  %v1956_v42 = vadd.f32 %v1955_v11, %v1954_v50  ;;  %v1294_v55 = vadd.f32 %v1953_v9, %v2715_v4 }
 0x16a   :  { %1712 = vst [vmem:[%s2776_s3] sm:$0xff] %v1711_v49   ;;  %v1452_v13 = vadd.f32 1.0, %v2216_v51 }
 0x16b   :  { %v2218_v14 = vpop.eup %2217  ;;  %v1382_v15 = vadd.f32 %v1381_v46, %v1294_v55  ;;  %v1297_v16 = vadd.f32 %v1956_v42, %v2717_v5 }
 0x16c   :  { %v1453_v19 = vadd.f32 1.0, %v2218_v14  ;;  %v1465_v29 = vmul.f32 %v1452_v13, %v1413_v52 }
 0x16d   :  { %v1430_v20 = vmul.f32 0.70710677, %v1382_v15  ;;  %v1385_v21 = vadd.f32 %v1384_v10, %v1297_v16  ;;  %v1957_v22 = vpop.f32.mrb[56].mxu1  ;;  %v1389_v7 = vpop.f32.mrb[60].mxu0  ;;  %v1417_v10 = vmul.f32 0.5, %v1382_v15 }
 0x16e   :  { %v1466_v31 = vmul.f32 %v1453_v19, %v1414_v18  ;;  %v1958_v17 = vpop.f32.mrb[57].mxu1  ;;  %v2024_v4 = vpop.f32.mrb[61].mxu0 }
 0x16f   :  { %2223 = verf.f32 %v1430_v20  ;;  %v1431_v6 = vmul.f32 0.70710677, %v1385_v21  ;;  %v1959_v8 = vadd.f32 %v1958_v17, %v1957_v22  ;;  %v1960_v28 = vpop.f32.mrb[58].mxu1  ;;  %v1392_v36 = vpop.f32.mrb[62].mxu0  ;;  %v1418_v49 = vmul.f32 0.5, %v1385_v21 }
 0x170   :  { %v1716_v37 = vpack.c.bf16 %v1466_v31, %v1465_v29  ;;  %v1961_v38 = vpop.f32.mrb[59].mxu1  ;;  %v2025_v23 = vpop.f32.mrb[63].mxu0 }
 0x171   :  { %v2220_v5 = vpop.eup %2219  ;;  %2225 = verf.f32 %v1431_v6  ;;  %v1962_v32 = vadd.f32 %v1961_v38, %v1960_v28  ;;  %v1302_v33 = vadd.f32 %v1959_v8, %v2723_v24 }
 0x172   :  { %1738 = vst [vmem:[%s2776_s3 + $0x8] sm:$0xff] %v1716_v37   ;;  %v1454_v39 = vadd.f32 1.0, %v2220_v5 }
 0x173   :  { %v2222_v41 = vpop.eup %2221  ;;  %v1390_v34 = vadd.f32 %v1389_v7, %v1302_v33  ;;  %v1305_v43 = vadd.f32 %v1962_v32, %v2725_v25 }
 0x174   :  { %v1455_v53 = vadd.f32 1.0, %v2222_v41  ;;  %v1467_v40 = vmul.f32 %v1454_v39, %v1415_v44 }
 0x175   :  { %v1432_v54 = vmul.f32 0.70710677, %v1390_v34  ;;  %v1393_v26 = vadd.f32 %v1392_v36, %v1305_v43  ;;  %v1963_v30 = vpop.f32.mrb[60].mxu1  ;;  %v1397_v27 = vpop.f32.mrb[64].mxu0  ;;  %v1419_v4 = vmul.f32 0.5, %v1390_v34 }
 0x176   :  { %v1468_v57 = vmul.f32 %v1455_v53, %v1416_v45  ;;  %v1964_v58 = vpop.f32.mrb[61].mxu1  ;;  %v2028_v24 = vpop.f32.mrb[65].mxu0 }
 0x177   :  { %2227 = verf.f32 %v1432_v54  ;;  %v1433_v59 = vmul.f32 0.70710677, %v1393_v26  ;;  %v1965_v60 = vadd.f32 %v1964_v58, %v1963_v30  ;;  %v1966_v61 = vpop.f32.mrb[62].mxu1  ;;  %v1400_v46 = vpop.f32.mrb[66].mxu0  ;;  %v1420_v6 = vmul.f32 0.5, %v1393_v26 }
 0x178   :  { %v1721_v63 = vpack.c.bf16 %v1468_v57, %v1467_v40  ;;  %v1967_v0 = vpop.f32.mrb[63].mxu1  ;;  %v2029_v1 = vpop.f32.mrb[67].mxu0 }
 0x179   :  { %v2224_v25 = vpop.eup %2223  ;;  %2229 = verf.f32 %v1433_v59  ;;  %v1968_v56 = vadd.f32 %v1967_v0, %v1966_v61  ;;  %v1310_v35 = vadd.f32 %v1965_v60, %v2731_v47 }
 0x17a   :  { %1739 = vst [vmem:[%s2776_s3 + $0x10] sm:$0xff] %v1721_v63   ;;  %v1456_v2 = vadd.f32 1.0, %v2224_v25 }
 0x17b   :  { %v2226_v3 = vpop.eup %2225  ;;  %v1398_v9 = vadd.f32 %v1397_v27, %v1310_v35  ;;  %v1313_v50 = vadd.f32 %v1968_v56, %v2733_v48 }
 0x17c   :  { %v1457_v11 = vadd.f32 1.0, %v2226_v3  ;;  %v1469_v13 = vmul.f32 %v1456_v2, %v1417_v10 }
 0x17d   :  { %v1434_v12 = vmul.f32 0.70710677, %v1398_v9  ;;  %v1401_v51 = vadd.f32 %v1400_v46, %v1313_v50  ;;  %v1969_v42 = vpop.f32.mrb[64].mxu1  ;;  %v1405_v55 = vpop.f32.mrb[68].mxu0  ;;  %v1421_v32 = vmul.f32 0.5, %v1398_v9 }
 0x17e   :  { %v1470_v14 = vmul.f32 %v1457_v11, %v1418_v49  ;;  %v1970_v16 = vpop.f32.mrb[65].mxu1  ;;  %v2032_v47 = vpop.f32.mrb[69].mxu0 }
 0x17f   :  { %2231 = verf.f32 %v1434_v12  ;;  %v1435_v52 = vmul.f32 0.70710677, %v1401_v51  ;;  %v1971_v18 = vadd.f32 %v1970_v16, %v1969_v42  ;;  %v1972_v19 = vpop.f32.mrb[66].mxu1  ;;  %v1408_v20 = vpop.f32.mrb[70].mxu0  ;;  %v1422_v33 = vmul.f32 0.5, %v1401_v51 }
 0x180   :  { %v1726_v22 = vpack.c.bf16 %v1470_v14, %v1469_v13  ;;  %v1973_v7 = vpop.f32.mrb[67].mxu1  ;;  %v2033_v29 = vpop.f32.mrb[71].mxu0 }
 0x181   :  { %v2228_v48 = vpop.eup %2227  ;;  %2233 = verf.f32 %v1435_v52  ;;  %v1318_v15 = vadd.f32 %v1971_v18, %v2737_v62 }
 0x182   :  { %1740 = vst [vmem:[%s2776_s3 + $0x18] sm:$0xff] %v1726_v22   ;;  %v1458_v21 = vadd.f32 1.0, %v2228_v48 }
 0x183   :  { %v2230_v31 = vpop.eup %2229  ;;  %v1406_v17 = vadd.f32 %v1405_v55, %v1318_v15 }
 0x184   :  { %v1459_v8 = vadd.f32 1.0, %v2230_v31  ;;  %v1471_v36 = vmul.f32 %v1458_v21, %v1419_v4 }
 0x185   :  { %v1436_v28 = vmul.f32 0.70710677, %v1406_v17  ;;  %v1423_v45 = vmul.f32 0.5, %v1406_v17 }
 0x186   :  { %v1472_v37 = vmul.f32 %v1459_v8, %v1420_v6 }
 0x187   :  { %2235 = verf.f32 %v1436_v28 }
 0x188   :  { %v1731_v38 = vpack.c.bf16 %v1472_v37, %v1471_v36 }
 0x189   :  { %v2232_v23 = vpop.eup %2231 }
 0x18a   :  { %1741 = vst [vmem:[%s2776_s3 + $0x20] sm:$0xff] %v1731_v38   ;;  %v1460_v62 = vadd.f32 1.0, %v2232_v23 }
 0x18b   :  { %v2234_v5 = vpop.eup %2233 }
 0x18c   :  { %v1461_v39 = vadd.f32 1.0, %v2234_v5  ;;  %v1473_v41 = vmul.f32 %v1460_v62, %v1421_v32 }
 0x18e   :  { %v1474_v43 = vmul.f32 %v1461_v39, %v1422_v33 }
 0x190   :  { %v1736_v34 = vpack.c.bf16 %v1474_v43, %v1473_v41 }
 0x191   :  { %v2236_v44 = vpop.eup %2235 }
 0x192   :  { %1742 = vst [vmem:[%s2776_s3 + $0x28] sm:$0xff] %v1736_v34   ;;  %v1462_v53 = vadd.f32 1.0, %v2236_v44 }
 0x194   :  { %v1475_v54 = vmul.f32 %v1462_v53, %v1423_v45 }
 0x196   :  { %v1707_v26 = vpack.c.bf16 %v1475_v54, %v1475_v54 }
 0x198   :  { %1541 = vst [vmem:[%s2776_s3 + $0x30] sm:$0x1] %v1707_v26 }

// kernel: cae_forward.15
= control target key start
LH: loop header
LB: loop body
LE: loop exit
PB: predicated region body
PF: predicated region fallthrough
CT: control target
= control target key end

     0   :  { %s1656_s1 = inlined_call_operand.vmem [shape: bf16[1152,128], index: 1, kind: input, shape index: {}]   ;;  %s1657_s0 = inlined_call_operand.vmem [shape: bf16[32,1152], index: 0, kind: input, shape index: {}]   ;;  %s1658_s2 = inlined_call_operand.vmem [shape: f32[1,128], index: 2, kind: input, shape index: {}]   ;;  %s1659_s3 = inlined_call_operand.vmem [shape: bf16[32,128], index: 3, kind: output, shape index: {}]  }
   0x1   :  { %v1251_v0 = vld [vmem:[%s1656_s1 + $0x40] sm:$0xff]   ;;  %v1255_v4 = vld [vmem:[%s1656_s1 + $0x48] sm:$0xff]   ;;  %v1259_v8 = vld [vmem:[%s1656_s1 + $0x50] sm:$0xff]  }
   0x2   :  { %v1252_v1 = vld [vmem:[%s1656_s1] sm:$0xff]   ;;  %1109 = vmatprep.subr.bf16.mxu0 %v1251_v0  ;;  %v1256_v5 = vld [vmem:[%s1656_s1 + $0x8] sm:$0xff]   ;;  %v1260_v9 = vld [vmem:[%s1656_s1 + $0x10] sm:$0xff]  }
   0x3   :  { %v1253_v2 = vld [vmem:[%s1656_s1 + $0xc0] sm:$0xff]   ;;  %1110 = vmatpush3.bf16.msra.mxu0 %v1252_v1  ;;  %v1257_v6 = vld [vmem:[%s1656_s1 + $0xc8] sm:$0xff]   ;;  %v1261_v10 = vld [vmem:[%s1656_s1 + $0xd0] sm:$0xff]  }
   0x4   :  { %v1254_v3 = vld [vmem:[%s1656_s1 + $0x80] sm:$0xff]   ;;  %1137 = vmatprep.subr.bf16.mxu1 %v1253_v2  ;;  %1111 = vmatprep.subr.bf16.mxu0 %v1255_v4  ;;  %v1258_v7 = vld [vmem:[%s1656_s1 + $0x88] sm:$0xff]   ;;  %v1262_v11 = vld [vmem:[%s1656_s1 + $0x90] sm:$0xff]  }
   0x5   :  { %1138 = vmatpush3.bf16.msra.mxu1 %v1254_v3  ;;  %v1263_v12 = vld [vmem:[%s1656_s1 + $0x58] sm:$0xff]   ;;  %v1267_v16 = vld [vmem:[%s1656_s1 + $0x60] sm:$0xff]   ;;  %v1271_v20 = vld [vmem:[%s1656_s1 + $0x68] sm:$0xff]  }
   0x6   :  { %1139 = vmatprep.subr.bf16.mxu1 %v1257_v6  ;;  %v1264_v13 = vld [vmem:[%s1656_s1 + $0x18] sm:$0xff]   ;;  %v1268_v17 = vld [vmem:[%s1656_s1 + $0x20] sm:$0xff]   ;;  %v1272_v21 = vld [vmem:[%s1656_s1 + $0x28] sm:$0xff]  }
   0x7   :  { %1112 = vmatpush3.bf16.msra.mxu0 %v1256_v5  ;;  %v1265_v14 = vld [vmem:[%s1656_s1 + $0xd8] sm:$0xff]   ;;  %v1269_v18 = vld [vmem:[%s1656_s1 + $0xe0] sm:$0xff]   ;;  %v1273_v22 = vld [vmem:[%s1656_s1 + $0xe8] sm:$0xff]  }
   0x8   :  { %1113 = vmatprep.subr.bf16.mxu0 %v1259_v8  ;;  %v1266_v15 = vld [vmem:[%s1656_s1 + $0x98] sm:$0xff]   ;;  %v1270_v19 = vld [vmem:[%s1656_s1 + $0xa0] sm:$0xff]   ;;  %v1274_v23 = vld [vmem:[%s1656_s1 + $0xa8] sm:$0xff]  }
   0x9   :  { %1140 = vmatpush3.bf16.msra.mxu1 %v1258_v7  ;;  %v1275_v24 = vld [vmem:[%s1656_s1 + $0x70] sm:$0xff]   ;;  %v1279_v28 = vld [vmem:[%s1656_s1 + $0x78] sm:$0xff]   ;;  %v1282_v31 = vld [vmem:[%s1657_s0] ss:$36 sps:$4 sm:$0xff]  }
   0xa   :  { %1141 = vmatprep.subr.bf16.mxu1 %v1261_v10  ;;  %v1276_v25 = vld [vmem:[%s1656_s1 + $0x30] sm:$0xff]   ;;  %v1280_v29 = vld [vmem:[%s1656_s1 + $0x38] sm:$0xff]   ;;  %v1284_v32 = vld [vmem:[%s1657_s0 + $0x4] ss:$36 sps:$4 sm:$0xff]  }
   0xb   :  { %1114 = vmatpush3.bf16.msra.mxu0 %v1260_v9  ;;  %v1277_v26 = vld [vmem:[%s1656_s1 + $0xf0] sm:$0xff]   ;;  %v1281_v30 = vld [vmem:[%s1656_s1 + $0xf8] sm:$0xff]   ;;  %742 = vmatprep.mubr.bf16.mxu0 %v1284_v32  ;;  %v1286_v34 = vld [vmem:[%s1656_s1 + $0x140] sm:$0xff]  }
   0xc   :  { %1115 = vmatprep.subr.bf16.mxu0 %v1263_v12  ;;  %v1278_v27 = vld [vmem:[%s1656_s1 + $0xb0] sm:$0xff]   ;;  %v1285_v33 = vld [vmem:[%s1656_s1 + $0xb8] sm:$0xff]   ;;  %v1287_v35 = vld [vmem:[%s1657_s0 + $0x8] ss:$36 sps:$4 sm:$0xff]  }
   0xd   :  { %1142 = vmatpush3.bf16.msra.mxu1 %v1262_v11  ;;  %v1289_v36 = vld [vmem:[%s1657_s0 + $0xc] ss:$36 sps:$4 sm:$0xff]   ;;  %v1290_v37 = vld [vmem:[%s1656_s1 + $0x100] sm:$0xff]   ;;  %v1301_v48 = vld [vmem:[%s1656_s1 + $0x158] sm:$0xff]  }
   0xe   :  { %1143 = vmatprep.subr.bf16.mxu1 %v1265_v14  ;;  %791 = vmatprep.mubr.bf16.mxu1 %v1289_v36  ;;  %v1291_v38 = vld [vmem:[%s1656_s1 + $0x1c0] sm:$0xff]   ;;  %v1293_v40 = vld [vmem:[%s1656_s1 + $0x148] sm:$0xff]   ;;  %v1297_v44 = vld [vmem:[%s1656_s1 + $0x150] sm:$0xff]  }
   0xf   :  { %1116 = vmatpush3.bf16.msra.mxu0 %v1264_v13  ;;  %v1292_v39 = vld [vmem:[%s1656_s1 + $0x180] sm:$0xff]   ;;  %v1294_v41 = vld [vmem:[%s1656_s1 + $0x108] sm:$0xff]   ;;  %v1298_v45 = vld [vmem:[%s1656_s1 + $0x110] sm:$0xff]  }
  0x10   :  { %1117 = vmatprep.subr.bf16.mxu0 %v1267_v16  ;;  %v1295_v42 = vld [vmem:[%s1656_s1 + $0x1c8] sm:$0xff]   ;;  %v1299_v46 = vld [vmem:[%s1656_s1 + $0x1d0] sm:$0xff]   ;;  %v1302_v49 = vld [vmem:[%s1656_s1 + $0x118] sm:$0xff]  }
  0x11   :  { %1144 = vmatpush3.bf16.msra.mxu1 %v1266_v15  ;;  %v1296_v43 = vld [vmem:[%s1656_s1 + $0x188] sm:$0xff]   ;;  %v1300_v47 = vld [vmem:[%s1656_s1 + $0x190] sm:$0xff]   ;;  %v1303_v50 = vld [vmem:[%s1656_s1 + $0x1d8] sm:$0xff]  }
  0x12   :  { %1145 = vmatprep.subr.bf16.mxu1 %v1269_v18  ;;  %v1304_v51 = vld [vmem:[%s1656_s1 + $0x198] sm:$0xff]   ;;  %v1305_v52 = vld [vmem:[%s1656_s1 + $0x160] sm:$0xff]   ;;  %v1309_v56 = vld [vmem:[%s1656_s1 + $0x168] sm:$0xff]  }
  0x13   :  { %1118 = vmatpush3.bf16.msra.mxu0 %v1268_v17  ;;  %v1306_v53 = vld [vmem:[%s1656_s1 + $0x120] sm:$0xff]   ;;  %v1310_v57 = vld [vmem:[%s1657_s0 + $0x4c] ss:$36 sps:$4 sm:$0xff]   ;;  %v1315_v61 = vld [vmem:[%s1657_s0 + $0x54] ss:$36 sps:$4 sm:$0xff]  }
  0x14   :  { %1119 = vmatprep.subr.bf16.mxu0 %v1271_v20  ;;  %v1307_v54 = vld [vmem:[%s1656_s1 + $0x1e0] sm:$0xff]   ;;  %v1312_v58 = vld [vmem:[%s1656_s1 + $0x128] sm:$0xff]   ;;  %v1318_v63 = vld [vmem:[%s1657_s0 + $0x50] ss:$36 sps:$4 sm:$0xff]  }
  0x15   :  { %1146 = vmatpush3.bf16.msra.mxu1 %v1270_v19  ;;  %v1308_v55 = vld [vmem:[%s1656_s1 + $0x1a0] sm:$0xff]   ;;  %v1313_v59 = vld [vmem:[%s1657_s0 + $0x48] ss:$36 sps:$4 sm:$0xff]   ;;  %v1319_v0 = vld [vmem:[%s1656_s1 + $0x170] sm:$0xff]  }
  0x16   :  { %1147 = vmatprep.subr.bf16.mxu1 %v1273_v22  ;;  %v1314_v60 = vld [vmem:[%s1656_s1 + $0x1e8] sm:$0xff]   ;;  %v1320_v1 = vld [vmem:[%s1656_s1 + $0x130] sm:$0xff]   ;;  %v1323_v4 = vld [vmem:[%s1656_s1 + $0x178] sm:$0xff]  }
  0x17   :  { %1120 = vmatpush3.bf16.msra.mxu0 %v1272_v21  ;;  %v1317_v62 = vld [vmem:[%s1656_s1 + $0x1a8] sm:$0xff]   ;;  %v1321_v2 = vld [vmem:[%s1656_s1 + $0x1f0] sm:$0xff]   ;;  %v1324_v5 = vld [vmem:[%s1656_s1 + $0x138] sm:$0xff]  }
  0x18   :  { %1121 = vmatprep.subr.bf16.mxu0 %v1275_v24  ;;  %v1322_v3 = vld [vmem:[%s1656_s1 + $0x1b0] sm:$0xff]   ;;  %v1325_v6 = vld [vmem:[%s1656_s1 + $0x1f8] sm:$0xff]   ;;  %v1330_v10 = vld [vmem:[%s1656_s1 + $0x200] sm:$0xff]  }
  0x19   :  { %1148 = vmatpush3.bf16.msra.mxu1 %v1274_v23  ;;  %v1326_v7 = vld [vmem:[%s1657_s0 + $0x10] ss:$36 sps:$4 sm:$0xff]   ;;  %v1329_v9 = vld [vmem:[%s1656_s1 + $0x1b8] sm:$0xff]   ;;  %v1334_v13 = vld [vmem:[%s1656_s1 + $0x208] sm:$0xff]  }
  0x1a   :  { %1149 = vmatprep.subr.bf16.mxu1 %v1277_v26  ;;  %v1328_v8 = vld [vmem:[%s1657_s0 + $0x14] ss:$36 sps:$4 sm:$0xff]   ;;  %v1333_v12 = vld [vmem:[%s1657_s0 + $0x1c] ss:$36 sps:$4 sm:$0xff]   ;;  %v1339_v17 = vld [vmem:[%s1657_s0 + $0x64] ss:$36 sps:$4 sm:$0xff]  }
  0x1b   :  { %1122 = vmatpush3.bf16.msra.mxu0 %v1276_v25  ;;  %v1331_v11 = vld [vmem:[%s1657_s0 + $0x18] ss:$36 sps:$4 sm:$0xff]   ;;  %v1338_v16 = vld [vmem:[%s1656_s1 + $0x210] sm:$0xff]   ;;  %v1341_v18 = vld [vmem:[%s1657_s0 + $0x60] ss:$36 sps:$4 sm:$0xff]  }
  0x1c   :  { %1123 = vmatprep.subr.bf16.mxu0 %v1279_v28  ;;  %v1335_v14 = vld [vmem:[%s1657_s0 + $0x5c] ss:$36 sps:$4 sm:$0xff]   ;;  %v1344_v22 = vld [vmem:[%s1656_s1 + $0x228] sm:$0xff]   ;;  %v1345_v23 = vld [vmem:[%s1656_s1 + $0x230] sm:$0xff]  }
  0x1d   :  { %1150 = vmatpush3.bf16.msra.mxu1 %v1278_v27  ;;  %v1337_v15 = vld [vmem:[%s1657_s0 + $0x58] ss:$36 sps:$4 sm:$0xff]   ;;  %v1343_v20 = vld [vmem:[%s1656_s1 + $0x220] sm:$0xff]   ;;  %v1348_v25 = vld [vmem:[%s1657_s0 + $0x68] ss:$36 sps:$4 sm:$0xff]  }
  0x1e   :  { %1151 = vmatprep.subr.bf16.mxu1 %v1281_v30  ;;  %v1342_v19 = vld [vmem:[%s1656_s1 + $0x218] sm:$0xff]   ;;  %v1347_v21 = vld [vmem:[%s1657_s0 + $0x20] ss:$36 sps:$4 sm:$0xff]  }
  0x1f   :  { %1124 = vmatpush3.bf16.msra.mxu0 %v1280_v29  ;;  %v1346_v24 = vld [vmem:[%s1656_s1 + $0x238] sm:$0xff]   ;;  %v999_v27 = vld [vmem:[%s1658_s2] ss:$0 sm:$0xff] }
  0x20   :  { %1165 = vmatprep.subr.bf16.mxu0 %v1286_v34 }
  0x21   :  { %1152 = vmatpush3.bf16.msra.mxu1 %v1285_v33 }
  0x22   :  { %743 = vmatmul.mubr.bf16.vlgmr.msra.gmra.mrb[0].mxu0 %v1282_v31  ;;  %1193 = vmatprep.subr.bf16.mxu1 %v1291_v38 }
  0x23   :  { %1166 = vmatpush3.bf16.msra.mxu0 %v1290_v37  ;;  %750 = vmatprep.mubr.bf16.mxu0 %v1310_v57 }
  0x24   :  { %792 = vmatmul.mubr.bf16.vlgmr.msra.gmra.mrb[0].mxu1 %v1287_v35  ;;  %1167 = vmatprep.subr.bf16.mxu0 %v1293_v40 }
  0x25   :  { %1194 = vmatpush3.bf16.msra.mxu1 %v1292_v39  ;;  %799 = vmatprep.mubr.bf16.mxu1 %v1315_v61 }
  0x26   :  { %1195 = vmatprep.subr.bf16.mxu1 %v1295_v42 }
  0x27   :  { %1168 = vmatpush3.bf16.msra.mxu0 %v1294_v41 }
  0x28   :  { %1169 = vmatprep.subr.bf16.mxu0 %v1297_v44 }
  0x29   :  { %1196 = vmatpush3.bf16.msra.mxu1 %v1296_v43 }
  0x2a   :  { %1197 = vmatprep.subr.bf16.mxu1 %v1299_v46  ;;  %751 = vmatmul.mubr.bf16.gmra.mrb[4].mxu0 %v1313_v59 }
  0x2b   :  { %1170 = vmatpush3.bf16.msra.mxu0 %v1298_v45  ;;  %840 = vmatprep.mubr.bf16.mxu0 %v1328_v8 }
  0x2c   :  { %1171 = vmatprep.subr.bf16.mxu0 %v1301_v48  ;;  %800 = vmatmul.mubr.bf16.gmra.mrb[4].mxu1 %v1318_v63 }
  0x2d   :  { %1198 = vmatpush3.bf16.msra.mxu1 %v1300_v47  ;;  %889 = vmatprep.mubr.bf16.mxu1 %v1333_v12 }
  0x2e   :  { %1199 = vmatprep.subr.bf16.mxu1 %v1303_v50 }
  0x2f   :  { %1172 = vmatpush3.bf16.msra.mxu0 %v1302_v49 }
  0x30   :  { %1173 = vmatprep.subr.bf16.mxu0 %v1305_v52 }
  0x31   :  { %1200 = vmatpush3.bf16.msra.mxu1 %v1304_v51 }
  0x32   :  { %1201 = vmatprep.subr.bf16.mxu1 %v1307_v54 }
  0x33   :  { %1174 = vmatpush3.bf16.msra.mxu0 %v1306_v53 }
  0x34   :  { %1175 = vmatprep.subr.bf16.mxu0 %v1309_v56 }
  0x35   :  { %1202 = vmatpush3.bf16.msra.mxu1 %v1308_v55 }
  0x36   :  { %1203 = vmatprep.subr.bf16.mxu1 %v1314_v60 }
  0x37   :  { %1176 = vmatpush3.bf16.msra.mxu0 %v1312_v58 }
  0x38   :  { %1177 = vmatprep.subr.bf16.mxu0 %v1319_v0 }
  0x39   :  { %1204 = vmatpush3.bf16.msra.mxu1 %v1317_v62 }
  0x3a   :  { %1205 = vmatprep.subr.bf16.mxu1 %v1321_v2 }
  0x3b   :  { %1178 = vmatpush3.bf16.msra.mxu0 %v1320_v1 }
  0x3c   :  { %1179 = vmatprep.subr.bf16.mxu0 %v1323_v4 }
  0x3d   :  { %1206 = vmatpush3.bf16.msra.mxu1 %v1322_v3 }
  0x3e   :  { %1207 = vmatprep.subr.bf16.mxu1 %v1325_v6 }
  0x3f   :  { %1180 = vmatpush3.bf16.msra.mxu0 %v1324_v5 }
  0x40   :  { %1231 = vmatprep.subr.bf16.mxu0 %v1330_v10 }
  0x41   :  { %1208 = vmatpush3.bf16.msra.mxu1 %v1329_v9 }
  0x42   :  { %841 = vmatmul.mubr.bf16.vlgmr.msra.gmra.mrb[8].mxu0 %v1326_v7 }
  0x43   :  { %1232 = vmatpush3.bf16.msra.mxu0 %v1330_v10  ;;  %848 = vmatprep.mubr.bf16.mxu0 %v1335_v14 }
  0x44   :  { %890 = vmatmul.mubr.bf16.vlgmr.msra.gmra.mrb[8].mxu1 %v1331_v11  ;;  %1233 = vmatprep.subr.bf16.mxu0 %v1334_v13 }
  0x45   :  { %897 = vmatprep.mubr.bf16.mxu1 %v1339_v17 }
  0x47   :  { %1234 = vmatpush3.bf16.msra.mxu0 %v1334_v13 }
  0x48   :  { %1235 = vmatprep.subr.bf16.mxu0 %v1338_v16 }
  0x4a   :  { %849 = vmatmul.mubr.bf16.gmra.mrb[12].mxu0 %v1337_v15 }
  0x4b   :  { %1236 = vmatpush3.bf16.msra.mxu0 %v1338_v16  ;;  %1247 = vmatprep.mubr.bf16.mxu0 %v1347_v21 }
  0x4c   :  { %898 = vmatmul.mubr.bf16.gmra.mrb[12].mxu1 %v1341_v18  ;;  %1237 = vmatprep.subr.bf16.mxu0 %v1342_v19 }
  0x4f   :  { %1238 = vmatpush3.bf16.msra.mxu0 %v1342_v19 }
  0x50   :  { %1239 = vmatprep.subr.bf16.mxu0 %v1343_v20 }
  0x53   :  { %1240 = vmatpush3.bf16.msra.mxu0 %v1343_v20 }
  0x54   :  { %1241 = vmatprep.subr.bf16.mxu0 %v1344_v22 }
  0x57   :  { %1242 = vmatpush3.bf16.msra.mxu0 %v1344_v22 }
  0x58   :  { %1243 = vmatprep.subr.bf16.mxu0 %v1345_v23 }
  0x5b   :  { %1244 = vmatpush3.bf16.msra.mxu0 %v1345_v23 }
  0x5c   :  { %1245 = vmatprep.subr.bf16.mxu0 %v1346_v24 }
  0x5f   :  { %1246 = vmatpush3.bf16.msra.mxu0 %v1346_v24 }
  0x62   :  { %1248 = vmatmul.mubr.bf16.vlgmr.msra.gmra.mrb[16].mxu0 %v1348_v25 }
  0xf5   :  { %v1125_v26 = vpop.f32.mrb[0].mxu0 }
  0xf6   :  { %v1126_v28 = vpop.f32.mrb[1].mxu0 }
  0xf7   :  { %v1127_v29 = vadd.f32 %v1126_v28, %v1125_v26  ;;  %v1128_v30 = vpop.f32.mrb[2].mxu0  ;;  %v1153_v31 = vpop.f32.mrb[0].mxu1 }
  0xf8   :  { %v1129_v32 = vpop.f32.mrb[3].mxu0  ;;  %v1154_v35 = vpop.f32.mrb[1].mxu1 }
  0xf9   :  { %v745_v33 = vadd.f32 %v1127_v29, %v999_v27  ;;  %v1130_v34 = vadd.f32 %v1129_v32, %v1128_v30  ;;  %v1155_v36 = vadd.f32 %v1154_v35, %v1153_v31  ;;  %v1156_v37 = vpop.f32.mrb[2].mxu1 }
  0xfa   :  { %v1157_v39 = vpop.f32.mrb[3].mxu1 }
  0xfb   :  { %v748_v38 = vadd.f32 %v1130_v34, %v999_v27  ;;  %v794_v40 = vadd.f32 %v1155_v36, %v745_v33  ;;  %v1158_v41 = vadd.f32 %v1157_v39, %v1156_v37 }
  0xfd   :  { %v797_v42 = vadd.f32 %v1158_v41, %v748_v38  ;;  %v1131_v43 = vpop.f32.mrb[4].mxu0 }
  0xfe   :  { %v1132_v44 = vpop.f32.mrb[5].mxu0 }
  0xff   :  { %v1133_v45 = vadd.f32 %v1132_v44, %v1131_v43  ;;  %v1134_v46 = vpop.f32.mrb[6].mxu0  ;;  %v1159_v47 = vpop.f32.mrb[4].mxu1 }
 0x100   :  { %v1135_v48 = vpop.f32.mrb[7].mxu0  ;;  %v1160_v51 = vpop.f32.mrb[5].mxu1 }
 0x101   :  { %v753_v49 = vadd.f32 %v1133_v45, %v999_v27  ;;  %v1136_v50 = vadd.f32 %v1135_v48, %v1134_v46  ;;  %v1161_v52 = vadd.f32 %v1160_v51, %v1159_v47  ;;  %v1162_v53 = vpop.f32.mrb[6].mxu1 }
 0x102   :  { %v1163_v55 = vpop.f32.mrb[7].mxu1 }
 0x103   :  { %v756_v54 = vadd.f32 %v1136_v50, %v999_v27  ;;  %v802_v56 = vadd.f32 %v1161_v52, %v753_v49  ;;  %v1164_v57 = vadd.f32 %v1163_v55, %v1162_v53 }
 0x105   :  { %v805_v58 = vadd.f32 %v1164_v57, %v756_v54 }
 0x115   :  { %v1181_v59 = vpop.f32.mrb[8].mxu0 }
 0x116   :  { %v1182_v60 = vpop.f32.mrb[9].mxu0 }
 0x117   :  { %v1183_v61 = vadd.f32 %v1182_v60, %v1181_v59  ;;  %v1184_v62 = vpop.f32.mrb[10].mxu0  ;;  %v1209_v63 = vpop.f32.mrb[8].mxu1 }
 0x118   :  { %v1185_v0 = vpop.f32.mrb[11].mxu0  ;;  %v1210_v3 = vpop.f32.mrb[9].mxu1 }
 0x119   :  { %v843_v1 = vadd.f32 %v1183_v61, %v794_v40  ;;  %v1186_v2 = vadd.f32 %v1185_v0, %v1184_v62  ;;  %v1211_v4 = vadd.f32 %v1210_v3, %v1209_v63  ;;  %v1212_v5 = vpop.f32.mrb[10].mxu1 }
 0x11a   :  { %v1213_v7 = vpop.f32.mrb[11].mxu1 }
 0x11b   :  { %v846_v6 = vadd.f32 %v1186_v2, %v797_v42  ;;  %v1214_v8 = vadd.f32 %v1213_v7, %v1212_v5  ;;  %v892_v9 = vadd.f32 %v1211_v4, %v843_v1 }
 0x11d   :  { %v1187_v10 = vpop.f32.mrb[12].mxu0  ;;  %v895_v12 = vadd.f32 %v1214_v8, %v846_v6 }
 0x11e   :  { %v1188_v11 = vpop.f32.mrb[13].mxu0 }
 0x11f   :  { %v1189_v13 = vadd.f32 %v1188_v11, %v1187_v10  ;;  %v1190_v14 = vpop.f32.mrb[14].mxu0  ;;  %v1215_v15 = vpop.f32.mrb[12].mxu1 }
 0x120   :  { %v1191_v16 = vpop.f32.mrb[15].mxu0  ;;  %v1216_v19 = vpop.f32.mrb[13].mxu1 }
 0x121   :  { %v851_v17 = vadd.f32 %v1189_v13, %v802_v56  ;;  %v1192_v18 = vadd.f32 %v1191_v16, %v1190_v14  ;;  %v1217_v20 = vadd.f32 %v1216_v19, %v1215_v15  ;;  %v1218_v21 = vpop.f32.mrb[14].mxu1 }
 0x122   :  { %v1219_v23 = vpop.f32.mrb[15].mxu1 }
 0x123   :  { %v854_v22 = vadd.f32 %v1192_v18, %v805_v58  ;;  %v1220_v24 = vadd.f32 %v1219_v23, %v1218_v21  ;;  %v900_v25 = vadd.f32 %v1217_v20, %v851_v17 }
 0x125   :  { %v903_v26 = vadd.f32 %v1220_v24, %v854_v22 }
 0x135   :  { %v1249_v27 = vpop.f32.mrb[16].mxu0 }
 0x136   :  { %v949_v28 = vadd.f32 %v1249_v27, %v900_v25  ;;  %v940_v29 = vpop.f32.mrb[17].mxu0 }
 0x137   :  { %v941_v30 = vadd.f32 %v940_v29, %v892_v9  ;;  %v1250_v31 = vpop.f32.mrb[18].mxu0 }
 0x138   :  { %v961_v32 = vmul.f32 0.70710677, %v949_v28  ;;  %v952_v33 = vadd.f32 %v1250_v31, %v903_v26  ;;  %v943_v34 = vpop.f32.mrb[19].mxu0  ;;  %v957_v45 = vmul.f32 0.5, %v949_v28 }
 0x139   :  { %v959_v35 = vmul.f32 0.70710677, %v941_v30  ;;  %v944_v36 = vadd.f32 %v943_v34, %v895_v12  ;;  %v955_v48 = vmul.f32 0.5, %v941_v30 }
 0x13a   :  { %1349 = verf.f32 %v961_v32  ;;  %v962_v37 = vmul.f32 0.70710677, %v952_v33  ;;  %v958_v46 = vmul.f32 0.5, %v952_v33 }
 0x13b   :  { %1351 = verf.f32 %v959_v35  ;;  %v960_v38 = vmul.f32 0.70710677, %v944_v36  ;;  %v956_v49 = vmul.f32 0.5, %v944_v36 }
 0x13c   :  { %1353 = verf.f32 %v962_v37 }
 0x13d   :  { %1355 = verf.f32 %v960_v38 }
 0x144   :  { %v1350_v39 = vpop.eup %1349 }
 0x145   :  { %v1352_v40 = vpop.eup %1351  ;;  %v969_v41 = vadd.f32 1.0, %v1350_v39 }
 0x146   :  { %v1354_v42 = vpop.eup %1353  ;;  %v967_v43 = vadd.f32 1.0, %v1352_v40 }
 0x147   :  { %v1356_v44 = vpop.eup %1355  ;;  %v970_v47 = vadd.f32 1.0, %v1354_v42  ;;  %v973_v51 = vmul.f32 %v969_v41, %v957_v45 }
 0x148   :  { %v968_v50 = vadd.f32 1.0, %v1356_v44  ;;  %v971_v53 = vmul.f32 %v967_v43, %v955_v48 }
 0x149   :  { %v974_v52 = vmul.f32 %v970_v47, %v958_v46 }
 0x14a   :  { %v972_v54 = vmul.f32 %v968_v50, %v956_v49 }
 0x14b   :  { %v1106_v55 = vpack.c.bf16 %v974_v52, %v973_v51 }
 0x14c   :  { %v1101_v56 = vpack.c.bf16 %v972_v54, %v971_v53 }
 0x14d   :  { %1108 = vst [vmem:[%s1659_s3 + $0x8] sm:$0xff] %v1106_v55  }
 0x14e   :  { %1102 = vst [vmem:[%s1659_s3] sm:$0xff] %v1101_v56  }

// kernel: cae_forward.16
= control target key start
LH: loop header
LB: loop body
LE: loop exit
PB: predicated region body
PF: predicated region fallthrough
CT: control target
= control target key end

     0   :  { %v295_v28 = vlaneseq  ;;  %v3102_v36 = vmov 1966171168   ;;  %s3876_s0 = inlined_call_operand.vmem [shape: bf16[2,2048], index: 0, kind: input, shape index: {}]   ;;  %s3877_s1 = inlined_call_operand.vmem [shape: bf16[2048,64], index: 1, kind: input, shape index: {}]   ;;  %s3878_s2 = inlined_call_operand.vmem [shape: f32[1,64], index: 2, kind: input, shape index: {}]   ;;  %s3879_s3 = inlined_call_operand.vmem [shape: bf16[64,2048], index: 3, kind: input, shape index: {}]   ;;  %s3880_s4 = inlined_call_operand.vmem [shape: f32[1,2048], index: 4, kind: input, shape index: {}]   ;;  %s3881_s5 = inlined_call_operand.hbm [shape: f32[2,64], index: 5, kind: output, shape index: {0}]   ;;  %s3882_s6 = inlined_call_operand.vmem [shape: bf16[2,2048], index: 6, kind: output, shape index: {1}]  }
   0x1   :  { %v2916_v0 = vld [vmem:[%s3877_s1 + $0x40] sm:$0xff]   ;;  %v2920_v4 = vld [vmem:[%s3877_s1 + $0x48] sm:$0xff]   ;;  %v2924_v8 = vld [vmem:[%s3877_s1 + $0x50] sm:$0xff]   ;;  %v293_v37 = vunpack.c.l.s4 %v3102_v36 }
   0x2   :  { %v2917_v1 = vld [vmem:[%s3877_s1 + $0xc0] sm:$0xff]   ;;  %2737 = vmatprep.subr.bf16.mxu0 %v2916_v0  ;;  %v2921_v5 = vld [vmem:[%s3877_s1 + $0xc8] sm:$0xff]   ;;  %v2925_v9 = vld [vmem:[%s3877_s1 + $0xd0] sm:$0xff]   ;;  %v3236_v33 = vshrl.u32 %v295_v28, 7 }
   0x3   :  { %v2918_v2 = vld [vmem:[%s3877_s1] sm:$0xff]   ;;  %2759 = vmatprep.subr.bf16.mxu1 %v2917_v1  ;;  %v2922_v6 = vld [vmem:[%s3877_s1 + $0x8] sm:$0xff]   ;;  %v2926_v10 = vld [vmem:[%s3877_s1 + $0x10] sm:$0xff]   ;;  %v294_v40 = vunpack.c.0.s8 %v293_v37 }
   0x4   :  { %v2919_v3 = vld [vmem:[%s3877_s1 + $0x80] sm:$0xff]   ;;  %2738 = vmatpush3.bf16.msra.mxu0 %v2918_v2  ;;  %v2923_v7 = vld [vmem:[%s3877_s1 + $0x88] sm:$0xff]   ;;  %v2927_v11 = vld [vmem:[%s3877_s1 + $0x90] sm:$0xff]  }
   0x5   :  { %2760 = vmatpush3.bf16.msra.mxu1 %v2919_v3  ;;  %2739 = vmatprep.subr.bf16.mxu0 %v2920_v4  ;;  %v2928_v12 = vld [vmem:[%s3877_s1 + $0x58] sm:$0xff]   ;;  %v2932_v16 = vld [vmem:[%s3877_s1 + $0x60] sm:$0xff]   ;;  %v2936_v20 = vld [vmem:[%s3877_s1 + $0x68] sm:$0xff]   ;;  %v3248_v41 = vsub.s32 %v294_v40, %v3236_v33 }
   0x6   :  { %2761 = vmatprep.subr.bf16.mxu1 %v2921_v5  ;;  %v2929_v13 = vld [vmem:[%s3877_s1 + $0xd8] sm:$0xff]   ;;  %v2933_v17 = vld [vmem:[%s3877_s1 + $0xe0] sm:$0xff]   ;;  %v2937_v21 = vld [vmem:[%s3877_s1 + $0xe8] sm:$0xff]  }
   0x7   :  { %v2930_v14 = vld [vmem:[%s3877_s1 + $0x18] sm:$0xff]   ;;  %v2934_v18 = vld [vmem:[%s3877_s1 + $0x20] sm:$0xff]   ;;  %v2938_v22 = vld [vmem:[%s3877_s1 + $0x28] sm:$0xff]  }
   0x8   :  { %2740 = vmatpush3.bf16.msra.mxu0 %v2922_v6  ;;  %v2931_v15 = vld [vmem:[%s3877_s1 + $0x98] sm:$0xff]   ;;  %v2935_v19 = vld [vmem:[%s3877_s1 + $0xa0] sm:$0xff]   ;;  %v2939_v23 = vld [vmem:[%s3877_s1 + $0xa8] sm:$0xff]  }
   0x9   :  { %2762 = vmatpush3.bf16.msra.mxu1 %v2923_v7  ;;  %2741 = vmatprep.subr.bf16.mxu0 %v2924_v8  ;;  %v2940_v24 = vld [vmem:[%s3877_s1 + $0x70] sm:$0xff]   ;;  %v2944_v29 = vld [vmem:[%s3877_s1 + $0x78] sm:$0xff]   ;;  %v24_v34 = vld [vmem:[%s3876_s0] sm:$0xff] }
   0xa   :  { %2763 = vmatprep.subr.bf16.mxu1 %v2925_v9  ;;  %v2941_v25 = vld [vmem:[%s3877_s1 + $0xf0] sm:$0xff]   ;;  %v2945_v30 = vld [vmem:[%s3877_s1 + $0xf8] sm:$0xff]   ;;  %v2949_v35 = vld [vmem:[%s3877_s1 + $0x140] sm:$0xff]   ;;  %v291_v39 = vcombine.high %v24_v34, %v24_v34  ;;  %v298_v42 = vrot.slane %v24_v34, %v3248_v41 }
   0xb   :  { %v2942_v26 = vld [vmem:[%s3877_s1 + $0x30] sm:$0xff]   ;;  %v2946_v31 = vld [vmem:[%s3877_s1 + $0x38] sm:$0xff]   ;;  %v2950_v38 = vld [vmem:[%s3877_s1 + $0x1c0] sm:$0xff]  }
   0xc   :  { %2742 = vmatpush3.bf16.msra.mxu0 %v2926_v10  ;;  %v2943_v27 = vld [vmem:[%s3877_s1 + $0xb0] sm:$0xff]   ;;  %v2947_v32 = vld [vmem:[%s3877_s1 + $0xb8] sm:$0xff]   ;;  %v3252_v43 = vrot.slane %v291_v39, %v3248_v41  ;;  %v306_v44 = vcombine.high %v298_v42, %v298_v42  ;;  %v314_v45 = vrot.slane %v298_v42, %v3248_v41  ;;  %v2951_v48 = vld [vmem:[%s3877_s1 + $0x100] sm:$0xff]  }
   0xd   :  { %2764 = vmatpush3.bf16.msra.mxu1 %v2927_v11  ;;  %2743 = vmatprep.subr.bf16.mxu0 %v2928_v12  ;;  %v2953_v51 = vld [vmem:[%s3877_s1 + $0x148] sm:$0xff]   ;;  %v2952_v53 = vld [vmem:[%s3877_s1 + $0x180] sm:$0xff]   ;;  %v2957_v57 = vld [vmem:[%s3877_s1 + $0x150] sm:$0xff]  }
   0xe   :  { %2765 = vmatprep.subr.bf16.mxu1 %v2929_v13  ;;  %v307_v46 = vcombine.high %v3252_v43, %v3252_v43  ;;  %v328_v47 = vrot.slane %v306_v44, %v3248_v41  ;;  %v336_v50 = vcombine.high %v314_v45, %v314_v45  ;;  %v2954_v54 = vld [vmem:[%s3877_s1 + $0x1c8] sm:$0xff]   ;;  %v2958_v59 = vld [vmem:[%s3877_s1 + $0x1d0] sm:$0xff]   ;;  %v2961_v61 = vld [vmem:[%s3877_s1 + $0x158] sm:$0xff]  }
   0xf   :  { %v2955_v56 = vld [vmem:[%s3877_s1 + $0x108] sm:$0xff]   ;;  %v2959_v60 = vld [vmem:[%s3877_s1 + $0x110] sm:$0xff]   ;;  %v2962_v63 = vld [vmem:[%s3877_s1 + $0x1d8] sm:$0xff]  }
  0x10   :  { %2744 = vmatpush3.bf16.msra.mxu0 %v2930_v14  ;;  %v335_v49 = vrot.slane %v307_v46, %v3248_v41  ;;  %1205 = vmatprep.mubr.bf16.mxu0 %v328_v47  ;;  %v338_v52 = vcombine.high %v328_v47, %v328_v47  ;;  %v2956_v58 = vld [vmem:[%s3877_s1 + $0x188] sm:$0xff]   ;;  %v2960_v62 = vld [vmem:[%s3877_s1 + $0x190] sm:$0xff]   ;;  %v2963_v0 = vld [vmem:[%s3877_s1 + $0x118] sm:$0xff]  }
  0x11   :  { %2766 = vmatpush3.bf16.msra.mxu1 %v2931_v15  ;;  %2745 = vmatprep.subr.bf16.mxu0 %v2932_v16  ;;  %v2965_v1 = vld [vmem:[%s3877_s1 + $0x160] sm:$0xff]   ;;  %v2964_v2 = vld [vmem:[%s3877_s1 + $0x198] sm:$0xff]   ;;  %v2969_v5 = vld [vmem:[%s3877_s1 + $0x168] sm:$0xff]  }
  0x12   :  { %2767 = vmatprep.subr.bf16.mxu1 %v2933_v17  ;;  %v339_v55 = vcombine.high %v335_v49, %v335_v49  ;;  %1245 = vmatprep.mubr.bf16.mxu1 %v338_v52  ;;  %v2966_v3 = vld [vmem:[%s3877_s1 + $0x1e0] sm:$0xff]   ;;  %v2970_v7 = vld [vmem:[%s3877_s1 + $0x1e8] sm:$0xff]   ;;  %v2973_v9 = vld [vmem:[%s3877_s1 + $0x170] sm:$0xff]   ;;  %v321_v17 = vrot.slane %v3252_v43, %v3248_v41 }
  0x13   :  { %v2967_v4 = vld [vmem:[%s3877_s1 + $0x120] sm:$0xff]   ;;  %v2971_v8 = vld [vmem:[%s3877_s1 + $0x128] sm:$0xff]   ;;  %v2974_v11 = vld [vmem:[%s3877_s1 + $0x1f0] sm:$0xff]  }
  0x14   :  { %2746 = vmatpush3.bf16.msra.mxu0 %v2934_v18  ;;  %v2968_v6 = vld [vmem:[%s3877_s1 + $0x1a0] sm:$0xff]   ;;  %v2972_v10 = vld [vmem:[%s3877_s1 + $0x1a8] sm:$0xff]   ;;  %v2975_v12 = vld [vmem:[%s3877_s1 + $0x130] sm:$0xff]  }
  0x15   :  { %2768 = vmatpush3.bf16.msra.mxu1 %v2935_v19  ;;  %2747 = vmatprep.subr.bf16.mxu0 %v2936_v20  ;;  %v2977_v13 = vld [vmem:[%s3877_s1 + $0x178] sm:$0xff]   ;;  %v2976_v14 = vld [vmem:[%s3877_s1 + $0x1b0] sm:$0xff]   ;;  %v2981_v18 = vld [vmem:[%s3877_s1 + $0x240] sm:$0xff]  }
  0x16   :  { %2769 = vmatprep.subr.bf16.mxu1 %v2937_v21  ;;  %v2978_v15 = vld [vmem:[%s3877_s1 + $0x1f8] sm:$0xff]   ;;  %v2982_v20 = vld [vmem:[%s3877_s1 + $0x2c0] sm:$0xff]   ;;  %v2988_v28 = vld [vmem:[%s3877_s1 + $0x288] sm:$0xff]  }
  0x17   :  { %v2979_v16 = vld [vmem:[%s3877_s1 + $0x138] sm:$0xff]   ;;  %v2983_v21 = vld [vmem:[%s3877_s1 + $0x200] sm:$0xff]   ;;  %v3001_v40 = vld [vmem:[%s3877_s1 + $0x268] sm:$0xff]  }
  0x18   :  { %2748 = vmatpush3.bf16.msra.mxu0 %v2938_v22  ;;  %v2980_v19 = vld [vmem:[%s3877_s1 + $0x1b8] sm:$0xff]   ;;  %v337_v22 = vcombine.high %v321_v17, %v321_v17  ;;  %v2997_v36 = vld [vmem:[%s3877_s1 + $0x260] sm:$0xff]   ;;  %v3002_v43 = vld [vmem:[%s3877_s1 + $0x2e8] sm:$0xff]  }
  0x19   :  { %2770 = vmatpush3.bf16.msra.mxu1 %v2939_v23  ;;  %2749 = vmatprep.subr.bf16.mxu0 %v2940_v24  ;;  %v2985_v23 = vld [vmem:[%s3877_s1 + $0x248] sm:$0xff]   ;;  %v2984_v24 = vld [vmem:[%s3877_s1 + $0x280] sm:$0xff]   ;;  %v2994_v34 = vld [vmem:[%s3877_s1 + $0x2d8] sm:$0xff]  }
  0x1a   :  { %2771 = vmatprep.subr.bf16.mxu1 %v2941_v25  ;;  %v2986_v25 = vld [vmem:[%s3877_s1 + $0x2c8] sm:$0xff]   ;;  %v2996_v37 = vld [vmem:[%s3877_s1 + $0x298] sm:$0xff]   ;;  %v2999_v39 = vld [vmem:[%s3877_s1 + $0x220] sm:$0xff]  }
  0x1b   :  { %v3000_v42 = vld [vmem:[%s3877_s1 + $0x2a0] sm:$0xff]   ;;  %v3003_v44 = vld [vmem:[%s3877_s1 + $0x228] sm:$0xff]  }
  0x1c   :  { %2750 = vmatpush3.bf16.msra.mxu0 %v2942_v26  ;;  %v2987_v26 = vld [vmem:[%s3877_s1 + $0x208] sm:$0xff]  }
  0x1d   :  { %2772 = vmatpush3.bf16.msra.mxu1 %v2943_v27  ;;  %2751 = vmatprep.subr.bf16.mxu0 %v2944_v29  ;;  %v2989_v27 = vld [vmem:[%s3877_s1 + $0x250] sm:$0xff]   ;;  %v25_v46 = vld [vmem:[%s3876_s0 + $0x8] sm:$0xff] }
  0x1e   :  { %2773 = vmatprep.subr.bf16.mxu1 %v2945_v30  ;;  %v2990_v29 = vld [vmem:[%s3877_s1 + $0x2d0] sm:$0xff]   ;;  %v3004_v47 = vld [vmem:[%s3877_s1 + $0x2a8] sm:$0xff]  }
  0x1f   :  { %v2991_v30 = vld [vmem:[%s3877_s1 + $0x210] sm:$0xff]  }
  0x20   :  { %2752 = vmatpush3.bf16.msra.mxu0 %v2946_v31  ;;  %v2993_v31 = vld [vmem:[%s3877_s1 + $0x258] sm:$0xff]  }
  0x21   :  { %2774 = vmatpush3.bf16.msra.mxu1 %v2947_v32  ;;  %2781 = vmatprep.subr.bf16.mxu0 %v2949_v35  ;;  %v2992_v32 = vld [vmem:[%s3877_s1 + $0x290] sm:$0xff]   ;;  %v2995_v35 = vld [vmem:[%s3877_s1 + $0x218] sm:$0xff]  }
  0x22   :  { %2803 = vmatprep.subr.bf16.mxu1 %v2950_v38  ;;  %v2998_v38 = vld [vmem:[%s3877_s1 + $0x2e0] sm:$0xff]  }
  0x23   :  { %1206 = vmatmul.mubr.bf16.vlgmr.msra.gmra.mrb[0].mxu0 %v314_v45  ;;  %v3005_v45 = vld [vmem:[%s3877_s1 + $0x270] sm:$0xff]  }
  0x24   :  { %2782 = vmatpush3.bf16.msra.mxu0 %v2951_v48  ;;  %1246 = vmatmul.mubr.bf16.vlgmr.msra.gmra.mrb[0].mxu1 %v336_v50  ;;  %v347_v48 = vrot.slane %v25_v46, %v3248_v41  ;;  %v3006_v50 = vld [vmem:[%s3877_s1 + $0x2f0] sm:$0xff]  }
  0x25   :  { %2783 = vmatprep.subr.bf16.mxu0 %v2953_v51  ;;  %2804 = vmatpush3.bf16.msra.mxu1 %v2952_v53  ;;  %v3007_v51 = vld [vmem:[%s3877_s1 + $0x230] sm:$0xff]  }
  0x26   :  { %1285 = vmatprep.mubr.bf16.mxu0 %v335_v49  ;;  %2805 = vmatprep.subr.bf16.mxu1 %v2954_v54  ;;  %v340_v49 = vcombine.high %v25_v46, %v25_v46  ;;  %v355_v52 = vcombine.high %v347_v48, %v347_v48  ;;  %v3009_v54 = vld [vmem:[%s3877_s1 + $0x278] sm:$0xff]  }
  0x27   :  { %1325 = vmatprep.mubr.bf16.mxu1 %v339_v55  ;;  %v3008_v55 = vld [vmem:[%s3877_s1 + $0x2b0] sm:$0xff]  }
  0x28   :  { %2784 = vmatpush3.bf16.msra.mxu0 %v2955_v56  ;;  %v3437_v53 = vrot.slane %v340_v49, %v3248_v41  ;;  %v377_v56 = vrot.slane %v355_v52, %v3248_v41 }
  0x29   :  { %2785 = vmatprep.subr.bf16.mxu0 %v2957_v57  ;;  %2806 = vmatpush3.bf16.msra.mxu1 %v2956_v58  ;;  %v3010_v58 = vld [vmem:[%s3877_s1 + $0x2f8] sm:$0xff]  }
  0x2a   :  { %2807 = vmatprep.subr.bf16.mxu1 %v2958_v59  ;;  %v356_v57 = vcombine.high %v3437_v53, %v3437_v53  ;;  %v3011_v59 = vld [vmem:[%s3877_s1 + $0x238] sm:$0xff]  }
  0x2c   :  { %2786 = vmatpush3.bf16.msra.mxu0 %v2959_v60  ;;  %v387_v60 = vcombine.high %v377_v56, %v377_v56 }
  0x2d   :  { %2787 = vmatprep.subr.bf16.mxu0 %v2961_v61  ;;  %2808 = vmatpush3.bf16.msra.mxu1 %v2960_v62  ;;  %v363_v61 = vrot.slane %v347_v48, %v3248_v41  ;;  %v3013_v62 = vld [vmem:[%s3877_s1 + $0x340] sm:$0xff]  }
  0x2e   :  { %2809 = vmatprep.subr.bf16.mxu1 %v2962_v63  ;;  %v3012_v63 = vld [vmem:[%s3877_s1 + $0x2b8] sm:$0xff]  }
  0x30   :  { %2788 = vmatpush3.bf16.msra.mxu0 %v2963_v0  ;;  %v384_v0 = vrot.slane %v356_v57, %v3248_v41 }
  0x31   :  { %2789 = vmatprep.subr.bf16.mxu0 %v2965_v1  ;;  %2810 = vmatpush3.bf16.msra.mxu1 %v2964_v2  ;;  %v3014_v1 = vld [vmem:[%s3877_s1 + $0x3c0] sm:$0xff]  }
  0x32   :  { %2811 = vmatprep.subr.bf16.mxu1 %v2966_v3  ;;  %v3015_v2 = vld [vmem:[%s3877_s1 + $0x300] sm:$0xff]   ;;  %v385_v3 = vcombine.high %v363_v61, %v363_v61 }
  0x34   :  { %2790 = vmatpush3.bf16.msra.mxu0 %v2967_v4  ;;  %v3017_v4 = vld [vmem:[%s3877_s1 + $0x348] sm:$0xff]  }
  0x35   :  { %2791 = vmatprep.subr.bf16.mxu0 %v2969_v5  ;;  %2812 = vmatpush3.bf16.msra.mxu1 %v2968_v6  ;;  %v3016_v5 = vld [vmem:[%s3877_s1 + $0x380] sm:$0xff]   ;;  %v388_v6 = vcombine.high %v384_v0, %v384_v0 }
  0x36   :  { %2813 = vmatprep.subr.bf16.mxu1 %v2970_v7  ;;  %v3018_v7 = vld [vmem:[%s3877_s1 + $0x3c8] sm:$0xff]  }
  0x38   :  { %2792 = vmatpush3.bf16.msra.mxu0 %v2971_v8  ;;  %v3019_v8 = vld [vmem:[%s3877_s1 + $0x308] sm:$0xff]  }
  0x39   :  { %2793 = vmatprep.subr.bf16.mxu0 %v2973_v9  ;;  %2814 = vmatpush3.bf16.msra.mxu1 %v2972_v10  ;;  %v3021_v9 = vld [vmem:[%s3877_s1 + $0x350] sm:$0xff]   ;;  %v3020_v10 = vld [vmem:[%s3877_s1 + $0x388] sm:$0xff]  }
  0x3a   :  { %2815 = vmatprep.subr.bf16.mxu1 %v2974_v11  ;;  %v3022_v11 = vld [vmem:[%s3877_s1 + $0x3d0] sm:$0xff]  }
  0x3c   :  { %2794 = vmatpush3.bf16.msra.mxu0 %v2975_v12  ;;  %v3023_v12 = vld [vmem:[%s3877_s1 + $0x310] sm:$0xff]  }
  0x3d   :  { %2795 = vmatprep.subr.bf16.mxu0 %v2977_v13  ;;  %2816 = vmatpush3.bf16.msra.mxu1 %v2976_v14  ;;  %v3025_v13 = vld [vmem:[%s3877_s1 + $0x358] sm:$0xff]   ;;  %v3024_v14 = vld [vmem:[%s3877_s1 + $0x390] sm:$0xff]  }
  0x3e   :  { %2817 = vmatprep.subr.bf16.mxu1 %v2978_v15  ;;  %v3026_v15 = vld [vmem:[%s3877_s1 + $0x3d8] sm:$0xff]  }
  0x40   :  { %2796 = vmatpush3.bf16.msra.mxu0 %v2979_v16  ;;  %v3027_v16 = vld [vmem:[%s3877_s1 + $0x318] sm:$0xff]  }
  0x41   :  { %2825 = vmatprep.subr.bf16.mxu0 %v2981_v18  ;;  %2818 = vmatpush3.bf16.msra.mxu1 %v2980_v19  ;;  %v3028_v18 = vld [vmem:[%s3877_s1 + $0x398] sm:$0xff]   ;;  %v3030_v19 = vld [vmem:[%s3877_s1 + $0x3e0] sm:$0xff]  }
  0x42   :  { %2847 = vmatprep.subr.bf16.mxu1 %v2982_v20  ;;  %v3031_v20 = vld [vmem:[%s3877_s1 + $0x320] sm:$0xff]  }
  0x43   :  { %1286 = vmatmul.mubr.bf16.vlgmr.msra.gmra.mrb[4].mxu0 %v321_v17  ;;  %v3029_v17 = vld [vmem:[%s3877_s1 + $0x360] sm:$0xff]  }
  0x44   :  { %2826 = vmatpush3.bf16.msra.mxu0 %v2983_v21  ;;  %1326 = vmatmul.mubr.bf16.vlgmr.msra.gmra.mrb[4].mxu1 %v337_v22  ;;  %v3033_v21 = vld [vmem:[%s3877_s1 + $0x368] sm:$0xff]   ;;  %v3032_v22 = vld [vmem:[%s3877_s1 + $0x3a0] sm:$0xff]  }
  0x45   :  { %2827 = vmatprep.subr.bf16.mxu0 %v2985_v23  ;;  %2848 = vmatpush3.bf16.msra.mxu1 %v2984_v24  ;;  %v3034_v23 = vld [vmem:[%s3877_s1 + $0x3e8] sm:$0xff]  }
  0x46   :  { %2849 = vmatprep.subr.bf16.mxu1 %v2986_v25  ;;  %1365 = vmatprep.mubr.bf16.mxu0 %v377_v56  ;;  %v3035_v24 = vld [vmem:[%s3877_s1 + $0x328] sm:$0xff]   ;;  %v3037_v25 = vld [vmem:[%s3877_s1 + $0x370] sm:$0xff]  }
  0x47   :  { %1405 = vmatprep.mubr.bf16.mxu1 %v387_v60 }
  0x48   :  { %2828 = vmatpush3.bf16.msra.mxu0 %v2987_v26 }
  0x49   :  { %2829 = vmatprep.subr.bf16.mxu0 %v2989_v27  ;;  %2850 = vmatpush3.bf16.msra.mxu1 %v2988_v28 }
  0x4a   :  { %2851 = vmatprep.subr.bf16.mxu1 %v2990_v29 }
  0x4c   :  { %2830 = vmatpush3.bf16.msra.mxu0 %v2991_v30 }
  0x4d   :  { %2831 = vmatprep.subr.bf16.mxu0 %v2993_v31  ;;  %2852 = vmatpush3.bf16.msra.mxu1 %v2992_v32 }
  0x4e   :  { %2853 = vmatprep.subr.bf16.mxu1 %v2994_v34 }
  0x50   :  { %2832 = vmatpush3.bf16.msra.mxu0 %v2995_v35 }
  0x51   :  { %2833 = vmatprep.subr.bf16.mxu0 %v2997_v36  ;;  %2854 = vmatpush3.bf16.msra.mxu1 %v2996_v37 }
  0x52   :  { %2855 = vmatprep.subr.bf16.mxu1 %v2998_v38 }
  0x54   :  { %2834 = vmatpush3.bf16.msra.mxu0 %v2999_v39 }
  0x55   :  { %2835 = vmatprep.subr.bf16.mxu0 %v3001_v40  ;;  %2856 = vmatpush3.bf16.msra.mxu1 %v3000_v42 }
  0x56   :  { %2857 = vmatprep.subr.bf16.mxu1 %v3002_v43 }
  0x58   :  { %2836 = vmatpush3.bf16.msra.mxu0 %v3003_v44 }
  0x59   :  { %2837 = vmatprep.subr.bf16.mxu0 %v3005_v45  ;;  %2858 = vmatpush3.bf16.msra.mxu1 %v3004_v47 }
  0x5a   :  { %2859 = vmatprep.subr.bf16.mxu1 %v3006_v50 }
  0x5c   :  { %2838 = vmatpush3.bf16.msra.mxu0 %v3007_v51 }
  0x5d   :  { %2839 = vmatprep.subr.bf16.mxu0 %v3009_v54  ;;  %2860 = vmatpush3.bf16.msra.mxu1 %v3008_v55 }
  0x5e   :  { %2861 = vmatprep.subr.bf16.mxu1 %v3010_v58 }
  0x60   :  { %2840 = vmatpush3.bf16.msra.mxu0 %v3011_v59 }
  0x61   :  { %2869 = vmatprep.subr.bf16.mxu0 %v3013_v62  ;;  %2862 = vmatpush3.bf16.msra.mxu1 %v3012_v63 }
  0x62   :  { %2891 = vmatprep.subr.bf16.mxu1 %v3014_v1 }
  0x63   :  { %1366 = vmatmul.mubr.bf16.vlgmr.msra.gmra.mrb[8].mxu0 %v363_v61 }
  0x64   :  { %2870 = vmatpush3.bf16.msra.mxu0 %v3015_v2  ;;  %1445 = vmatprep.mubr.bf16.mxu0 %v384_v0 }
  0x65   :  { %1406 = vmatmul.mubr.bf16.vlgmr.msra.gmra.mrb[8].mxu1 %v385_v3  ;;  %2871 = vmatprep.subr.bf16.mxu0 %v3017_v4 }
  0x66   :  { %2892 = vmatpush3.bf16.msra.mxu1 %v3016_v5  ;;  %1485 = vmatprep.mubr.bf16.mxu1 %v388_v6 }
  0x67   :  { %2893 = vmatprep.subr.bf16.mxu1 %v3018_v7 }
  0x68   :  { %2872 = vmatpush3.bf16.msra.mxu0 %v3019_v8 }
  0x69   :  { %2873 = vmatprep.subr.bf16.mxu0 %v3021_v9 }
  0x6a   :  { %2894 = vmatpush3.bf16.msra.mxu1 %v3020_v10 }
  0x6b   :  { %2895 = vmatprep.subr.bf16.mxu1 %v3022_v11 }
  0x6c   :  { %2874 = vmatpush3.bf16.msra.mxu0 %v3023_v12 }
  0x6d   :  { %2875 = vmatprep.subr.bf16.mxu0 %v3025_v13 }
  0x6e   :  { %2896 = vmatpush3.bf16.msra.mxu1 %v3024_v14 }
  0x6f   :  { %2897 = vmatprep.subr.bf16.mxu1 %v3026_v15 }
  0x70   :  { %2876 = vmatpush3.bf16.msra.mxu0 %v3027_v16 }
  0x71   :  { %2877 = vmatprep.subr.bf16.mxu0 %v3029_v17 }
  0x72   :  { %2898 = vmatpush3.bf16.msra.mxu1 %v3028_v18 }
  0x73   :  { %2899 = vmatprep.subr.bf16.mxu1 %v3030_v19 }
  0x74   :  { %2878 = vmatpush3.bf16.msra.mxu0 %v3031_v20 }
  0x75   :  { %2879 = vmatprep.subr.bf16.mxu0 %v3033_v21 }
  0x76   :  { %12 = vsyncpa [#allocation3], 0  ;;  %2900 = vmatpush3.bf16.msra.mxu1 %v3032_v22  ;;  %v3036_v26 = vld [vmem:[%s3877_s1 + $0x3a8] sm:$0xff]   ;;  %v3038_v27 = vld [vmem:[%s3877_s1 + $0x3f0] sm:$0xff]   ;;  %v370_v34 = vrot.slane %v3437_v53, %v3248_v41  ;;  %v3103_v9 = vmov 0   ;;  %vm1493_vm0 = vcmask 517120  }
  0x77   :  { %2901 = vmatprep.subr.bf16.mxu1 %v3034_v23  ;;  %v3039_v28 = vld [vmem:[%s3877_s1 + $0x330] sm:$0xff]   ;;  %v3041_v29 = vld [vmem:[%s3877_s1 + $0x378] sm:$0xff]   ;;  %v1496_v37 = vld [vmem:[%s3879_s3] sm:$0xff]  ;;  %vm1964_vm1 = vcmask 523264  }
  0x78   :  { %2880 = vmatpush3.bf16.msra.mxu0 %v3035_v24  ;;  %v3040_v30 = vld [vmem:[%s3877_s1 + $0x3b0] sm:$0xff]   ;;  %v3042_v31 = vld [vmem:[%s3877_s1 + $0x3f8] sm:$0xff]   ;;  %v386_v36 = vcombine.high %v370_v34, %v370_v34  ;;  %v1504_v38 = vld [vmem:[%s3879_s3 + $0x40] sm:$0xff] }
  0x79   :  { %2881 = vmatprep.subr.bf16.mxu0 %v3037_v25  ;;  %v3043_v32 = vld [vmem:[%s3877_s1 + $0x338] sm:$0xff]   ;;  %v1497_v39 = vld [vmem:[%s3879_s3 + $0x8] sm:$0xff]  ;;  %v2657_v40 = vcombine.low %v1496_v37, %v1504_v38  ;;  %v2658_v42 = vcombine.high %v1496_v37, %v1504_v38  ;;  %v1512_v44 = vld [vmem:[%s3879_s3 + $0x80] sm:$0xff] }
  0x7a   :  { %2902 = vmatpush3.bf16.msra.mxu1 %v3036_v26  ;;  %v3044_v35 = vld [vmem:[%s3877_s1 + $0x3b8] sm:$0xff]   ;;  %v1505_v43 = vld [vmem:[%s3879_s3 + $0x48] sm:$0xff]  ;;  %v1520_v45 = vld [vmem:[%s3879_s3 + $0xc0] sm:$0xff] }
  0x7b   :  { %2903 = vmatprep.subr.bf16.mxu1 %v3038_v27  ;;  %v2659_v46 = vcombine.low %v1497_v39, %v1505_v43  ;;  %v2660_v47 = vcombine.high %v1497_v39, %v1505_v43  ;;  %v2674_v48 = vcombine.high %v1512_v44, %v1520_v45  ;;  %v1513_v49 = vld [vmem:[%s3879_s3 + $0x88] sm:$0xff]  ;;  %v2673_v52 = vcombine.low %v1512_v44, %v1520_v45  ;;  %v1528_v54 = vld [vmem:[%s3879_s3 + $0x100] sm:$0xff]  ;;  %v3608_v6 = vld [vmem:[%s3879_s3 + $0x10] sm:$0xff] }
  0x7c   :  { %2882 = vmatpush3.bf16.msra.mxu0 %v3039_v28  ;;  %v1521_v50 = vld [vmem:[%s3879_s3 + $0xc8] sm:$0xff]  ;;  %v1536_v55 = vld [vmem:[%s3879_s3 + $0x140] sm:$0xff]  ;;  %v3613_v7 = vld [vmem:[%s3879_s3 + $0x50] sm:$0xff] }
  0x7d   :  { %2883 = vmatprep.subr.bf16.mxu0 %v3041_v29  ;;  %v2676_v51 = vcombine.high %v1513_v49, %v1521_v50  ;;  %v2675_v53 = vcombine.low %v1513_v49, %v1521_v50  ;;  %v1529_v56 = vld [vmem:[%s3879_s3 + $0x108] sm:$0xff]  ;;  %v2690_v57 = vcombine.high %v1528_v54, %v1536_v55  ;;  %v2689_v59 = vcombine.low %v1528_v54, %v1536_v55  ;;  %v1544_v62 = vld [vmem:[%s3879_s3 + $0x180] sm:$0xff]  ;;  %v3618_v8 = vld [vmem:[%s3879_s3 + $0x18] sm:$0xff] }
  0x7e   :  { %2904 = vmatpush3.bf16.msra.mxu1 %v3040_v30  ;;  %v1537_v58 = vld [vmem:[%s3879_s3 + $0x148] sm:$0xff]  ;;  %v1552_v63 = vld [vmem:[%s3879_s3 + $0x1c0] sm:$0xff]  ;;  %v2661_v10 = vcombine.low %v3608_v6, %v3613_v7  ;;  %v2662_v11 = vcombine.high %v3608_v6, %v3613_v7  ;;  %v3628_v12 = vld [vmem:[%s3879_s3 + $0x58] sm:$0xff] }
  0x7f   :  { %2905 = vmatprep.subr.bf16.mxu1 %v3042_v31  ;;  %v2691_v60 = vcombine.low %v1529_v56, %v1537_v58  ;;  %v2692_v61 = vcombine.high %v1529_v56, %v1537_v58  ;;  %v1545_v0 = vld [vmem:[%s3879_s3 + $0x188] sm:$0xff]  ;;  %v2706_v1 = vcombine.high %v1544_v62, %v1552_v63  ;;  %v2705_v3 = vcombine.low %v1544_v62, %v1552_v63  ;;  %v2528_v16 = vld [vmem:[%s3878_s2] ss:$0 sm:$0xff]  ;;  %v1547_v6 = vld [vmem:[%s3879_s3 + $0x198] sm:$0xff] }
  0x80   :  { %2884 = vmatpush3.bf16.msra.mxu0 %v3043_v32  ;;  %v1553_v2 = vld [vmem:[%s3879_s3 + $0x1c8] sm:$0xff]  ;;  %v2663_v13 = vcombine.low %v3618_v8, %v3628_v12  ;;  %v2664_v14 = vcombine.high %v3618_v8, %v3628_v12  ;;  %v1555_v7 = vld [vmem:[%s3879_s3 + $0x1d8] sm:$0xff] }
  0x81   :  { %1968 = vmatprep.subr.bf16.mxu0 %v2658_v42  ;;  %v2707_v4 = vcombine.low %v1545_v0, %v1553_v2  ;;  %v2708_v5 = vcombine.high %v1545_v0, %v1553_v2  ;;  %v1514_v0 = vld [vmem:[%s3879_s3 + $0x90] sm:$0xff] }
  0x82   :  { %2906 = vmatpush3.bf16.msra.mxu1 %v3044_v35  ;;  %v1522_v2 = vld [vmem:[%s3879_s3 + $0xd0] sm:$0xff] }
  0x83   :  { %1446 = vmatmul.mubr.bf16.vlgmr.msra.gmra.mrb[12].mxu0 %v370_v34  ;;  %2009 = vmatprep.subr.bf16.mxu1 %v2660_v47 }
  0x84   :  { %1969 = vmatpush1.bf16.msra.mxu0 %v2657_v40  ;;  %2000 = vmatprep.mubr.bf16.mxu0 %v3103_v9 }
  0x85   :  { %1486 = vmatmul.mubr.bf16.vlgmr.msra.gmra.mrb[12].mxu1 %v386_v36  ;;  %1970 = vmatprep.subr.bf16.mxu0 %v2674_v48 }
  0x86   :  { %2010 = vmatpush1.bf16.msra.mxu1 %v2659_v46  ;;  %2041 = vmatprep.mubr.bf16.mxu1 %v3103_v9 }
  0x87   :  { %2011 = vmatprep.subr.bf16.mxu1 %v2676_v51 }
  0x88   :  { %1971 = vmatpush1.bf16.msra.mxu0 %v2673_v52 }
  0x89   :  { %1972 = vmatprep.subr.bf16.mxu0 %v2690_v57 }
  0x8a   :  { %2012 = vmatpush1.bf16.msra.mxu1 %v2675_v53 }
  0x8b   :  { %2013 = vmatprep.subr.bf16.mxu1 %v2692_v61 }
  0x8c   :  { %1973 = vmatpush1.bf16.msra.mxu0 %v2689_v59 }
  0x8d   :  { %1974 = vmatprep.subr.bf16.mxu0 %v2706_v1 }
  0x8e   :  { %2014 = vmatpush1.bf16.msra.mxu1 %v2691_v60 }
  0x8f   :  { %2015 = vmatprep.subr.bf16.mxu1 %v2708_v5 }
  0x90   :  { %1975 = vmatpush1.bf16.msra.mxu0 %v2705_v3  ;;  %v1515_v3 = vld [vmem:[%s3879_s3 + $0x98] sm:$0xff] }
  0x91   :  { %2050 = vmatprep.subr.bf16.mxu0 %v2662_v11 }
  0x92   :  { %2016 = vmatpush1.bf16.msra.mxu1 %v2707_v4  ;;  %v1523_v4 = vld [vmem:[%s3879_s3 + $0xd8] sm:$0xff] }
  0x93   :  { %2091 = vmatprep.subr.bf16.mxu1 %v2664_v14  ;;  %v2678_v14 = vcombine.high %v1514_v0, %v1522_v2 }
  0xf6   :  { %v2753_v15 = vpop.f32.mrb[0].mxu0 }
  0xf7   :  { %v2754_v17 = vpop.f32.mrb[1].mxu0  ;;  %v2775_v18 = vpop.f32.mrb[0].mxu1 }
  0xf8   :  { %v2755_v19 = vadd.f32 %v2754_v17, %v2753_v15  ;;  %v2756_v20 = vpop.f32.mrb[2].mxu0  ;;  %v2776_v21 = vpop.f32.mrb[1].mxu1  ;;  %v2680_v15 = vcombine.high %v1515_v3, %v1523_v4  ;;  %v1538_v17 = vld [vmem:[%s3879_s3 + $0x150] sm:$0xff] }
  0xf9   :  { %v2757_v22 = vpop.f32.mrb[3].mxu0  ;;  %v2777_v24 = vadd.f32 %v2776_v21, %v2775_v18  ;;  %v2778_v25 = vpop.f32.mrb[2].mxu1  ;;  %v1531_v18 = vld [vmem:[%s3879_s3 + $0x118] sm:$0xff]  ;;  %v2677_v20 = vcombine.low %v1514_v0, %v1522_v2  ;;  %v2679_v21 = vcombine.low %v1515_v3, %v1523_v4  ;;  %v1518_v4 = vld [vmem:[%s3879_s3 + $0xb0] sm:$0xff] }
  0xfa   :  { %v1208_v23 = vadd.f32 %v2755_v19, %v2528_v16  ;;  %v2779_v26 = vpop.f32.mrb[3].mxu1  ;;  %v1530_v16 = vld [vmem:[%s3879_s3 + $0x110] sm:$0xff]  ;;  %v1539_v19 = vld [vmem:[%s3879_s3 + $0x158] sm:$0xff] }
  0xfb   :  { %v2694_v22 = vcombine.high %v1530_v16, %v1538_v17  ;;  %v1554_v25 = vld [vmem:[%s3879_s3 + $0x1d0] sm:$0xff]  ;;  %v2693_v8 = vcombine.low %v1530_v16, %v1538_v17  ;;  %v1500_v26 = vld [vmem:[%s3879_s3 + $0x20] sm:$0xff] }
  0xfc   :  { %v1248_v27 = vadd.f32 %v2777_v24, %v1208_v23  ;;  %v2696_v23 = vcombine.high %v1531_v18, %v1539_v19  ;;  %v1546_v24 = vld [vmem:[%s3879_s3 + $0x190] sm:$0xff] }
  0xfd   :  { %v2710_v12 = vcombine.high %v1546_v24, %v1554_v25 }
 0x116   :  { %v2797_v28 = vpop.f32.mrb[4].mxu0 }
 0x117   :  { %v2798_v29 = vpop.f32.mrb[5].mxu0  ;;  %v2819_v30 = vpop.f32.mrb[4].mxu1 }
 0x118   :  { %v2799_v31 = vadd.f32 %v2798_v29, %v2797_v28  ;;  %v2800_v32 = vpop.f32.mrb[6].mxu0  ;;  %v2820_v34 = vpop.f32.mrb[5].mxu1  ;;  %v1501_v28 = vld [vmem:[%s3879_s3 + $0x28] sm:$0xff] }
 0x119   :  { %v2801_v35 = vpop.f32.mrb[7].mxu0  ;;  %v2821_v37 = vadd.f32 %v2820_v34, %v2819_v30  ;;  %v2822_v38 = vpop.f32.mrb[6].mxu1  ;;  %v1509_v29 = vld [vmem:[%s3879_s3 + $0x68] sm:$0xff]  ;;  %v2709_v30 = vcombine.low %v1546_v24, %v1554_v25 }
 0x11a   :  { %v1288_v36 = vadd.f32 %v2799_v31, %v1248_v27  ;;  %v2823_v39 = vpop.f32.mrb[7].mxu1  ;;  %v1508_v27 = vld [vmem:[%s3879_s3 + $0x60] sm:$0xff]  ;;  %v2711_v31 = vcombine.low %v1547_v6, %v1555_v7  ;;  %v2668_v34 = vcombine.high %v1501_v28, %v1509_v29  ;;  %v1525_v38 = vld [vmem:[%s3879_s3 + $0xe8] sm:$0xff] }
 0x11b   :  { %v2666_v32 = vcombine.high %v1500_v26, %v1508_v27  ;;  %v1516_v35 = vld [vmem:[%s3879_s3 + $0xa0] sm:$0xff]  ;;  %v2665_v39 = vcombine.low %v1500_v26, %v1508_v27 }
 0x11c   :  { %v1328_v40 = vadd.f32 %v2821_v37, %v1288_v36  ;;  %v1524_v36 = vld [vmem:[%s3879_s3 + $0xe0] sm:$0xff]  ;;  %v1517_v37 = vld [vmem:[%s3879_s3 + $0xa8] sm:$0xff] }
 0x136   :  { %v2841_v42 = vpop.f32.mrb[8].mxu0 }
 0x137   :  { %v2842_v43 = vpop.f32.mrb[9].mxu0 }
 0x138   :  { %v2863_v44 = vpop.f32.mrb[8].mxu1  ;;  %v2843_v45 = vadd.f32 %v2842_v43, %v2841_v42  ;;  %v2844_v46 = vpop.f32.mrb[10].mxu0  ;;  %v2682_v42 = vcombine.high %v1516_v35, %v1524_v36  ;;  %v2684_v43 = vcombine.high %v1517_v37, %v1525_v38 }
 0x139   :  { %v2864_v47 = vpop.f32.mrb[9].mxu1  ;;  %v2845_v48 = vpop.f32.mrb[11].mxu0  ;;  %v1533_v46 = vld [vmem:[%s3879_s3 + $0x128] sm:$0xff] }
 0x13a   :  { %v1368_v49 = vadd.f32 %v2843_v45, %v1328_v40  ;;  %v2865_v50 = vadd.f32 %v2864_v47, %v2863_v44  ;;  %v2866_v51 = vpop.f32.mrb[10].mxu1  ;;  %v2667_v40 = vcombine.low %v1501_v28, %v1509_v29  ;;  %v1532_v44 = vld [vmem:[%s3879_s3 + $0x120] sm:$0xff]  ;;  %v1541_v47 = vld [vmem:[%s3879_s3 + $0x168] sm:$0xff]  ;;  %v2681_v48 = vcombine.low %v1516_v35, %v1524_v36 }
 0x13b   :  { %v2867_v52 = vpop.f32.mrb[11].mxu1  ;;  %v1540_v45 = vld [vmem:[%s3879_s3 + $0x160] sm:$0xff]  ;;  %v2700_v51 = vcombine.high %v1533_v46, %v1541_v47 }
 0x13c   :  { %v1408_v53 = vadd.f32 %v2865_v50, %v1368_v49  ;;  %v2683_v49 = vcombine.low %v1517_v37, %v1525_v38  ;;  %v2698_v50 = vcombine.high %v1532_v44, %v1540_v45  ;;  %v1548_v52 = vld [vmem:[%s3879_s3 + $0x1a0] sm:$0xff] }
 0x156   :  { %v2885_v54 = vpop.f32.mrb[12].mxu0 }
 0x157   :  { %v2886_v55 = vpop.f32.mrb[13].mxu0 }
 0x158   :  { %v2907_v56 = vpop.f32.mrb[12].mxu1  ;;  %v2887_v57 = vadd.f32 %v2886_v55, %v2885_v54  ;;  %v2888_v58 = vpop.f32.mrb[14].mxu0  ;;  %v1549_v54 = vld [vmem:[%s3879_s3 + $0x1a8] sm:$0xff] }
 0x159   :  { %v2908_v59 = vpop.f32.mrb[13].mxu1  ;;  %v2889_v60 = vpop.f32.mrb[15].mxu0  ;;  %v1557_v55 = vld [vmem:[%s3879_s3 + $0x1e8] sm:$0xff] }
 0x15a   :  { %v1448_v61 = vadd.f32 %v2887_v57, %v1408_v53  ;;  %v2909_v62 = vadd.f32 %v2908_v59, %v2907_v56  ;;  %v2910_v63 = vpop.f32.mrb[14].mxu1  ;;  %v1556_v53 = vld [vmem:[%s3879_s3 + $0x1e0] sm:$0xff]  ;;  %v2697_v56 = vcombine.low %v1532_v44, %v1540_v45  ;;  %v2699_v57 = vcombine.low %v1533_v46, %v1541_v47  ;;  %v1502_v60 = vld [vmem:[%s3879_s3 + $0x30] sm:$0xff] }
 0x15b   :  { %v2911_v1 = vpop.f32.mrb[15].mxu1  ;;  %v2714_v58 = vcombine.high %v1548_v52, %v1556_v53  ;;  %v2716_v59 = vcombine.high %v1549_v54, %v1557_v55  ;;  %v1511_v63 = vld [vmem:[%s3879_s3 + $0x78] sm:$0xff]  ;;  %v2713_v0 = vcombine.low %v1548_v52, %v1556_v53 }
 0x15c   :  { %v1488_v5 = vadd.f32 %v2909_v62, %v1448_v61  ;;  %v1510_v61 = vld [vmem:[%s3879_s3 + $0x70] sm:$0xff]  ;;  %v1503_v62 = vld [vmem:[%s3879_s3 + $0x38] sm:$0xff]  ;;  %v2715_v1 = vcombine.low %v1549_v54, %v1557_v55 }
 0x15d   :  { %v2670_v2 = vcombine.high %v1502_v60, %v1510_v61  ;;  %v2672_v3 = vcombine.high %v1503_v62, %v1511_v63  ;;  %v2669_v16 = vcombine.low %v1502_v60, %v1510_v61  ;;  %v2671_v17 = vcombine.low %v1503_v62, %v1511_v63 }
 0x15e   :  { %v3650_v11 = vpack.c.bf16 %v1488_v5, %v1488_v5  ;;  %1494 = vst.msk [vmem:[#allocation2] sm:$0x3] %vm1493_vm0, %v1488_v5  ;;  %v1526_v5 = vld [vmem:[%s3879_s3 + $0xf0] sm:$0xff] }
 0x15f   :  { %v2685_v24 = vcombine.low %v1518_v4, %v1526_v5 }
 0x160   :  { %2721 = vmatmul.mubr.msk.bf16.vlgmr.msra.gmra.mrb[16].mxu0 %vm1964_vm1, %v3650_v11  ;;  %2722 = vmatmul.mubr.msk.bf16.vlgmr.msra.gmra.mrb[16].mxu1 %vm1964_vm1, %v3650_v11 }
 0x161   :  { %2051 = vmatpush1.bf16.msra.mxu0 %v2661_v10  ;;  %2092 = vmatpush1.bf16.msra.mxu1 %v2663_v13  ;;  %v2695_v10 = vcombine.low %v1531_v18, %v1539_v19  ;;  %v2712_v13 = vcombine.high %v1547_v6, %v1555_v7  ;;  %v2686_v18 = vcombine.high %v1518_v4, %v1526_v5 }
 0x162   :  { %2052 = vmatprep.subr.bf16.mxu0 %v2678_v14  ;;  %2093 = vmatprep.subr.bf16.mxu1 %v2680_v15  ;;  %v1519_v14 = vld [vmem:[%s3879_s3 + $0xb8] sm:$0xff] }
 0x163   :  { %2082 = vmatprep.mubr.bf16.mxu0 %v3103_v9  ;;  %2123 = vmatprep.mubr.bf16.mxu1 %v3103_v9  ;;  %v1527_v15 = vld [vmem:[%s3879_s3 + $0xf8] sm:$0xff] }
 0x164   :  { %v2688_v19 = vcombine.high %v1519_v14, %v1527_v15  ;;  %v2687_v25 = vcombine.low %v1519_v14, %v1527_v15 }
 0x165   :  { %2053 = vmatpush1.bf16.msra.mxu0 %v2677_v20  ;;  %2094 = vmatpush1.bf16.msra.mxu1 %v2679_v21  ;;  %v1534_v20 = vld [vmem:[%s3879_s3 + $0x130] sm:$0xff] }
 0x166   :  { %2054 = vmatprep.subr.bf16.mxu0 %v2694_v22  ;;  %2095 = vmatprep.subr.bf16.mxu1 %v2696_v23  ;;  %v1542_v21 = vld [vmem:[%s3879_s3 + $0x170] sm:$0xff]  ;;  %v1535_v22 = vld [vmem:[%s3879_s3 + $0x138] sm:$0xff] }
 0x167   :  { %v1543_v23 = vld [vmem:[%s3879_s3 + $0x178] sm:$0xff]  ;;  %v2702_v6 = vcombine.high %v1534_v20, %v1542_v21  ;;  %v2701_v26 = vcombine.low %v1534_v20, %v1542_v21 }
 0x168   :  { %v2704_v7 = vcombine.high %v1535_v22, %v1543_v23  ;;  %v2703_v27 = vcombine.low %v1535_v22, %v1543_v23 }
 0x169   :  { %2055 = vmatpush1.bf16.msra.mxu0 %v2693_v8  ;;  %2096 = vmatpush1.bf16.msra.mxu1 %v2695_v10  ;;  %v1550_v8 = vld [vmem:[%s3879_s3 + $0x1b0] sm:$0xff] }
 0x16a   :  { %2056 = vmatprep.subr.bf16.mxu0 %v2710_v12  ;;  %2097 = vmatprep.subr.bf16.mxu1 %v2712_v13  ;;  %v1558_v10 = vld [vmem:[%s3879_s3 + $0x1f0] sm:$0xff]  ;;  %v1551_v12 = vld [vmem:[%s3879_s3 + $0x1b8] sm:$0xff] }
 0x16b   :  { %v1559_v13 = vld [vmem:[%s3879_s3 + $0x1f8] sm:$0xff]  ;;  %v2718_v28 = vcombine.high %v1550_v8, %v1558_v10  ;;  %s3104_s3 = smov [#allocation2]  }
 0x16c   :  { %v2720_v29 = vcombine.high %v1551_v12, %v1559_v13  ;;  %s2516_s10 = sshll.u32 %s3104_s3, 4  ;;  %s2517_s10 = int_to_ptr.vmem [resolvable:$true] %s2516_s10 }
 0x16d   :  { %2057 = vmatpush1.bf16.msra.mxu0 %v2709_v30  ;;  %2098 = vmatpush1.bf16.msra.mxu1 %v2711_v31  ;;  %v2717_v30 = vcombine.low %v1550_v8, %v1558_v10  ;;  %v2719_v31 = vcombine.low %v1551_v12, %v1559_v13  ;;  %s3078_s11 = scalar_lea.vmem %s2517_s10, 32  ;;  %p3083_p1 = scmp.lt.s32.totalorder %s2517_s10, %s2517_s10 }
 0x16e   :  { %2132 = vmatprep.subr.bf16.mxu0 %v2666_v32  ;;  %2173 = vmatprep.subr.bf16.mxu1 %v2668_v34  ;;  %p3079_p0 = scmp.ne.s32.totalorder %s2517_s10, %s3078_s11  ;;  %p3084_p2 = scmp.lt.s32.totalorder %s3078_s11, %s3078_s11 }
 0x170   :  { %2723 = vmatmul.mubr.msk.bf16.vlgmr.msra.gmra.mrb[20].mxu0 %vm1964_vm1, %v3650_v11  ;;  %2724 = vmatmul.mubr.msk.bf16.vlgmr.msra.gmra.mrb[20].mxu1 %vm1964_vm1, %v3650_v11  ;;  %p3085_p3 = por %p3084_p2, %p3083_p1 }
 0x171   :  { %2133 = vmatpush1.bf16.msra.mxu0 %v2665_v39  ;;  %2174 = vmatpush1.bf16.msra.mxu1 %v2667_v40 }
 0x172   :  { %2134 = vmatprep.subr.bf16.mxu0 %v2682_v42  ;;  %2175 = vmatprep.subr.bf16.mxu1 %v2684_v43  ;;  %p3086_p4 = pnand %p3085_p3, %p3079_p0 }
 0x173   :  { %2164 = vmatprep.mubr.bf16.mxu0 %v3103_v9  ;;  %2205 = vmatprep.mubr.bf16.mxu1 %v3103_v9 }
 0x175   :  { %2135 = vmatpush1.bf16.msra.mxu0 %v2681_v48  ;;  %2176 = vmatpush1.bf16.msra.mxu1 %v2683_v49 }
 0x176   :  { %2136 = vmatprep.subr.bf16.mxu0 %v2698_v50  ;;  %2177 = vmatprep.subr.bf16.mxu1 %v2700_v51 }
 0x179   :  { %2137 = vmatpush1.bf16.msra.mxu0 %v2697_v56  ;;  %2178 = vmatpush1.bf16.msra.mxu1 %v2699_v57 }
 0x17a   :  { %2138 = vmatprep.subr.bf16.mxu0 %v2714_v58  ;;  %2179 = vmatprep.subr.bf16.mxu1 %v2716_v59 }
 0x17d   :  { %2139 = vmatpush1.bf16.msra.mxu0 %v2713_v0  ;;  %2180 = vmatpush1.bf16.msra.mxu1 %v2715_v1 }
 0x17e   :  { %2214 = vmatprep.subr.bf16.mxu0 %v2670_v2  ;;  %2255 = vmatprep.subr.bf16.mxu1 %v2672_v3 }
 0x180   :  { %2725 = vmatmul.mubr.msk.bf16.vlgmr.msra.gmra.mrb[24].mxu0 %vm1964_vm1, %v3650_v11  ;;  %2726 = vmatmul.mubr.msk.bf16.vlgmr.msra.gmra.mrb[24].mxu1 %vm1964_vm1, %v3650_v11 }
 0x181   :  { %2215 = vmatpush1.bf16.msra.mxu0 %v2669_v16  ;;  %2256 = vmatpush1.bf16.msra.mxu1 %v2671_v17 }
 0x182   :  { %2216 = vmatprep.subr.bf16.mxu0 %v2686_v18  ;;  %2257 = vmatprep.subr.bf16.mxu1 %v2688_v19 }
 0x183   :  { %2246 = vmatprep.mubr.bf16.mxu0 %v3103_v9  ;;  %2287 = vmatprep.mubr.bf16.mxu1 %v3103_v9 }
 0x185   :  { %2217 = vmatpush1.bf16.msra.mxu0 %v2685_v24  ;;  %2258 = vmatpush1.bf16.msra.mxu1 %v2687_v25 }
 0x186   :  { %2218 = vmatprep.subr.bf16.mxu0 %v2702_v6  ;;  %2259 = vmatprep.subr.bf16.mxu1 %v2704_v7 }
 0x189   :  { %2219 = vmatpush1.bf16.msra.mxu0 %v2701_v26  ;;  %2260 = vmatpush1.bf16.msra.mxu1 %v2703_v27 }
 0x18a   :  { %2220 = vmatprep.subr.bf16.mxu0 %v2718_v28  ;;  %2261 = vmatprep.subr.bf16.mxu1 %v2720_v29 }
 0x18d   :  { %2221 = vmatpush1.bf16.msra.mxu0 %v2717_v30  ;;  %2262 = vmatpush1.bf16.msra.mxu1 %v2719_v31 }
 0x190   :  { %2727 = vmatmul.mubr.msk.bf16.vlgmr.msra.gmra.mrb[28].mxu0 %vm1964_vm1, %v3650_v11  ;;  %2728 = vmatmul.mubr.msk.bf16.vlgmr.msra.gmra.mrb[28].mxu1 %vm1964_vm1, %v3650_v11 }
 0x191   :  { %3089 = shalt.err (!%p3086_p4)
}
 0x192   :  { %s3090_s14 = scalar_lea.hbm %s3881_s5, 32 }
 0x193   :  { %p3091_p5 = scmp.ne.s32.totalorder %s3881_s5, %s3090_s14  ;;  %p3094_p6 = scmp.lt.u32.totalorder %s3090_s14, %s3881_s5 }
 0x195   :  { %p3096_p7 = pnand %p3094_p6, %p3091_p5 }
 0x197   :  { %3099 = shalt.err (!%p3096_p7)
}
 0x198   :  { %2519 = dma.vmem_to_hbm [thread:$0]  %s2517_s10, 32, %s3881_s5, [#allocation3]   ;;  %v1566_v9 = vsub.s32 0, %v3236_v33  ;;  %v1574_v11 = vsub.s32 2, %v3236_v33  ;;  %v1560_v32 = vld [vmem:[%s3880_s4] sm:$0xff]  ;;  %v1570_v34 = vsub.s32 1, %v3236_v33 }
 0x199   :  { %v1578_v35 = vsub.s32 3, %v3236_v33  ;;  %v1582_v57 = vsub.s32 4, %v3236_v33  ;;  %v1590_v58 = vsub.s32 6, %v3236_v33  ;;  %v1586_v59 = vsub.s32 5, %v3236_v33 }
 0x19a   :  { %v1567_v36 = vrot.slane %v1560_v32, %v1566_v9  ;;  %v1575_v37 = vrot.slane %v1560_v32, %v1574_v11  ;;  %v1571_v38 = vrot.slane %v1560_v32, %v1570_v34  ;;  %v1594_v60 = vsub.s32 7, %v3236_v33 }
 0x19b   :  { %v1579_v39 = vrot.slane %v1560_v32, %v1578_v35  ;;  %v1583_v61 = vrot.slane %v1560_v32, %v1582_v57  ;;  %v1591_v62 = vrot.slane %v1560_v32, %v1590_v58  ;;  %v1587_v63 = vrot.slane %v1560_v32, %v1586_v59 }
 0x19c   :  { %v1595_v0 = vrot.slane %v1560_v32, %v1594_v60 }
 0x233   :  { %v2002_v40 = vpop.f32.mrb[16].mxu0  ;;  %v2043_v42 = vpop.f32.mrb[16].mxu1 }
 0x234   :  { %v2003_v43 = vadd.f32 %v2002_v40, %v1567_v36  ;;  %v2044_v44 = vadd.f32 %v2043_v42, %v1575_v37  ;;  %v2004_v45 = vpop.f32.mrb[17].mxu0  ;;  %v2045_v46 = vpop.f32.mrb[17].mxu1 }
 0x235   :  { %v2005_v47 = vadd.f32 %v2004_v45, %v1571_v38  ;;  %v2046_v48 = vadd.f32 %v2045_v46, %v1579_v39  ;;  %v2006_v49 = vpop.f32.mrb[18].mxu0  ;;  %v2047_v50 = vpop.f32.mrb[18].mxu1 }
 0x236   :  { %v2312_v51 = vmul.f32 0.70710677, %v2003_v43  ;;  %v2314_v52 = vmul.f32 0.70710677, %v2044_v44  ;;  %v2007_v55 = vpop.f32.mrb[19].mxu0  ;;  %v2048_v56 = vpop.f32.mrb[19].mxu1 }
 0x237   :  { %v2313_v53 = vmul.f32 0.70710677, %v2005_v47  ;;  %v2315_v54 = vmul.f32 0.70710677, %v2046_v48  ;;  %v2296_v3 = vmul.f32 0.5, %v2003_v43  ;;  %v2298_v5 = vmul.f32 0.5, %v2044_v44 }
 0x238   :  { %3046 = verf.f32 %v2312_v51  ;;  %v2297_v18 = vmul.f32 0.5, %v2005_v47  ;;  %v2299_v13 = vmul.f32 0.5, %v2046_v48  ;;  %v1561_v43 = vld [vmem:[%s3880_s4 + $0x8] sm:$0xff] }
 0x239   :  { %3048 = verf.f32 %v2314_v52  ;;  %v1599_v45 = vrot.slane %v1561_v43, %v1566_v9  ;;  %v1607_v46 = vrot.slane %v1561_v43, %v1574_v11  ;;  %v1603_v47 = vrot.slane %v1561_v43, %v1570_v34 }
 0x23a   :  { %3050 = verf.f32 %v2313_v53  ;;  %v1611_v48 = vrot.slane %v1561_v43, %v1578_v35 }
 0x23b   :  { %3052 = verf.f32 %v2315_v54 }
 0x242   :  { %v3047_v1 = vpop.eup %3046 }
 0x243   :  { %v3049_v2 = vpop.eup %3048  ;;  %v2344_v4 = vadd.f32 1.0, %v3047_v1  ;;  %v2084_v14 = vpop.f32.mrb[20].mxu0 }
 0x244   :  { %v2125_v15 = vpop.f32.mrb[20].mxu1  ;;  %v3051_v16 = vpop.eup %3050  ;;  %v2346_v17 = vadd.f32 1.0, %v3049_v2  ;;  %v2085_v19 = vadd.f32 %v2084_v14, %v1583_v61 }
 0x245   :  { %v2126_v20 = vadd.f32 %v2125_v15, %v1591_v62  ;;  %v2086_v21 = vpop.f32.mrb[21].mxu0  ;;  %v2127_v22 = vpop.f32.mrb[21].mxu1  ;;  %v2360_v24 = vmul.f32 %v2344_v4, %v2296_v3  ;;  %v2345_v25 = vadd.f32 1.0, %v3051_v16 }
 0x246   :  { %v3053_v23 = vpop.eup %3052  ;;  %v2087_v6 = vadd.f32 %v2086_v21, %v1587_v63  ;;  %v2128_v7 = vadd.f32 %v2127_v22, %v1595_v0  ;;  %v2088_v8 = vpop.f32.mrb[22].mxu0  ;;  %v2362_v12 = vmul.f32 %v2346_v17, %v2298_v5  ;;  %v2316_v27 = vmul.f32 0.70710677, %v2085_v19 }
 0x247   :  { %v2129_v10 = vpop.f32.mrb[22].mxu1  ;;  %v2347_v26 = vadd.f32 1.0, %v3053_v23  ;;  %v2089_v28 = vpop.f32.mrb[23].mxu0  ;;  %v2361_v30 = vmul.f32 %v2345_v25, %v2297_v18  ;;  %v2318_v31 = vmul.f32 0.70710677, %v2126_v20  ;;  %v2300_v51 = vmul.f32 0.5, %v2085_v19 }
 0x248   :  { %v2130_v29 = vpop.f32.mrb[23].mxu1  ;;  %3054 = verf.f32 %v2316_v27  ;;  %v2317_v36 = vmul.f32 0.70710677, %v2087_v6  ;;  %v2319_v38 = vmul.f32 0.70710677, %v2128_v7  ;;  %v2302_v53 = vmul.f32 0.5, %v2126_v20 }
 0x249   :  { %v2363_v32 = vmul.f32 %v2347_v26, %v2299_v13  ;;  %v2729_v37 = vpack.c.bf16 %v2361_v30, %v2360_v24  ;;  %3056 = verf.f32 %v2318_v31  ;;  %v2301_v62 = vmul.f32 0.5, %v2087_v6 }
 0x24a   :  { %3058 = verf.f32 %v2317_v36  ;;  %v2303_v15 = vmul.f32 0.5, %v2128_v7  ;;  %v1615_v26 = vrot.slane %v1561_v43, %v1582_v57  ;;  %v1623_v27 = vrot.slane %v1561_v43, %v1590_v58 }
 0x24b   :  { %v2730_v39 = vpack.c.bf16 %v2363_v32, %v2362_v12  ;;  %v2418_v40 = vrot.slane %v2729_v37, %v3248_v41  ;;  %3060 = verf.f32 %v2319_v38  ;;  %v1619_v28 = vrot.slane %v1561_v43, %v1586_v59 }
 0x24c   :  { %v1627_v29 = vrot.slane %v1561_v43, %v1594_v60 }
 0x24d   :  { %v2425_v42 = vrot.slane %v2730_v39, %v3248_v41 }
 0x24f   :  { %v2440_v44 = vcombine.low %v2418_v40, %v2425_v42 }
 0x251   :  { %v2448_v12 = vrot.slane %v2440_v44, %v3248_v41 }
 0x252   :  { %v3055_v49 = vpop.eup %3054 }
 0x253   :  { %v3057_v50 = vpop.eup %3056  ;;  %v2348_v52 = vadd.f32 1.0, %v3055_v49  ;;  %v2166_v54 = vpop.f32.mrb[24].mxu0 }
 0x254   :  { %v2207_v55 = vpop.f32.mrb[24].mxu1  ;;  %v3059_v56 = vpop.eup %3058  ;;  %v2350_v61 = vadd.f32 1.0, %v3057_v50  ;;  %v2167_v9 = vadd.f32 %v2166_v54, %v1599_v45 }
 0x255   :  { %v2208_v63 = vadd.f32 %v2207_v55, %v1607_v46  ;;  %v2168_v0 = vpop.f32.mrb[25].mxu0  ;;  %v2209_v11 = vpop.f32.mrb[25].mxu1  ;;  %v2364_v2 = vmul.f32 %v2348_v52, %v2300_v51  ;;  %v2349_v34 = vadd.f32 1.0, %v3059_v56 }
 0x256   :  { %v3061_v1 = vpop.eup %3060  ;;  %v2169_v3 = vadd.f32 %v2168_v0, %v1603_v47  ;;  %v2210_v4 = vadd.f32 %v2209_v11, %v1611_v48  ;;  %v2170_v35 = vpop.f32.mrb[26].mxu0  ;;  %v2366_v14 = vmul.f32 %v2350_v61, %v2302_v53  ;;  %v2320_v17 = vmul.f32 0.70710677, %v2167_v9 }
 0x257   :  { %v2211_v5 = vpop.f32.mrb[26].mxu1  ;;  %v2351_v16 = vadd.f32 1.0, %v3061_v1  ;;  %v2171_v18 = vpop.f32.mrb[27].mxu0  ;;  %v2365_v20 = vmul.f32 %v2349_v34, %v2301_v62  ;;  %v2322_v21 = vmul.f32 0.70710677, %v2208_v63  ;;  %v2304_v36 = vmul.f32 0.5, %v2167_v9 }
 0x258   :  { %v2212_v19 = vpop.f32.mrb[27].mxu1  ;;  %3062 = verf.f32 %v2320_v17  ;;  %v2321_v23 = vmul.f32 0.70710677, %v2169_v3  ;;  %v2323_v25 = vmul.f32 0.70710677, %v2210_v4  ;;  %v2306_v38 = vmul.f32 0.5, %v2208_v63 }
 0x259   :  { %v2367_v22 = vmul.f32 %v2351_v16, %v2303_v15  ;;  %v2731_v24 = vpack.c.bf16 %v2365_v20, %v2364_v2  ;;  %3064 = verf.f32 %v2322_v21  ;;  %v2305_v58 = vmul.f32 0.5, %v2169_v3 }
 0x25a   :  { %3066 = verf.f32 %v2321_v23  ;;  %v2307_v52 = vmul.f32 0.5, %v2210_v4 }
 0x25b   :  { %v2732_v6 = vpack.c.bf16 %v2367_v22, %v2366_v14  ;;  %v2432_v8 = vrot.slane %v2731_v24, %v3248_v41  ;;  %3068 = verf.f32 %v2323_v25 }
 0x25d   :  { %v2439_v10 = vrot.slane %v2732_v6, %v3248_v41 }
 0x25f   :  { %v2441_v7 = vcombine.low %v2432_v8, %v2439_v10 }
 0x261   :  { %v2455_v13 = vrot.slane %v2441_v7, %v3248_v41 }
 0x262   :  { %v3063_v30 = vpop.eup %3062 }
 0x263   :  { %v2456_v31 = vcombine.low %v2448_v12, %v2455_v13  ;;  %v3065_v32 = vpop.eup %3064  ;;  %v2352_v37 = vadd.f32 1.0, %v3063_v30  ;;  %v2248_v39 = vpop.f32.mrb[28].mxu0 }
 0x264   :  { %v2289_v40 = vpop.f32.mrb[28].mxu1  ;;  %v3067_v42 = vpop.eup %3066  ;;  %v2354_v57 = vadd.f32 1.0, %v3065_v32  ;;  %v2249_v44 = vadd.f32 %v2248_v39, %v1615_v26 }
 0x265   :  { %2508 = vst [vmem:[%s3882_s6] sm:$0xff] %v2456_v31  ;;  %v2290_v59 = vadd.f32 %v2289_v40, %v1623_v27  ;;  %v2250_v45 = vpop.f32.mrb[29].mxu0  ;;  %v2291_v33 = vpop.f32.mrb[29].mxu1  ;;  %v2368_v43 = vmul.f32 %v2352_v37, %v2304_v36  ;;  %v2353_v46 = vadd.f32 1.0, %v3067_v42 }
 0x266   :  { %v3069_v60 = vpop.eup %3068  ;;  %v2251_v47 = vadd.f32 %v2250_v45, %v1619_v28  ;;  %v2292_v48 = vadd.f32 %v2291_v33, %v1627_v29  ;;  %v2252_v49 = vpop.f32.mrb[30].mxu0  ;;  %v2370_v51 = vmul.f32 %v2354_v57, %v2306_v38  ;;  %v2324_v54 = vmul.f32 0.70710677, %v2249_v44 }
 0x267   :  { %v2293_v50 = vpop.f32.mrb[30].mxu1  ;;  %v2355_v53 = vadd.f32 1.0, %v3069_v60  ;;  %v2253_v55 = vpop.f32.mrb[31].mxu0  ;;  %v2369_v61 = vmul.f32 %v2353_v46, %v2305_v58  ;;  %v2326_v62 = vmul.f32 0.70710677, %v2290_v59  ;;  %v2308_v5 = vmul.f32 0.5, %v2249_v44 }
 0x268   :  { %v2294_v56 = vpop.f32.mrb[31].mxu1  ;;  %3070 = verf.f32 %v2324_v54  ;;  %v2325_v63 = vmul.f32 0.70710677, %v2251_v47  ;;  %v2327_v11 = vmul.f32 0.70710677, %v2292_v48  ;;  %v2310_v16 = vmul.f32 0.5, %v2290_v59 }
 0x269   :  { %v2371_v9 = vmul.f32 %v2355_v53, %v2307_v52  ;;  %v2733_v0 = vpack.c.bf16 %v2369_v61, %v2368_v43  ;;  %3072 = verf.f32 %v2326_v62  ;;  %v2309_v20 = vmul.f32 0.5, %v2251_v47 }
 0x26a   :  { %3074 = verf.f32 %v2325_v63  ;;  %v2311_v23 = vmul.f32 0.5, %v2292_v48 }
 0x26b   :  { %v2734_v1 = vpack.c.bf16 %v2371_v9, %v2370_v51  ;;  %v2467_v2 = vrot.slane %v2733_v0, %v3248_v41  ;;  %3076 = verf.f32 %v2327_v11 }
 0x26d   :  { %v2474_v34 = vrot.slane %v2734_v1, %v3248_v41 }
 0x26f   :  { %v2489_v3 = vcombine.low %v2467_v2, %v2474_v34 }
 0x271   :  { %v2497_v26 = vrot.slane %v2489_v3, %v3248_v41 }
 0x272   :  { %v3071_v4 = vpop.eup %3070 }
 0x273   :  { %v3073_v35 = vpop.eup %3072  ;;  %v2356_v14 = vadd.f32 1.0, %v3071_v4 }
 0x274   :  { %v3075_v15 = vpop.eup %3074  ;;  %v2358_v17 = vadd.f32 1.0, %v3073_v35 }
 0x275   :  { %v3077_v18 = vpop.eup %3076  ;;  %v2372_v19 = vmul.f32 %v2356_v14, %v2308_v5  ;;  %v2357_v21 = vadd.f32 1.0, %v3075_v15 }
 0x276   :  { %v2374_v22 = vmul.f32 %v2358_v17, %v2310_v16  ;;  %v2359_v24 = vadd.f32 1.0, %v3077_v18 }
 0x277   :  { %v2373_v25 = vmul.f32 %v2357_v21, %v2309_v20 }
 0x278   :  { %v2375_v6 = vmul.f32 %v2359_v24, %v2311_v23 }
 0x279   :  { %v2735_v8 = vpack.c.bf16 %v2373_v25, %v2372_v19 }
 0x27a   :  { %v2736_v10 = vpack.c.bf16 %v2375_v6, %v2374_v22 }
 0x27b   :  { %v2481_v7 = vrot.slane %v2735_v8, %v3248_v41 }
 0x27c   :  { %v2488_v12 = vrot.slane %v2736_v10, %v3248_v41 }
 0x27e   :  { %v2490_v13 = vcombine.low %v2481_v7, %v2488_v12 }
 0x280   :  { %v2504_v27 = vrot.slane %v2490_v13, %v3248_v41 }
 0x282   :  { %v2505_v28 = vcombine.low %v2497_v26, %v2504_v27 }
 0x284   :  { %2509 = vst [vmem:[%s3882_s6 + $0x8] sm:$0xff] %v2505_v28 }
 0x285   :  { %3100 = dma.done.wait [#allocation3], 32  }
 0x286   :  { %3101 = vsyncadd [#allocation3], 4294967264 }
 0x287   :  { %2527 = vsyncpa [#allocation3], 1 }

// kernel: cae_forward.19
= control target key start
LH: loop header
LB: loop body
LE: loop exit
PB: predicated region body
PF: predicated region fallthrough
CT: control target
= control target key end

     0   :  { %v5121_v0 = vmov 0   ;;  %vm5123_vm0 = vmmov 0   ;;  %vm3581_vm1 = vcmask 519168   ;;  %s6542_s1 = inlined_call_operand.vmem [shape: bf16[1152,64], index: 1, kind: input, shape index: {}]   ;;  %s6543_s0 = inlined_call_operand.vmem [shape: bf16[392,1152], index: 0, kind: input, shape index: {}]   ;;  %s6544_s2 = inlined_call_operand.vmem [shape: f32[1,64], index: 2, kind: input, shape index: {}]   ;;  %s6545_s3 = inlined_call_operand.vmem [shape: bf16[392,64], index: 3, kind: output, shape index: {}]  }
   0x1   :  { %1979 = vmatprep.subr.bf16.mxu1 %v5121_v0  ;;  %2443 = vmatprep.subr.bf16.mxu0 %v5121_v0  ;;  %v4613_v1 = vld [vmem:[%s6542_s1] sm:$0xff]   ;;  %v4615_v3 = vld [vmem:[%s6542_s1 + $0x8] sm:$0xff]   ;;  %v4617_v5 = vld [vmem:[%s6542_s1 + $0x10] sm:$0xff]  }
   0x2   :  { %v4614_v2 = vld [vmem:[%s6542_s1 + $0x100] sm:$0xff]   ;;  %1980 = vmatpush1.bf16.msra.mxu1 %v4613_v1  ;;  %v4616_v4 = vld [vmem:[%s6542_s1 + $0x108] sm:$0xff]   ;;  %v4618_v6 = vld [vmem:[%s6542_s1 + $0x110] sm:$0xff]  }
   0x3   :  { %2444 = vmatpush1.bf16.msra.mxu0 %v4614_v2  ;;  %1981 = vmatprep.subr.bf16.mxu1 %v5121_v0  ;;  %v4619_v7 = vld [vmem:[%s6542_s1 + $0x18] sm:$0xff]   ;;  %v4621_v9 = vld [vmem:[%s6542_s1 + $0x20] sm:$0xff]   ;;  %v4623_v11 = vld [vmem:[%s6542_s1 + $0x28] sm:$0xff]  }
   0x4   :  { %2445 = vmatprep.subr.bf16.mxu0 %v5121_v0  ;;  %v4620_v8 = vld [vmem:[%s6542_s1 + $0x118] sm:$0xff]   ;;  %v4622_v10 = vld [vmem:[%s6542_s1 + $0x120] sm:$0xff]   ;;  %v4624_v12 = vld [vmem:[%s6542_s1 + $0x128] sm:$0xff]  }
   0x5   :  { %v4625_v13 = vld [vmem:[%s6542_s1 + $0x30] sm:$0xff]   ;;  %v4627_v15 = vld [vmem:[%s6542_s1 + $0x38] sm:$0xff]   ;;  %v4629_v17 = vld [vmem:[%s6542_s1 + $0x40] sm:$0xff]  }
   0x6   :  { %1982 = vmatpush1.bf16.msra.mxu1 %v4615_v3  ;;  %v4626_v14 = vld [vmem:[%s6542_s1 + $0x130] sm:$0xff]   ;;  %v4628_v16 = vld [vmem:[%s6542_s1 + $0x138] sm:$0xff]   ;;  %v4630_v18 = vld [vmem:[%s6542_s1 + $0x140] sm:$0xff]  }
   0x7   :  { %2446 = vmatpush1.bf16.msra.mxu0 %v4616_v4  ;;  %1983 = vmatprep.subr.bf16.mxu1 %v5121_v0  ;;  %v4647_v19 = vld [vmem:[%s6543_s0 + $0x4] ss:$36 sps:$4 sm:$0xff]   ;;  %v4650_v21 = vld [vmem:[%s6543_s0 + $0x14] ss:$36 sps:$4 sm:$0xff]   ;;  %v4652_v38 = vld [vmem:[%s6543_s0 + $0x4c] ss:$36 sps:$4 sm:$0xff]  }
   0x8   :  { %2447 = vmatprep.subr.bf16.mxu0 %v5121_v0  ;;  %v4631_v20 = vld [vmem:[%s6542_s1 + $0x48] sm:$0xff]   ;;  %2011 = vmatprep.mubr.bf16.mxu1 %v4647_v19  ;;  %v4633_v23 = vld [vmem:[%s6542_s1 + $0x50] sm:$0xff]   ;;  %v4635_v25 = vld [vmem:[%s6542_s1 + $0x58] sm:$0xff]  }
   0x9   :  { %v4632_v22 = vld [vmem:[%s6542_s1 + $0x148] sm:$0xff]   ;;  %2475 = vmatprep.mubr.bf16.mxu0 %v4650_v21  ;;  %v4634_v24 = vld [vmem:[%s6542_s1 + $0x150] sm:$0xff]   ;;  %v4636_v26 = vld [vmem:[%s6542_s1 + $0x158] sm:$0xff]  }
   0xa   :  { %1984 = vmatpush1.bf16.msra.mxu1 %v4617_v5  ;;  %v4637_v27 = vld [vmem:[%s6542_s1 + $0x60] sm:$0xff]   ;;  %v4639_v29 = vld [vmem:[%s6542_s1 + $0x68] sm:$0xff]   ;;  %v4641_v31 = vld [vmem:[%s6542_s1 + $0x70] sm:$0xff]  }
   0xb   :  { %2448 = vmatpush1.bf16.msra.mxu0 %v4618_v6  ;;  %1985 = vmatprep.subr.bf16.mxu1 %v5121_v0  ;;  %v4638_v28 = vld [vmem:[%s6542_s1 + $0x160] sm:$0xff]   ;;  %v4640_v30 = vld [vmem:[%s6542_s1 + $0x168] sm:$0xff]   ;;  %v4642_v32 = vld [vmem:[%s6542_s1 + $0x170] sm:$0xff]  }
   0xc   :  { %2449 = vmatprep.subr.bf16.mxu0 %v5121_v0  ;;  %v4643_v33 = vld [vmem:[%s6542_s1 + $0x78] sm:$0xff]   ;;  %v4645_v35 = vld [vmem:[%s6543_s0] ss:$36 sps:$4 sm:$0xff]   ;;  %v4648_v36 = vld [vmem:[%s6543_s0 + $0x10] ss:$36 sps:$4 sm:$0xff]  }
   0xd   :  { %v4644_v34 = vld [vmem:[%s6542_s1 + $0x178] sm:$0xff]   ;;  %v4651_v37 = vld [vmem:[%s6542_s1 + $0x180] sm:$0xff]   ;;  %v4659_v41 = vld [vmem:[%s6542_s1 + $0x188] sm:$0xff]  }
   0xe   :  { %1986 = vmatpush1.bf16.msra.mxu1 %v4619_v7  ;;  %v4654_v39 = vld [vmem:[%s6542_s1 + $0x80] sm:$0xff]   ;;  %v4667_v42 = vld [vmem:[%s6542_s1 + $0x88] sm:$0xff]   ;;  %v4658_v44 = vld [vmem:[%s6543_s0 + $0x58] ss:$36 sps:$4 sm:$0xff]  }
   0xf   :  { %2450 = vmatpush1.bf16.msra.mxu0 %v4620_v8  ;;  %1987 = vmatprep.subr.bf16.mxu1 %v5121_v0  ;;  %v4655_v40 = vld [vmem:[%s6543_s0 + $0x5c] ss:$36 sps:$4 sm:$0xff]   ;;  %v4657_v43 = vld [vmem:[%s6543_s0 + $0x48] ss:$36 sps:$4 sm:$0xff]   ;;  %v4660_v45 = vld [vmem:[%s6542_s1 + $0x190] sm:$0xff]  }
  0x10   :  { %2451 = vmatprep.subr.bf16.mxu0 %v5121_v0  ;;  %v4661_v46 = vld [vmem:[%s6543_s0 + $0x94] ss:$36 sps:$4 sm:$0xff]   ;;  %v4663_v47 = vld [vmem:[%s6543_s0 + $0xa4] ss:$36 sps:$4 sm:$0xff]   ;;  %v4669_v53 = vld [vmem:[%s6543_s0 + $0xdc] ss:$36 sps:$4 sm:$0xff]  }
  0x11   :  { %v4681_v48 = vld [vmem:[%s6542_s1 + $0x90] sm:$0xff]   ;;  %v4668_v50 = vld [vmem:[%s6542_s1 + $0x198] sm:$0xff]   ;;  %v4666_v52 = vld [vmem:[%s6543_s0 + $0xa0] ss:$36 sps:$4 sm:$0xff]  }
  0x12   :  { %1988 = vmatpush1.bf16.msra.mxu1 %v4621_v9  ;;  %v4665_v49 = vld [vmem:[%s6543_s0 + $0x90] ss:$36 sps:$4 sm:$0xff]   ;;  %v4691_v51 = vld [vmem:[%s6542_s1 + $0x98] sm:$0xff]   ;;  %v4675_v55 = vld [vmem:[%s6542_s1 + $0x1a0] sm:$0xff]  }
  0x13   :  { %2452 = vmatpush1.bf16.msra.mxu0 %v4622_v10  ;;  %1989 = vmatprep.subr.bf16.mxu1 %v5121_v0  ;;  %v4671_v54 = vld [vmem:[%s6543_s0 + $0xec] ss:$36 sps:$4 sm:$0xff]   ;;  %v4706_v56 = vld [vmem:[%s6542_s1 + $0xa0] sm:$0xff]   ;;  %v4673_v58 = vld [vmem:[%s6543_s0 + $0xd8] ss:$36 sps:$4 sm:$0xff]  }
  0x14   :  { %2453 = vmatprep.subr.bf16.mxu0 %v5121_v0  ;;  %v4683_v57 = vld [vmem:[%s6542_s1 + $0x1a8] sm:$0xff]   ;;  %v4678_v62 = vld [vmem:[%s6543_s0 + $0x134] ss:$36 sps:$4 sm:$0xff]   ;;  %v4680_v2 = vld [vmem:[%s6543_s0 + $0x120] ss:$36 sps:$4 sm:$0xff]  }
  0x15   :  { %v4674_v59 = vld [vmem:[%s6543_s0 + $0xe8] ss:$36 sps:$4 sm:$0xff]   ;;  %v4690_v63 = vld [vmem:[%s6542_s1 + $0x1b0] sm:$0xff]   ;;  %v4696_v3 = vld [vmem:[%s6542_s1 + $0x1b8] sm:$0xff]  }
  0x16   :  { %1990 = vmatpush1.bf16.msra.mxu1 %v4623_v11  ;;  %v4715_v60 = vld [vmem:[%s6542_s1 + $0xa8] sm:$0xff]   ;;  %v4730_v1 = vld [vmem:[%s6542_s1 + $0xb0] sm:$0xff]   ;;  %v4741_v5 = vld [vmem:[%s6542_s1 + $0xb8] sm:$0xff]  }
  0x17   :  { %2454 = vmatpush1.bf16.msra.mxu0 %v4624_v12  ;;  %1991 = vmatprep.subr.bf16.mxu1 %v5121_v0  ;;  %v4676_v61 = vld [vmem:[%s6543_s0 + $0x124] ss:$36 sps:$4 sm:$0xff]   ;;  %v4682_v4 = vld [vmem:[%s6543_s0 + $0x130] ss:$36 sps:$4 sm:$0xff]   ;;  %v4686_v7 = vld [vmem:[%s6543_s0 + $0x17c] ss:$36 sps:$4 sm:$0xff]  }
  0x18   :  { %2455 = vmatprep.subr.bf16.mxu0 %v5121_v0  ;;  %v4684_v6 = vld [vmem:[%s6543_s0 + $0x16c] ss:$36 sps:$4 sm:$0xff]   ;;  %v4699_v8 = vld [vmem:[%s6542_s1 + $0x1c0] sm:$0xff]   ;;  %v4689_v12 = vld [vmem:[%s6543_s0 + $0x178] ss:$36 sps:$4 sm:$0xff]  }
  0x19   :  { %v4754_v9 = vld [vmem:[%s6542_s1 + $0xc0] sm:$0xff]   ;;  %v4707_v10 = vld [vmem:[%s6542_s1 + $0x1c8] sm:$0xff]   ;;  %v4697_v19 = vld [vmem:[%s6543_s0 + $0x1b0] ss:$36 sps:$4 sm:$0xff]  }
  0x1a   :  { %1992 = vmatpush1.bf16.msra.mxu1 %v4625_v13  ;;  %v4688_v11 = vld [vmem:[%s6543_s0 + $0x168] ss:$36 sps:$4 sm:$0xff]   ;;  %v4700_v21 = vld [vmem:[%s6543_s0 + $0x1fc] ss:$36 sps:$4 sm:$0xff]  }
  0x1b   :  { %2456 = vmatpush1.bf16.msra.mxu0 %v4626_v14  ;;  %1993 = vmatprep.subr.bf16.mxu1 %v5121_v0  ;;  %v4766_v13 = vld [vmem:[%s6542_s1 + $0xc8] sm:$0xff]   ;;  %v4692_v14 = vld [vmem:[%s6543_s0 + $0x1b4] ss:$36 sps:$4 sm:$0xff]  }
  0x1c   :  { %2457 = vmatprep.subr.bf16.mxu0 %v5121_v0 }
  0x1e   :  { %1994 = vmatpush1.bf16.msra.mxu1 %v4627_v15  ;;  %v4694_v15 = vld [vmem:[%s6543_s0 + $0x1c4] ss:$36 sps:$4 sm:$0xff]  }
  0x1f   :  { %2458 = vmatpush1.bf16.msra.mxu0 %v4628_v16  ;;  %1995 = vmatprep.subr.bf16.mxu1 %v5121_v0  ;;  %v4714_v16 = vld [vmem:[%s6542_s1 + $0x1d0] sm:$0xff]  }
  0x20   :  { %2459 = vmatprep.subr.bf16.mxu0 %v5121_v0 }
  0x22   :  { %1996 = vmatpush1.bf16.msra.mxu1 %v4629_v17  ;;  %v4775_v17 = vld [vmem:[%s6542_s1 + $0xd0] sm:$0xff]  }
  0x23   :  { %2460 = vmatpush1.bf16.msra.mxu0 %v4630_v18  ;;  %1997 = vmatprep.subr.bf16.mxu1 %v5121_v0  ;;  %v4722_v18 = vld [vmem:[%s6542_s1 + $0x1d8] sm:$0xff]  }
  0x24   :  { %2461 = vmatprep.subr.bf16.mxu0 %v5121_v0 }
  0x26   :  { %1998 = vmatpush1.bf16.msra.mxu1 %v4631_v20  ;;  %v4698_v20 = vld [vmem:[%s6543_s0 + $0x1c0] ss:$36 sps:$4 sm:$0xff]  }
  0x27   :  { %2462 = vmatpush1.bf16.msra.mxu0 %v4632_v22  ;;  %1999 = vmatprep.subr.bf16.mxu1 %v5121_v0  ;;  %v4702_v22 = vld [vmem:[%s6543_s0 + $0x20c] ss:$36 sps:$4 sm:$0xff]  }
  0x28   :  { %2463 = vmatprep.subr.bf16.mxu0 %v5121_v0 }
  0x2a   :  { %2000 = vmatpush1.bf16.msra.mxu1 %v4633_v23  ;;  %v4727_v23 = vld [vmem:[%s6542_s1 + $0x1e0] sm:$0xff]  }
  0x2b   :  { %2464 = vmatpush1.bf16.msra.mxu0 %v4634_v24  ;;  %2001 = vmatprep.subr.bf16.mxu1 %v5121_v0  ;;  %v4788_v24 = vld [vmem:[%s6542_s1 + $0xd8] sm:$0xff]  }
  0x2c   :  { %2465 = vmatprep.subr.bf16.mxu0 %v5121_v0 }
  0x2e   :  { %2002 = vmatpush1.bf16.msra.mxu1 %v4635_v25  ;;  %v4704_v25 = vld [vmem:[%s6543_s0 + $0x1f8] ss:$36 sps:$4 sm:$0xff]  }
  0x2f   :  { %2466 = vmatpush1.bf16.msra.mxu0 %v4636_v26  ;;  %2003 = vmatprep.subr.bf16.mxu1 %v5121_v0  ;;  %v4731_v26 = vld [vmem:[%s6542_s1 + $0x1e8] sm:$0xff]  }
  0x30   :  { %2467 = vmatprep.subr.bf16.mxu0 %v5121_v0 }
  0x32   :  { %2004 = vmatpush1.bf16.msra.mxu1 %v4637_v27  ;;  %v4705_v27 = vld [vmem:[%s6543_s0 + $0x208] ss:$36 sps:$4 sm:$0xff]  }
  0x33   :  { %2468 = vmatpush1.bf16.msra.mxu0 %v4638_v28  ;;  %2005 = vmatprep.subr.bf16.mxu1 %v5121_v0  ;;  %v4796_v28 = vld [vmem:[%s6542_s1 + $0xe0] sm:$0xff]  }
  0x34   :  { %2469 = vmatprep.subr.bf16.mxu0 %v5121_v0 }
  0x36   :  { %2006 = vmatpush1.bf16.msra.mxu1 %v4639_v29  ;;  %v4708_v29 = vld [vmem:[%s6543_s0 + $0x244] ss:$36 sps:$4 sm:$0xff]  }
  0x37   :  { %2470 = vmatpush1.bf16.msra.mxu0 %v4640_v30  ;;  %2007 = vmatprep.subr.bf16.mxu1 %v5121_v0  ;;  %v4710_v30 = vld [vmem:[%s6543_s0 + $0x254] ss:$36 sps:$4 sm:$0xff]  }
  0x38   :  { %2471 = vmatprep.subr.bf16.mxu0 %v5121_v0 }
  0x3a   :  { %2008 = vmatpush1.bf16.msra.mxu1 %v4641_v31  ;;  %v4738_v31 = vld [vmem:[%s6542_s1 + $0x1f0] sm:$0xff]  }
  0x3b   :  { %2472 = vmatpush1.bf16.msra.mxu0 %v4642_v32  ;;  %2009 = vmatprep.subr.bf16.mxu1 %v5121_v0  ;;  %v4746_v32 = vld [vmem:[%s6542_s1 + $0x1f8] sm:$0xff]  }
  0x3c   :  { %2473 = vmatprep.subr.bf16.mxu0 %v5121_v0 }
  0x3e   :  { %2010 = vmatpush1.bf16.msra.mxu1 %v4643_v33  ;;  %v4809_v33 = vld [vmem:[%s6542_s1 + $0xe8] sm:$0xff]  }
  0x3f   :  { %2474 = vmatpush1.bf16.msra.mxu0 %v4644_v34  ;;  %2211 = vmatprep.subr.bf16.mxu1 %v5121_v0  ;;  %v4712_v34 = vld [vmem:[%s6543_s0 + $0x240] ss:$36 sps:$4 sm:$0xff]  }
  0x40   :  { %2675 = vmatprep.subr.bf16.mxu0 %v5121_v0 }
  0x41   :  { %2012 = vmatmul.mubr.bf16.vlgmr.msra.gmra.mrb[0].mxu1 %v4645_v35  ;;  %v4713_v35 = vld [vmem:[%s6543_s0 + $0x250] ss:$36 sps:$4 sm:$0xff]  }
  0x42   :  { %2476 = vmatmul.mubr.bf16.vlgmr.msra.gmra.mrb[0].mxu0 %v4648_v36  ;;  %2019 = vmatprep.mubr.bf16.mxu1 %v4652_v38  ;;  %v4716_v36 = vld [vmem:[%s6543_s0 + $0x28c] ss:$36 sps:$4 sm:$0xff]   ;;  %v5122_v38 = vmov 0.0  }
  0x43   :  { %2676 = vmatpush1.bf16.msra.mxu0 %v4651_v37  ;;  %2212 = vmatpush1.bf16.msra.mxu1 %v4654_v39  ;;  %v4718_v37 = vld [vmem:[%s6543_s0 + $0x29c] ss:$36 sps:$4 sm:$0xff]   ;;  %v4817_v39 = vld [vmem:[%s6542_s1 + $0xf0] sm:$0xff]  }
  0x44   :  { %2483 = vmatprep.mubr.bf16.mxu0 %v4655_v40  ;;  %2677 = vmatprep.subr.bf16.mxu0 %v5121_v0  ;;  %v4720_v40 = vld [vmem:[%s6543_s0 + $0x288] ss:$36 sps:$4 sm:$0xff]  }
  0x45   :  { %2213 = vmatprep.subr.bf16.mxu1 %v5121_v0 }
  0x47   :  { %2678 = vmatpush1.bf16.msra.mxu0 %v4659_v41  ;;  %2214 = vmatpush1.bf16.msra.mxu1 %v4667_v42  ;;  %v4829_v41 = vld [vmem:[%s6542_s1 + $0xf8] sm:$0xff]  }
  0x48   :  { %2679 = vmatprep.subr.bf16.mxu0 %v5121_v0  ;;  %2215 = vmatprep.subr.bf16.mxu1 %v5121_v0  ;;  %v4721_v42 = vld [vmem:[%s6543_s0 + $0x298] ss:$36 sps:$4 sm:$0xff]  }
  0x49   :  { %2020 = vmatmul.mubr.bf16.gmra.mrb[4].mxu1 %v4657_v43  ;;  %v4723_v43 = vld [vmem:[%s6543_s0 + $0x2d4] ss:$36 sps:$4 sm:$0xff]  }
  0x4a   :  { %2484 = vmatmul.mubr.bf16.gmra.mrb[4].mxu0 %v4658_v44  ;;  %2027 = vmatprep.mubr.bf16.mxu1 %v4661_v46  ;;  %v4725_v44 = vld [vmem:[%s6543_s0 + $0x2e4] ss:$36 sps:$4 sm:$0xff]  }
  0x4b   :  { %2680 = vmatpush1.bf16.msra.mxu0 %v4660_v45  ;;  %2491 = vmatprep.mubr.bf16.mxu0 %v4663_v47  ;;  %v4728_v45 = vld [vmem:[%s6543_s0 + $0x2d0] ss:$36 sps:$4 sm:$0xff]   ;;  %v4729_v46 = vld [vmem:[%s6543_s0 + $0x2e0] ss:$36 sps:$4 sm:$0xff]  }
  0x4c   :  { %2681 = vmatprep.subr.bf16.mxu0 %v5121_v0  ;;  %2216 = vmatpush1.bf16.msra.mxu1 %v4681_v48  ;;  %v4732_v47 = vld [vmem:[%s6543_s0 + $0x31c] ss:$36 sps:$4 sm:$0xff]   ;;  %v4734_v48 = vld [vmem:[%s6543_s0 + $0x32c] ss:$36 sps:$4 sm:$0xff]  }
  0x4d   :  { %2217 = vmatprep.subr.bf16.mxu1 %v5121_v0 }
  0x4f   :  { %2682 = vmatpush1.bf16.msra.mxu0 %v4668_v50  ;;  %v4737_v50 = vld [vmem:[%s6543_s0 + $0x328] ss:$36 sps:$4 sm:$0xff]  }
  0x50   :  { %2683 = vmatprep.subr.bf16.mxu0 %v5121_v0  ;;  %2218 = vmatpush1.bf16.msra.mxu1 %v4691_v51  ;;  %v4739_v51 = vld [vmem:[%s6543_s0 + $0x364] ss:$36 sps:$4 sm:$0xff]  }
  0x51   :  { %2028 = vmatmul.mubr.bf16.gmra.mrb[8].mxu1 %v4665_v49  ;;  %2219 = vmatprep.subr.bf16.mxu1 %v5121_v0  ;;  %v4736_v49 = vld [vmem:[%s6543_s0 + $0x318] ss:$36 sps:$4 sm:$0xff]  }
  0x52   :  { %2492 = vmatmul.mubr.bf16.gmra.mrb[8].mxu0 %v4666_v52  ;;  %2035 = vmatprep.mubr.bf16.mxu1 %v4669_v53  ;;  %v4742_v52 = vld [vmem:[%s6543_s0 + $0x374] ss:$36 sps:$4 sm:$0xff]   ;;  %v4744_v53 = vld [vmem:[%s6543_s0 + $0x360] ss:$36 sps:$4 sm:$0xff]  }
  0x53   :  { %2499 = vmatprep.mubr.bf16.mxu0 %v4671_v54  ;;  %2684 = vmatpush1.bf16.msra.mxu0 %v4675_v55  ;;  %v4745_v54 = vld [vmem:[%s6543_s0 + $0x370] ss:$36 sps:$4 sm:$0xff]  }
  0x54   :  { %2685 = vmatprep.subr.bf16.mxu0 %v5121_v0  ;;  %2220 = vmatpush1.bf16.msra.mxu1 %v4706_v56  ;;  %v4747_v55 = vld [vmem:[%s6543_s0 + $0x3ac] ss:$36 sps:$4 sm:$0xff]   ;;  %v4751_v56 = vld [vmem:[%s6543_s0 + $0x1c] ss:$36 sps:$4 sm:$0xff]  }
  0x55   :  { %2221 = vmatprep.subr.bf16.mxu1 %v5121_v0 }
  0x57   :  { %2686 = vmatpush1.bf16.msra.mxu0 %v4683_v57  ;;  %v4752_v57 = vld [vmem:[%s6543_s0 + $0x3a8] ss:$36 sps:$4 sm:$0xff]  }
  0x58   :  { %2687 = vmatprep.subr.bf16.mxu0 %v5121_v0  ;;  %2222 = vmatpush1.bf16.msra.mxu1 %v4715_v60  ;;  %v4753_v60 = vld [vmem:[%s6542_s1 + $0x200] sm:$0xff]  }
  0x59   :  { %2036 = vmatmul.mubr.bf16.gmra.mrb[12].mxu1 %v4673_v58  ;;  %2223 = vmatprep.subr.bf16.mxu1 %v5121_v0  ;;  %v4749_v58 = vld [vmem:[%s6543_s0 + $0x18] ss:$36 sps:$4 sm:$0xff]  }
  0x5a   :  { %2500 = vmatmul.mubr.bf16.gmra.mrb[12].mxu0 %v4674_v59  ;;  %2043 = vmatprep.mubr.bf16.mxu1 %v4676_v61  ;;  %v4755_v59 = vld [vmem:[%s6543_s0 + $0x3f4] ss:$36 sps:$4 sm:$0xff]   ;;  %v4757_v61 = vld [vmem:[%s6543_s0 + $0x64] ss:$36 sps:$4 sm:$0xff]  }
  0x5b   :  { %2507 = vmatprep.mubr.bf16.mxu0 %v4678_v62  ;;  %2688 = vmatpush1.bf16.msra.mxu0 %v4690_v63  ;;  %v4759_v62 = vld [vmem:[%s6543_s0 + $0x3f0] ss:$36 sps:$4 sm:$0xff]   ;;  %v4774_v63 = vld [vmem:[%s6542_s1 + $0x208] sm:$0xff]  }
  0x5c   :  { %2689 = vmatprep.subr.bf16.mxu0 %v5121_v0  ;;  %2224 = vmatpush1.bf16.msra.mxu1 %v4730_v1  ;;  %v4760_v1 = vld [vmem:[%s6543_s0 + $0x60] ss:$36 sps:$4 sm:$0xff]  }
  0x5d   :  { %2225 = vmatprep.subr.bf16.mxu1 %v5121_v0 }
  0x5f   :  { %2690 = vmatpush1.bf16.msra.mxu0 %v4696_v3  ;;  %v4763_v3 = vld [vmem:[%s6543_s0 + $0xac] ss:$36 sps:$4 sm:$0xff]  }
  0x60   :  { %2691 = vmatprep.subr.bf16.mxu0 %v5121_v0  ;;  %2226 = vmatpush1.bf16.msra.mxu1 %v4741_v5  ;;  %v4765_v5 = vld [vmem:[%s6543_s0 + $0x438] ss:$36 sps:$4 sm:$0xff]  }
  0x61   :  { %2044 = vmatmul.mubr.bf16.gmra.mrb[16].mxu1 %v4680_v2  ;;  %2227 = vmatprep.subr.bf16.mxu1 %v5121_v0  ;;  %v4761_v2 = vld [vmem:[%s6543_s0 + $0x43c] ss:$36 sps:$4 sm:$0xff]  }
  0x62   :  { %2508 = vmatmul.mubr.bf16.gmra.mrb[16].mxu0 %v4682_v4  ;;  %2051 = vmatprep.mubr.bf16.mxu1 %v4684_v6  ;;  %v4795_v4 = vld [vmem:[%s6542_s1 + $0x210] sm:$0xff]   ;;  %v4816_v6 = vld [vmem:[%s6542_s1 + $0x218] sm:$0xff]  }
  0x63   :  { %2515 = vmatprep.mubr.bf16.mxu0 %v4686_v7  ;;  %2692 = vmatpush1.bf16.msra.mxu0 %v4699_v8  ;;  %v4767_v7 = vld [vmem:[%s6543_s0 + $0xa8] ss:$36 sps:$4 sm:$0xff]  }
  0x64   :  { %2693 = vmatprep.subr.bf16.mxu0 %v5121_v0  ;;  %2228 = vmatpush1.bf16.msra.mxu1 %v4754_v9  ;;  %v4768_v8 = vld [vmem:[%s6543_s0 + $0x484] ss:$36 sps:$4 sm:$0xff]   ;;  %v4770_v9 = vld [vmem:[%s6543_s0 + $0xf4] ss:$36 sps:$4 sm:$0xff]  }
  0x65   :  { %2229 = vmatprep.subr.bf16.mxu1 %v5121_v0 }
  0x67   :  { %2694 = vmatpush1.bf16.msra.mxu0 %v4707_v10  ;;  %v4836_v10 = vld [vmem:[%s6542_s1 + $0x220] sm:$0xff]  }
  0x68   :  { %2695 = vmatprep.subr.bf16.mxu0 %v5121_v0  ;;  %2230 = vmatpush1.bf16.msra.mxu1 %v4766_v13  ;;  %v4773_v13 = vld [vmem:[%s6543_s0 + $0xf0] ss:$36 sps:$4 sm:$0xff]  }
  0x69   :  { %2052 = vmatmul.mubr.bf16.gmra.mrb[20].mxu1 %v4688_v11  ;;  %2231 = vmatprep.subr.bf16.mxu1 %v5121_v0  ;;  %v4772_v11 = vld [vmem:[%s6543_s0 + $0x480] ss:$36 sps:$4 sm:$0xff]  }
  0x6a   :  { %2516 = vmatmul.mubr.bf16.gmra.mrb[20].mxu0 %v4689_v12  ;;  %2059 = vmatprep.mubr.bf16.mxu1 %v4692_v14  ;;  %v4855_v12 = vld [vmem:[%s6542_s1 + $0x228] sm:$0xff]  }
  0x6b   :  { %2523 = vmatprep.mubr.bf16.mxu0 %v4694_v15  ;;  %2696 = vmatpush1.bf16.msra.mxu0 %v4714_v16  ;;  %v4776_v14 = vld [vmem:[%s6543_s0 + $0x4cc] ss:$36 sps:$4 sm:$0xff]   ;;  %v4778_v15 = vld [vmem:[%s6543_s0 + $0x13c] ss:$36 sps:$4 sm:$0xff]  }
  0x6c   :  { %2697 = vmatprep.subr.bf16.mxu0 %v5121_v0  ;;  %2232 = vmatpush1.bf16.msra.mxu1 %v4775_v17  ;;  %v4878_v16 = vld [vmem:[%s6542_s1 + $0x230] sm:$0xff]   ;;  %v4780_v17 = vld [vmem:[%s6543_s0 + $0x4c8] ss:$36 sps:$4 sm:$0xff]  }
  0x6d   :  { %2233 = vmatprep.subr.bf16.mxu1 %v5121_v0 }
  0x6f   :  { %2698 = vmatpush1.bf16.msra.mxu0 %v4722_v18  ;;  %v4781_v18 = vld [vmem:[%s6543_s0 + $0x138] ss:$36 sps:$4 sm:$0xff]  }
  0x70   :  { %2699 = vmatprep.subr.bf16.mxu0 %v5121_v0  ;;  %2234 = vmatpush1.bf16.msra.mxu1 %v4788_v24  ;;  %v4791_v24 = vld [vmem:[%s6543_s0 + $0x1cc] ss:$36 sps:$4 sm:$0xff]  }
  0x71   :  { %2060 = vmatmul.mubr.bf16.gmra.mrb[24].mxu1 %v4697_v19  ;;  %2235 = vmatprep.subr.bf16.mxu1 %v5121_v0  ;;  %v4782_v19 = vld [vmem:[%s6543_s0 + $0x514] ss:$36 sps:$4 sm:$0xff]  }
  0x72   :  { %2524 = vmatmul.mubr.bf16.gmra.mrb[24].mxu0 %v4698_v20  ;;  %2067 = vmatprep.mubr.bf16.mxu1 %v4700_v21  ;;  %v4784_v20 = vld [vmem:[%s6543_s0 + $0x184] ss:$36 sps:$4 sm:$0xff]   ;;  %v4786_v21 = vld [vmem:[%s6543_s0 + $0x510] ss:$36 sps:$4 sm:$0xff]  }
  0x73   :  { %2531 = vmatprep.mubr.bf16.mxu0 %v4702_v22  ;;  %2700 = vmatpush1.bf16.msra.mxu0 %v4727_v23  ;;  %v4787_v22 = vld [vmem:[%s6543_s0 + $0x180] ss:$36 sps:$4 sm:$0xff]  }
  0x74   :  { %2701 = vmatprep.subr.bf16.mxu0 %v5121_v0  ;;  %2236 = vmatpush1.bf16.msra.mxu1 %v4796_v28  ;;  %v4789_v23 = vld [vmem:[%s6543_s0 + $0x55c] ss:$36 sps:$4 sm:$0xff]   ;;  %v4799_v28 = vld [vmem:[%s6543_s0 + $0x214] ss:$36 sps:$4 sm:$0xff]  }
  0x75   :  { %2237 = vmatprep.subr.bf16.mxu1 %v5121_v0 }
  0x77   :  { %2702 = vmatpush1.bf16.msra.mxu0 %v4731_v26  ;;  %v4794_v26 = vld [vmem:[%s6543_s0 + $0x1c8] ss:$36 sps:$4 sm:$0xff]  }
  0x78   :  { %2703 = vmatprep.subr.bf16.mxu0 %v5121_v0  ;;  %2238 = vmatpush1.bf16.msra.mxu1 %v4809_v33  ;;  %v4805_v33 = vld [vmem:[%s6543_s0 + $0x25c] ss:$36 sps:$4 sm:$0xff]  }
  0x79   :  { %2068 = vmatmul.mubr.bf16.gmra.mrb[28].mxu1 %v4704_v25  ;;  %2239 = vmatprep.subr.bf16.mxu1 %v5121_v0  ;;  %v4793_v25 = vld [vmem:[%s6543_s0 + $0x558] ss:$36 sps:$4 sm:$0xff]  }
  0x7a   :  { %2532 = vmatmul.mubr.bf16.gmra.mrb[28].mxu0 %v4705_v27  ;;  %2075 = vmatprep.mubr.bf16.mxu1 %v4708_v29  ;;  %v4797_v27 = vld [vmem:[%s6543_s0 + $0x5a4] ss:$36 sps:$4 sm:$0xff]   ;;  %v4899_v29 = vld [vmem:[%s6542_s1 + $0x238] sm:$0xff]  }
  0x7b   :  { %2539 = vmatprep.mubr.bf16.mxu0 %v4710_v30  ;;  %2704 = vmatpush1.bf16.msra.mxu0 %v4738_v31  ;;  %v4801_v30 = vld [vmem:[%s6543_s0 + $0x5a0] ss:$36 sps:$4 sm:$0xff]   ;;  %v4802_v31 = vld [vmem:[%s6543_s0 + $0x210] ss:$36 sps:$4 sm:$0xff]  }
  0x7c   :  { %2705 = vmatprep.subr.bf16.mxu0 %v5121_v0  ;;  %2240 = vmatpush1.bf16.msra.mxu1 %v4817_v39  ;;  %v4814_v39 = vld [vmem:[%s6543_s0 + $0x630] ss:$36 sps:$4 sm:$0xff]  }
  0x7d   :  { %2241 = vmatprep.subr.bf16.mxu1 %v5121_v0 }
  0x7f   :  { %2706 = vmatpush1.bf16.msra.mxu0 %v4746_v32  ;;  %v4803_v32 = vld [vmem:[%s6543_s0 + $0x5ec] ss:$36 sps:$4 sm:$0xff]  }
  0x80   :  { %4064 = vmatprep.subr.bf16.mxu0 %v5122_v38  ;;  %2242 = vmatpush1.bf16.msra.mxu1 %v4829_v41  ;;  %v4818_v41 = vld [vmem:[%s6543_s0 + $0x67c] ss:$36 sps:$4 sm:$0xff]  }
  0x81   :  { %2076 = vmatmul.mubr.bf16.gmra.mrb[32].mxu1 %v4712_v34  ;;  %4180 = vmatprep.subr.bf16.mxu1 %v5121_v0  ;;  %v4807_v34 = vld [vmem:[%s6543_s0 + $0x5e8] ss:$36 sps:$4 sm:$0xff]  }
  0x82   :  { %2540 = vmatmul.mubr.bf16.gmra.mrb[32].mxu0 %v4713_v35  ;;  %2083 = vmatprep.mubr.bf16.mxu1 %v4716_v36  ;;  %v4808_v35 = vld [vmem:[%s6543_s0 + $0x258] ss:$36 sps:$4 sm:$0xff]  }
  0x83   :  { %2547 = vmatprep.mubr.bf16.mxu0 %v4718_v37  ;;  %v4810_v36 = vld [vmem:[%s6543_s0 + $0x634] ss:$36 sps:$4 sm:$0xff]   ;;  %v4812_v37 = vld [vmem:[%s6543_s0 + $0x2a4] ss:$36 sps:$4 sm:$0xff]  }
  0x89   :  { %2084 = vmatmul.mubr.bf16.gmra.mrb[36].mxu1 %v4720_v40  ;;  %v4815_v40 = vld [vmem:[%s6543_s0 + $0x2a0] ss:$36 sps:$4 sm:$0xff]  }
  0x8a   :  { %2548 = vmatmul.mubr.bf16.gmra.mrb[36].mxu0 %v4721_v42  ;;  %2091 = vmatprep.mubr.bf16.mxu1 %v4723_v43  ;;  %v4820_v42 = vld [vmem:[%s6543_s0 + $0x2ec] ss:$36 sps:$4 sm:$0xff]   ;;  %v255_v43 = vld [vmem:[%s6543_s0 + $0x6c0] sm:$0xff] }
  0x8b   :  { %2555 = vmatprep.mubr.bf16.mxu0 %v4725_v44  ;;  %v4822_v44 = vld [vmem:[%s6543_s0 + $0x678] ss:$36 sps:$4 sm:$0xff]  }
  0x91   :  { %2092 = vmatmul.mubr.bf16.gmra.mrb[40].mxu1 %v4728_v45  ;;  %v4823_v45 = vld [vmem:[%s6543_s0 + $0x2e8] ss:$36 sps:$4 sm:$0xff]  }
  0x92   :  { %2556 = vmatmul.mubr.bf16.gmra.mrb[40].mxu0 %v4729_v46  ;;  %2099 = vmatprep.mubr.bf16.mxu1 %v4732_v47  ;;  %v3853_v46 = vcombine.high %v255_v43, %v255_v43  ;;  %v4825_v47 = vld [vmem:[%s6543_s0 + $0x334] ss:$36 sps:$4 sm:$0xff]  }
  0x93   :  { %2563 = vmatprep.mubr.bf16.mxu0 %v4734_v48  ;;  %v3852_v48 = vcombine.low %v255_v43, %v255_v43  ;;  %v4893_v43 = vld [vmem:[%s6543_s0 + $0x2dc] ss:$36 sps:$4 sm:$0xff]  }
  0x99   :  { %2100 = vmatmul.mubr.bf16.gmra.mrb[44].mxu1 %v4736_v49  ;;  %v4828_v49 = vld [vmem:[%s6543_s0 + $0x330] ss:$36 sps:$4 sm:$0xff]  }
  0x9a   :  { %2564 = vmatmul.mubr.bf16.gmra.mrb[44].mxu0 %v4737_v50  ;;  %2107 = vmatprep.mubr.bf16.mxu1 %v4739_v51  ;;  %v4832_v50 = vld [vmem:[%s6543_s0 + $0xc] ss:$36 sps:$4 sm:$0xff]   ;;  %v4833_v51 = vld [vmem:[%s6543_s0 + $0x37c] ss:$36 sps:$4 sm:$0xff]  }
  0x9b   :  { %2571 = vmatprep.mubr.bf16.mxu0 %v4742_v52  ;;  %v4830_v52 = vld [vmem:[%s6543_s0 + $0x8] ss:$36 sps:$4 sm:$0xff]  }
  0xa1   :  { %2108 = vmatmul.mubr.bf16.gmra.mrb[48].mxu1 %v4744_v53  ;;  %v4835_v53 = vld [vmem:[%s6543_s0 + $0x378] ss:$36 sps:$4 sm:$0xff]  }
  0xa2   :  { %2572 = vmatmul.mubr.bf16.gmra.mrb[48].mxu0 %v4745_v54  ;;  %2115 = vmatprep.mubr.bf16.mxu1 %v4747_v55  ;;  %v4837_v54 = vld [vmem:[%s6543_s0 + $0x54] ss:$36 sps:$4 sm:$0xff]   ;;  %v4839_v55 = vld [vmem:[%s6543_s0 + $0x3c4] ss:$36 sps:$4 sm:$0xff]  }
  0xa3   :  { %2707 = vmatprep.mubr.bf16.mxu0 %v4751_v56  ;;  %v5104_v56 = vld [vmem:[%s6542_s1 + $0x100] sm:$0xff]  }
  0xa9   :  { %2116 = vmatmul.mubr.bf16.gmra.mrb[52].mxu1 %v4752_v57  ;;  %v4841_v57 = vld [vmem:[%s6543_s0 + $0x50] ss:$36 sps:$4 sm:$0xff]  }
  0xaa   :  { %2708 = vmatmul.mubr.bf16.vlgmr.msra.gmra.mrb[0].mxu0 %v4749_v58  ;;  %2123 = vmatprep.mubr.bf16.mxu1 %v4755_v59  ;;  %v4842_v58 = vld [vmem:[%s6543_s0 + $0x3c0] ss:$36 sps:$4 sm:$0xff]  }
  0xab   :  { %4065 = vmatpush3.bf16.msra.mxu0 %v4753_v60  ;;  %2715 = vmatprep.mubr.bf16.mxu0 %v4757_v61  ;;  %v4843_v59 = vld [vmem:[%s6543_s0 + $0x9c] ss:$36 sps:$4 sm:$0xff]   ;;  %v4845_v60 = vld [vmem:[%s6543_s0 + $0x40c] ss:$36 sps:$4 sm:$0xff]  }
  0xac   :  { %4066 = vmatprep.subr.bf16.mxu0 %v5122_v38  ;;  %v5105_v61 = vld [vmem:[%s6542_s1 + $0x108] sm:$0xff]  }
  0xaf   :  { %4067 = vmatpush3.bf16.msra.mxu0 %v4774_v63  ;;  %v4847_v63 = vld [vmem:[%s6543_s0 + $0x98] ss:$36 sps:$4 sm:$0xff]  }
  0xb0   :  { %4068 = vmatprep.subr.bf16.mxu0 %v5122_v38 }
  0xb1   :  { %2124 = vmatmul.mubr.bf16.gmra.mrb[56].mxu1 %v4759_v62  ;;  %v5106_v62 = vld [vmem:[%s6542_s1 + $0x110] sm:$0xff]  }
  0xb2   :  { %2716 = vmatmul.mubr.bf16.gmra.mrb[4].mxu0 %v4760_v1  ;;  %2131 = vmatprep.mubr.bf16.mxu1 %v4761_v2  ;;  %v4848_v1 = vld [vmem:[%s6543_s0 + $0x408] ss:$36 sps:$4 sm:$0xff]  }
  0xb3   :  { %2723 = vmatprep.mubr.bf16.mxu0 %v4763_v3  ;;  %4069 = vmatpush3.bf16.msra.mxu0 %v4795_v4  ;;  %v4849_v2 = vld [vmem:[%s6543_s0 + $0xe4] ss:$36 sps:$4 sm:$0xff]   ;;  %v4851_v3 = vld [vmem:[%s6543_s0 + $0x454] ss:$36 sps:$4 sm:$0xff]  }
  0xb4   :  { %4070 = vmatprep.subr.bf16.mxu0 %v5122_v38  ;;  %v5107_v4 = vld [vmem:[%s6542_s1 + $0x118] sm:$0xff]  }
  0xb7   :  { %4071 = vmatpush3.bf16.msra.mxu0 %v4816_v6  ;;  %v4853_v6 = vld [vmem:[%s6543_s0 + $0xe0] ss:$36 sps:$4 sm:$0xff]  }
  0xb8   :  { %4072 = vmatprep.subr.bf16.mxu0 %v5122_v38 }
  0xb9   :  { %2132 = vmatmul.mubr.bf16.gmra.mrb[60].mxu1 %v4765_v5  ;;  %v5108_v5 = vld [vmem:[%s6542_s1 + $0x120] sm:$0xff]  }
  0xba   :  { %2724 = vmatmul.mubr.bf16.gmra.mrb[8].mxu0 %v4767_v7  ;;  %2139 = vmatprep.mubr.bf16.mxu1 %v4768_v8  ;;  %v4854_v7 = vld [vmem:[%s6543_s0 + $0x450] ss:$36 sps:$4 sm:$0xff]  }
  0xbb   :  { %2731 = vmatprep.mubr.bf16.mxu0 %v4770_v9  ;;  %4073 = vmatpush3.bf16.msra.mxu0 %v4836_v10  ;;  %v4856_v8 = vld [vmem:[%s6543_s0 + $0x12c] ss:$36 sps:$4 sm:$0xff]   ;;  %v4858_v9 = vld [vmem:[%s6543_s0 + $0x49c] ss:$36 sps:$4 sm:$0xff]  }
  0xbc   :  { %4074 = vmatprep.subr.bf16.mxu0 %v5122_v38  ;;  %v5109_v10 = vld [vmem:[%s6542_s1 + $0x128] sm:$0xff]  }
  0xbf   :  { %4075 = vmatpush3.bf16.msra.mxu0 %v4855_v12  ;;  %v4860_v12 = vld [vmem:[%s6543_s0 + $0x128] ss:$36 sps:$4 sm:$0xff]  }
  0xc0   :  { %4076 = vmatprep.subr.bf16.mxu0 %v5122_v38 }
  0xc1   :  { %2140 = vmatmul.mubr.bf16.gmra.mrb[64].mxu1 %v4772_v11  ;;  %v5110_v11 = vld [vmem:[%s6542_s1 + $0x130] sm:$0xff]  }
  0xc2   :  { %2732 = vmatmul.mubr.bf16.gmra.mrb[12].mxu0 %v4773_v13  ;;  %2147 = vmatprep.mubr.bf16.mxu1 %v4776_v14  ;;  %v4861_v13 = vld [vmem:[%s6543_s0 + $0x498] ss:$36 sps:$4 sm:$0xff]  }
  0xc3   :  { %2739 = vmatprep.mubr.bf16.mxu0 %v4778_v15  ;;  %4077 = vmatpush3.bf16.msra.mxu0 %v4878_v16  ;;  %v4862_v14 = vld [vmem:[%s6543_s0 + $0x174] ss:$36 sps:$4 sm:$0xff]   ;;  %v4864_v15 = vld [vmem:[%s6543_s0 + $0x4e4] ss:$36 sps:$4 sm:$0xff]  }
  0xc4   :  { %4078 = vmatprep.subr.bf16.mxu0 %v5122_v38  ;;  %v5111_v16 = vld [vmem:[%s6542_s1 + $0x138] sm:$0xff]  }
  0xc7   :  { %4079 = vmatpush3.bf16.msra.mxu0 %v4899_v29  ;;  %v5116_v29 = vld [vmem:[%s6542_s1 + $0x160] sm:$0xff]  }
  0xc9   :  { %2148 = vmatmul.mubr.bf16.gmra.mrb[68].mxu1 %v4780_v17  ;;  %v5112_v17 = vld [vmem:[%s6542_s1 + $0x140] sm:$0xff]  }
  0xca   :  { %2740 = vmatmul.mubr.bf16.gmra.mrb[16].mxu0 %v4781_v18  ;;  %2155 = vmatprep.mubr.bf16.mxu1 %v4782_v19  ;;  %v4866_v18 = vld [vmem:[%s6543_s0 + $0x170] ss:$36 sps:$4 sm:$0xff]   ;;  %v4867_v19 = vld [vmem:[%s6543_s0 + $0x4e0] ss:$36 sps:$4 sm:$0xff]  }
  0xcb   :  { %2747 = vmatprep.mubr.bf16.mxu0 %v4784_v20  ;;  %v4868_v20 = vld [vmem:[%s6543_s0 + $0x1bc] ss:$36 sps:$4 sm:$0xff]  }
  0xd1   :  { %2156 = vmatmul.mubr.bf16.gmra.mrb[72].mxu1 %v4786_v21  ;;  %v4870_v21 = vld [vmem:[%s6543_s0 + $0x52c] ss:$36 sps:$4 sm:$0xff]  }
  0xd2   :  { %2748 = vmatmul.mubr.bf16.gmra.mrb[20].mxu0 %v4787_v22  ;;  %2163 = vmatprep.mubr.bf16.mxu1 %v4789_v23  ;;  %v5113_v22 = vld [vmem:[%s6542_s1 + $0x148] sm:$0xff]   ;;  %v5114_v23 = vld [vmem:[%s6542_s1 + $0x150] sm:$0xff]  }
  0xd3   :  { %2755 = vmatprep.mubr.bf16.mxu0 %v4791_v24  ;;  %v4872_v24 = vld [vmem:[%s6543_s0 + $0x1b8] ss:$36 sps:$4 sm:$0xff]  }
  0xd9   :  { %2164 = vmatmul.mubr.bf16.gmra.mrb[76].mxu1 %v4793_v25  ;;  %v4873_v25 = vld [vmem:[%s6543_s0 + $0x528] ss:$36 sps:$4 sm:$0xff]  }
  0xda   :  { %2756 = vmatmul.mubr.bf16.gmra.mrb[24].mxu0 %v4794_v26  ;;  %2171 = vmatprep.mubr.bf16.mxu1 %v4797_v27  ;;  %v4874_v26 = vld [vmem:[%s6543_s0 + $0x204] ss:$36 sps:$4 sm:$0xff]   ;;  %v4876_v27 = vld [vmem:[%s6543_s0 + $0x574] ss:$36 sps:$4 sm:$0xff]  }
  0xdb   :  { %2763 = vmatprep.mubr.bf16.mxu0 %v4799_v28  ;;  %v5115_v28 = vld [vmem:[%s6542_s1 + $0x158] sm:$0xff]  }
  0xe1   :  { %2172 = vmatmul.mubr.bf16.gmra.mrb[80].mxu1 %v4801_v30  ;;  %v4879_v30 = vld [vmem:[%s6543_s0 + $0x200] ss:$36 sps:$4 sm:$0xff]  }
  0xe2   :  { %2764 = vmatmul.mubr.bf16.gmra.mrb[28].mxu0 %v4802_v31  ;;  %2179 = vmatprep.mubr.bf16.mxu1 %v4803_v32  ;;  %v4880_v31 = vld [vmem:[%s6543_s0 + $0x570] ss:$36 sps:$4 sm:$0xff]  }
  0xe3   :  { %2771 = vmatprep.mubr.bf16.mxu0 %v4805_v33  ;;  %v4881_v32 = vld [vmem:[%s6543_s0 + $0x24c] ss:$36 sps:$4 sm:$0xff]   ;;  %v4883_v33 = vld [vmem:[%s6543_s0 + $0x5bc] ss:$36 sps:$4 sm:$0xff]  }
  0xe9   :  { %2180 = vmatmul.mubr.bf16.gmra.mrb[84].mxu1 %v4807_v34  ;;  %v5117_v34 = vld [vmem:[%s6542_s1 + $0x168] sm:$0xff]  }
  0xea   :  { %2772 = vmatmul.mubr.bf16.gmra.mrb[32].mxu0 %v4808_v35  ;;  %2187 = vmatprep.mubr.bf16.mxu1 %v4810_v36  ;;  %v5118_v35 = vld [vmem:[%s6542_s1 + $0x170] sm:$0xff]   ;;  %v4885_v36 = vld [vmem:[%s6543_s0 + $0x248] ss:$36 sps:$4 sm:$0xff]  }
  0xeb   :  { %2779 = vmatprep.mubr.bf16.mxu0 %v4812_v37  ;;  %v4886_v37 = vld [vmem:[%s6543_s0 + $0x5b8] ss:$36 sps:$4 sm:$0xff]  }
  0xf1   :  { %2188 = vmatmul.mubr.bf16.gmra.mrb[88].mxu1 %v4814_v39  ;;  %v4887_v39 = vld [vmem:[%s6543_s0 + $0x294] ss:$36 sps:$4 sm:$0xff]  }
  0xf2   :  { %2780 = vmatmul.mubr.bf16.gmra.mrb[36].mxu0 %v4815_v40  ;;  %2195 = vmatprep.mubr.bf16.mxu1 %v4818_v41  ;;  %v4889_v40 = vld [vmem:[%s6543_s0 + $0x604] ss:$36 sps:$4 sm:$0xff]   ;;  %v4891_v41 = vld [vmem:[%s6543_s0 + $0x290] ss:$36 sps:$4 sm:$0xff]  }
  0xf3   :  { %2787 = vmatprep.mubr.bf16.mxu0 %v4820_v42  ;;  %v4892_v42 = vld [vmem:[%s6543_s0 + $0x600] ss:$36 sps:$4 sm:$0xff]  }
  0xf9   :  { %2196 = vmatmul.mubr.bf16.gmra.mrb[92].mxu1 %v4822_v44  ;;  %v4895_v44 = vld [vmem:[%s6543_s0 + $0x64c] ss:$36 sps:$4 sm:$0xff]  }
  0xfa   :  { %2788 = vmatmul.mubr.bf16.gmra.mrb[40].mxu0 %v4823_v45  ;;  %2203 = vmatprep.mubr.bf16.mxu1 %v3853_v46  ;;  %v4897_v45 = vld [vmem:[%s6543_s0 + $0x2d8] ss:$36 sps:$4 sm:$0xff]   ;;  %v4898_v46 = vld [vmem:[%s6543_s0 + $0x648] ss:$36 sps:$4 sm:$0xff]  }
  0xfb   :  { %2795 = vmatprep.mubr.bf16.mxu0 %v4825_v47  ;;  %v4900_v47 = vld [vmem:[%s6543_s0 + $0x324] ss:$36 sps:$4 sm:$0xff]  }
 0x101   :  { %2204 = vmatmul.mubr.bf16.gmra.mrb[96].mxu1 %v3852_v48  ;;  %v4902_v48 = vld [vmem:[%s6543_s0 + $0x694] ss:$36 sps:$4 sm:$0xff]  }
 0x102   :  { %2796 = vmatmul.mubr.bf16.gmra.mrb[44].mxu0 %v4828_v49  ;;  %2243 = vmatprep.mubr.bf16.mxu1 %v4832_v50  ;;  %v258_v49 = vld [vmem:[%s6543_s0 + $0x6d8] sm:$0xff]  ;;  %v4904_v50 = vld [vmem:[%s6543_s0 + $0x320] ss:$36 sps:$4 sm:$0xff]  }
 0x103   :  { %2803 = vmatprep.mubr.bf16.mxu0 %v4833_v51  ;;  %v4905_v51 = vld [vmem:[%s6543_s0 + $0x690] ss:$36 sps:$4 sm:$0xff]  }
 0x109   :  { %2244 = vmatmul.mubr.bf16.vlgmr.msra.gmra.mrb[0].mxu1 %v4830_v52  ;;  %v4906_v52 = vld [vmem:[%s6543_s0 + $0x36c] ss:$36 sps:$4 sm:$0xff]  }
 0x10a   :  { %2804 = vmatmul.mubr.bf16.gmra.mrb[48].mxu0 %v4835_v53  ;;  %2251 = vmatprep.mubr.bf16.mxu1 %v4837_v54  ;;  %v3859_v53 = vcombine.high %v258_v49, %v258_v49  ;;  %v4909_v54 = vld [vmem:[%s6543_s0 + $0x368] ss:$36 sps:$4 sm:$0xff]  }
 0x10b   :  { %4196 = vmatpush1.bf16.msra.mxu1 %v5104_v56  ;;  %2811 = vmatprep.mubr.bf16.mxu0 %v4839_v55  ;;  %v3858_v55 = vcombine.low %v258_v49, %v258_v49  ;;  %v4911_v56 = vld [vmem:[%s6543_s0 + $0x3b4] ss:$36 sps:$4 sm:$0xff]   ;;  %v4974_v49 = vld [vmem:[%s6543_s0 + $0x4dc] ss:$36 sps:$4 sm:$0xff]  }
 0x10c   :  { %4181 = vmatprep.subr.bf16.mxu1 %v5121_v0 }
 0x10f   :  { %4197 = vmatpush1.bf16.msra.mxu1 %v5105_v61  ;;  %v4918_v61 = vld [vmem:[%s6543_s0 + $0x68] ss:$36 sps:$4 sm:$0xff]  }
 0x110   :  { %4182 = vmatprep.subr.bf16.mxu1 %v5121_v0 }
 0x111   :  { %2252 = vmatmul.mubr.bf16.gmra.mrb[4].mxu1 %v4841_v57  ;;  %v4913_v57 = vld [vmem:[%s6543_s0 + $0x3b0] ss:$36 sps:$4 sm:$0xff]  }
 0x112   :  { %2812 = vmatmul.mubr.bf16.gmra.mrb[52].mxu0 %v4842_v58  ;;  %2259 = vmatprep.mubr.bf16.mxu1 %v4843_v59  ;;  %v4914_v58 = vld [vmem:[%s6543_s0 + $0x20] ss:$36 sps:$4 sm:$0xff]  }
 0x113   :  { %2819 = vmatprep.mubr.bf16.mxu0 %v4845_v60  ;;  %4198 = vmatpush1.bf16.msra.mxu1 %v5106_v62  ;;  %v4915_v59 = vld [vmem:[%s6543_s0 + $0x3fc] ss:$36 sps:$4 sm:$0xff]   ;;  %v4919_v62 = vld [vmem:[%s6543_s0 + $0x444] ss:$36 sps:$4 sm:$0xff]  }
 0x114   :  { %4183 = vmatprep.subr.bf16.mxu1 %v5121_v0  ;;  %v4917_v60 = vld [vmem:[%s6543_s0 + $0x3f8] ss:$36 sps:$4 sm:$0xff]  }
 0x117   :  { %4199 = vmatpush1.bf16.msra.mxu1 %v5107_v4  ;;  %v4926_v4 = vld [vmem:[%s6543_s0 + $0xf8] ss:$36 sps:$4 sm:$0xff]  }
 0x118   :  { %4184 = vmatprep.subr.bf16.mxu1 %v5121_v0 }
 0x119   :  { %2260 = vmatmul.mubr.bf16.gmra.mrb[8].mxu1 %v4847_v63  ;;  %v4921_v63 = vld [vmem:[%s6543_s0 + $0x440] ss:$36 sps:$4 sm:$0xff]  }
 0x11a   :  { %2820 = vmatmul.mubr.bf16.gmra.mrb[56].mxu0 %v4848_v1  ;;  %2267 = vmatprep.mubr.bf16.mxu1 %v4849_v2  ;;  %v4922_v1 = vld [vmem:[%s6543_s0 + $0xb0] ss:$36 sps:$4 sm:$0xff]  }
 0x11b   :  { %2827 = vmatprep.mubr.bf16.mxu0 %v4851_v3  ;;  %4200 = vmatpush1.bf16.msra.mxu1 %v5108_v5  ;;  %v4923_v2 = vld [vmem:[%s6543_s0 + $0x48c] ss:$36 sps:$4 sm:$0xff]   ;;  %v4927_v5 = vld [vmem:[%s6543_s0 + $0x4d4] ss:$36 sps:$4 sm:$0xff]  }
 0x11c   :  { %4185 = vmatprep.subr.bf16.mxu1 %v5121_v0  ;;  %v4925_v3 = vld [vmem:[%s6543_s0 + $0x488] ss:$36 sps:$4 sm:$0xff]  }
 0x11f   :  { %4201 = vmatpush1.bf16.msra.mxu1 %v5109_v10  ;;  %v4934_v10 = vld [vmem:[%s6543_s0 + $0x188] ss:$36 sps:$4 sm:$0xff]  }
 0x120   :  { %4186 = vmatprep.subr.bf16.mxu1 %v5121_v0 }
 0x121   :  { %2268 = vmatmul.mubr.bf16.gmra.mrb[12].mxu1 %v4853_v6  ;;  %v4929_v6 = vld [vmem:[%s6543_s0 + $0x4d0] ss:$36 sps:$4 sm:$0xff]  }
 0x122   :  { %2828 = vmatmul.mubr.bf16.gmra.mrb[60].mxu0 %v4854_v7  ;;  %2275 = vmatprep.mubr.bf16.mxu1 %v4856_v8  ;;  %v4930_v7 = vld [vmem:[%s6543_s0 + $0x140] ss:$36 sps:$4 sm:$0xff]  }
 0x123   :  { %2835 = vmatprep.mubr.bf16.mxu0 %v4858_v9  ;;  %4202 = vmatpush1.bf16.msra.mxu1 %v5110_v11  ;;  %v4931_v8 = vld [vmem:[%s6543_s0 + $0x51c] ss:$36 sps:$4 sm:$0xff]   ;;  %v4935_v11 = vld [vmem:[%s6543_s0 + $0x564] ss:$36 sps:$4 sm:$0xff]  }
 0x124   :  { %4187 = vmatprep.subr.bf16.mxu1 %v5121_v0  ;;  %v4933_v9 = vld [vmem:[%s6543_s0 + $0x518] ss:$36 sps:$4 sm:$0xff]  }
 0x127   :  { %4203 = vmatpush1.bf16.msra.mxu1 %v5111_v16  ;;  %v4942_v16 = vld [vmem:[%s6543_s0 + $0x218] ss:$36 sps:$4 sm:$0xff]  }
 0x128   :  { %4188 = vmatprep.subr.bf16.mxu1 %v5121_v0 }
 0x129   :  { %2276 = vmatmul.mubr.bf16.gmra.mrb[16].mxu1 %v4860_v12  ;;  %v4937_v12 = vld [vmem:[%s6543_s0 + $0x560] ss:$36 sps:$4 sm:$0xff]  }
 0x12a   :  { %2836 = vmatmul.mubr.bf16.gmra.mrb[64].mxu0 %v4861_v13  ;;  %2283 = vmatprep.mubr.bf16.mxu1 %v4862_v14  ;;  %v4938_v13 = vld [vmem:[%s6543_s0 + $0x1d0] ss:$36 sps:$4 sm:$0xff]  }
 0x12b   :  { %2843 = vmatprep.mubr.bf16.mxu0 %v4864_v15  ;;  %4204 = vmatpush1.bf16.msra.mxu1 %v5112_v17  ;;  %v4939_v14 = vld [vmem:[%s6543_s0 + $0x5ac] ss:$36 sps:$4 sm:$0xff]   ;;  %v4943_v17 = vld [vmem:[%s6543_s0 + $0x5f4] ss:$36 sps:$4 sm:$0xff]  }
 0x12c   :  { %4189 = vmatprep.subr.bf16.mxu1 %v5121_v0  ;;  %v4941_v15 = vld [vmem:[%s6543_s0 + $0x5a8] ss:$36 sps:$4 sm:$0xff]  }
 0x12f   :  { %4205 = vmatpush1.bf16.msra.mxu1 %v5113_v22  ;;  %v4950_v22 = vld [vmem:[%s6543_s0 + $0x2a8] ss:$36 sps:$4 sm:$0xff]  }
 0x130   :  { %4190 = vmatprep.subr.bf16.mxu1 %v5121_v0 }
 0x131   :  { %2284 = vmatmul.mubr.bf16.gmra.mrb[20].mxu1 %v4866_v18  ;;  %v4945_v18 = vld [vmem:[%s6543_s0 + $0x5f0] ss:$36 sps:$4 sm:$0xff]  }
 0x132   :  { %2844 = vmatmul.mubr.bf16.gmra.mrb[68].mxu0 %v4867_v19  ;;  %2291 = vmatprep.mubr.bf16.mxu1 %v4868_v20  ;;  %v4946_v19 = vld [vmem:[%s6543_s0 + $0x260] ss:$36 sps:$4 sm:$0xff]  }
 0x133   :  { %2851 = vmatprep.mubr.bf16.mxu0 %v4870_v21  ;;  %4206 = vmatpush1.bf16.msra.mxu1 %v5114_v23  ;;  %v4947_v20 = vld [vmem:[%s6543_s0 + $0x63c] ss:$36 sps:$4 sm:$0xff]   ;;  %v4951_v23 = vld [vmem:[%s6543_s0 + $0x684] ss:$36 sps:$4 sm:$0xff]  }
 0x134   :  { %4191 = vmatprep.subr.bf16.mxu1 %v5121_v0  ;;  %v4949_v21 = vld [vmem:[%s6543_s0 + $0x638] ss:$36 sps:$4 sm:$0xff]  }
 0x137   :  { %4207 = vmatpush1.bf16.msra.mxu1 %v5115_v28 }
 0x138   :  { %4192 = vmatprep.subr.bf16.mxu1 %v5121_v0 }
 0x139   :  { %2292 = vmatmul.mubr.bf16.gmra.mrb[24].mxu1 %v4872_v24  ;;  %v256_v24 = vld [vmem:[%s6543_s0 + $0x6c8] sm:$0xff] }
 0x13a   :  { %2852 = vmatmul.mubr.bf16.gmra.mrb[72].mxu0 %v4873_v25  ;;  %2299 = vmatprep.mubr.bf16.mxu1 %v4874_v26  ;;  %v4953_v25 = vld [vmem:[%s6543_s0 + $0x680] ss:$36 sps:$4 sm:$0xff]   ;;  %v4954_v26 = vld [vmem:[%s6543_s0 + $0x2f0] ss:$36 sps:$4 sm:$0xff]   ;;  %v3854_v28 = vcombine.low %v256_v24, %v256_v24 }
 0x13b   :  { %2859 = vmatprep.mubr.bf16.mxu0 %v4876_v27  ;;  %4208 = vmatpush1.bf16.msra.mxu1 %v5116_v29  ;;  %v3855_v27 = vcombine.high %v256_v24, %v256_v24  ;;  %v4957_v29 = vld [vmem:[%s6543_s0 + $0x338] ss:$36 sps:$4 sm:$0xff]  }
 0x13c   :  { %4193 = vmatprep.subr.bf16.mxu1 %v5121_v0 }
 0x13f   :  { %4209 = vmatpush1.bf16.msra.mxu1 %v5117_v34  ;;  %v4964_v34 = vld [vmem:[%s6543_s0 + $0x400] ss:$36 sps:$4 sm:$0xff]  }
 0x140   :  { %4194 = vmatprep.subr.bf16.mxu1 %v5121_v0 }
 0x141   :  { %2300 = vmatmul.mubr.bf16.gmra.mrb[28].mxu1 %v4879_v30  ;;  %v4960_v30 = vld [vmem:[%s6543_s0 + $0x3bc] ss:$36 sps:$4 sm:$0xff]  }
 0x142   :  { %2860 = vmatmul.mubr.bf16.gmra.mrb[76].mxu0 %v4880_v31  ;;  %2307 = vmatprep.mubr.bf16.mxu1 %v4881_v32  ;;  %v4958_v31 = vld [vmem:[%s6543_s0 + $0x3b8] ss:$36 sps:$4 sm:$0xff]   ;;  %v4961_v32 = vld [vmem:[%s6543_s0 + $0x380] ss:$36 sps:$4 sm:$0xff]  }
 0x143   :  { %2867 = vmatprep.mubr.bf16.mxu0 %v4883_v33  ;;  %4210 = vmatpush1.bf16.msra.mxu1 %v5118_v35  ;;  %v4962_v33 = vld [vmem:[%s6543_s0 + $0x404] ss:$36 sps:$4 sm:$0xff]  }
 0x144   :  { %4195 = vmatprep.subr.bf16.mxu1 %v5121_v0  ;;  %v5119_v0 = vld [vmem:[%s6542_s1 + $0x178] sm:$0xff]   ;;  %v4965_v35 = vld [vmem:[%s6543_s0 + $0x3c8] ss:$36 sps:$4 sm:$0xff]  }
 0x147   :  { %4211 = vmatpush1.bf16.msra.mxu1 %v5119_v0 }
 0x149   :  { %2308 = vmatmul.mubr.bf16.gmra.mrb[32].mxu1 %v4885_v36  ;;  %v4966_v36 = vld [vmem:[%s6543_s0 + $0x44c] ss:$36 sps:$4 sm:$0xff]  }
 0x14a   :  { %2868 = vmatmul.mubr.bf16.gmra.mrb[80].mxu0 %v4886_v37  ;;  %2315 = vmatprep.mubr.bf16.mxu1 %v4887_v39 }
 0x14b   :  { %2875 = vmatprep.mubr.bf16.mxu0 %v4889_v40  ;;  %v4968_v40 = vld [vmem:[%s6543_s0 + $0x448] ss:$36 sps:$4 sm:$0xff]  }
 0x151   :  { %2316 = vmatmul.mubr.bf16.gmra.mrb[36].mxu1 %v4891_v41  ;;  %v4969_v41 = vld [vmem:[%s6543_s0 + $0x410] ss:$36 sps:$4 sm:$0xff]  }
 0x152   :  { %2876 = vmatmul.mubr.bf16.gmra.mrb[84].mxu0 %v4892_v42  ;;  %2323 = vmatprep.mubr.bf16.mxu1 %v4893_v43  ;;  %v4970_v42 = vld [vmem:[%s6543_s0 + $0x494] ss:$36 sps:$4 sm:$0xff]  }
 0x153   :  { %2883 = vmatprep.mubr.bf16.mxu0 %v4895_v44 }
 0x159   :  { %2324 = vmatmul.mubr.bf16.gmra.mrb[40].mxu1 %v4897_v45 }
 0x15a   :  { %2884 = vmatmul.mubr.bf16.gmra.mrb[88].mxu0 %v4898_v46  ;;  %2331 = vmatprep.mubr.bf16.mxu1 %v4900_v47  ;;  %v4972_v46 = vld [vmem:[%s6543_s0 + $0x490] ss:$36 sps:$4 sm:$0xff]  }
 0x15b   :  { %2891 = vmatprep.mubr.bf16.mxu0 %v4902_v48  ;;  %v4973_v48 = vld [vmem:[%s6543_s0 + $0x458] ss:$36 sps:$4 sm:$0xff]  }
 0x161   :  { %2332 = vmatmul.mubr.bf16.gmra.mrb[44].mxu1 %v4904_v50 }
 0x162   :  { %2892 = vmatmul.mubr.bf16.gmra.mrb[92].mxu0 %v4905_v51  ;;  %2339 = vmatprep.mubr.bf16.mxu1 %v4906_v52 }
 0x163   :  { %2899 = vmatprep.mubr.bf16.mxu0 %v3859_v53  ;;  %v4976_v53 = vld [vmem:[%s6543_s0 + $0x4d8] ss:$36 sps:$4 sm:$0xff]  }
 0x169   :  { %2340 = vmatmul.mubr.bf16.gmra.mrb[48].mxu1 %v4909_v54 }
 0x16a   :  { %2900 = vmatmul.mubr.bf16.gmra.mrb[96].mxu0 %v3858_v55  ;;  %2347 = vmatprep.mubr.bf16.mxu1 %v4911_v56  ;;  %v4977_v55 = vld [vmem:[%s6543_s0 + $0x4a0] ss:$36 sps:$4 sm:$0xff]  }
 0x16b   :  { %4080 = vmatprep.mubr.msk.bf16.mxu0 %vm5123_vm0, %v5122_v38  ;;  %v4978_v56 = vld [vmem:[%s6543_s0 + $0x524] ss:$36 sps:$4 sm:$0xff]  }
 0x171   :  { %2348 = vmatmul.mubr.bf16.gmra.mrb[52].mxu1 %v4913_v57 }
 0x172   :  { %4081 = vmatmul.mubr.bf16.vlgmr.msra.gmra.mrb[0].mxu0 %v4914_v58  ;;  %2355 = vmatprep.mubr.bf16.mxu1 %v4915_v59 }
 0x173   :  { %4084 = vmatprep.mubr.msk.bf16.mxu0 %vm5123_vm0, %v5122_v38 }
 0x179   :  { %2356 = vmatmul.mubr.bf16.gmra.mrb[56].mxu1 %v4917_v60  ;;  %v4980_v60 = vld [vmem:[%s6543_s0 + $0x520] ss:$36 sps:$4 sm:$0xff]  }
 0x17a   :  { %4085 = vmatmul.mubr.bf16.gmra.mrb[4].mxu0 %v4918_v61  ;;  %2363 = vmatprep.mubr.bf16.mxu1 %v4919_v62  ;;  %v4981_v62 = vld [vmem:[%s6543_s0 + $0x4e8] ss:$36 sps:$4 sm:$0xff]  }
 0x17b   :  { %4088 = vmatprep.mubr.msk.bf16.mxu0 %vm5123_vm0, %v5122_v38 }
 0x181   :  { %2364 = vmatmul.mubr.bf16.gmra.mrb[60].mxu1 %v4921_v63  ;;  %v4982_v63 = vld [vmem:[%s6543_s0 + $0x56c] ss:$36 sps:$4 sm:$0xff]  }
 0x182   :  { %4089 = vmatmul.mubr.bf16.gmra.mrb[8].mxu0 %v4922_v1  ;;  %2371 = vmatprep.mubr.bf16.mxu1 %v4923_v2 }
 0x183   :  { %4092 = vmatprep.mubr.msk.bf16.mxu0 %vm5123_vm0, %v5122_v38 }
 0x189   :  { %2372 = vmatmul.mubr.bf16.gmra.mrb[64].mxu1 %v4925_v3 }
 0x18a   :  { %4093 = vmatmul.mubr.bf16.gmra.mrb[12].mxu0 %v4926_v4  ;;  %2379 = vmatprep.mubr.bf16.mxu1 %v4927_v5  ;;  %v4984_v4 = vld [vmem:[%s6543_s0 + $0x568] ss:$36 sps:$4 sm:$0xff]  }
 0x18b   :  { %4096 = vmatprep.mubr.msk.bf16.mxu0 %vm5123_vm0, %v5122_v38 }
 0x191   :  { %2380 = vmatmul.mubr.bf16.gmra.mrb[68].mxu1 %v4929_v6  ;;  %v4985_v6 = vld [vmem:[%s6543_s0 + $0x530] ss:$36 sps:$4 sm:$0xff]  }
 0x192   :  { %4097 = vmatmul.mubr.bf16.gmra.mrb[16].mxu0 %v4930_v7  ;;  %2387 = vmatprep.mubr.bf16.mxu1 %v4931_v8  ;;  %v4986_v7 = vld [vmem:[%s6543_s0 + $0x5b4] ss:$36 sps:$4 sm:$0xff]  }
 0x193   :  { %4100 = vmatprep.mubr.msk.bf16.mxu0 %vm5123_vm0, %v5122_v38 }
 0x199   :  { %2388 = vmatmul.mubr.bf16.gmra.mrb[72].mxu1 %v4933_v9 }
 0x19a   :  { %4101 = vmatmul.mubr.bf16.gmra.mrb[20].mxu0 %v4934_v10  ;;  %2395 = vmatprep.mubr.bf16.mxu1 %v4935_v11  ;;  %v4988_v11 = vld [vmem:[%s6543_s0 + $0x5b0] ss:$36 sps:$4 sm:$0xff]  }
 0x19b   :  { %4104 = vmatprep.mubr.msk.bf16.mxu0 %vm5123_vm0, %v5122_v38 }
 0x1a1   :  { %2396 = vmatmul.mubr.bf16.gmra.mrb[76].mxu1 %v4937_v12 }
 0x1a2   :  { %4105 = vmatmul.mubr.bf16.gmra.mrb[24].mxu0 %v4938_v13  ;;  %2403 = vmatprep.mubr.bf16.mxu1 %v4939_v14  ;;  %v4989_v13 = vld [vmem:[%s6543_s0 + $0x578] ss:$36 sps:$4 sm:$0xff]  }
 0x1a3   :  { %4108 = vmatprep.mubr.msk.bf16.mxu0 %vm5123_vm0, %v5122_v38  ;;  %v4990_v14 = vld [vmem:[%s6543_s0 + $0x5fc] ss:$36 sps:$4 sm:$0xff]  }
 0x1a9   :  { %2404 = vmatmul.mubr.bf16.gmra.mrb[80].mxu1 %v4941_v15 }
 0x1aa   :  { %4109 = vmatmul.mubr.bf16.gmra.mrb[28].mxu0 %v4942_v16  ;;  %2411 = vmatprep.mubr.bf16.mxu1 %v4943_v17 }
 0x1ab   :  { %4112 = vmatprep.mubr.msk.bf16.mxu0 %vm5123_vm0, %v5122_v38 }
 0x1b1   :  { %2412 = vmatmul.mubr.bf16.gmra.mrb[84].mxu1 %v4945_v18  ;;  %v4992_v18 = vld [vmem:[%s6543_s0 + $0x5f8] ss:$36 sps:$4 sm:$0xff]  }
 0x1b2   :  { %4113 = vmatmul.mubr.bf16.gmra.mrb[32].mxu0 %v4946_v19  ;;  %2419 = vmatprep.mubr.bf16.mxu1 %v4947_v20  ;;  %v4993_v20 = vld [vmem:[%s6543_s0 + $0x5c0] ss:$36 sps:$4 sm:$0xff]  }
 0x1b3   :  { %4116 = vmatprep.mubr.msk.bf16.mxu0 %vm5123_vm0, %v5122_v38 }
 0x1b9   :  { %2420 = vmatmul.mubr.bf16.gmra.mrb[88].mxu1 %v4949_v21  ;;  %v4994_v21 = vld [vmem:[%s6543_s0 + $0x644] ss:$36 sps:$4 sm:$0xff]  }
 0x1ba   :  { %4117 = vmatmul.mubr.bf16.gmra.mrb[36].mxu0 %v4950_v22  ;;  %2427 = vmatprep.mubr.bf16.mxu1 %v4951_v23 }
 0x1bb   :  { %4120 = vmatprep.mubr.msk.bf16.mxu0 %vm5123_vm0, %v5122_v38 }
 0x1c1   :  { %2428 = vmatmul.mubr.bf16.gmra.mrb[92].mxu1 %v4953_v25  ;;  %v4996_v25 = vld [vmem:[%s6543_s0 + $0x640] ss:$36 sps:$4 sm:$0xff]  }
 0x1c2   :  { %4121 = vmatmul.mubr.bf16.gmra.mrb[40].mxu0 %v4954_v26  ;;  %2435 = vmatprep.mubr.bf16.mxu1 %v3855_v27  ;;  %v4997_v27 = vld [vmem:[%s6543_s0 + $0x608] ss:$36 sps:$4 sm:$0xff]  }
 0x1c3   :  { %4124 = vmatprep.mubr.msk.bf16.mxu0 %vm5123_vm0, %v5122_v38 }
 0x1c9   :  { %2436 = vmatmul.mubr.bf16.gmra.mrb[96].mxu1 %v3854_v28  ;;  %v4998_v28 = vld [vmem:[%s6543_s0 + $0x68c] ss:$36 sps:$4 sm:$0xff]  }
 0x1ca   :  { %4125 = vmatmul.mubr.bf16.gmra.mrb[44].mxu0 %v4957_v29  ;;  %2579 = vmatprep.mubr.bf16.mxu1 %v4960_v30  ;;  %v257_v30 = vld [vmem:[%s6543_s0 + $0x6d0] sm:$0xff] }
 0x1cb   :  { %4128 = vmatprep.mubr.msk.bf16.mxu0 %vm5123_vm0, %v5122_v38 }
 0x1d1   :  { %2580 = vmatmul.mubr.bf16.vlgmr.msra.gmra.mrb[52].mxu1 %v4958_v31 }
 0x1d2   :  { %4129 = vmatmul.mubr.bf16.gmra.mrb[48].mxu0 %v4961_v32  ;;  %2587 = vmatprep.mubr.bf16.mxu1 %v4962_v33  ;;  %v5000_v33 = vld [vmem:[%s6543_s0 + $0x688] ss:$36 sps:$4 sm:$0xff]  }
 0x1d3   :  { %4132 = vmatprep.mubr.msk.bf16.mxu0 %vm5123_vm0, %v5122_v38 }
 0x1d9   :  { %2588 = vmatmul.mubr.bf16.gmra.mrb[56].mxu1 %v4964_v34 }
 0x1da   :  { %4133 = vmatmul.mubr.bf16.gmra.mrb[52].mxu0 %v4965_v35  ;;  %2595 = vmatprep.mubr.bf16.mxu1 %v4966_v36  ;;  %v5001_v35 = vld [vmem:[%s6543_s0 + $0x650] ss:$36 sps:$4 sm:$0xff]   ;;  %v3857_v36 = vcombine.high %v257_v30, %v257_v30 }
 0x1db   :  { %4136 = vmatprep.mubr.msk.bf16.mxu0 %vm5123_vm0, %v5122_v38 }
 0x1dc   :  { %v6102_v37 = vpop.f32.mrb[0].mxu1 }
 0x1dd   :  { %v2247_v39 = vpop.f32.mrb[1].mxu1 }
 0x1de   :  { %v6107_v0 = vpop.f32.mrb[2].mxu1 }
 0x1df   :  { %v2250_v43 = vpop.f32.mrb[3].mxu1 }
 0x1e1   :  { %2596 = vmatmul.mubr.bf16.gmra.mrb[60].mxu1 %v4968_v40 }
 0x1e2   :  { %4137 = vmatmul.mubr.bf16.gmra.mrb[56].mxu0 %v4969_v41  ;;  %2603 = vmatprep.mubr.bf16.mxu1 %v4970_v42  ;;  %v3856_v42 = vcombine.low %v257_v30, %v257_v30 }
 0x1e3   :  { %4140 = vmatprep.mubr.msk.bf16.mxu0 %vm5123_vm0, %v5122_v38 }
 0x1e4   :  { %v6117_v44 = vpop.f32.mrb[4].mxu1 }
 0x1e5   :  { %v2255_v45 = vpop.f32.mrb[5].mxu1 }
 0x1e6   :  { %v6122_v47 = vpop.f32.mrb[6].mxu1  ;;  %v5004_v45 = vld [vmem:[%s6543_s0 + $0x698] ss:$36 sps:$4 sm:$0xff]  }
 0x1e7   :  { %v2258_v50 = vpop.f32.mrb[7].mxu1 }
 0x1e9   :  { %2604 = vmatmul.mubr.bf16.gmra.mrb[64].mxu1 %v4972_v46 }
 0x1ea   :  { %4141 = vmatmul.mubr.bf16.gmra.mrb[60].mxu0 %v4973_v48  ;;  %2611 = vmatprep.mubr.bf16.mxu1 %v4974_v49 }
 0x1eb   :  { %4144 = vmatprep.mubr.msk.bf16.mxu0 %vm5123_vm0, %v5122_v38 }
 0x1ec   :  { %v6132_v51 = vpop.f32.mrb[8].mxu1 }
 0x1ed   :  { %v2263_v52 = vpop.f32.mrb[9].mxu1 }
 0x1ee   :  { %v6137_v54 = vpop.f32.mrb[10].mxu1  ;;  %v5005_v52 = vld [vmem:[%s6543_s0 + $0x6e0] ss:$0 sps:$4 sm:$0xff]  }
 0x1ef   :  { %v2266_v57 = vpop.f32.mrb[11].mxu1 }
 0x1f1   :  { %2612 = vmatmul.mubr.bf16.gmra.mrb[68].mxu1 %v4976_v53 }
 0x1f2   :  { %4145 = vmatmul.mubr.bf16.gmra.mrb[64].mxu0 %v4977_v55  ;;  %2619 = vmatprep.mubr.bf16.mxu1 %v4978_v56 }
 0x1f3   :  { %4148 = vmatprep.mubr.msk.bf16.mxu0 %vm5123_vm0, %v5122_v38 }
 0x1f4   :  { %v6147_v58 = vpop.f32.mrb[12].mxu1 }
 0x1f5   :  { %v2271_v59 = vpop.f32.mrb[13].mxu1 }
 0x1f6   :  { %v6152_v61 = vpop.f32.mrb[14].mxu1 }
 0x1f7   :  { %v2274_v1 = vpop.f32.mrb[15].mxu1 }
 0x1f8   :  { %v6264_v1 = vld [vmem:[%s6544_s2] ss:$0 sm:$0xff] }
 0x1f9   :  { %2620 = vmatmul.mubr.bf16.gmra.mrb[72].mxu1 %v4980_v60 }
 0x1fa   :  { %4149 = vmatmul.mubr.bf16.gmra.mrb[68].mxu0 %v4981_v62  ;;  %2627 = vmatprep.mubr.bf16.mxu1 %v4982_v63 }
 0x1fb   :  { %4152 = vmatprep.mubr.msk.bf16.mxu0 %vm5123_vm0, %v5122_v38 }
 0x1fc   :  { %v6162_v2 = vpop.f32.mrb[16].mxu1 }
 0x1fd   :  { %v2279_v3 = vpop.f32.mrb[17].mxu1 }
 0x1fe   :  { %v6167_v5 = vpop.f32.mrb[18].mxu1  ;;  %v4212_v3 = vadd.f32 %v6264_v1, %v6102_v37  ;;  %v4218_v37 = vadd.f32 %v6264_v1, %v6122_v47  ;;  %v4222_v47 = vadd.f32 %v6264_v1, %v6137_v54 }
 0x1ff   :  { %v2282_v8 = vpop.f32.mrb[19].mxu1 }
 0x201   :  { %2628 = vmatmul.mubr.bf16.gmra.mrb[76].mxu1 %v4984_v4 }
 0x202   :  { %4153 = vmatmul.mubr.bf16.gmra.mrb[72].mxu0 %v4985_v6  ;;  %2635 = vmatprep.mubr.bf16.mxu1 %v4986_v7  ;;  %v4214_v6 = vadd.f32 %v6264_v1, %v6107_v0 }
 0x203   :  { %4156 = vmatprep.mubr.msk.bf16.mxu0 %vm5123_vm0, %v5122_v38 }
 0x204   :  { %v6177_v9 = vpop.f32.mrb[20].mxu1 }
 0x205   :  { %v2287_v10 = vpop.f32.mrb[21].mxu1 }
 0x206   :  { %v6182_v12 = vpop.f32.mrb[22].mxu1 }
 0x207   :  { %v2290_v15 = vpop.f32.mrb[23].mxu1 }
 0x209   :  { %2636 = vmatmul.mubr.bf16.gmra.mrb[80].mxu1 %v4988_v11 }
 0x20a   :  { %4157 = vmatmul.mubr.bf16.gmra.mrb[76].mxu0 %v4989_v13  ;;  %2643 = vmatprep.mubr.bf16.mxu1 %v4990_v14 }
 0x20b   :  { %4160 = vmatprep.mubr.msk.bf16.mxu0 %vm5123_vm0, %v5122_v38 }
 0x20c   :  { %v6192_v16 = vpop.f32.mrb[24].mxu1 }
 0x20d   :  { %v2295_v17 = vpop.f32.mrb[25].mxu1 }
 0x20e   :  { %v6197_v19 = vpop.f32.mrb[26].mxu1  ;;  %v4216_v17 = vadd.f32 %v6264_v1, %v6117_v44 }
 0x20f   :  { %v2298_v22 = vpop.f32.mrb[27].mxu1 }
 0x211   :  { %2644 = vmatmul.mubr.bf16.gmra.mrb[84].mxu1 %v4992_v18 }
 0x212   :  { %4161 = vmatmul.mubr.bf16.gmra.mrb[80].mxu0 %v4993_v20  ;;  %2651 = vmatprep.mubr.bf16.mxu1 %v4994_v21 }
 0x213   :  { %4164 = vmatprep.mubr.msk.bf16.mxu0 %vm5123_vm0, %v5122_v38 }
 0x214   :  { %v6207_v23 = vpop.f32.mrb[28].mxu1 }
 0x215   :  { %v2303_v24 = vpop.f32.mrb[29].mxu1 }
 0x216   :  { %v6212_v26 = vpop.f32.mrb[30].mxu1 }
 0x217   :  { %v2306_v29 = vpop.f32.mrb[31].mxu1 }
 0x218   :  { %v4220_v29 = vadd.f32 %v6264_v1, %v6132_v51 }
 0x219   :  { %2652 = vmatmul.mubr.bf16.gmra.mrb[88].mxu1 %v4996_v25 }
 0x21a   :  { %4165 = vmatmul.mubr.bf16.gmra.mrb[84].mxu0 %v4997_v27  ;;  %2659 = vmatprep.mubr.bf16.mxu1 %v4998_v28 }
 0x21b   :  { %4168 = vmatprep.mubr.msk.bf16.mxu0 %vm5123_vm0, %v5122_v38 }
 0x21c   :  { %v6225_v31 = vpop.f32.mrb[32].mxu1 }
 0x21d   :  { %v2311_v32 = vpop.f32.mrb[33].mxu1 }
 0x21e   :  { %v6230_v34 = vpop.f32.mrb[34].mxu1 }
 0x21f   :  { %v2314_v39 = vpop.f32.mrb[35].mxu1 }
 0x221   :  { %2660 = vmatmul.mubr.bf16.gmra.mrb[92].mxu1 %v5000_v33 }
 0x222   :  { %4169 = vmatmul.mubr.bf16.gmra.mrb[88].mxu0 %v5001_v35  ;;  %2667 = vmatprep.mubr.bf16.mxu1 %v3857_v36 }
 0x223   :  { %4172 = vmatprep.mubr.msk.bf16.mxu0 %vm5123_vm0, %v5122_v38 }
 0x224   :  { %v6237_v40 = vpop.f32.mrb[36].mxu1 }
 0x225   :  { %v2319_v41 = vpop.f32.mrb[37].mxu1 }
 0x226   :  { %v6239_v43 = vpop.f32.mrb[38].mxu1 }
 0x227   :  { %v2322_v46 = vpop.f32.mrb[39].mxu1 }
 0x229   :  { %2668 = vmatmul.mubr.bf16.gmra.mrb[96].mxu1 %v3856_v42 }
 0x22a   :  { %4173 = vmatmul.mubr.bf16.gmra.mrb[92].mxu0 %v5004_v45 }
 0x22b   :  { %4176 = vmatprep.mubr.msk.bf16.mxu0 %vm5123_vm0, %v5122_v38 }
 0x22c   :  { %v6246_v48 = vpop.f32.mrb[40].mxu1 }
 0x22d   :  { %v2327_v49 = vpop.f32.mrb[41].mxu1 }
 0x22e   :  { %v6248_v50 = vpop.f32.mrb[42].mxu1 }
 0x22f   :  { %v2330_v53 = vpop.f32.mrb[43].mxu1 }
 0x232   :  { %4177 = vmatmul.mubr.bf16.gmra.mrb[96].mxu0 %v5005_v52 }
 0x234   :  { %v6253_v55 = vpop.f32.mrb[44].mxu1 }
 0x235   :  { %v2335_v56 = vpop.f32.mrb[45].mxu1 }
 0x236   :  { %v6255_v57 = vpop.f32.mrb[46].mxu1 }
 0x237   :  { %v2338_v59 = vpop.f32.mrb[47].mxu1 }
 0x23c   :  { %v6257_v60 = vpop.f32.mrb[48].mxu1 }
 0x23d   :  { %v2343_v38 = vpop.f32.mrb[49].mxu1 }
 0x23e   :  { %v6259_v62 = vpop.f32.mrb[50].mxu1  ;;  %v4224_v38 = vadd.f32 %v6264_v1, %v6147_v58 }
 0x23f   :  { %v2346_v63 = vpop.f32.mrb[51].mxu1 }
 0x245   :  { %v2941_v4 = vpop.f32.mrb[0].mxu0 }
 0x246   :  { %v4213_v7 = vadd.f32 %v4212_v3, %v2941_v4  ;;  %v4082_v8 = vpop.f32.mrb[1].mxu0 }
 0x247   :  { %v2944_v10 = vpop.f32.mrb[2].mxu0 }
 0x248   :  { %v3188_v11 = vmul.f32 0.70710677, %v4213_v7  ;;  %v4215_v13 = vadd.f32 %v4214_v6, %v2944_v10  ;;  %v4083_v14 = vpop.f32.mrb[3].mxu0  ;;  %v3139_v30 = vmul.f32 0.5, %v4213_v7  ;;  %v4226_v7 = vadd.f32 %v6264_v1, %v6152_v61 }
 0x24a   :  { %5006 = verf.f32 %v3188_v11  ;;  %v3189_v15 = vmul.f32 0.70710677, %v4215_v13  ;;  %v3140_v41 = vmul.f32 0.5, %v4215_v13 }
 0x24c   :  { %5008 = verf.f32 %v3189_v15 }
 0x24d   :  { %v2949_v18 = vpop.f32.mrb[4].mxu0 }
 0x24e   :  { %v4217_v20 = vadd.f32 %v4216_v17, %v2949_v18  ;;  %v4086_v21 = vpop.f32.mrb[5].mxu0 }
 0x24f   :  { %v2952_v22 = vpop.f32.mrb[6].mxu0 }
 0x250   :  { %v3190_v0 = vmul.f32 0.70710677, %v4217_v20  ;;  %v4219_v24 = vadd.f32 %v4218_v37, %v2952_v22  ;;  %v4087_v25 = vpop.f32.mrb[7].mxu0  ;;  %v3141_v63 = vmul.f32 0.5, %v4217_v20 }
 0x252   :  { %5010 = verf.f32 %v3190_v0  ;;  %v3191_v27 = vmul.f32 0.70710677, %v4219_v24  ;;  %v3142_v13 = vmul.f32 0.5, %v4219_v24  ;;  %v4228_v0 = vadd.f32 %v6264_v1, %v6162_v2 }
 0x254   :  { %v5007_v28 = vpop.eup %5006  ;;  %5012 = verf.f32 %v3191_v27 }
 0x255   :  { %v3286_v44 = vadd.f32 1.0, %v5007_v28  ;;  %v2957_v32 = vpop.f32.mrb[8].mxu0 }
 0x256   :  { %v5009_v33 = vpop.eup %5008  ;;  %v4221_v35 = vadd.f32 %v4220_v29, %v2957_v32  ;;  %v4090_v36 = vpop.f32.mrb[9].mxu0  ;;  %v4230_v29 = vadd.f32 %v6264_v1, %v6167_v5 }
 0x257   :  { %v3335_v39 = vmul.f32 %v3286_v44, %v3139_v30  ;;  %v3287_v42 = vadd.f32 1.0, %v5009_v33  ;;  %v2960_v45 = vpop.f32.mrb[10].mxu0 }
 0x258   :  { %v3192_v46 = vmul.f32 0.70710677, %v4221_v35  ;;  %v4223_v49 = vadd.f32 %v4222_v47, %v2960_v45  ;;  %v4091_v52 = vpop.f32.mrb[11].mxu0  ;;  %v3143_v24 = vmul.f32 0.5, %v4221_v35 }
 0x259   :  { %v3982_v53 = vpack.c.bf16 %v3335_v39, %v3335_v39  ;;  %v3336_v51 = vmul.f32 %v3287_v42, %v3140_v41  ;;  %v4232_v52 = vadd.f32 %v6264_v1, %v6177_v9 }
 0x25a   :  { %5014 = verf.f32 %v3192_v46  ;;  %v3193_v56 = vmul.f32 0.70710677, %v4223_v49  ;;  %v3144_v33 = vmul.f32 0.5, %v4223_v49 }
 0x25b   :  { %3582 = vst.msk [vmem:[%s6545_s3] sm:$0xf] %vm3581_vm1, %v3982_v53  ;;  %v3983_v54 = vpack.c.bf16 %v3336_v51, %v3336_v51 }
 0x25c   :  { %v5011_v59 = vpop.eup %5010  ;;  %5016 = verf.f32 %v3193_v56 }
 0x25d   :  { %3583 = vst.msk [vmem:[%s6545_s3 + $0x4] sm:$0xf] %vm3581_vm1, %v3983_v54  ;;  %v3288_v3 = vadd.f32 1.0, %v5011_v59  ;;  %v2965_v4 = vpop.f32.mrb[12].mxu0  ;;  %v4234_v54 = vadd.f32 %v6264_v1, %v6182_v12 }
 0x25e   :  { %v5013_v6 = vpop.eup %5012  ;;  %v4225_v8 = vadd.f32 %v4224_v38, %v2965_v4  ;;  %v4094_v10 = vpop.f32.mrb[13].mxu0 }
 0x25f   :  { %v3337_v11 = vmul.f32 %v3288_v3, %v3141_v63  ;;  %v3289_v14 = vadd.f32 1.0, %v5013_v6  ;;  %v2968_v15 = vpop.f32.mrb[14].mxu0 }
 0x260   :  { %v3194_v58 = vmul.f32 0.70710677, %v4225_v8  ;;  %v4227_v17 = vadd.f32 %v4226_v7, %v2968_v15  ;;  %v4095_v18 = vpop.f32.mrb[15].mxu0  ;;  %v3145_v49 = vmul.f32 0.5, %v4225_v8  ;;  %v4236_v15 = vadd.f32 %v6264_v1, %v6192_v16 }
 0x261   :  { %v3984_v37 = vpack.c.bf16 %v3337_v11, %v3337_v11  ;;  %v3338_v21 = vmul.f32 %v3289_v14, %v3142_v13 }
 0x262   :  { %5018 = verf.f32 %v3194_v58  ;;  %v3195_v22 = vmul.f32 0.70710677, %v4227_v17  ;;  %v3146_v3 = vmul.f32 0.5, %v4227_v17 }
 0x263   :  { %3584 = vst.msk [vmem:[%s6545_s3 + $0x8] sm:$0xf] %vm3581_vm1, %v3984_v37  ;;  %v3985_v20 = vpack.c.bf16 %v3338_v21, %v3338_v21  ;;  %v4238_v21 = vadd.f32 %v6264_v1, %v6197_v19 }
 0x264   :  { %v5015_v61 = vpop.eup %5014  ;;  %5020 = verf.f32 %v3195_v22 }
 0x265   :  { %3585 = vst.msk [vmem:[%s6545_s3 + $0xc] sm:$0xf] %vm3581_vm1, %v3985_v20  ;;  %v3290_v25 = vadd.f32 1.0, %v5015_v61  ;;  %v2973_v27 = vpop.f32.mrb[16].mxu0 }
 0x266   :  { %v5017_v28 = vpop.eup %5016  ;;  %v4229_v30 = vadd.f32 %v4228_v0, %v2973_v27  ;;  %v4098_v44 = vpop.f32.mrb[17].mxu0 }
 0x267   :  { %v3339_v32 = vmul.f32 %v3290_v25, %v3143_v24  ;;  %v3291_v47 = vadd.f32 1.0, %v5017_v28  ;;  %v2976_v36 = vpop.f32.mrb[18].mxu0 }
 0x268   :  { %v3196_v2 = vmul.f32 0.70710677, %v4229_v30  ;;  %v4231_v39 = vadd.f32 %v4230_v29, %v2976_v36  ;;  %v4099_v41 = vpop.f32.mrb[19].mxu0  ;;  %v3147_v58 = vmul.f32 0.5, %v4229_v30 }
 0x269   :  { %v3986_v42 = vpack.c.bf16 %v3339_v32, %v3339_v32  ;;  %v3340_v45 = vmul.f32 %v3291_v47, %v3144_v33  ;;  %v4240_v33 = vadd.f32 %v6264_v1, %v6207_v23  ;;  %v4242_v41 = vadd.f32 %v6264_v1, %v6212_v26 }
 0x26a   :  { %5022 = verf.f32 %v3196_v2  ;;  %v3197_v46 = vmul.f32 0.70710677, %v4231_v39  ;;  %v3148_v0 = vmul.f32 0.5, %v4231_v39 }
 0x26b   :  { %3586 = vst.msk [vmem:[%s6545_s3 + $0x10] sm:$0xf] %vm3581_vm1, %v3986_v42  ;;  %v3987_v35 = vpack.c.bf16 %v3340_v45, %v3340_v45 }
 0x26c   :  { %v5019_v5 = vpop.eup %5018  ;;  %5024 = verf.f32 %v3197_v46 }
 0x26d   :  { %3587 = vst.msk [vmem:[%s6545_s3 + $0x14] sm:$0xf] %vm3581_vm1, %v3987_v35  ;;  %v3292_v53 = vadd.f32 1.0, %v5019_v5  ;;  %v2981_v51 = vpop.f32.mrb[20].mxu0 }
 0x26e   :  { %v5021_v56 = vpop.eup %5020  ;;  %v4233_v59 = vadd.f32 %v4232_v52, %v2981_v51  ;;  %v4102_v38 = vpop.f32.mrb[21].mxu0 }
 0x26f   :  { %v3341_v63 = vmul.f32 %v3292_v53, %v3145_v49  ;;  %v3293_v4 = vadd.f32 1.0, %v5021_v56  ;;  %v2984_v6 = vpop.f32.mrb[22].mxu0  ;;  %v4244_v38 = vadd.f32 %v6264_v1, %v6225_v31 }
 0x270   :  { %v3198_v9 = vmul.f32 0.70710677, %v4233_v59  ;;  %v4235_v7 = vadd.f32 %v4234_v54, %v2984_v6  ;;  %v4103_v10 = vpop.f32.mrb[23].mxu0  ;;  %v3149_v47 = vmul.f32 0.5, %v4233_v59 }
 0x271   :  { %v3988_v11 = vpack.c.bf16 %v3341_v63, %v3341_v63  ;;  %v3342_v13 = vmul.f32 %v3293_v4, %v3146_v3 }
 0x272   :  { %5026 = verf.f32 %v3198_v9  ;;  %v3199_v14 = vmul.f32 0.70710677, %v4235_v7  ;;  %v3150_v35 = vmul.f32 0.5, %v4235_v7  ;;  %v4246_v9 = vadd.f32 %v6264_v1, %v6230_v34 }
 0x273   :  { %3588 = vst.msk [vmem:[%s6545_s3 + $0x18] sm:$0xf] %vm3581_vm1, %v3988_v11  ;;  %v3989_v8 = vpack.c.bf16 %v3342_v13, %v3342_v13 }
 0x274   :  { %v5023_v12 = vpop.eup %5022  ;;  %5028 = verf.f32 %v3199_v14 }
 0x275   :  { %3589 = vst.msk [vmem:[%s6545_s3 + $0x1c] sm:$0xf] %vm3581_vm1, %v3989_v8  ;;  %v3294_v17 = vadd.f32 1.0, %v5023_v12  ;;  %v2989_v18 = vpop.f32.mrb[24].mxu0 }
 0x276   :  { %v5025_v37 = vpop.eup %5024  ;;  %v4237_v22 = vadd.f32 %v4236_v15, %v2989_v18  ;;  %v4106_v20 = vpop.f32.mrb[25].mxu0 }
 0x277   :  { %v3343_v61 = vmul.f32 %v3294_v17, %v3147_v58  ;;  %v3295_v24 = vadd.f32 1.0, %v5025_v37  ;;  %v2992_v25 = vpop.f32.mrb[26].mxu0 }
 0x278   :  { %v3200_v16 = vmul.f32 0.70710677, %v4237_v22  ;;  %v4239_v27 = vadd.f32 %v4238_v21, %v2992_v25  ;;  %v4107_v28 = vpop.f32.mrb[27].mxu0  ;;  %v3151_v63 = vmul.f32 0.5, %v4237_v22  ;;  %v4248_v21 = vadd.f32 %v6264_v1, %v6237_v40 }
 0x279   :  { %v3990_v29 = vpack.c.bf16 %v3343_v61, %v3343_v61  ;;  %v3344_v44 = vmul.f32 %v3295_v24, %v3148_v0  ;;  %v4250_v24 = vadd.f32 %v6264_v1, %v6239_v43 }
 0x27a   :  { %5030 = verf.f32 %v3200_v16  ;;  %v3201_v32 = vmul.f32 0.70710677, %v4239_v27  ;;  %v3152_v13 = vmul.f32 0.5, %v4239_v27 }
 0x27b   :  { %3590 = vst.msk [vmem:[%s6545_s3 + $0x20] sm:$0xf] %vm3581_vm1, %v3990_v29  ;;  %v3991_v30 = vpack.c.bf16 %v3344_v44, %v3344_v44 }
 0x27c   :  { %v5027_v19 = vpop.eup %5026  ;;  %5032 = verf.f32 %v3201_v32 }
 0x27d   :  { %3591 = vst.msk [vmem:[%s6545_s3 + $0x24] sm:$0xf] %vm3581_vm1, %v3991_v30  ;;  %v3296_v36 = vadd.f32 1.0, %v5027_v19  ;;  %v2997_v2 = vpop.f32.mrb[28].mxu0 }
 0x27e   :  { %v5029_v39 = vpop.eup %5028  ;;  %v4241_v42 = vadd.f32 %v4240_v33, %v2997_v2  ;;  %v4110_v45 = vpop.f32.mrb[29].mxu0  ;;  %v4252_v2 = vadd.f32 %v6264_v1, %v6246_v48 }
 0x27f   :  { %v3345_v46 = vmul.f32 %v3296_v36, %v3149_v47  ;;  %v3297_v5 = vadd.f32 1.0, %v5029_v39  ;;  %v3000_v52 = vpop.f32.mrb[30].mxu0 }
 0x280   :  { %v3202_v23 = vmul.f32 0.70710677, %v4241_v42  ;;  %v4243_v49 = vadd.f32 %v4242_v41, %v3000_v52  ;;  %v4111_v53 = vpop.f32.mrb[31].mxu0  ;;  %v3153_v22 = vmul.f32 0.5, %v4241_v42 }
 0x281   :  { %v3992_v51 = vpack.c.bf16 %v3345_v46, %v3345_v46  ;;  %v3346_v56 = vmul.f32 %v3297_v5, %v3150_v35  ;;  %v4254_v46 = vadd.f32 %v6264_v1, %v6248_v50 }
 0x282   :  { %5034 = verf.f32 %v3202_v23  ;;  %v3203_v54 = vmul.f32 0.70710677, %v4243_v49  ;;  %v3154_v28 = vmul.f32 0.5, %v4243_v49 }
 0x283   :  { %3592 = vst.msk [vmem:[%s6545_s3 + $0x28] sm:$0xf] %vm3581_vm1, %v3992_v51  ;;  %v3993_v59 = vpack.c.bf16 %v3346_v56, %v3346_v56 }
 0x284   :  { %v5031_v26 = vpop.eup %5030  ;;  %5036 = verf.f32 %v3203_v54 }
 0x285   :  { %3593 = vst.msk [vmem:[%s6545_s3 + $0x2c] sm:$0xf] %vm3581_vm1, %v3993_v59  ;;  %v3298_v3 = vadd.f32 1.0, %v5031_v26  ;;  %v3005_v4 = vpop.f32.mrb[32].mxu0 }
 0x286   :  { %v5033_v6 = vpop.eup %5032  ;;  %v4245_v7 = vadd.f32 %v4244_v38, %v3005_v4  ;;  %v4114_v10 = vpop.f32.mrb[33].mxu0 }
 0x287   :  { %v3347_v11 = vmul.f32 %v3298_v3, %v3151_v63  ;;  %v3299_v14 = vadd.f32 1.0, %v5033_v6  ;;  %v3008_v8 = vpop.f32.mrb[34].mxu0  ;;  %v4256_v63 = vadd.f32 %v6264_v1, %v6253_v55 }
 0x288   :  { %v3204_v31 = vmul.f32 0.70710677, %v4245_v7  ;;  %v4247_v12 = vadd.f32 %v4246_v9, %v3008_v8  ;;  %v4115_v15 = vpop.f32.mrb[35].mxu0  ;;  %v3155_v39 = vmul.f32 0.5, %v4245_v7  ;;  %v4258_v7 = vadd.f32 %v6264_v1, %v6255_v57 }
 0x289   :  { %v3994_v58 = vpack.c.bf16 %v3347_v11, %v3347_v11  ;;  %v3348_v17 = vmul.f32 %v3299_v14, %v3152_v13 }
 0x28a   :  { %5038 = verf.f32 %v3204_v31  ;;  %v3205_v18 = vmul.f32 0.70710677, %v4247_v12  ;;  %v3156_v23 = vmul.f32 0.5, %v4247_v12 }
 0x28b   :  { %3594 = vst.msk [vmem:[%s6545_s3 + $0x30] sm:$0xf] %vm3581_vm1, %v3994_v58  ;;  %v3995_v37 = vpack.c.bf16 %v3348_v17, %v3348_v17 }
 0x28c   :  { %v5035_v34 = vpop.eup %5034  ;;  %5040 = verf.f32 %v3205_v18 }
 0x28d   :  { %3595 = vst.msk [vmem:[%s6545_s3 + $0x34] sm:$0xf] %vm3581_vm1, %v3995_v37  ;;  %v3300_v20 = vadd.f32 1.0, %v5035_v34  ;;  %v3013_v61 = vpop.f32.mrb[36].mxu0  ;;  %v4260_v34 = vadd.f32 %v6264_v1, %v6257_v60 }
 0x28e   :  { %v5037_v0 = vpop.eup %5036  ;;  %v4249_v25 = vadd.f32 %v4248_v21, %v3013_v61  ;;  %v4118_v16 = vpop.f32.mrb[37].mxu0 }
 0x28f   :  { %v3349_v27 = vmul.f32 %v3300_v20, %v3153_v22  ;;  %v3301_v29 = vadd.f32 1.0, %v5037_v0  ;;  %v3016_v44 = vpop.f32.mrb[38].mxu0 }
 0x290   :  { %v3206_v40 = vmul.f32 0.70710677, %v4249_v25  ;;  %v4251_v32 = vadd.f32 %v4250_v24, %v3016_v44  ;;  %v4119_v30 = vpop.f32.mrb[39].mxu0  ;;  %v3157_v3 = vmul.f32 0.5, %v4249_v25  ;;  %v4262_v25 = vadd.f32 %v6264_v1, %v6259_v62 }
 0x291   :  { %v3996_v19 = vpack.c.bf16 %v3349_v27, %v3349_v27  ;;  %v3350_v33 = vmul.f32 %v3301_v29, %v3154_v28 }
 0x292   :  { %5042 = verf.f32 %v3206_v40  ;;  %v3207_v47 = vmul.f32 0.70710677, %v4251_v32  ;;  %v3158_v14 = vmul.f32 0.5, %v4251_v32 }
 0x293   :  { %3596 = vst.msk [vmem:[%s6545_s3 + $0x38] sm:$0xf] %vm3581_vm1, %v3996_v19  ;;  %v3997_v36 = vpack.c.bf16 %v3350_v33, %v3350_v33 }
 0x294   :  { %v5039_v43 = vpop.eup %5038  ;;  %5044 = verf.f32 %v3207_v47 }
 0x295   :  { %3597 = vst.msk [vmem:[%s6545_s3 + $0x3c] sm:$0xf] %vm3581_vm1, %v3997_v36  ;;  %v3302_v41 = vadd.f32 1.0, %v5039_v43  ;;  %v3021_v42 = vpop.f32.mrb[40].mxu0 }
 0x296   :  { %v5041_v45 = vpop.eup %5040  ;;  %v4253_v35 = vadd.f32 %v4252_v2, %v3021_v42  ;;  %v4122_v5 = vpop.f32.mrb[41].mxu0 }
 0x297   :  { %v3351_v52 = vmul.f32 %v3302_v41, %v3155_v39  ;;  %v3303_v49 = vadd.f32 1.0, %v5041_v45  ;;  %v3024_v53 = vpop.f32.mrb[42].mxu0 }
 0x298   :  { %v3208_v48 = vmul.f32 0.70710677, %v4253_v35  ;;  %v4255_v51 = vadd.f32 %v4254_v46, %v3024_v53  ;;  %v4123_v56 = vpop.f32.mrb[43].mxu0  ;;  %v3159_v22 = vmul.f32 0.5, %v4253_v35 }
 0x299   :  { %v3998_v54 = vpack.c.bf16 %v3351_v52, %v3351_v52  ;;  %v3352_v59 = vmul.f32 %v3303_v49, %v3156_v23 }
 0x29a   :  { %5046 = verf.f32 %v3208_v48  ;;  %v3209_v26 = vmul.f32 0.70710677, %v4255_v51  ;;  %v3160_v60 = vmul.f32 0.5, %v4255_v51 }
 0x29b   :  { %3598 = vst.msk [vmem:[%s6545_s3 + $0x40] sm:$0xf] %vm3581_vm1, %v3998_v54  ;;  %v3999_v38 = vpack.c.bf16 %v3352_v59, %v3352_v59 }
 0x29c   :  { %v5043_v50 = vpop.eup %5042  ;;  %5048 = verf.f32 %v3209_v26 }
 0x29d   :  { %3599 = vst.msk [vmem:[%s6545_s3 + $0x44] sm:$0xf] %vm3581_vm1, %v3999_v38  ;;  %v3304_v4 = vadd.f32 1.0, %v5043_v50  ;;  %v3029_v6 = vpop.f32.mrb[44].mxu0 }
 0x29e   :  { %v5045_v9 = vpop.eup %5044  ;;  %v4257_v10 = vadd.f32 %v4256_v63, %v3029_v6  ;;  %v4126_v11 = vpop.f32.mrb[45].mxu0 }
 0x29f   :  { %v3353_v13 = vmul.f32 %v3304_v4, %v3157_v3  ;;  %v3305_v8 = vadd.f32 1.0, %v5045_v9  ;;  %v3032_v31 = vpop.f32.mrb[46].mxu0 }
 0x2a0   :  { %v3210_v55 = vmul.f32 0.70710677, %v4257_v10  ;;  %v4259_v12 = vadd.f32 %v4258_v7, %v3032_v31  ;;  %v4127_v15 = vpop.f32.mrb[47].mxu0  ;;  %v3161_v42 = vmul.f32 0.5, %v4257_v10 }
 0x2a1   :  { %v4000_v58 = vpack.c.bf16 %v3353_v13, %v3353_v13  ;;  %v3354_v17 = vmul.f32 %v3305_v8, %v3158_v14 }
 0x2a2   :  { %5050 = verf.f32 %v3210_v55  ;;  %v3211_v18 = vmul.f32 0.70710677, %v4259_v12  ;;  %v3162_v51 = vmul.f32 0.5, %v4259_v12 }
 0x2a3   :  { %3600 = vst.msk [vmem:[%s6545_s3 + $0x48] sm:$0xf] %vm3581_vm1, %v4000_v58  ;;  %v4001_v37 = vpack.c.bf16 %v3354_v17, %v3354_v17 }
 0x2a4   :  { %v5047_v57 = vpop.eup %5046  ;;  %5052 = verf.f32 %v3211_v18  ;;  %v2581_v21 = vpop.f32.mrb[52].mxu1 }
 0x2a5   :  { %3601 = vst.msk [vmem:[%s6545_s3 + $0x4c] sm:$0xf] %vm3581_vm1, %v4001_v37  ;;  %v3306_v20 = vadd.f32 1.0, %v5047_v57  ;;  %v3037_v61 = vpop.f32.mrb[48].mxu0  ;;  %v2583_v0 = vpop.f32.mrb[53].mxu1  ;;  %v4264_v39 = vadd.f32 %v6264_v1, %v2581_v21 }
 0x2a6   :  { %v5049_v24 = vpop.eup %5048  ;;  %v4261_v16 = vadd.f32 %v4260_v34, %v3037_v61  ;;  %v4130_v27 = vpop.f32.mrb[49].mxu0 }
 0x2a7   :  { %v2584_v28 = vpop.f32.mrb[54].mxu1  ;;  %v3355_v29 = vmul.f32 %v3306_v20, %v3159_v22  ;;  %v3307_v44 = vadd.f32 1.0, %v5049_v24  ;;  %v3040_v40 = vpop.f32.mrb[50].mxu0 }
 0x2a8   :  { %v2586_v32 = vpop.f32.mrb[55].mxu1  ;;  %v3212_v30 = vmul.f32 0.70710677, %v4261_v16  ;;  %v4263_v19 = vadd.f32 %v4262_v25, %v3040_v40  ;;  %v4131_v33 = vpop.f32.mrb[51].mxu0  ;;  %v4266_v52 = vadd.f32 %v6264_v1, %v2584_v28  ;;  %v3163_v11 = vmul.f32 0.5, %v4261_v16 }
 0x2a9   :  { %v4002_v47 = vpack.c.bf16 %v3355_v29, %v3355_v29  ;;  %v3356_v36 = vmul.f32 %v3307_v44, %v3160_v60 }
 0x2aa   :  { %5054 = verf.f32 %v3212_v30  ;;  %v3213_v43 = vmul.f32 0.70710677, %v4263_v19  ;;  %v3164_v18 = vmul.f32 0.5, %v4263_v19 }
 0x2ab   :  { %3602 = vst.msk [vmem:[%s6545_s3 + $0x50] sm:$0xf] %vm3581_vm1, %v4002_v47  ;;  %v4003_v62 = vpack.c.bf16 %v3356_v36, %v3356_v36 }
 0x2ac   :  { %v5051_v2 = vpop.eup %5050  ;;  %5056 = verf.f32 %v3213_v43  ;;  %v2589_v41 = vpop.f32.mrb[56].mxu1 }
 0x2ad   :  { %3603 = vst.msk [vmem:[%s6545_s3 + $0x54] sm:$0xf] %vm3581_vm1, %v4003_v62  ;;  %v3308_v45 = vadd.f32 1.0, %v5051_v2  ;;  %v3045_v46 = vpop.f32.mrb[52].mxu0  ;;  %v2591_v35 = vpop.f32.mrb[57].mxu1  ;;  %v4268_v7 = vadd.f32 %v6264_v1, %v2589_v41 }
 0x2ae   :  { %v5053_v5 = vpop.eup %5052  ;;  %v4265_v23 = vadd.f32 %v4264_v39, %v3045_v46  ;;  %v4134_v49 = vpop.f32.mrb[53].mxu0 }
 0x2af   :  { %v2592_v53 = vpop.f32.mrb[58].mxu1  ;;  %v3357_v48 = vmul.f32 %v3308_v45, %v3161_v42  ;;  %v3309_v56 = vadd.f32 1.0, %v5053_v5  ;;  %v3048_v54 = vpop.f32.mrb[54].mxu0 }
 0x2b0   :  { %v2594_v59 = vpop.f32.mrb[59].mxu1  ;;  %v3214_v26 = vmul.f32 0.70710677, %v4265_v23  ;;  %v4267_v38 = vadd.f32 %v4266_v52, %v3048_v54  ;;  %v4135_v50 = vpop.f32.mrb[55].mxu0  ;;  %v4270_v55 = vadd.f32 %v6264_v1, %v2592_v53  ;;  %v3165_v29 = vmul.f32 0.5, %v4265_v23 }
 0x2b1   :  { %v4004_v63 = vpack.c.bf16 %v3357_v48, %v3357_v48  ;;  %v3358_v3 = vmul.f32 %v3309_v56, %v3162_v51 }
 0x2b2   :  { %5058 = verf.f32 %v3214_v26  ;;  %v3215_v4 = vmul.f32 0.70710677, %v4267_v38  ;;  %v3166_v43 = vmul.f32 0.5, %v4267_v38 }
 0x2b3   :  { %3604 = vst.msk [vmem:[%s6545_s3 + $0x58] sm:$0xf] %vm3581_vm1, %v4004_v63  ;;  %v4005_v6 = vpack.c.bf16 %v3358_v3, %v3358_v3 }
 0x2b4   :  { %v5055_v9 = vpop.eup %5054  ;;  %5060 = verf.f32 %v3215_v4  ;;  %v2597_v10 = vpop.f32.mrb[60].mxu1 }
 0x2b5   :  { %3605 = vst.msk [vmem:[%s6545_s3 + $0x5c] sm:$0xf] %vm3581_vm1, %v4005_v6  ;;  %v3310_v13 = vadd.f32 1.0, %v5055_v9  ;;  %v3053_v14 = vpop.f32.mrb[56].mxu0  ;;  %v2599_v8 = vpop.f32.mrb[61].mxu1  ;;  %v4272_v27 = vadd.f32 %v6264_v1, %v2597_v10 }
 0x2b6   :  { %v5057_v31 = vpop.eup %5056  ;;  %v4269_v12 = vadd.f32 %v4268_v7, %v3053_v14  ;;  %v4138_v15 = vpop.f32.mrb[57].mxu0 }
 0x2b7   :  { %v2600_v58 = vpop.f32.mrb[62].mxu1  ;;  %v3359_v17 = vmul.f32 %v3310_v13, %v3163_v11  ;;  %v3311_v37 = vadd.f32 1.0, %v5057_v31  ;;  %v3056_v57 = vpop.f32.mrb[58].mxu0 }
 0x2b8   :  { %v2602_v34 = vpop.f32.mrb[63].mxu1  ;;  %v3216_v21 = vmul.f32 0.70710677, %v4269_v12  ;;  %v4271_v22 = vadd.f32 %v4270_v55, %v3056_v57  ;;  %v4139_v20 = vpop.f32.mrb[59].mxu0  ;;  %v4274_v30 = vadd.f32 %v6264_v1, %v2600_v58  ;;  %v3167_v48 = vmul.f32 0.5, %v4269_v12 }
 0x2b9   :  { %v4006_v61 = vpack.c.bf16 %v3359_v17, %v3359_v17  ;;  %v3360_v0 = vmul.f32 %v3311_v37, %v3164_v18 }
 0x2ba   :  { %5062 = verf.f32 %v3216_v21  ;;  %v3217_v24 = vmul.f32 0.70710677, %v4271_v22  ;;  %v3168_v4 = vmul.f32 0.5, %v4271_v22 }
 0x2bb   :  { %3606 = vst.msk [vmem:[%s6545_s3 + $0x60] sm:$0xf] %vm3581_vm1, %v4006_v61  ;;  %v4007_v25 = vpack.c.bf16 %v3360_v0, %v3360_v0 }
 0x2bc   :  { %v5059_v16 = vpop.eup %5058  ;;  %5064 = verf.f32 %v3217_v24  ;;  %v2605_v28 = vpop.f32.mrb[64].mxu1 }
 0x2bd   :  { %3607 = vst.msk [vmem:[%s6545_s3 + $0x64] sm:$0xf] %vm3581_vm1, %v4007_v25  ;;  %v3312_v60 = vadd.f32 1.0, %v5059_v16  ;;  %v3061_v44 = vpop.f32.mrb[60].mxu0  ;;  %v2607_v40 = vpop.f32.mrb[65].mxu1  ;;  %v4276_v49 = vadd.f32 %v6264_v1, %v2605_v28 }
 0x2be   :  { %v5061_v32 = vpop.eup %5060  ;;  %v4273_v19 = vadd.f32 %v4272_v27, %v3061_v44  ;;  %v4142_v33 = vpop.f32.mrb[61].mxu0 }
 0x2bf   :  { %v2608_v47 = vpop.f32.mrb[66].mxu1  ;;  %v3361_v36 = vmul.f32 %v3312_v60, %v3165_v29  ;;  %v3313_v62 = vadd.f32 1.0, %v5061_v32  ;;  %v3064_v2 = vpop.f32.mrb[62].mxu0 }
 0x2c0   :  { %v2610_v39 = vpop.f32.mrb[67].mxu1  ;;  %v3218_v41 = vmul.f32 0.70710677, %v4273_v19  ;;  %v4275_v42 = vadd.f32 %v4274_v30, %v3064_v2  ;;  %v4143_v45 = vpop.f32.mrb[63].mxu0  ;;  %v4278_v26 = vadd.f32 %v6264_v1, %v2608_v47  ;;  %v3169_v17 = vmul.f32 0.5, %v4273_v19 }
 0x2c1   :  { %v4008_v46 = vpack.c.bf16 %v3361_v36, %v3361_v36  ;;  %v3362_v35 = vmul.f32 %v3313_v62, %v3166_v43 }
 0x2c2   :  { %5066 = verf.f32 %v3218_v41  ;;  %v3219_v5 = vmul.f32 0.70710677, %v4275_v42  ;;  %v3170_v24 = vmul.f32 0.5, %v4275_v42 }
 0x2c3   :  { %3608 = vst.msk [vmem:[%s6545_s3 + $0x68] sm:$0xf] %vm3581_vm1, %v4008_v46  ;;  %v4009_v52 = vpack.c.bf16 %v3362_v35, %v3362_v35 }
 0x2c4   :  { %v5063_v23 = vpop.eup %5062  ;;  %5068 = verf.f32 %v3219_v5  ;;  %v2613_v53 = vpop.f32.mrb[68].mxu1 }
 0x2c5   :  { %3609 = vst.msk [vmem:[%s6545_s3 + $0x6c] sm:$0xf] %vm3581_vm1, %v4009_v52  ;;  %v3314_v51 = vadd.f32 1.0, %v5063_v23  ;;  %v3069_v56 = vpop.f32.mrb[64].mxu0  ;;  %v2615_v54 = vpop.f32.mrb[69].mxu1  ;;  %v4280_v15 = vadd.f32 %v6264_v1, %v2613_v53 }
 0x2c6   :  { %v5065_v59 = vpop.eup %5064  ;;  %v4277_v38 = vadd.f32 %v4276_v49, %v3069_v56  ;;  %v4146_v50 = vpop.f32.mrb[65].mxu0 }
 0x2c7   :  { %v2616_v63 = vpop.f32.mrb[70].mxu1  ;;  %v3363_v3 = vmul.f32 %v3314_v51, %v3167_v48  ;;  %v3315_v6 = vadd.f32 1.0, %v5065_v59  ;;  %v3072_v9 = vpop.f32.mrb[66].mxu0 }
 0x2c8   :  { %v2618_v7 = vpop.f32.mrb[71].mxu1  ;;  %v3220_v10 = vmul.f32 0.70710677, %v4277_v38  ;;  %v4279_v11 = vadd.f32 %v4278_v26, %v3072_v9  ;;  %v4147_v13 = vpop.f32.mrb[67].mxu0  ;;  %v4282_v21 = vadd.f32 %v6264_v1, %v2616_v63  ;;  %v3171_v36 = vmul.f32 0.5, %v4277_v38 }
 0x2c9   :  { %v4010_v14 = vpack.c.bf16 %v3363_v3, %v3363_v3  ;;  %v3364_v8 = vmul.f32 %v3315_v6, %v3168_v4 }
 0x2ca   :  { %5070 = verf.f32 %v3220_v10  ;;  %v3221_v31 = vmul.f32 0.70710677, %v4279_v11  ;;  %v3172_v5 = vmul.f32 0.5, %v4279_v11 }
 0x2cb   :  { %3610 = vst.msk [vmem:[%s6545_s3 + $0x70] sm:$0xf] %vm3581_vm1, %v4010_v14  ;;  %v4011_v55 = vpack.c.bf16 %v3364_v8, %v3364_v8 }
 0x2cc   :  { %v5067_v12 = vpop.eup %5066  ;;  %5072 = verf.f32 %v3221_v31  ;;  %v2621_v58 = vpop.f32.mrb[72].mxu1 }
 0x2cd   :  { %3611 = vst.msk [vmem:[%s6545_s3 + $0x74] sm:$0xf] %vm3581_vm1, %v4011_v55  ;;  %v3316_v18 = vadd.f32 1.0, %v5067_v12  ;;  %v3077_v37 = vpop.f32.mrb[68].mxu0  ;;  %v2623_v57 = vpop.f32.mrb[73].mxu1  ;;  %v4284_v33 = vadd.f32 %v6264_v1, %v2621_v58 }
 0x2ce   :  { %v5069_v34 = vpop.eup %5068  ;;  %v4281_v22 = vadd.f32 %v4280_v15, %v3077_v37  ;;  %v4150_v20 = vpop.f32.mrb[69].mxu0 }
 0x2cf   :  { %v2624_v61 = vpop.f32.mrb[74].mxu1  ;;  %v3365_v0 = vmul.f32 %v3316_v18, %v3169_v17  ;;  %v3317_v25 = vadd.f32 1.0, %v5069_v34  ;;  %v3080_v16 = vpop.f32.mrb[70].mxu0 }
 0x2d0   :  { %v2626_v27 = vpop.f32.mrb[75].mxu1  ;;  %v3222_v28 = vmul.f32 0.70710677, %v4281_v22  ;;  %v4283_v29 = vadd.f32 %v4282_v21, %v3080_v16  ;;  %v4151_v60 = vpop.f32.mrb[71].mxu0  ;;  %v4286_v41 = vadd.f32 %v6264_v1, %v2624_v61  ;;  %v3173_v3 = vmul.f32 0.5, %v4281_v22 }
 0x2d1   :  { %v4012_v44 = vpack.c.bf16 %v3365_v0, %v3365_v0  ;;  %v3366_v40 = vmul.f32 %v3317_v25, %v3170_v24 }
 0x2d2   :  { %5074 = verf.f32 %v3222_v28  ;;  %v3223_v32 = vmul.f32 0.70710677, %v4283_v29  ;;  %v3174_v31 = vmul.f32 0.5, %v4283_v29 }
 0x2d3   :  { %3612 = vst.msk [vmem:[%s6545_s3 + $0x78] sm:$0xf] %vm3581_vm1, %v4012_v44  ;;  %v4013_v30 = vpack.c.bf16 %v3366_v40, %v3366_v40 }
 0x2d4   :  { %v5071_v19 = vpop.eup %5070  ;;  %5076 = verf.f32 %v3223_v32  ;;  %v2629_v47 = vpop.f32.mrb[76].mxu1 }
 0x2d5   :  { %3613 = vst.msk [vmem:[%s6545_s3 + $0x7c] sm:$0xf] %vm3581_vm1, %v4013_v30  ;;  %v3318_v43 = vadd.f32 1.0, %v5071_v19  ;;  %v3085_v62 = vpop.f32.mrb[72].mxu0  ;;  %v2631_v2 = vpop.f32.mrb[77].mxu1  ;;  %v4288_v50 = vadd.f32 %v6264_v1, %v2629_v47 }
 0x2d6   :  { %v5073_v39 = vpop.eup %5072  ;;  %v4285_v42 = vadd.f32 %v4284_v33, %v3085_v62  ;;  %v4154_v45 = vpop.f32.mrb[73].mxu0 }
 0x2d7   :  { %v2632_v46 = vpop.f32.mrb[78].mxu1  ;;  %v3367_v35 = vmul.f32 %v3318_v43, %v3171_v36  ;;  %v3319_v52 = vadd.f32 1.0, %v5073_v39  ;;  %v3088_v23 = vpop.f32.mrb[74].mxu0 }
 0x2d8   :  { %v2634_v49 = vpop.f32.mrb[79].mxu1  ;;  %v3224_v53 = vmul.f32 0.70710677, %v4285_v42  ;;  %v4287_v48 = vadd.f32 %v4286_v41, %v3088_v23  ;;  %v4155_v51 = vpop.f32.mrb[75].mxu0  ;;  %v4290_v10 = vadd.f32 %v6264_v1, %v2632_v46  ;;  %v3175_v0 = vmul.f32 0.5, %v4285_v42 }
 0x2d9   :  { %v4014_v56 = vpack.c.bf16 %v3367_v35, %v3367_v35  ;;  %v3368_v54 = vmul.f32 %v3319_v52, %v3172_v5  ;;  %v6485_v42 = vld [vmem:[%s6544_s2] ss:$0 sm:$0xff] }
 0x2da   :  { %5078 = verf.f32 %v3224_v53  ;;  %v3225_v59 = vmul.f32 0.70710677, %v4287_v48  ;;  %v3176_v32 = vmul.f32 0.5, %v4287_v48 }
 0x2db   :  { %3614 = vst.msk [vmem:[%s6545_s3 + $0x80] sm:$0xf] %vm3581_vm1, %v4014_v56  ;;  %v4015_v26 = vpack.c.bf16 %v3368_v54, %v3368_v54 }
 0x2dc   :  { %v5075_v38 = vpop.eup %5074  ;;  %5080 = verf.f32 %v3225_v59  ;;  %v2637_v63 = vpop.f32.mrb[80].mxu1 }
 0x2dd   :  { %3615 = vst.msk [vmem:[%s6545_s3 + $0x84] sm:$0xf] %vm3581_vm1, %v4015_v26  ;;  %v3320_v4 = vadd.f32 1.0, %v5075_v38  ;;  %v3093_v6 = vpop.f32.mrb[76].mxu0  ;;  %v2639_v9 = vpop.f32.mrb[81].mxu1  ;;  %v4292_v20 = vadd.f32 %v6264_v1, %v2637_v63 }
 0x2de   :  { %v5077_v7 = vpop.eup %5076  ;;  %v4289_v11 = vadd.f32 %v4288_v50, %v3093_v6  ;;  %v4158_v13 = vpop.f32.mrb[77].mxu0 }
 0x2df   :  { %v2640_v14 = vpop.f32.mrb[82].mxu1  ;;  %v3369_v8 = vmul.f32 %v3320_v4, %v3173_v3  ;;  %v3321_v55 = vadd.f32 1.0, %v5077_v7  ;;  %v3096_v12 = vpop.f32.mrb[78].mxu0 }
 0x2e0   :  { %v2642_v15 = vpop.f32.mrb[83].mxu1  ;;  %v3226_v58 = vmul.f32 0.70710677, %v4289_v11  ;;  %v4291_v17 = vadd.f32 %v4290_v10, %v3096_v12  ;;  %v4159_v18 = vpop.f32.mrb[79].mxu0  ;;  %v4294_v28 = vadd.f32 %v6264_v1, %v2640_v14  ;;  %v3177_v35 = vmul.f32 0.5, %v4289_v11 }
 0x2e1   :  { %v4016_v37 = vpack.c.bf16 %v3369_v8, %v3369_v8  ;;  %v3370_v57 = vmul.f32 %v3321_v55, %v3174_v31 }
 0x2e2   :  { %5082 = verf.f32 %v3226_v58  ;;  %v3227_v34 = vmul.f32 0.70710677, %v4291_v17  ;;  %v3178_v59 = vmul.f32 0.5, %v4291_v17 }
 0x2e3   :  { %3616 = vst.msk [vmem:[%s6545_s3 + $0x88] sm:$0xf] %vm3581_vm1, %v4016_v37  ;;  %v4017_v21 = vpack.c.bf16 %v3370_v57, %v3370_v57 }
 0x2e4   :  { %v5079_v22 = vpop.eup %5078  ;;  %5084 = verf.f32 %v3227_v34  ;;  %v2645_v61 = vpop.f32.mrb[84].mxu1 }
 0x2e5   :  { %3617 = vst.msk [vmem:[%s6545_s3 + $0x8c] sm:$0xf] %vm3581_vm1, %v4017_v21  ;;  %v3322_v24 = vadd.f32 1.0, %v5079_v22  ;;  %v3101_v25 = vpop.f32.mrb[80].mxu0  ;;  %v2647_v16 = vpop.f32.mrb[85].mxu1  ;;  %v4296_v45 = vadd.f32 %v6485_v42, %v2645_v61 }
 0x2e6   :  { %v5081_v27 = vpop.eup %5080  ;;  %v4293_v29 = vadd.f32 %v4292_v20, %v3101_v25  ;;  %v4162_v60 = vpop.f32.mrb[81].mxu0 }
 0x2e7   :  { %v2648_v44 = vpop.f32.mrb[86].mxu1  ;;  %v3371_v40 = vmul.f32 %v3322_v24, %v3175_v0  ;;  %v3323_v30 = vadd.f32 1.0, %v5081_v27  ;;  %v3104_v19 = vpop.f32.mrb[82].mxu0 }
 0x2e8   :  { %v2650_v33 = vpop.f32.mrb[87].mxu1  ;;  %v3228_v47 = vmul.f32 0.70710677, %v4293_v29  ;;  %v4295_v36 = vadd.f32 %v4294_v28, %v3104_v19  ;;  %v4163_v43 = vpop.f32.mrb[83].mxu0  ;;  %v4298_v53 = vadd.f32 %v6485_v42, %v2648_v44  ;;  %v3179_v8 = vmul.f32 0.5, %v4293_v29 }
 0x2e9   :  { %v4018_v62 = vpack.c.bf16 %v3371_v40, %v3371_v40  ;;  %v3372_v2 = vmul.f32 %v3323_v30, %v3176_v32 }
 0x2ea   :  { %5086 = verf.f32 %v3228_v47  ;;  %v3229_v39 = vmul.f32 0.70710677, %v4295_v36  ;;  %v3180_v34 = vmul.f32 0.5, %v4295_v36 }
 0x2eb   :  { %3618 = vst.msk [vmem:[%s6545_s3 + $0x90] sm:$0xf] %vm3581_vm1, %v4018_v62  ;;  %v4019_v1 = vpack.c.bf16 %v3372_v2, %v3372_v2 }
 0x2ec   :  { %v5083_v41 = vpop.eup %5082  ;;  %5088 = verf.f32 %v3229_v39  ;;  %v2653_v46 = vpop.f32.mrb[88].mxu1 }
 0x2ed   :  { %3619 = vst.msk [vmem:[%s6545_s3 + $0x94] sm:$0xf] %vm3581_vm1, %v4019_v1  ;;  %v3324_v5 = vadd.f32 1.0, %v5083_v41  ;;  %v3109_v52 = vpop.f32.mrb[84].mxu0  ;;  %v2655_v23 = vpop.f32.mrb[89].mxu1  ;;  %v4300_v13 = vadd.f32 %v6485_v42, %v2653_v46 }
 0x2ee   :  { %v5085_v49 = vpop.eup %5084  ;;  %v4297_v48 = vadd.f32 %v4296_v45, %v3109_v52  ;;  %v4166_v51 = vpop.f32.mrb[85].mxu0 }
 0x2ef   :  { %v2656_v56 = vpop.f32.mrb[90].mxu1  ;;  %v3373_v54 = vmul.f32 %v3324_v5, %v3177_v35  ;;  %v3325_v26 = vadd.f32 1.0, %v5085_v49  ;;  %v3112_v38 = vpop.f32.mrb[86].mxu0 }
 0x2f0   :  { %v2658_v50 = vpop.f32.mrb[91].mxu1  ;;  %v3230_v63 = vmul.f32 0.70710677, %v4297_v48  ;;  %v4299_v3 = vadd.f32 %v4298_v53, %v3112_v38  ;;  %v4167_v4 = vpop.f32.mrb[87].mxu0  ;;  %v4302_v58 = vadd.f32 %v6485_v42, %v2656_v56  ;;  %v3181_v40 = vmul.f32 0.5, %v4297_v48 }
 0x2f1   :  { %v4020_v6 = vpack.c.bf16 %v3373_v54, %v3373_v54  ;;  %v3374_v9 = vmul.f32 %v3325_v26, %v3178_v59 }
 0x2f2   :  { %5090 = verf.f32 %v3230_v63  ;;  %v3231_v7 = vmul.f32 0.70710677, %v4299_v3  ;;  %v3182_v39 = vmul.f32 0.5, %v4299_v3 }
 0x2f3   :  { %3620 = vst.msk [vmem:[%s6545_s3 + $0x98] sm:$0xf] %vm3581_vm1, %v4020_v6  ;;  %v4021_v10 = vpack.c.bf16 %v3374_v9, %v3374_v9 }
 0x2f4   :  { %v5087_v11 = vpop.eup %5086  ;;  %5092 = verf.f32 %v3231_v7  ;;  %v2661_v14 = vpop.f32.mrb[92].mxu1 }
 0x2f5   :  { %3621 = vst.msk [vmem:[%s6545_s3 + $0x9c] sm:$0xf] %vm3581_vm1, %v4021_v10  ;;  %v3326_v31 = vadd.f32 1.0, %v5087_v11  ;;  %v3117_v55 = vpop.f32.mrb[88].mxu0  ;;  %v2663_v12 = vpop.f32.mrb[93].mxu1  ;;  %v4304_v60 = vadd.f32 %v6485_v42, %v2661_v14 }
 0x2f6   :  { %v5089_v15 = vpop.eup %5088  ;;  %v4301_v17 = vadd.f32 %v4300_v13, %v3117_v55  ;;  %v4170_v18 = vpop.f32.mrb[89].mxu0 }
 0x2f7   :  { %v2664_v37 = vpop.f32.mrb[94].mxu1  ;;  %v3375_v57 = vmul.f32 %v3326_v31, %v3179_v8  ;;  %v3327_v21 = vadd.f32 1.0, %v5089_v15  ;;  %v3120_v22 = vpop.f32.mrb[90].mxu0 }
 0x2f8   :  { %v2666_v20 = vpop.f32.mrb[95].mxu1  ;;  %v3232_v61 = vmul.f32 0.70710677, %v4301_v17  ;;  %v4303_v0 = vadd.f32 %v4302_v58, %v3120_v22  ;;  %v4171_v24 = vpop.f32.mrb[91].mxu0  ;;  %v4306_v47 = vadd.f32 %v6485_v42, %v2664_v37  ;;  %v3183_v56 = vmul.f32 0.5, %v4301_v17 }
 0x2f9   :  { %v4022_v25 = vpack.c.bf16 %v3375_v57, %v3375_v57  ;;  %v3376_v16 = vmul.f32 %v3327_v21, %v3180_v34 }
 0x2fa   :  { %5094 = verf.f32 %v3232_v61  ;;  %v3233_v27 = vmul.f32 0.70710677, %v4303_v0  ;;  %v3184_v3 = vmul.f32 0.5, %v4303_v0 }
 0x2fb   :  { %3622 = vst.msk [vmem:[%s6545_s3 + $0xa0] sm:$0xf] %vm3581_vm1, %v4022_v25  ;;  %v4023_v28 = vpack.c.bf16 %v3376_v16, %v3376_v16 }
 0x2fc   :  { %v5091_v29 = vpop.eup %5090  ;;  %5096 = verf.f32 %v3233_v27  ;;  %v2669_v44 = vpop.f32.mrb[96].mxu1 }
 0x2fd   :  { %3623 = vst.msk [vmem:[%s6545_s3 + $0xa4] sm:$0xf] %vm3581_vm1, %v4023_v28  ;;  %v3328_v32 = vadd.f32 1.0, %v5091_v29  ;;  %v3125_v30 = vpop.f32.mrb[92].mxu0  ;;  %v2671_v19 = vpop.f32.mrb[97].mxu1  ;;  %v4308_v51 = vadd.f32 %v6485_v42, %v2669_v44 }
 0x2fe   :  { %v5093_v33 = vpop.eup %5092  ;;  %v4305_v36 = vadd.f32 %v4304_v60, %v3125_v30  ;;  %v4174_v43 = vpop.f32.mrb[93].mxu0 }
 0x2ff   :  { %v2672_v62 = vpop.f32.mrb[98].mxu1  ;;  %v3377_v2 = vmul.f32 %v3328_v32, %v3181_v40  ;;  %v3329_v1 = vadd.f32 1.0, %v5093_v33  ;;  %v3128_v41 = vpop.f32.mrb[94].mxu0 }
 0x300   :  { %v2673_v45 = vpop.f32.mrb[99].mxu1  ;;  %v3234_v46 = vmul.f32 0.70710677, %v4305_v36  ;;  %v4307_v35 = vadd.f32 %v4306_v47, %v3128_v41  ;;  %v4175_v5 = vpop.f32.mrb[95].mxu0  ;;  %v3185_v14 = vmul.f32 0.5, %v4305_v36 }
 0x301   :  { %v4024_v52 = vpack.c.bf16 %v3377_v2, %v3377_v2  ;;  %v3378_v23 = vmul.f32 %v3329_v1, %v3182_v39 }
 0x302   :  { %5098 = verf.f32 %v3234_v46  ;;  %v3235_v49 = vmul.f32 0.70710677, %v4307_v35  ;;  %v3186_v12 = vmul.f32 0.5, %v4307_v35 }
 0x303   :  { %3624 = vst.msk [vmem:[%s6545_s3 + $0xa8] sm:$0xf] %vm3581_vm1, %v4024_v52  ;;  %v4025_v53 = vpack.c.bf16 %v3378_v23, %v3378_v23 }
 0x304   :  { %v5095_v48 = vpop.eup %5094  ;;  %5100 = verf.f32 %v3235_v49 }
 0x305   :  { %3625 = vst.msk [vmem:[%s6545_s3 + $0xac] sm:$0xf] %vm3581_vm1, %v4025_v53  ;;  %v3330_v54 = vadd.f32 1.0, %v5095_v48  ;;  %v3133_v59 = vpop.f32.mrb[96].mxu0 }
 0x306   :  { %v5097_v26 = vpop.eup %5096  ;;  %v4309_v38 = vadd.f32 %v4308_v51, %v3133_v59  ;;  %v4178_v50 = vpop.f32.mrb[97].mxu0 }
 0x307   :  { %v3379_v63 = vmul.f32 %v3330_v54, %v3183_v56  ;;  %v3331_v4 = vadd.f32 1.0, %v5097_v26  ;;  %v3136_v6 = vpop.f32.mrb[98].mxu0 }
 0x308   :  { %v3236_v9 = vmul.f32 0.70710677, %v4309_v38  ;;  %v4179_v7 = vpop.f32.mrb[99].mxu0  ;;  %v3187_v57 = vmul.f32 0.5, %v4309_v38 }
 0x309   :  { %v4026_v10 = vpack.c.bf16 %v3379_v63, %v3379_v63  ;;  %v3380_v42 = vmul.f32 %v3331_v4, %v3184_v3 }
 0x30a   :  { %5102 = verf.f32 %v3236_v9 }
 0x30b   :  { %3626 = vst.msk [vmem:[%s6545_s3 + $0xb0] sm:$0xf] %vm3581_vm1, %v4026_v10  ;;  %v4027_v11 = vpack.c.bf16 %v3380_v42, %v3380_v42 }
 0x30c   :  { %v5099_v13 = vpop.eup %5098 }
 0x30d   :  { %3627 = vst.msk [vmem:[%s6545_s3 + $0xb4] sm:$0xf] %vm3581_vm1, %v4027_v11  ;;  %v3332_v8 = vadd.f32 1.0, %v5099_v13 }
 0x30e   :  { %v5101_v31 = vpop.eup %5100 }
 0x30f   :  { %v3381_v55 = vmul.f32 %v3332_v8, %v3185_v14  ;;  %v3333_v15 = vadd.f32 1.0, %v5101_v31 }
 0x311   :  { %v4028_v58 = vpack.c.bf16 %v3381_v55, %v3381_v55  ;;  %v3382_v17 = vmul.f32 %v3333_v15, %v3186_v12 }
 0x313   :  { %3628 = vst.msk [vmem:[%s6545_s3 + $0xb8] sm:$0xf] %vm3581_vm1, %v4028_v58  ;;  %v4029_v18 = vpack.c.bf16 %v3382_v17, %v3382_v17 }
 0x314   :  { %v5103_v37 = vpop.eup %5102 }
 0x315   :  { %3629 = vst.msk [vmem:[%s6545_s3 + $0xbc] sm:$0xf] %vm3581_vm1, %v4029_v18  ;;  %v3334_v34 = vadd.f32 1.0, %v5103_v37 }
 0x317   :  { %v3383_v21 = vmul.f32 %v3334_v34, %v3187_v57 }
 0x319   :  { %v4030_v22 = vpack.c.bf16 %v3383_v21, %v3383_v21 }
 0x31b   :  { %3630 = vst.msk [vmem:[%s6545_s3 + $0xc0] sm:$0xf] %vm3581_vm1, %v4030_v22 }

// kernel: cae_forward.21
= control target key start
LH: loop header
LB: loop body
LE: loop exit
PB: predicated region body
PF: predicated region fallthrough
CT: control target
= control target key end

     0   :  { %s5313_s14 = smov 0   ;;  %s6404_s0 = inlined_call_operand.vmem [shape: bf16[1568,576], index: 0, kind: input, shape index: {}]   ;;  %s6405_s1 = inlined_call_operand.vmem [shape: bf16[576,1], index: 1, kind: input, shape index: {}]   ;;  %s6406_s2 = inlined_call_operand.<no memory space> [shape: f32[1,1], index: 2, kind: input, shape index: {}]   ;;  %s6407_s3 = inlined_call_operand.vmem [shape: f32[1568,1], index: 3, kind: output, shape index: {}]  }
   0x1   :  { %v8_v0 = vstv %s6406_s2 }
   0x2   :  { %9 = vst [vmem:[#allocation2] sm:$0x1] %v8_v0 }
   0x3 LB: > { %s3670_s15 = sadd.s32 4294967295, %s5285_s14   ;;  %p3674_p0 = scmp.ge.s32.totalorder %s5285_s14, 1  ;;  %s5285_s14 = sphi %s5313_s14, %s15_s14  }
   0x4   : > { %p141_p1 = scmp.lt.s32.totalorder %s5285_s14, 3 }
   0x6   : > { %p142_p2 = pnand %p3674_p0, %p141_p1 }
   0x7   : > { %v4703_v1 = vld [vmem:[%s6405_s1] sm:$0xff] (!%p142_p2)   ;;  %v5287_v2 = vmov (!%p142_p2), 0   ;;  %v4705_v4 = vld [vmem:[%s6405_s1 + $0x8] sm:$0xff] (!%p142_p2)   ;;  %v4707_v6 = vld [vmem:[%s6405_s1 + $0x10] sm:$0xff] (!%p142_p2)   ;;  %s166_s6 = smul.u32 (!%p142_p2), 98, %s3670_s15  ;;  %v5288_v40 = vmov (!%p142_p2), 0.0  }
   0x8   : > { %145 = sbr.rel (%p142_p2) target bundleno = 884 (0x374), region = 32  ;;  %2142 = vmatprep.subr.bf16.mxu1 (!%p142_p2), %v5287_v2  ;;  %2567 = vmatprep.subr.bf16.mxu0 (!%p142_p2), %v5287_v2  ;;  %v5329_v3 = vld [vmem:[%s6405_s1 + $0x80] sm:$0xff] (!%p142_p2)   ;;  %v5339_v5 = vld [vmem:[%s6405_s1 + $0x88] sm:$0xff] (!%p142_p2)   ;;  %v5350_v7 = vld [vmem:[%s6405_s1 + $0x90] sm:$0xff] (!%p142_p2)   ;;  %vm5289_vm0 = vmmov (!%p142_p2), 0   ;;  %vm1994_vm1 = vcmask (!%p142_p2), 523264  }
   0x9   : > { %2143 = vmatpush1.bf16.msra.mxu1 (!%p142_p2), %v4703_v1  ;;  %2568 = vmatpush1.bf16.msra.mxu0 (!%p142_p2), %v5329_v3  ;;  %v4709_v8 = vld [vmem:[%s6405_s1 + $0x18] sm:$0xff] (!%p142_p2)   ;;  %v4711_v10 = vld [vmem:[%s6405_s1 + $0x20] sm:$0xff] (!%p142_p2)   ;;  %v4713_v12 = vld [vmem:[%s6405_s1 + $0x28] sm:$0xff] (!%p142_p2)   ;;  %p167_p3 = scmp.lt.s32.totalorder (!%p142_p2), %s166_s6, 195  ;;  %vm3515_vm2 = vcmask (!%p142_p2), 7168  }
   0xa   : > { %2144 = vmatprep.subr.bf16.mxu1 (!%p142_p2), %v5287_v2  ;;  %2569 = vmatprep.subr.bf16.mxu0 (!%p142_p2), %v5287_v2  ;;  %v5361_v9 = vld [vmem:[%s6405_s1 + $0x98] sm:$0xff] (!%p142_p2)   ;;  %v5374_v11 = vld [vmem:[%s6405_s1 + $0xa0] sm:$0xff] (!%p142_p2)   ;;  %v5385_v13 = vld [vmem:[%s6405_s1 + $0xa8] sm:$0xff] (!%p142_p2)  }
   0xb   : > { %v4715_v14 = vld [vmem:[%s6405_s1 + $0x30] sm:$0xff] (!%p142_p2)   ;;  %v4717_v16 = vld [vmem:[%s6405_s1 + $0x38] sm:$0xff] (!%p142_p2)   ;;  %v4719_v18 = vld [vmem:[%s6405_s1 + $0x40] sm:$0xff] (!%p142_p2)  }
   0xc   : > { %v5398_v15 = vld [vmem:[%s6405_s1 + $0xb0] sm:$0xff] (!%p142_p2)   ;;  %v5410_v17 = vld [vmem:[%s6405_s1 + $0xb8] sm:$0xff] (!%p142_p2)   ;;  %v5426_v19 = vld [vmem:[%s6405_s1 + $0xc0] sm:$0xff] (!%p142_p2)  }
   0xd   : > { %2145 = vmatpush1.bf16.msra.mxu1 (!%p142_p2), %v4705_v4  ;;  %2570 = vmatpush1.bf16.msra.mxu0 (!%p142_p2), %v5339_v5  ;;  %v4721_v21 = vld [vmem:[%s6405_s1 + $0x48] sm:$0xff] (!%p142_p2)   ;;  %v4723_v24 = vld [vmem:[%s6405_s1 + $0x50] sm:$0xff] (!%p142_p2)   ;;  %v4725_v26 = vld [vmem:[%s6405_s1 + $0x58] sm:$0xff] (!%p142_p2)  }
   0xe   : > { %2146 = vmatprep.subr.bf16.mxu1 (!%p142_p2), %v5287_v2  ;;  %2571 = vmatprep.subr.bf16.mxu0 (!%p142_p2), %v5287_v2  ;;  %v5439_v23 = vld [vmem:[%s6405_s1 + $0xc8] sm:$0xff] (!%p142_p2)   ;;  %v5450_v25 = vld [vmem:[%s6405_s1 + $0xd0] sm:$0xff] (!%p142_p2)   ;;  %v5461_v27 = vld [vmem:[%s6405_s1 + $0xd8] sm:$0xff] (!%p142_p2)  }
   0xf   : > { %s6409_s6 = smov (!%p167_p3, %s166_s6), 195  ;;  %v4727_v28 = vld [vmem:[%s6405_s1 + $0x60] sm:$0xff]   ;;  %v4729_v30 = vld [vmem:[%s6405_s1 + $0x68] sm:$0xff]   ;;  %v4731_v32 = vld [vmem:[%s6405_s1 + $0x70] sm:$0xff]  }
  0x10   : > { %s4691_s19 = smul.u32 20, %s6409_s6  ;;  %v5472_v29 = vld [vmem:[%s6405_s1 + $0xe0] sm:$0xff]   ;;  %v5483_v31 = vld [vmem:[%s6405_s1 + $0xe8] sm:$0xff]   ;;  %v5494_v33 = vld [vmem:[%s6405_s1 + $0xf0] sm:$0xff]   ;;  %s3676_s15 = sshll.u32 %s6409_s6, 3 }
  0x11   : > { %2147 = vmatpush1.bf16.msra.mxu1 %v4707_v6  ;;  %2572 = vmatpush1.bf16.msra.mxu0 %v5350_v7  ;;  %v4733_v34 = vld [vmem:[%s6405_s1 + $0x78] sm:$0xff]   ;;  %v4741_v39 = vld [vmem:[%s6405_s1 + $0x100] sm:$0xff]   ;;  %v4778_v42 = vld [vmem:[%s6405_s1 + $0x108] sm:$0xff]   ;;  %s5943_s2 = scalar_lea.vmem %s6407_s3, %s3676_s15 }
  0x12   : > { %2148 = vmatprep.subr.bf16.mxu1 %v5287_v2  ;;  %2573 = vmatprep.subr.bf16.mxu0 %v5287_v2  ;;  %s5419_s26 = scalar_lea.vmem %s6404_s0, %s4691_s19  ;;  %v5505_v35 = vld [vmem:[%s6405_s1 + $0xf8] sm:$0xff]   ;;  %v4815_v47 = vld [vmem:[%s6405_s1 + $0x110] sm:$0xff]  }
  0x13   : > { %v4737_v20 = vld [vmem:[%s5419_s26 + $0x4] ss:$20 sps:$4 sm:$0xff]   ;;  %v4740_v22 = vld [vmem:[%s5419_s26 + $0xc] ss:$20 sps:$4 sm:$0xff]   ;;  %v4738_v37 = vld [vmem:[%s5419_s26 + $0x8] ss:$20 sps:$4 sm:$0xff]  }
  0x14   : > { %2174 = vmatprep.mubr.bf16.mxu1 %v4737_v20  ;;  %2599 = vmatprep.mubr.bf16.mxu0 %v4740_v22  ;;  %v4735_v36 = vld [vmem:[%s5419_s26] ss:$20 sps:$4 sm:$0xff]   ;;  %v4746_v43 = vld [vmem:[%s5419_s26 + $0x28] ss:$20 sps:$4 sm:$0xff]   ;;  %v4747_v44 = vld [vmem:[%s5419_s26 + $0x30] ss:$20 sps:$4 sm:$0xff]  }
  0x15   : > { %2149 = vmatpush1.bf16.msra.mxu1 %v4709_v8  ;;  %2574 = vmatpush1.bf16.msra.mxu0 %v5361_v9  ;;  %v4742_v38 = vld [vmem:[%s5419_s26 + $0x2c] ss:$20 sps:$4 sm:$0xff]   ;;  %v4744_v41 = vld [vmem:[%s5419_s26 + $0x34] ss:$20 sps:$4 sm:$0xff]   ;;  %v4750_v46 = vld [vmem:[%s5419_s26 + $0x5c] ss:$20 sps:$4 sm:$0xff]  }
  0x16   : > { %2150 = vmatprep.subr.bf16.mxu1 %v5287_v2  ;;  %2575 = vmatprep.subr.bf16.mxu0 %v5287_v2  ;;  %v4748_v45 = vld [vmem:[%s5419_s26 + $0x54] ss:$20 sps:$4 sm:$0xff]   ;;  %v4752_v48 = vld [vmem:[%s5419_s26 + $0x50] ss:$20 sps:$4 sm:$0xff]   ;;  %v4753_v49 = vld [vmem:[%s5419_s26 + $0x58] ss:$20 sps:$4 sm:$0xff]  }
  0x17   : > { %v4754_v50 = vld [vmem:[%s5419_s26 + $0x7c] ss:$20 sps:$4 sm:$0xff]   ;;  %v4756_v51 = vld [vmem:[%s5419_s26 + $0x84] ss:$20 sps:$4 sm:$0xff]   ;;  %v4759_v53 = vld [vmem:[%s5419_s26 + $0x80] ss:$20 sps:$4 sm:$0xff]  }
  0x18   : > { %v4758_v52 = vld [vmem:[%s5419_s26 + $0x78] ss:$20 sps:$4 sm:$0xff]   ;;  %v4764_v57 = vld [vmem:[%s5419_s26 + $0xa0] ss:$20 sps:$4 sm:$0xff]   ;;  %v4765_v58 = vld [vmem:[%s5419_s26 + $0xa8] ss:$20 sps:$4 sm:$0xff]  }
  0x19   : > { %2151 = vmatpush1.bf16.msra.mxu1 %v4711_v10  ;;  %2576 = vmatpush1.bf16.msra.mxu0 %v5374_v11  ;;  %v4760_v54 = vld [vmem:[%s5419_s26 + $0xa4] ss:$20 sps:$4 sm:$0xff]   ;;  %v4762_v55 = vld [vmem:[%s5419_s26 + $0xac] ss:$20 sps:$4 sm:$0xff]   ;;  %v4768_v60 = vld [vmem:[%s5419_s26 + $0xd4] ss:$20 sps:$4 sm:$0xff]  }
  0x1a   : > { %2152 = vmatprep.subr.bf16.mxu1 %v5287_v2  ;;  %2577 = vmatprep.subr.bf16.mxu0 %v5287_v2  ;;  %v4856_v56 = vld [vmem:[%s6405_s1 + $0x118] sm:$0xff]   ;;  %v4766_v59 = vld [vmem:[%s5419_s26 + $0xcc] ss:$20 sps:$4 sm:$0xff]   ;;  %v4771_v62 = vld [vmem:[%s5419_s26 + $0xd0] ss:$20 sps:$4 sm:$0xff]  }
  0x1b   : > { %v4770_v61 = vld [vmem:[%s5419_s26 + $0xc8] ss:$20 sps:$4 sm:$0xff]   ;;  %v4776_v1 = vld [vmem:[%s5419_s26 + $0xf0] ss:$20 sps:$4 sm:$0xff]   ;;  %v4783_v6 = vld [vmem:[%s5419_s26 + $0x118] ss:$20 sps:$4 sm:$0xff]  }
  0x1c   : > { %v4772_v63 = vld [vmem:[%s5419_s26 + $0xf4] ss:$20 sps:$4 sm:$0xff]   ;;  %v4774_v0 = vld [vmem:[%s5419_s26 + $0xfc] ss:$20 sps:$4 sm:$0xff]   ;;  %v4785_v8 = vld [vmem:[%s5419_s26 + $0x144] ss:$20 sps:$4 sm:$0xff]  }
  0x1d   : > { %2153 = vmatpush1.bf16.msra.mxu1 %v4713_v12  ;;  %2578 = vmatpush1.bf16.msra.mxu0 %v5385_v13  ;;  %v4779_v4 = vld [vmem:[%s5419_s26 + $0x11c] ss:$20 sps:$4 sm:$0xff]   ;;  %v4789_v10 = vld [vmem:[%s5419_s26 + $0x140] ss:$20 sps:$4 sm:$0xff]   ;;  %v4805_v20 = vld [vmem:[%s5419_s26 + $0x1c4] ss:$20 sps:$4 sm:$0xff]  }
  0x1e   : > { %2154 = vmatprep.subr.bf16.mxu1 %v5287_v2  ;;  %2579 = vmatprep.subr.bf16.mxu0 %v5287_v2  ;;  %v4791_v12 = vld [vmem:[%s5419_s26 + $0x16c] ss:$20 sps:$4 sm:$0xff]  }
  0x1f   : > { %v4808_v22 = vld [vmem:[%s5419_s26 + $0x1c0] ss:$20 sps:$4 sm:$0xff]  }
  0x21   : > { %2155 = vmatpush1.bf16.msra.mxu1 %v4715_v14  ;;  %2580 = vmatpush1.bf16.msra.mxu0 %v5398_v15  ;;  %v4795_v14 = vld [vmem:[%s5419_s26 + $0x168] ss:$20 sps:$4 sm:$0xff]  }
  0x22   : > { %2156 = vmatprep.subr.bf16.mxu1 %v5287_v2  ;;  %2581 = vmatprep.subr.bf16.mxu0 %v5287_v2 }
  0x25   : > { %2157 = vmatpush1.bf16.msra.mxu1 %v4717_v16  ;;  %2582 = vmatpush1.bf16.msra.mxu0 %v5410_v17  ;;  %v4797_v16 = vld [vmem:[%s5419_s26 + $0x194] ss:$20 sps:$4 sm:$0xff]  }
  0x26   : > { %2158 = vmatprep.subr.bf16.mxu1 %v5287_v2  ;;  %2583 = vmatprep.subr.bf16.mxu0 %v5287_v2 }
  0x29   : > { %2159 = vmatpush1.bf16.msra.mxu1 %v4719_v18  ;;  %2584 = vmatpush1.bf16.msra.mxu0 %v5426_v19  ;;  %v4802_v18 = vld [vmem:[%s5419_s26 + $0x198] ss:$20 sps:$4 sm:$0xff]  }
  0x2a   : > { %2160 = vmatprep.subr.bf16.mxu1 %v5287_v2  ;;  %2585 = vmatprep.subr.bf16.mxu0 %v5287_v2 }
  0x2d   : > { %2161 = vmatpush1.bf16.msra.mxu1 %v4721_v21  ;;  %2586 = vmatpush1.bf16.msra.mxu0 %v5439_v23  ;;  %v4807_v21 = vld [vmem:[%s5419_s26 + $0x1b8] ss:$20 sps:$4 sm:$0xff]  }
  0x2e   : > { %2162 = vmatprep.subr.bf16.mxu1 %v5287_v2  ;;  %2587 = vmatprep.subr.bf16.mxu0 %v5287_v2 }
  0x31   : > { %2163 = vmatpush1.bf16.msra.mxu1 %v4723_v24  ;;  %2588 = vmatpush1.bf16.msra.mxu0 %v5450_v25  ;;  %v4811_v24 = vld [vmem:[%s5419_s26 + $0x1ec] ss:$20 sps:$4 sm:$0xff]  }
  0x32   : > { %2164 = vmatprep.subr.bf16.mxu1 %v5287_v2  ;;  %2589 = vmatprep.subr.bf16.mxu0 %v5287_v2 }
  0x35   : > { %2165 = vmatpush1.bf16.msra.mxu1 %v4725_v26  ;;  %2590 = vmatpush1.bf16.msra.mxu0 %v5461_v27  ;;  %v4814_v26 = vld [vmem:[%s5419_s26 + $0x1e8] ss:$20 sps:$4 sm:$0xff]  }
  0x36   : > { %2166 = vmatprep.subr.bf16.mxu1 %v5287_v2  ;;  %2591 = vmatprep.subr.bf16.mxu0 %v5287_v2 }
  0x39   : > { %2167 = vmatpush1.bf16.msra.mxu1 %v4727_v28  ;;  %2592 = vmatpush1.bf16.msra.mxu0 %v5472_v29  ;;  %v4818_v28 = vld [vmem:[%s5419_s26 + $0x214] ss:$20 sps:$4 sm:$0xff]  }
  0x3a   : > { %2168 = vmatprep.subr.bf16.mxu1 %v5287_v2  ;;  %2593 = vmatprep.subr.bf16.mxu0 %v5287_v2 }
  0x3d   : > { %2169 = vmatpush1.bf16.msra.mxu1 %v4729_v30  ;;  %2594 = vmatpush1.bf16.msra.mxu0 %v5483_v31  ;;  %v4821_v30 = vld [vmem:[%s5419_s26 + $0x210] ss:$20 sps:$4 sm:$0xff]  }
  0x3e   : > { %2170 = vmatprep.subr.bf16.mxu1 %v5287_v2  ;;  %2595 = vmatprep.subr.bf16.mxu0 %v5287_v2 }
  0x41   : > { %2171 = vmatpush1.bf16.msra.mxu1 %v4731_v32  ;;  %2596 = vmatpush1.bf16.msra.mxu0 %v5494_v33  ;;  %v4824_v32 = vld [vmem:[%s5419_s26 + $0x23c] ss:$20 sps:$4 sm:$0xff]  }
  0x42   : > { %2172 = vmatprep.subr.bf16.mxu1 %v5287_v2  ;;  %2597 = vmatprep.subr.bf16.mxu0 %v5287_v2 }
  0x45   : > { %2173 = vmatpush1.bf16.msra.mxu1 %v4733_v34  ;;  %2598 = vmatpush1.bf16.msra.mxu0 %v5505_v35  ;;  %v4827_v34 = vld [vmem:[%s5419_s26 + $0x238] ss:$20 sps:$4 sm:$0xff]  }
  0x46   : > { %4267 = vmatprep.subr.bf16.mxu1 %v5287_v2  ;;  %4063 = vmatprep.subr.bf16.mxu0 %v5288_v40 }
  0x48   : > { %2175 = vmatmul.mubr.bf16.vlgmr.msra.gmra.mrb[0].mxu1 %v4735_v36  ;;  %2600 = vmatmul.mubr.bf16.vlgmr.msra.gmra.mrb[0].mxu0 %v4738_v37  ;;  %v4830_v36 = vld [vmem:[%s5419_s26 + $0x264] ss:$20 sps:$4 sm:$0xff]  }
  0x49   : > { %2182 = vmatprep.mubr.bf16.mxu1 %v4742_v38  ;;  %4064 = vmatpush3.bf16.msra.mxu0 %v4741_v39  ;;  %v4832_v37 = vld [vmem:[%s5419_s26 + $0x258] ss:$20 sps:$4 sm:$0xff]   ;;  %v4833_v38 = vld [vmem:[%s5419_s26 + $0x260] ss:$20 sps:$4 sm:$0xff]  }
  0x4a   : > { %4283 = vmatpush1.bf16.msra.mxu1 %v5329_v3  ;;  %2607 = vmatprep.mubr.bf16.mxu0 %v4744_v41  ;;  %v4777_v3 = vld [vmem:[%s5419_s26 + $0xf8] ss:$20 sps:$4 sm:$0xff]  }
  0x4b   : > { %4268 = vmatprep.subr.bf16.mxu1 %v5287_v2  ;;  %4065 = vmatprep.subr.bf16.mxu0 %v5288_v40  ;;  %v4834_v39 = vld [vmem:[%s5419_s26 + $0x284] ss:$20 sps:$4 sm:$0xff]   ;;  %v4836_v41 = vld [vmem:[%s5419_s26 + $0x28c] ss:$20 sps:$4 sm:$0xff]  }
  0x4d   : > { %4066 = vmatpush3.bf16.msra.mxu0 %v4778_v42  ;;  %v4838_v42 = vld [vmem:[%s5419_s26 + $0x280] ss:$20 sps:$4 sm:$0xff]  }
  0x4e   : > { %4284 = vmatpush1.bf16.msra.mxu1 %v5339_v5  ;;  %4067 = vmatprep.subr.bf16.mxu0 %v5288_v40  ;;  %v4781_v5 = vld [vmem:[%s5419_s26 + $0x124] ss:$20 sps:$4 sm:$0xff]  }
  0x4f   : > { %4269 = vmatprep.subr.bf16.mxu1 %v5287_v2 }
  0x50   : > { %2183 = vmatmul.mubr.bf16.gmra.mrb[4].mxu1 %v4746_v43  ;;  %2608 = vmatmul.mubr.bf16.gmra.mrb[4].mxu0 %v4747_v44  ;;  %v4839_v43 = vld [vmem:[%s5419_s26 + $0x288] ss:$20 sps:$4 sm:$0xff]   ;;  %v4840_v44 = vld [vmem:[%s5419_s26 + $0x2ac] ss:$20 sps:$4 sm:$0xff]  }
  0x51   : > { %2190 = vmatprep.mubr.bf16.mxu1 %v4748_v45  ;;  %2615 = vmatprep.mubr.bf16.mxu0 %v4750_v46  ;;  %v4842_v45 = vld [vmem:[%s5419_s26 + $0x2b4] ss:$20 sps:$4 sm:$0xff]  }
  0x52   : > { %4285 = vmatpush1.bf16.msra.mxu1 %v5350_v7  ;;  %4068 = vmatpush3.bf16.msra.mxu0 %v4815_v47  ;;  %v4784_v7 = vld [vmem:[%s5419_s26 + $0x120] ss:$20 sps:$4 sm:$0xff]   ;;  %v4844_v46 = vld [vmem:[%s5419_s26 + $0x2a8] ss:$20 sps:$4 sm:$0xff]   ;;  %v4845_v47 = vld [vmem:[%s5419_s26 + $0x2b0] ss:$20 sps:$4 sm:$0xff]  }
  0x53   : > { %4270 = vmatprep.subr.bf16.mxu1 %v5287_v2  ;;  %4069 = vmatprep.subr.bf16.mxu0 %v5288_v40 }
  0x56   : > { %4286 = vmatpush1.bf16.msra.mxu1 %v5361_v9  ;;  %4070 = vmatpush3.bf16.msra.mxu0 %v4856_v56  ;;  %v4787_v9 = vld [vmem:[%s5419_s26 + $0x14c] ss:$20 sps:$4 sm:$0xff]   ;;  %v4859_v56 = vld [vmem:[%s5419_s26 + $0x324] ss:$20 sps:$4 sm:$0xff]  }
  0x57   : > { %4271 = vmatprep.subr.bf16.mxu1 %v5287_v2 }
  0x58   : > { %2191 = vmatmul.mubr.bf16.gmra.mrb[8].mxu1 %v4752_v48  ;;  %2616 = vmatmul.mubr.bf16.gmra.mrb[8].mxu0 %v4753_v49  ;;  %v4846_v48 = vld [vmem:[%s5419_s26 + $0x2d4] ss:$20 sps:$4 sm:$0xff]   ;;  %v4848_v49 = vld [vmem:[%s5419_s26 + $0x2dc] ss:$20 sps:$4 sm:$0xff]  }
  0x59   : > { %2198 = vmatprep.mubr.bf16.mxu1 %v4754_v50  ;;  %2623 = vmatprep.mubr.bf16.mxu0 %v4756_v51  ;;  %v4850_v50 = vld [vmem:[%s5419_s26 + $0x2d0] ss:$20 sps:$4 sm:$0xff]   ;;  %v4851_v51 = vld [vmem:[%s5419_s26 + $0x2d8] ss:$20 sps:$4 sm:$0xff]  }
  0x5a   : > { %4287 = vmatpush1.bf16.msra.mxu1 %v5374_v11  ;;  %v4790_v11 = vld [vmem:[%s5419_s26 + $0x148] ss:$20 sps:$4 sm:$0xff]  }
  0x5b   : > { %4272 = vmatprep.subr.bf16.mxu1 %v5287_v2 }
  0x5e   : > { %4288 = vmatpush1.bf16.msra.mxu1 %v5385_v13  ;;  %v4793_v13 = vld [vmem:[%s5419_s26 + $0x174] ss:$20 sps:$4 sm:$0xff]  }
  0x5f   : > { %4273 = vmatprep.subr.bf16.mxu1 %v5287_v2 }
  0x60   : > { %2199 = vmatmul.mubr.bf16.gmra.mrb[12].mxu1 %v4758_v52  ;;  %2624 = vmatmul.mubr.bf16.gmra.mrb[12].mxu0 %v4759_v53  ;;  %v4852_v52 = vld [vmem:[%s5419_s26 + $0x2fc] ss:$20 sps:$4 sm:$0xff]   ;;  %v4854_v53 = vld [vmem:[%s5419_s26 + $0x304] ss:$20 sps:$4 sm:$0xff]  }
  0x61   : > { %2206 = vmatprep.mubr.bf16.mxu1 %v4760_v54  ;;  %2631 = vmatprep.mubr.bf16.mxu0 %v4762_v55  ;;  %v4857_v54 = vld [vmem:[%s5419_s26 + $0x2f8] ss:$20 sps:$4 sm:$0xff]   ;;  %v4858_v55 = vld [vmem:[%s5419_s26 + $0x300] ss:$20 sps:$4 sm:$0xff]  }
  0x62   : > { %4289 = vmatpush1.bf16.msra.mxu1 %v5398_v15  ;;  %v4796_v15 = vld [vmem:[%s5419_s26 + $0x170] ss:$20 sps:$4 sm:$0xff]  }
  0x63   : > { %4274 = vmatprep.subr.bf16.mxu1 %v5287_v2 }
  0x66   : > { %4290 = vmatpush1.bf16.msra.mxu1 %v5410_v17  ;;  %v4799_v17 = vld [vmem:[%s5419_s26 + $0x19c] ss:$20 sps:$4 sm:$0xff]  }
  0x67   : > { %4275 = vmatprep.subr.bf16.mxu1 %v5287_v2 }
  0x68   : > { %2207 = vmatmul.mubr.bf16.gmra.mrb[16].mxu1 %v4764_v57  ;;  %2632 = vmatmul.mubr.bf16.gmra.mrb[16].mxu0 %v4765_v58  ;;  %v4861_v57 = vld [vmem:[%s5419_s26 + $0x32c] ss:$20 sps:$4 sm:$0xff]  }
  0x69   : > { %2214 = vmatprep.mubr.bf16.mxu1 %v4766_v59  ;;  %2639 = vmatprep.mubr.bf16.mxu0 %v4768_v60  ;;  %v4863_v58 = vld [vmem:[%s5419_s26 + $0x320] ss:$20 sps:$4 sm:$0xff]   ;;  %v4864_v59 = vld [vmem:[%s5419_s26 + $0x328] ss:$20 sps:$4 sm:$0xff]  }
  0x6a   : > { %4291 = vmatpush1.bf16.msra.mxu1 %v5426_v19  ;;  %v4803_v19 = vld [vmem:[%s5419_s26 + $0x1bc] ss:$20 sps:$4 sm:$0xff]   ;;  %v4865_v60 = vld [vmem:[%s5419_s26 + $0x34c] ss:$20 sps:$4 sm:$0xff]  }
  0x6b   : > { %4276 = vmatprep.subr.bf16.mxu1 %v5287_v2 }
  0x6e   : > { %4292 = vmatpush1.bf16.msra.mxu1 %v5439_v23  ;;  %v4809_v23 = vld [vmem:[%s5419_s26 + $0x1e4] ss:$20 sps:$4 sm:$0xff]  }
  0x6f   : > { %4277 = vmatprep.subr.bf16.mxu1 %v5287_v2 }
  0x70   : > { %2215 = vmatmul.mubr.bf16.gmra.mrb[20].mxu1 %v4770_v61  ;;  %2640 = vmatmul.mubr.bf16.gmra.mrb[20].mxu0 %v4771_v62  ;;  %v4867_v61 = vld [vmem:[%s5419_s26 + $0x354] ss:$20 sps:$4 sm:$0xff]  }
  0x71   : > { %2222 = vmatprep.mubr.bf16.mxu1 %v4772_v63  ;;  %2647 = vmatprep.mubr.bf16.mxu0 %v4774_v0  ;;  %v4869_v62 = vld [vmem:[%s5419_s26 + $0x348] ss:$20 sps:$4 sm:$0xff]   ;;  %v4870_v63 = vld [vmem:[%s5419_s26 + $0x350] ss:$20 sps:$4 sm:$0xff]  }
  0x72   : > { %4293 = vmatpush1.bf16.msra.mxu1 %v5450_v25  ;;  %v4813_v25 = vld [vmem:[%s5419_s26 + $0x1e0] ss:$20 sps:$4 sm:$0xff]  }
  0x73   : > { %4278 = vmatprep.subr.bf16.mxu1 %v5287_v2  ;;  %v4871_v0 = vld [vmem:[%s5419_s26 + $0x374] ss:$20 sps:$4 sm:$0xff]  }
  0x76   : > { %4294 = vmatpush1.bf16.msra.mxu1 %v5461_v27  ;;  %v4816_v27 = vld [vmem:[%s5419_s26 + $0x20c] ss:$20 sps:$4 sm:$0xff]  }
  0x77   : > { %4279 = vmatprep.subr.bf16.mxu1 %v5287_v2 }
  0x78   : > { %2223 = vmatmul.mubr.bf16.gmra.mrb[24].mxu1 %v4776_v1  ;;  %2648 = vmatmul.mubr.bf16.gmra.mrb[24].mxu0 %v4777_v3  ;;  %v4873_v1 = vld [vmem:[%s5419_s26 + $0x37c] ss:$20 sps:$4 sm:$0xff]  }
  0x79   : > { %2230 = vmatprep.mubr.bf16.mxu1 %v4779_v4  ;;  %2655 = vmatprep.mubr.bf16.mxu0 %v4781_v5  ;;  %v4875_v3 = vld [vmem:[%s5419_s26 + $0x370] ss:$20 sps:$4 sm:$0xff]   ;;  %v4876_v4 = vld [vmem:[%s5419_s26 + $0x378] ss:$20 sps:$4 sm:$0xff]  }
  0x7a   : > { %4295 = vmatpush1.bf16.msra.mxu1 %v5472_v29  ;;  %v4820_v29 = vld [vmem:[%s5419_s26 + $0x208] ss:$20 sps:$4 sm:$0xff]  }
  0x7b   : > { %4280 = vmatprep.subr.bf16.mxu1 %v5287_v2  ;;  %v4877_v5 = vld [vmem:[%s5419_s26 + $0x39c] ss:$20 sps:$4 sm:$0xff]  }
  0x7e   : > { %4296 = vmatpush1.bf16.msra.mxu1 %v5483_v31  ;;  %v4822_v31 = vld [vmem:[%s5419_s26 + $0x234] ss:$20 sps:$4 sm:$0xff]  }
  0x7f   : > { %4281 = vmatprep.subr.bf16.mxu1 %v5287_v2 }
  0x80   : > { %2231 = vmatmul.mubr.bf16.gmra.mrb[28].mxu1 %v4783_v6  ;;  %2656 = vmatmul.mubr.bf16.gmra.mrb[28].mxu0 %v4784_v7  ;;  %v4879_v6 = vld [vmem:[%s5419_s26 + $0x3a4] ss:$20 sps:$4 sm:$0xff]  }
  0x81   : > { %2238 = vmatprep.mubr.bf16.mxu1 %v4785_v8  ;;  %2663 = vmatprep.mubr.bf16.mxu0 %v4787_v9  ;;  %v4881_v7 = vld [vmem:[%s5419_s26 + $0x398] ss:$20 sps:$4 sm:$0xff]   ;;  %v4882_v8 = vld [vmem:[%s5419_s26 + $0x3a0] ss:$20 sps:$4 sm:$0xff]  }
  0x82   : > { %4297 = vmatpush1.bf16.msra.mxu1 %v5494_v33  ;;  %v4826_v33 = vld [vmem:[%s5419_s26 + $0x230] ss:$20 sps:$4 sm:$0xff]  }
  0x83   : > { %4282 = vmatprep.subr.bf16.mxu1 %v5287_v2  ;;  %v4801_v2 = vld [vmem:[%s5419_s26 + $0x190] ss:$20 sps:$4 sm:$0xff]  }
  0x84   : > { %v4883_v9 = vld [vmem:[%s5419_s26 + $0x3c4] ss:$20 sps:$4 sm:$0xff]  }
  0x86   : > { %4298 = vmatpush1.bf16.msra.mxu1 %v5505_v35  ;;  %v4828_v35 = vld [vmem:[%s5419_s26 + $0x25c] ss:$20 sps:$4 sm:$0xff]  }
  0x88   : > { %2239 = vmatmul.mubr.bf16.gmra.mrb[32].mxu1 %v4789_v10  ;;  %2664 = vmatmul.mubr.bf16.gmra.mrb[32].mxu0 %v4790_v11  ;;  %v4885_v10 = vld [vmem:[%s5419_s26 + $0x3cc] ss:$20 sps:$4 sm:$0xff]  }
  0x89   : > { %2246 = vmatprep.mubr.bf16.mxu1 %v4791_v12  ;;  %2671 = vmatprep.mubr.bf16.mxu0 %v4793_v13  ;;  %v4887_v11 = vld [vmem:[%s5419_s26 + $0x3c0] ss:$20 sps:$4 sm:$0xff]   ;;  %v4888_v12 = vld [vmem:[%s5419_s26 + $0x3c8] ss:$20 sps:$4 sm:$0xff]  }
  0x8a   : > { %v4889_v13 = vld [vmem:[%s5419_s26 + $0x3ec] ss:$20 sps:$4 sm:$0xff]  }
  0x90   : > { %2247 = vmatmul.mubr.bf16.gmra.mrb[36].mxu1 %v4795_v14  ;;  %2672 = vmatmul.mubr.bf16.gmra.mrb[36].mxu0 %v4796_v15  ;;  %v4891_v14 = vld [vmem:[%s5419_s26 + $0x3e8] ss:$20 sps:$4 sm:$0xff]   ;;  %v4892_v15 = vld [vmem:[%s5419_s26 + $0x10] ss:$20 sps:$4 sm:$0xff]  }
  0x91   : > { %2254 = vmatprep.mubr.bf16.mxu1 %v4797_v16  ;;  %2679 = vmatprep.mubr.bf16.mxu0 %v4799_v17  ;;  %v4893_v16 = vld [vmem:[%s5419_s26 + $0x414] ss:$20 sps:$4 sm:$0xff]   ;;  %v4895_v17 = vld [vmem:[%s5419_s26 + $0x410] ss:$20 sps:$4 sm:$0xff]  }
  0x98   : > { %2255 = vmatmul.mubr.bf16.gmra.mrb[40].mxu1 %v4801_v2  ;;  %2680 = vmatmul.mubr.bf16.gmra.mrb[40].mxu0 %v4802_v18  ;;  %v4896_v2 = vld [vmem:[%s5419_s26 + $0x38] ss:$20 sps:$4 sm:$0xff]   ;;  %v4897_v18 = vld [vmem:[%s5419_s26 + $0x43c] ss:$20 sps:$4 sm:$0xff]  }
  0x99   : > { %2262 = vmatprep.mubr.bf16.mxu1 %v4803_v19  ;;  %2687 = vmatprep.mubr.bf16.mxu0 %v4805_v20 }
  0xa0   : > { %2263 = vmatmul.mubr.bf16.gmra.mrb[44].mxu1 %v4807_v21  ;;  %2688 = vmatmul.mubr.bf16.gmra.mrb[44].mxu0 %v4808_v22  ;;  %v4899_v21 = vld [vmem:[%s5419_s26 + $0x438] ss:$20 sps:$4 sm:$0xff]   ;;  %v4900_v22 = vld [vmem:[%s5419_s26 + $0x60] ss:$20 sps:$4 sm:$0xff]  }
  0xa1   : > { %2270 = vmatprep.mubr.bf16.mxu1 %v4809_v23  ;;  %2695 = vmatprep.mubr.bf16.mxu0 %v4811_v24  ;;  %v4901_v24 = vld [vmem:[%s5419_s26 + $0x464] ss:$20 sps:$4 sm:$0xff]  }
  0xa8   : > { %2271 = vmatmul.mubr.bf16.gmra.mrb[48].mxu1 %v4813_v25  ;;  %2696 = vmatmul.mubr.bf16.gmra.mrb[48].mxu0 %v4814_v26 }
  0xa9   : > { %2278 = vmatprep.mubr.bf16.mxu1 %v4816_v27  ;;  %2703 = vmatprep.mubr.bf16.mxu0 %v4818_v28  ;;  %v4903_v28 = vld [vmem:[%s5419_s26 + $0x460] ss:$20 sps:$4 sm:$0xff]  }
  0xb0   : > { %2279 = vmatmul.mubr.bf16.gmra.mrb[52].mxu1 %v4820_v29  ;;  %2704 = vmatmul.mubr.bf16.gmra.mrb[52].mxu0 %v4821_v30  ;;  %v4904_v29 = vld [vmem:[%s5419_s26 + $0x88] ss:$20 sps:$4 sm:$0xff]  }
  0xb1   : > { %2286 = vmatprep.mubr.bf16.mxu1 %v4822_v31  ;;  %2711 = vmatprep.mubr.bf16.mxu0 %v4824_v32  ;;  %v4905_v31 = vld [vmem:[%s5419_s26 + $0x48c] ss:$20 sps:$4 sm:$0xff]  }
  0xb8   : > { %2287 = vmatmul.mubr.bf16.gmra.mrb[56].mxu1 %v4826_v33  ;;  %2712 = vmatmul.mubr.bf16.gmra.mrb[56].mxu0 %v4827_v34 }
  0xb9   : > { %2294 = vmatprep.mubr.bf16.mxu1 %v4828_v35  ;;  %2719 = vmatprep.mubr.bf16.mxu0 %v4830_v36  ;;  %v4907_v35 = vld [vmem:[%s5419_s26 + $0x488] ss:$20 sps:$4 sm:$0xff]   ;;  %v4908_v36 = vld [vmem:[%s5419_s26 + $0xb0] ss:$20 sps:$4 sm:$0xff]  }
  0xc0   : > { %2295 = vmatmul.mubr.bf16.gmra.mrb[60].mxu1 %v4832_v37  ;;  %2720 = vmatmul.mubr.bf16.gmra.mrb[60].mxu0 %v4833_v38  ;;  %v4909_v38 = vld [vmem:[%s5419_s26 + $0x4b4] ss:$20 sps:$4 sm:$0xff]  }
  0xc1   : > { %2302 = vmatprep.mubr.bf16.mxu1 %v4834_v39  ;;  %2727 = vmatprep.mubr.bf16.mxu0 %v4836_v41 }
  0xc8   : > { %2303 = vmatmul.mubr.bf16.gmra.mrb[64].mxu1 %v4838_v42  ;;  %2728 = vmatmul.mubr.bf16.gmra.mrb[64].mxu0 %v4839_v43  ;;  %v4911_v43 = vld [vmem:[%s5419_s26 + $0x4b0] ss:$20 sps:$4 sm:$0xff]  }
  0xc9   : > { %2310 = vmatprep.mubr.bf16.mxu1 %v4840_v44  ;;  %2735 = vmatprep.mubr.bf16.mxu0 %v4842_v45  ;;  %v4912_v44 = vld [vmem:[%s5419_s26 + $0xd8] ss:$20 sps:$4 sm:$0xff]  }
  0xd0   : > { %2311 = vmatmul.mubr.bf16.gmra.mrb[68].mxu1 %v4844_v46  ;;  %2736 = vmatmul.mubr.bf16.gmra.mrb[68].mxu0 %v4845_v47  ;;  %v4913_v46 = vld [vmem:[%s5419_s26 + $0x4dc] ss:$20 sps:$4 sm:$0xff]  }
  0xd1   : > { %2318 = vmatprep.mubr.bf16.mxu1 %v4846_v48  ;;  %2743 = vmatprep.mubr.bf16.mxu0 %v4848_v49 }
  0xd8   : > { %2319 = vmatmul.mubr.bf16.gmra.mrb[72].mxu1 %v4850_v50  ;;  %2744 = vmatmul.mubr.bf16.gmra.mrb[72].mxu0 %v4851_v51  ;;  %v4915_v50 = vld [vmem:[%s5419_s26 + $0x4d8] ss:$20 sps:$4 sm:$0xff]   ;;  %v4916_v51 = vld [vmem:[%s5419_s26 + $0x100] ss:$20 sps:$4 sm:$0xff]  }
  0xd9   : > { %2326 = vmatprep.mubr.bf16.mxu1 %v4852_v52  ;;  %2751 = vmatprep.mubr.bf16.mxu0 %v4854_v53  ;;  %v4917_v53 = vld [vmem:[%s5419_s26 + $0x504] ss:$20 sps:$4 sm:$0xff]  }
  0xe0   : > { %2327 = vmatmul.mubr.bf16.gmra.mrb[76].mxu1 %v4857_v54  ;;  %2752 = vmatmul.mubr.bf16.gmra.mrb[76].mxu0 %v4858_v55 }
  0xe1   : > { %2334 = vmatprep.mubr.bf16.mxu1 %v4859_v56  ;;  %2759 = vmatprep.mubr.bf16.mxu0 %v4861_v57  ;;  %v4919_v57 = vld [vmem:[%s5419_s26 + $0x500] ss:$20 sps:$4 sm:$0xff]  }
  0xe8   : > { %2335 = vmatmul.mubr.bf16.gmra.mrb[80].mxu1 %v4863_v58  ;;  %2760 = vmatmul.mubr.bf16.gmra.mrb[80].mxu0 %v4864_v59  ;;  %v4920_v58 = vld [vmem:[%s5419_s26 + $0x128] ss:$20 sps:$4 sm:$0xff]  }
  0xe9   : > { %2342 = vmatprep.mubr.bf16.mxu1 %v4865_v60  ;;  %2767 = vmatprep.mubr.bf16.mxu0 %v4867_v61  ;;  %v4921_v60 = vld [vmem:[%s5419_s26 + $0x52c] ss:$20 sps:$4 sm:$0xff]  }
  0xf0   : > { %2343 = vmatmul.mubr.bf16.gmra.mrb[84].mxu1 %v4869_v62  ;;  %2768 = vmatmul.mubr.bf16.gmra.mrb[84].mxu0 %v4870_v63 }
  0xf1   : > { %2350 = vmatprep.mubr.bf16.mxu1 %v4871_v0  ;;  %2775 = vmatprep.mubr.bf16.mxu0 %v4873_v1  ;;  %v4923_v0 = vld [vmem:[%s5419_s26 + $0x528] ss:$20 sps:$4 sm:$0xff]   ;;  %v4924_v1 = vld [vmem:[%s5419_s26 + $0x150] ss:$20 sps:$4 sm:$0xff]  }
  0xf8   : > { %2351 = vmatmul.mubr.bf16.gmra.mrb[88].mxu1 %v4875_v3  ;;  %2776 = vmatmul.mubr.bf16.gmra.mrb[88].mxu0 %v4876_v4  ;;  %v4925_v4 = vld [vmem:[%s5419_s26 + $0x554] ss:$20 sps:$4 sm:$0xff]  }
  0xf9   : > { %2358 = vmatprep.mubr.bf16.mxu1 %v4877_v5  ;;  %2783 = vmatprep.mubr.bf16.mxu0 %v4879_v6 }
 0x100   : > { %2359 = vmatmul.mubr.bf16.gmra.mrb[92].mxu1 %v4881_v7  ;;  %2784 = vmatmul.mubr.bf16.gmra.mrb[92].mxu0 %v4882_v8  ;;  %v4927_v8 = vld [vmem:[%s5419_s26 + $0x550] ss:$20 sps:$4 sm:$0xff]  }
 0x101   : > { %2366 = vmatprep.mubr.bf16.mxu1 %v4883_v9  ;;  %2791 = vmatprep.mubr.bf16.mxu0 %v4885_v10  ;;  %v4928_v9 = vld [vmem:[%s5419_s26 + $0x178] ss:$20 sps:$4 sm:$0xff]  }
 0x108   : > { %2367 = vmatmul.mubr.bf16.gmra.mrb[96].mxu1 %v4887_v11  ;;  %2792 = vmatmul.mubr.bf16.gmra.mrb[96].mxu0 %v4888_v12  ;;  %v4929_v11 = vld [vmem:[%s5419_s26 + $0x57c] ss:$20 sps:$4 sm:$0xff]  }
 0x109   : > { %2374 = vmatprep.mubr.bf16.mxu1 %v4889_v13  ;;  %4071 = vmatprep.mubr.msk.bf16.mxu0 %vm5289_vm0, %v5288_v40 }
 0x110   : > { %2375 = vmatmul.mubr.bf16.gmra.mrb[100].mxu1 %v4891_v14  ;;  %4072 = vmatmul.mubr.msk.bf16.vlgmr.msra.gmra.mrb[0].mxu0 %vm1994_vm1, %v4892_v15  ;;  %v4931_v15 = vld [vmem:[%s5419_s26 + $0x578] ss:$20 sps:$4 sm:$0xff]  }
 0x111   : > { %2382 = vmatprep.mubr.bf16.mxu1 %v4893_v16  ;;  %4075 = vmatprep.mubr.msk.bf16.mxu0 %vm5289_vm0, %v5288_v40  ;;  %v4932_v16 = vld [vmem:[%s5419_s26 + $0x1a0] ss:$20 sps:$4 sm:$0xff]  }
 0x118   : > { %2383 = vmatmul.mubr.bf16.gmra.mrb[104].mxu1 %v4895_v17  ;;  %4076 = vmatmul.mubr.msk.bf16.gmra.mrb[4].mxu0 %vm1994_vm1, %v4896_v2  ;;  %v4933_v2 = vld [vmem:[%s5419_s26 + $0x5a4] ss:$20 sps:$4 sm:$0xff]  }
 0x119   : > { %2390 = vmatprep.mubr.bf16.mxu1 %v4897_v18  ;;  %4079 = vmatprep.mubr.msk.bf16.mxu0 %vm5289_vm0, %v5288_v40 }
 0x11b   : > { %v5670_v19 = vpop.f32.mrb[0].mxu1 }
 0x11c   : > { %v2178_v20 = vpop.f32.mrb[1].mxu1 }
 0x11d   : > { %v5674_v23 = vpop.f32.mrb[2].mxu1 }
 0x11e   : > { %v2181_v25 = vpop.f32.mrb[3].mxu1 }
 0x120   : > { %2391 = vmatmul.mubr.bf16.gmra.mrb[108].mxu1 %v4899_v21  ;;  %4080 = vmatmul.mubr.msk.bf16.gmra.mrb[8].mxu0 %vm1994_vm1, %v4900_v22  ;;  %v4935_v22 = vld [vmem:[%s5419_s26 + $0x5a0] ss:$20 sps:$4 sm:$0xff]  }
 0x121   : > { %2398 = vmatprep.mubr.bf16.mxu1 %v4901_v24  ;;  %4083 = vmatprep.mubr.msk.bf16.mxu0 %vm5289_vm0, %v5288_v40  ;;  %v4936_v24 = vld [vmem:[%s5419_s26 + $0x1c8] ss:$20 sps:$4 sm:$0xff]  }
 0x123   : > { %v5680_v26 = vpop.f32.mrb[4].mxu1 }
 0x124   : > { %v2186_v27 = vpop.f32.mrb[5].mxu1 }
 0x125   : > { %v5684_v30 = vpop.f32.mrb[6].mxu1  ;;  %v4937_v27 = vld [vmem:[%s5419_s26 + $0x5cc] ss:$20 sps:$4 sm:$0xff]  }
 0x126   : > { %v2189_v32 = vpop.f32.mrb[7].mxu1 }
 0x127   : > { %v4939_v32 = vld [vmem:[%s5419_s26 + $0x5c8] ss:$20 sps:$4 sm:$0xff]  }
 0x128   : > { %2399 = vmatmul.mubr.bf16.gmra.mrb[112].mxu1 %v4903_v28  ;;  %4084 = vmatmul.mubr.msk.bf16.gmra.mrb[12].mxu0 %vm1994_vm1, %v4904_v29 }
 0x129   : > { %2406 = vmatprep.mubr.bf16.mxu1 %v4905_v31  ;;  %4087 = vmatprep.mubr.msk.bf16.mxu0 %vm5289_vm0, %v5288_v40 }
 0x12b   : > { %v5690_v33 = vpop.f32.mrb[8].mxu1 }
 0x12c   : > { %v2194_v34 = vpop.f32.mrb[9].mxu1 }
 0x12d   : > { %v5694_v37 = vpop.f32.mrb[10].mxu1  ;;  %v4940_v34 = vld [vmem:[%s5419_s26 + $0x1f0] ss:$20 sps:$4 sm:$0xff]  }
 0x12e   : > { %v2197_v39 = vpop.f32.mrb[11].mxu1 }
 0x130   : > { %2407 = vmatmul.mubr.bf16.gmra.mrb[116].mxu1 %v4907_v35  ;;  %4088 = vmatmul.mubr.msk.bf16.gmra.mrb[16].mxu0 %vm1994_vm1, %v4908_v36  ;;  %v4941_v36 = vld [vmem:[%s5419_s26 + $0x5f4] ss:$20 sps:$4 sm:$0xff]  }
 0x131   : > { %2414 = vmatprep.mubr.bf16.mxu1 %v4909_v38  ;;  %4091 = vmatprep.mubr.msk.bf16.mxu0 %vm5289_vm0, %v5288_v40 }
 0x133   : > { %v5700_v41 = vpop.f32.mrb[12].mxu1 }
 0x134   : > { %v2202_v42 = vpop.f32.mrb[13].mxu1 }
 0x135   : > { %v5704_v45 = vpop.f32.mrb[14].mxu1 }
 0x136   : > { %v2205_v47 = vpop.f32.mrb[15].mxu1 }
 0x137   : > { %v4945_v47 = vld [vmem:[%s5419_s26 + $0x61c] ss:$20 sps:$4 sm:$0xff]  }
 0x138   : > { %2415 = vmatmul.mubr.bf16.gmra.mrb[120].mxu1 %v4911_v43  ;;  %4092 = vmatmul.mubr.msk.bf16.gmra.mrb[20].mxu0 %vm1994_vm1, %v4912_v44  ;;  %v4943_v43 = vld [vmem:[%s5419_s26 + $0x5f0] ss:$20 sps:$4 sm:$0xff]   ;;  %v4944_v44 = vld [vmem:[%s5419_s26 + $0x218] ss:$20 sps:$4 sm:$0xff]  }
 0x139   : > { %2422 = vmatprep.mubr.bf16.mxu1 %v4913_v46  ;;  %4095 = vmatprep.mubr.msk.bf16.mxu0 %vm5289_vm0, %v5288_v40 }
 0x13b   : > { %v5710_v48 = vpop.f32.mrb[16].mxu1 }
 0x13c   : > { %v2210_v49 = vpop.f32.mrb[17].mxu1 }
 0x13d   : > { %v5714_v52 = vpop.f32.mrb[18].mxu1 }
 0x13e   : > { %v2213_v54 = vpop.f32.mrb[19].mxu1 }
 0x13f   : > { %v4948_v54 = vld [vmem:[%s5419_s26 + $0x240] ss:$20 sps:$4 sm:$0xff]  }
 0x140   : > { %2423 = vmatmul.mubr.bf16.gmra.mrb[124].mxu1 %v4915_v50  ;;  %4096 = vmatmul.mubr.msk.bf16.gmra.mrb[24].mxu0 %vm1994_vm1, %v4916_v51 }
 0x141   : > { %2430 = vmatprep.mubr.bf16.mxu1 %v4917_v53  ;;  %4099 = vmatprep.mubr.msk.bf16.mxu0 %vm5289_vm0, %v5288_v40  ;;  %v4947_v53 = vld [vmem:[%s5419_s26 + $0x618] ss:$20 sps:$4 sm:$0xff]  }
 0x143   : > { %v5720_v55 = vpop.f32.mrb[20].mxu1 }
 0x144   : > { %v2218_v56 = vpop.f32.mrb[21].mxu1 }
 0x145   : > { %v5724_v59 = vpop.f32.mrb[22].mxu1 }
 0x146   : > { %v2221_v61 = vpop.f32.mrb[23].mxu1 }
 0x148   : > { %2431 = vmatmul.mubr.bf16.gmra.mrb[128].mxu1 %v4919_v57  ;;  %4100 = vmatmul.mubr.msk.bf16.gmra.mrb[28].mxu0 %vm1994_vm1, %v4920_v58  ;;  %v4949_v57 = vld [vmem:[%s5419_s26 + $0x644] ss:$20 sps:$4 sm:$0xff]  }
 0x149   : > { %2438 = vmatprep.mubr.bf16.mxu1 %v4921_v60  ;;  %4103 = vmatprep.mubr.msk.bf16.mxu0 %vm5289_vm0, %v5288_v40 }
 0x14b   : > { %v5730_v62 = vpop.f32.mrb[24].mxu1 }
 0x14c   : > { %v2226_v63 = vpop.f32.mrb[25].mxu1 }
 0x14d   : > { %v5734_v3 = vpop.f32.mrb[26].mxu1  ;;  %v4951_v63 = vld [vmem:[%s5419_s26 + $0x640] ss:$20 sps:$4 sm:$0xff]  }
 0x14e   : > { %v2229_v5 = vpop.f32.mrb[27].mxu1 }
 0x150   : > { %2439 = vmatmul.mubr.bf16.gmra.mrb[132].mxu1 %v4923_v0  ;;  %4104 = vmatmul.mubr.msk.bf16.gmra.mrb[32].mxu0 %vm1994_vm1, %v4924_v1  ;;  %v4952_v0 = vld [vmem:[%s5419_s26 + $0x268] ss:$20 sps:$4 sm:$0xff]  }
 0x151   : > { %2446 = vmatprep.mubr.bf16.mxu1 %v4925_v4  ;;  %4107 = vmatprep.mubr.msk.bf16.mxu0 %vm5289_vm0, %v5288_v40  ;;  %v4953_v4 = vld [vmem:[%s5419_s26 + $0x66c] ss:$20 sps:$4 sm:$0xff]  }
 0x153   : > { %v5740_v6 = vpop.f32.mrb[28].mxu1 }
 0x154   : > { %v2234_v7 = vpop.f32.mrb[29].mxu1 }
 0x155   : > { %v5744_v10 = vpop.f32.mrb[30].mxu1 }
 0x156   : > { %v2237_v12 = vpop.f32.mrb[31].mxu1 }
 0x158   : > { %2447 = vmatmul.mubr.bf16.gmra.mrb[136].mxu1 %v4927_v8  ;;  %4108 = vmatmul.mubr.msk.bf16.gmra.mrb[36].mxu0 %vm1994_vm1, %v4928_v9  ;;  %v4955_v9 = vld [vmem:[%s5419_s26 + $0x668] ss:$20 sps:$4 sm:$0xff]  }
 0x159   : > { %2454 = vmatprep.mubr.bf16.mxu1 %v4929_v11  ;;  %4111 = vmatprep.mubr.msk.bf16.mxu0 %vm5289_vm0, %v5288_v40  ;;  %v4956_v11 = vld [vmem:[%s5419_s26 + $0x290] ss:$20 sps:$4 sm:$0xff]  }
 0x15b   : > { %v5750_v13 = vpop.f32.mrb[32].mxu1 }
 0x15c   : > { %v2242_v14 = vpop.f32.mrb[33].mxu1 }
 0x15d   : > { %v5754_v17 = vpop.f32.mrb[34].mxu1  ;;  %v4957_v14 = vld [vmem:[%s5419_s26 + $0x694] ss:$20 sps:$4 sm:$0xff]  }
 0x15e   : > { %v2245_v18 = vpop.f32.mrb[35].mxu1 }
 0x15f   : > { %v4959_v18 = vld [vmem:[%s5419_s26 + $0x690] ss:$20 sps:$4 sm:$0xff]  }
 0x160   : > { %2455 = vmatmul.mubr.bf16.gmra.mrb[140].mxu1 %v4931_v15  ;;  %4112 = vmatmul.mubr.msk.bf16.gmra.mrb[40].mxu0 %vm1994_vm1, %v4932_v16 }
 0x161   : > { %2462 = vmatprep.mubr.bf16.mxu1 %v4933_v2  ;;  %4115 = vmatprep.mubr.msk.bf16.mxu0 %vm5289_vm0, %v5288_v40 }
 0x163   : > { %v5760_v20 = vpop.f32.mrb[36].mxu1 }
 0x164   : > { %v2250_v21 = vpop.f32.mrb[37].mxu1 }
 0x165   : > { %v5764_v25 = vpop.f32.mrb[38].mxu1  ;;  %v4960_v21 = vld [vmem:[%s5419_s26 + $0x2b8] ss:$20 sps:$4 sm:$0xff]  }
 0x166   : > { %v2253_v28 = vpop.f32.mrb[39].mxu1 }
 0x168   : > { %2463 = vmatmul.mubr.bf16.gmra.mrb[144].mxu1 %v4935_v22  ;;  %4116 = vmatmul.mubr.msk.bf16.gmra.mrb[44].mxu0 %vm1994_vm1, %v4936_v24  ;;  %v4961_v24 = vld [vmem:[%s5419_s26 + $0x6bc] ss:$20 sps:$4 sm:$0xff]  }
 0x169   : > { %2470 = vmatprep.mubr.bf16.mxu1 %v4937_v27  ;;  %4119 = vmatprep.mubr.msk.bf16.mxu0 %vm5289_vm0, %v5288_v40 }
 0x16b   : > { %v5770_v29 = vpop.f32.mrb[40].mxu1 }
 0x16c   : > { %v2258_v31 = vpop.f32.mrb[41].mxu1 }
 0x16d   : > { %v5774_v35 = vpop.f32.mrb[42].mxu1 }
 0x16e   : > { %v2261_v38 = vpop.f32.mrb[43].mxu1 }
 0x16f   : > { %v4965_v38 = vld [vmem:[%s5419_s26 + $0x6e4] ss:$20 sps:$4 sm:$0xff]  }
 0x170   : > { %2471 = vmatmul.mubr.bf16.gmra.mrb[148].mxu1 %v4939_v32  ;;  %4120 = vmatmul.mubr.msk.bf16.gmra.mrb[48].mxu0 %vm1994_vm1, %v4940_v34  ;;  %v4963_v32 = vld [vmem:[%s5419_s26 + $0x6b8] ss:$20 sps:$4 sm:$0xff]   ;;  %v4964_v34 = vld [vmem:[%s5419_s26 + $0x2e0] ss:$20 sps:$4 sm:$0xff]  }
 0x171   : > { %2478 = vmatprep.mubr.bf16.mxu1 %v4941_v36  ;;  %4123 = vmatprep.mubr.msk.bf16.mxu0 %vm5289_vm0, %v5288_v40 }
 0x173   : > { %v5780_v39 = vpop.f32.mrb[44].mxu1 }
 0x174   : > { %v2266_v42 = vpop.f32.mrb[45].mxu1 }
 0x175   : > { %v5784_v46 = vpop.f32.mrb[46].mxu1 }
 0x176   : > { %v2269_v49 = vpop.f32.mrb[47].mxu1 }
 0x177   : > { %v4968_v49 = vld [vmem:[%s5419_s26 + $0x308] ss:$20 sps:$4 sm:$0xff]  }
 0x178   : > { %2479 = vmatmul.mubr.bf16.gmra.mrb[152].mxu1 %v4943_v43  ;;  %4124 = vmatmul.mubr.msk.bf16.gmra.mrb[52].mxu0 %vm1994_vm1, %v4944_v44 }
 0x179   : > { %2486 = vmatprep.mubr.bf16.mxu1 %v4945_v47  ;;  %4127 = vmatprep.mubr.msk.bf16.mxu0 %vm5289_vm0, %v5288_v40  ;;  %v4967_v47 = vld [vmem:[%s5419_s26 + $0x6e0] ss:$20 sps:$4 sm:$0xff]  }
 0x17b   : > { %v5790_v50 = vpop.f32.mrb[48].mxu1 }
 0x17c   : > { %v2274_v51 = vpop.f32.mrb[49].mxu1 }
 0x17d   : > { %v5794_v56 = vpop.f32.mrb[50].mxu1 }
 0x17e   : > { %v2277_v58 = vpop.f32.mrb[51].mxu1 }
 0x180   : > { %2487 = vmatmul.mubr.bf16.gmra.mrb[156].mxu1 %v4947_v53  ;;  %4128 = vmatmul.mubr.msk.bf16.gmra.mrb[56].mxu0 %vm1994_vm1, %v4948_v54  ;;  %v4969_v53 = vld [vmem:[%s5419_s26 + $0x70c] ss:$20 sps:$4 sm:$0xff]  }
 0x181   : > { %2494 = vmatprep.mubr.bf16.mxu1 %v4949_v57  ;;  %4131 = vmatprep.mubr.msk.bf16.mxu0 %vm5289_vm0, %v5288_v40 }
 0x183   : > { %v5800_v60 = vpop.f32.mrb[52].mxu1 }
 0x184   : > { %v2282_v61 = vpop.f32.mrb[53].mxu1 }
 0x185   : > { %v5804_v1 = vpop.f32.mrb[54].mxu1  ;;  %v4971_v61 = vld [vmem:[%s5419_s26 + $0x708] ss:$20 sps:$4 sm:$0xff]  }
 0x186   : > { %v2285_v5 = vpop.f32.mrb[55].mxu1 }
 0x188   : > { %2495 = vmatmul.mubr.bf16.gmra.mrb[160].mxu1 %v4951_v63  ;;  %4132 = vmatmul.mubr.msk.bf16.gmra.mrb[60].mxu0 %vm1994_vm1, %v4952_v0  ;;  %v4972_v63 = vld [vmem:[%s5419_s26 + $0x330] ss:$20 sps:$4 sm:$0xff]  }
 0x189   : > { %2502 = vmatprep.mubr.bf16.mxu1 %v4953_v4  ;;  %4135 = vmatprep.mubr.msk.bf16.mxu0 %vm5289_vm0, %v5288_v40  ;;  %v4973_v4 = vld [vmem:[%s5419_s26 + $0x734] ss:$20 sps:$4 sm:$0xff]  }
 0x18b   : > { %v5810_v7 = vpop.f32.mrb[56].mxu1 }
 0x18c   : > { %v2290_v8 = vpop.f32.mrb[57].mxu1 }
 0x18d   : > { %v5814_v12 = vpop.f32.mrb[58].mxu1 }
 0x18e   : > { %v2293_v15 = vpop.f32.mrb[59].mxu1 }
 0x190   : > { %2503 = vmatmul.mubr.bf16.gmra.mrb[164].mxu1 %v4955_v9  ;;  %4136 = vmatmul.mubr.msk.bf16.gmra.mrb[64].mxu0 %vm1994_vm1, %v4956_v11  ;;  %v4975_v11 = vld [vmem:[%s5419_s26 + $0x730] ss:$20 sps:$4 sm:$0xff]  }
 0x191   : > { %2510 = vmatprep.mubr.bf16.mxu1 %v4957_v14  ;;  %4139 = vmatprep.mubr.msk.bf16.mxu0 %vm5289_vm0, %v5288_v40  ;;  %v4976_v14 = vld [vmem:[%s5419_s26 + $0x358] ss:$20 sps:$4 sm:$0xff]  }
 0x193   : > { %v5820_v16 = vpop.f32.mrb[60].mxu1 }
 0x194   : > { %v2298_v2 = vpop.f32.mrb[61].mxu1 }
 0x195   : > { %v5824_v22 = vpop.f32.mrb[62].mxu1  ;;  %v4977_v2 = vld [vmem:[%s5419_s26 + $0x75c] ss:$20 sps:$4 sm:$0xff]  }
 0x196   : > { %v2301_v27 = vpop.f32.mrb[63].mxu1 }
 0x197   : > { %v4979_v27 = vld [vmem:[%s5419_s26 + $0x758] ss:$20 sps:$4 sm:$0xff]  }
 0x198   : > { %2511 = vmatmul.mubr.bf16.gmra.mrb[168].mxu1 %v4959_v18  ;;  %4140 = vmatmul.mubr.msk.bf16.gmra.mrb[68].mxu0 %vm1994_vm1, %v4960_v21 }
 0x199   : > { %2518 = vmatprep.mubr.bf16.mxu1 %v4961_v24  ;;  %4143 = vmatprep.mubr.msk.bf16.mxu0 %vm5289_vm0, %v5288_v40 }
 0x19b   : > { %v5830_v28 = vpop.f32.mrb[64].mxu1 }
 0x19c   : > { %v2306_v31 = vpop.f32.mrb[65].mxu1 }
 0x19d   : > { %v5834_v36 = vpop.f32.mrb[66].mxu1  ;;  %v4980_v31 = vld [vmem:[%s5419_s26 + $0x380] ss:$20 sps:$4 sm:$0xff]  }
 0x19e   : > { %v2309_v42 = vpop.f32.mrb[67].mxu1 }
 0x1a0   : > { %2519 = vmatmul.mubr.bf16.gmra.mrb[172].mxu1 %v4963_v32  ;;  %4144 = vmatmul.mubr.msk.bf16.gmra.mrb[72].mxu0 %vm1994_vm1, %v4964_v34  ;;  %v4981_v34 = vld [vmem:[%s5419_s26 + $0x784] ss:$20 sps:$4 sm:$0xff]  }
 0x1a1   : > { %2526 = vmatprep.mubr.bf16.mxu1 %v4965_v38  ;;  %4147 = vmatprep.mubr.msk.bf16.mxu0 %vm5289_vm0, %v5288_v40 }
 0x1a3   : > { %v5840_v43 = vpop.f32.mrb[68].mxu1 }
 0x1a4   : > { %v2314_v44 = vpop.f32.mrb[69].mxu1 }
 0x1a5   : > { %v5844_v51 = vpop.f32.mrb[70].mxu1 }
 0x1a6   : > { %v2317_v54 = vpop.f32.mrb[71].mxu1 }
 0x1a7   : > { %v4987_v54 = vld [vmem:[%s5419_s26 + $0x3f4] ss:$20 sps:$4 sm:$0xff]  }
 0x1a8   : > { %2527 = vmatmul.mubr.bf16.gmra.mrb[176].mxu1 %v4967_v47  ;;  %4148 = vmatmul.mubr.msk.bf16.gmra.mrb[76].mxu0 %vm1994_vm1, %v4968_v49  ;;  %v4983_v47 = vld [vmem:[%s5419_s26 + $0x780] ss:$20 sps:$4 sm:$0xff]   ;;  %v4984_v49 = vld [vmem:[%s5419_s26 + $0x3a8] ss:$20 sps:$4 sm:$0xff]  }
 0x1a9   : > { %2534 = vmatprep.mubr.bf16.mxu1 %v4969_v53  ;;  %4151 = vmatprep.mubr.msk.bf16.mxu0 %vm5289_vm0, %v5288_v40 }
 0x1ab   : > { %v5850_v57 = vpop.f32.mrb[72].mxu1 }
 0x1ac   : > { %v2322_v58 = vpop.f32.mrb[73].mxu1 }
 0x1ad   : > { %v5854_v0 = vpop.f32.mrb[74].mxu1 }
 0x1ae   : > { %v2325_v5 = vpop.f32.mrb[75].mxu1 }
 0x1af   : > { %v4988_v5 = vld [vmem:[%s5419_s26 + $0x3d0] ss:$20 sps:$4 sm:$0xff]  }
 0x1b0   : > { %2535 = vmatmul.mubr.bf16.gmra.mrb[180].mxu1 %v4971_v61  ;;  %4152 = vmatmul.mubr.msk.bf16.gmra.mrb[80].mxu0 %vm1994_vm1, %v4972_v63  ;;  %v4985_v63 = vld [vmem:[%s5419_s26 + $0x3f0] ss:$20 sps:$4 sm:$0xff]  }
 0x1b1   : > { %2542 = vmatprep.mubr.bf16.mxu1 %v4973_v4  ;;  %4155 = vmatprep.mubr.msk.bf16.mxu0 %vm5289_vm0, %v5288_v40 }
 0x1b3   : > { %v5860_v8 = vpop.f32.mrb[76].mxu1 }
 0x1b4   : > { %v2330_v9 = vpop.f32.mrb[77].mxu1 }
 0x1b5   : > { %v5864_v15 = vpop.f32.mrb[78].mxu1 }
 0x1b6   : > { %v2333_v18 = vpop.f32.mrb[79].mxu1 }
 0x1b8   : > { %2543 = vmatmul.mubr.bf16.gmra.mrb[184].mxu1 %v4975_v11  ;;  %4156 = vmatmul.mubr.msk.bf16.gmra.mrb[84].mxu0 %vm1994_vm1, %v4976_v14  ;;  %v4989_v11 = vld [vmem:[%s5419_s26 + $0x41c] ss:$20 sps:$4 sm:$0xff]  }
 0x1b9   : > { %2550 = vmatprep.mubr.bf16.mxu1 %v4977_v2  ;;  %4159 = vmatprep.mubr.msk.bf16.mxu0 %vm5289_vm0, %v5288_v40 }
 0x1bb   : > { %v5870_v21 = vpop.f32.mrb[80].mxu1 }
 0x1bc   : > { %v2338_v24 = vpop.f32.mrb[81].mxu1 }
 0x1bd   : > { %v5874_v32 = vpop.f32.mrb[82].mxu1  ;;  %v4991_v24 = vld [vmem:[%s5419_s26 + $0x418] ss:$20 sps:$4 sm:$0xff]  }
 0x1be   : > { %v2341_v38 = vpop.f32.mrb[83].mxu1 }
 0x1c0   : > { %2551 = vmatmul.mubr.bf16.gmra.mrb[188].mxu1 %v4979_v27  ;;  %4160 = vmatmul.mubr.msk.bf16.gmra.mrb[88].mxu0 %vm1994_vm1, %v4980_v31  ;;  %v4992_v27 = vld [vmem:[%s5419_s26 + $0x3f8] ss:$20 sps:$4 sm:$0xff]  }
 0x1c1   : > { %2558 = vmatprep.mubr.bf16.mxu1 %v4981_v34  ;;  %4163 = vmatprep.mubr.msk.bf16.mxu0 %vm5289_vm0, %v5288_v40  ;;  %v4993_v34 = vld [vmem:[%s5419_s26 + $0x444] ss:$20 sps:$4 sm:$0xff]  }
 0x1c3   : > { %v5880_v42 = vpop.f32.mrb[84].mxu1 }
 0x1c4   : > { %v2346_v44 = vpop.f32.mrb[85].mxu1 }
 0x1c5   : > { %v5884_v53 = vpop.f32.mrb[86].mxu1 }
 0x1c6   : > { %v2349_v58 = vpop.f32.mrb[87].mxu1 }
 0x1c8   : > { %2559 = vmatmul.mubr.bf16.gmra.mrb[192].mxu1 %v4983_v47  ;;  %4164 = vmatmul.mubr.msk.bf16.gmra.mrb[92].mxu0 %vm1994_vm1, %v4984_v49  ;;  %v4995_v49 = vld [vmem:[%s5419_s26 + $0x440] ss:$20 sps:$4 sm:$0xff]  }
 0x1c9   : > { %2799 = vmatprep.mubr.bf16.mxu1 %v4987_v54  ;;  %4167 = vmatprep.mubr.msk.bf16.mxu0 %vm5289_vm0, %v5288_v40  ;;  %v4996_v54 = vld [vmem:[%s5419_s26 + $0x420] ss:$20 sps:$4 sm:$0xff]  }
 0x1cb   : > { %v5890_v61 = vpop.f32.mrb[88].mxu1 }
 0x1cc   : > { %v2354_v4 = vpop.f32.mrb[89].mxu1 }
 0x1cd   : > { %v5894_v9 = vpop.f32.mrb[90].mxu1 }
 0x1ce   : > { %v2357_v14 = vpop.f32.mrb[91].mxu1 }
 0x1d0   : > { %2800 = vmatmul.mubr.bf16.vlgmr.msra.gmra.mrb[100].mxu1 %v4985_v63  ;;  %4168 = vmatmul.mubr.msk.bf16.gmra.mrb[96].mxu0 %vm1994_vm1, %v4988_v5  ;;  %v4997_v63 = vld [vmem:[%s5419_s26 + $0x46c] ss:$20 sps:$4 sm:$0xff]  }
 0x1d1   : > { %2807 = vmatprep.mubr.bf16.mxu1 %v4989_v11  ;;  %4171 = vmatprep.mubr.msk.bf16.mxu0 %vm5289_vm0, %v5288_v40  ;;  %v5917_v5 = vld [vmem:[#allocation2] ss:$0 sm:$0xff] }
 0x1d2   : > { %v2177_v11 = vadd.f32 %v5917_v5, %v5670_v19  ;;  %v2185_v19 = vadd.f32 %v5917_v5, %v5680_v26 }
 0x1d3   : > { %v5900_v2 = vpop.f32.mrb[92].mxu1 }
 0x1d4   : > { %v2362_v18 = vpop.f32.mrb[93].mxu1 }
 0x1d5   : > { %v5904_v31 = vpop.f32.mrb[94].mxu1  ;;  %v4999_v18 = vld [vmem:[%s5419_s26 + $0x468] ss:$20 sps:$4 sm:$0xff]  }
 0x1d6   : > { %v2365_v38 = vpop.f32.mrb[95].mxu1 }
 0x1d7   : > { %v5000_v38 = vld [vmem:[%s5419_s26 + $0x448] ss:$20 sps:$4 sm:$0xff]  }
 0x1d8   : > { %2808 = vmatmul.mubr.bf16.gmra.mrb[104].mxu1 %v4991_v24  ;;  %4172 = vmatmul.mubr.msk.bf16.gmra.mrb[100].mxu0 %vm1994_vm1, %v4992_v27  ;;  %v2180_v24 = vadd.f32 %v5917_v5, %v5674_v23 }
 0x1d9   : > { %2815 = vmatprep.mubr.bf16.mxu1 %v4993_v34  ;;  %4175 = vmatprep.mubr.msk.bf16.mxu0 %vm5289_vm0, %v5288_v40 }
 0x1db   : > { %v5910_v44 = vpop.f32.mrb[96].mxu1 }
 0x1dc   : > { %v2370_v47 = vpop.f32.mrb[97].mxu1 }
 0x1dd   : > { %v5914_v58 = vpop.f32.mrb[98].mxu1  ;;  %v5001_v47 = vld [vmem:[%s5419_s26 + $0x494] ss:$20 sps:$4 sm:$0xff]  }
 0x1de   : > { %v2373_v4 = vpop.f32.mrb[99].mxu1 }
 0x1df   : > { %v5003_v4 = vld [vmem:[%s5419_s26 + $0x490] ss:$20 sps:$4 sm:$0xff]  }
 0x1e0   : > { %2816 = vmatmul.mubr.bf16.gmra.mrb[108].mxu1 %v4995_v49  ;;  %4176 = vmatmul.mubr.msk.bf16.gmra.mrb[104].mxu0 %vm1994_vm1, %v4996_v54 }
 0x1e1   : > { %2823 = vmatprep.mubr.bf16.mxu1 %v4997_v63  ;;  %4179 = vmatprep.mubr.msk.bf16.mxu0 %vm5289_vm0, %v5288_v40 }
 0x1e3   : > { %v3026_v14 = vpop.f32.mrb[0].mxu0 }
 0x1e4   : > { %v4300_v27 = vadd.f32 %v3026_v14, %v2177_v11  ;;  %v4073_v34 = vpop.f32.mrb[1].mxu0  ;;  %v2188_v11 = vadd.f32 %v5917_v5, %v5684_v30 }
 0x1e5   : > { %v3029_v49 = vpop.f32.mrb[2].mxu0 }
 0x1e6   : > { %5082 = vtanh.f32 %v4300_v27  ;;  %v4302_v54 = vadd.f32 %v3029_v49, %v2180_v24  ;;  %v4074_v63 = vpop.f32.mrb[3].mxu0  ;;  %v5004_v27 = vld [vmem:[%s5419_s26 + $0x470] ss:$20 sps:$4 sm:$0xff]   ;;  %v2193_v49 = vadd.f32 %v5917_v5, %v5690_v33 }
 0x1e7   : > { %v5007_v63 = vld [vmem:[%s5419_s26 + $0x4b8] ss:$20 sps:$4 sm:$0xff]  }
 0x1e8   : > { %2824 = vmatmul.mubr.bf16.gmra.mrb[112].mxu1 %v4999_v18  ;;  %5084 = vtanh.f32 %v4302_v54  ;;  %4180 = vmatmul.mubr.msk.bf16.gmra.mrb[108].mxu0 %vm1994_vm1, %v5000_v38  ;;  %v5005_v18 = vld [vmem:[%s5419_s26 + $0x4bc] ss:$20 sps:$4 sm:$0xff]  }
 0x1e9   : > { %2831 = vmatprep.mubr.bf16.mxu1 %v5001_v47  ;;  %4183 = vmatprep.mubr.msk.bf16.mxu0 %vm5289_vm0, %v5288_v40 }
 0x1eb   : > { %v3034_v23 = vpop.f32.mrb[4].mxu0 }
 0x1ec   : > { %v4304_v14 = vadd.f32 %v3034_v23, %v2185_v19  ;;  %v4077_v24 = vpop.f32.mrb[5].mxu0  ;;  %v2196_v19 = vadd.f32 %v5917_v5, %v5694_v37 }
 0x1ed   : > { %v3037_v34 = vpop.f32.mrb[6].mxu0 }
 0x1ee   : > { %5086 = vtanh.f32 %v4304_v14  ;;  %v4306_v26 = vadd.f32 %v3037_v34, %v2188_v11  ;;  %v4078_v38 = vpop.f32.mrb[7].mxu0  ;;  %v5008_v11 = vld [vmem:[%s5419_s26 + $0x498] ss:$20 sps:$4 sm:$0xff]   ;;  %v2201_v34 = vadd.f32 %v5917_v5, %v5700_v41 }
 0x1ef   : > { %v5009_v14 = vld [vmem:[%s5419_s26 + $0x4e4] ss:$20 sps:$4 sm:$0xff]   ;;  %v5011_v38 = vld [vmem:[%s5419_s26 + $0x4e0] ss:$20 sps:$4 sm:$0xff]  }
 0x1f0   : > { %2832 = vmatmul.mubr.bf16.gmra.mrb[116].mxu1 %v5003_v4  ;;  %v5083_v30 = vpop.eup %5082  ;;  %5088 = vtanh.f32 %v4306_v26  ;;  %4184 = vmatmul.mubr.msk.bf16.gmra.mrb[112].mxu0 %vm1994_vm1, %v5004_v27 }
 0x1f1   : > { %2839 = vmatprep.mubr.bf16.mxu1 %v5005_v18  ;;  %3516 = vst.msk [vmem:[%s5943_s2] sm:$0xff] %vm3515_vm2, %v5083_v30  ;;  %4187 = vmatprep.mubr.msk.bf16.mxu0 %vm5289_vm0, %v5288_v40  ;;  %v2204_v30 = vadd.f32 %v5917_v5, %v5704_v45 }
 0x1f2   : > { %v5085_v47 = vpop.eup %5084 }
 0x1f3   : > { %3517 = vst.msk [vmem:[%s5943_s2 + $0x8] sm:$0xff] %vm3515_vm2, %v5085_v47  ;;  %v3042_v54 = vpop.f32.mrb[8].mxu0 }
 0x1f4   : > { %v4308_v23 = vadd.f32 %v3042_v54, %v2193_v49  ;;  %v4081_v4 = vpop.f32.mrb[9].mxu0  ;;  %v5012_v54 = vld [vmem:[%s5419_s26 + $0x4c0] ss:$20 sps:$4 sm:$0xff]  }
 0x1f5   : > { %v3045_v24 = vpop.f32.mrb[10].mxu0 }
 0x1f6   : > { %5090 = vtanh.f32 %v4308_v23  ;;  %v4310_v27 = vadd.f32 %v3045_v24, %v2196_v19  ;;  %v4082_v18 = vpop.f32.mrb[11].mxu0  ;;  %v5015_v24 = vld [vmem:[%s5419_s26 + $0x508] ss:$20 sps:$4 sm:$0xff]  }
 0x1f8   : > { %2840 = vmatmul.mubr.bf16.gmra.mrb[120].mxu1 %v5007_v63  ;;  %v5087_v33 = vpop.eup %5086  ;;  %5092 = vtanh.f32 %v4310_v27  ;;  %4188 = vmatmul.mubr.msk.bf16.gmra.mrb[116].mxu0 %vm1994_vm1, %v5008_v11  ;;  %v5013_v63 = vld [vmem:[%s5419_s26 + $0x50c] ss:$20 sps:$4 sm:$0xff]   ;;  %v2209_v11 = vadd.f32 %v5917_v5, %v5710_v48  ;;  %v2212_v27 = vadd.f32 %v5917_v5, %v5714_v52 }
 0x1f9   : > { %2847 = vmatprep.mubr.bf16.mxu1 %v5009_v14  ;;  %3518 = vst.msk [vmem:[%s5943_s2 + $0x10] sm:$0xff] %vm3515_vm2, %v5087_v33  ;;  %4191 = vmatprep.mubr.msk.bf16.mxu0 %vm5289_vm0, %v5288_v40 }
 0x1fa   : > { %v5089_v37 = vpop.eup %5088 }
 0x1fb   : > { %3519 = vst.msk [vmem:[%s5943_s2 + $0x18] sm:$0xff] %vm3515_vm2, %v5089_v37  ;;  %v3050_v26 = vpop.f32.mrb[12].mxu0  ;;  %v5016_v37 = vld [vmem:[%s5419_s26 + $0x4e8] ss:$20 sps:$4 sm:$0xff]  }
 0x1fc   : > { %v4312_v47 = vadd.f32 %v3050_v26, %v2201_v34  ;;  %v4085_v49 = vpop.f32.mrb[13].mxu0  ;;  %v5017_v34 = vld [vmem:[%s5419_s26 + $0x534] ss:$20 sps:$4 sm:$0xff]  }
 0x1fd   : > { %v3053_v19 = vpop.f32.mrb[14].mxu0 }
 0x1fe   : > { %5094 = vtanh.f32 %v4312_v47  ;;  %v4314_v23 = vadd.f32 %v3053_v19, %v2204_v30  ;;  %v4086_v4 = vpop.f32.mrb[15].mxu0  ;;  %v2217_v47 = vadd.f32 %v5917_v5, %v5720_v55 }
 0x1ff   : > { %v5020_v4 = vld [vmem:[%s5419_s26 + $0x510] ss:$20 sps:$4 sm:$0xff]  }
 0x200   : > { %2848 = vmatmul.mubr.bf16.gmra.mrb[124].mxu1 %v5011_v38  ;;  %v5091_v41 = vpop.eup %5090  ;;  %5096 = vtanh.f32 %v4314_v23  ;;  %4192 = vmatmul.mubr.msk.bf16.gmra.mrb[120].mxu0 %vm1994_vm1, %v5012_v54  ;;  %v5019_v54 = vld [vmem:[%s5419_s26 + $0x530] ss:$20 sps:$4 sm:$0xff]  }
 0x201   : > { %2855 = vmatprep.mubr.bf16.mxu1 %v5013_v63  ;;  %3520 = vst.msk [vmem:[%s5943_s2 + $0x20] sm:$0xff] %vm3515_vm2, %v5091_v41  ;;  %4195 = vmatprep.mubr.msk.bf16.mxu0 %vm5289_vm0, %v5288_v40  ;;  %v2220_v63 = vadd.f32 %v5917_v5, %v5724_v59  ;;  %v5021_v41 = vld [vmem:[%s5419_s26 + $0x55c] ss:$20 sps:$4 sm:$0xff]  }
 0x202   : > { %v5093_v45 = vpop.eup %5092 }
 0x203   : > { %3521 = vst.msk [vmem:[%s5943_s2 + $0x28] sm:$0xff] %vm3515_vm2, %v5093_v45  ;;  %v3058_v14 = vpop.f32.mrb[16].mxu0 }
 0x204   : > { %v4316_v18 = vadd.f32 %v3058_v14, %v2209_v11  ;;  %v4089_v33 = vpop.f32.mrb[17].mxu0 }
 0x205   : > { %v3061_v26 = vpop.f32.mrb[18].mxu0  ;;  %v2228_v33 = vadd.f32 %v5917_v5, %v5734_v3 }
 0x206   : > { %5098 = vtanh.f32 %v4316_v18  ;;  %v4318_v38 = vadd.f32 %v3061_v26, %v2212_v27  ;;  %v4090_v30 = vpop.f32.mrb[19].mxu0  ;;  %v5023_v18 = vld [vmem:[%s5419_s26 + $0x558] ss:$20 sps:$4 sm:$0xff]  }
 0x207   : > { %v5024_v26 = vld [vmem:[%s5419_s26 + $0x538] ss:$20 sps:$4 sm:$0xff]  }
 0x208   : > { %2856 = vmatmul.mubr.bf16.gmra.mrb[128].mxu1 %v5015_v24  ;;  %v5095_v48 = vpop.eup %5094  ;;  %5100 = vtanh.f32 %v4318_v38  ;;  %4196 = vmatmul.mubr.msk.bf16.gmra.mrb[124].mxu0 %vm1994_vm1, %v5016_v37  ;;  %v2225_v24 = vadd.f32 %v5917_v5, %v5730_v62  ;;  %v5025_v38 = vld [vmem:[%s5419_s26 + $0x584] ss:$20 sps:$4 sm:$0xff]  }
 0x209   : > { %2863 = vmatprep.mubr.bf16.mxu1 %v5017_v34  ;;  %3522 = vst.msk [vmem:[%s5943_s2 + $0x30] sm:$0xff] %vm3515_vm2, %v5095_v48  ;;  %4199 = vmatprep.mubr.msk.bf16.mxu0 %vm5289_vm0, %v5288_v40 }
 0x20a   : > { %v5097_v52 = vpop.eup %5096 }
 0x20b   : > { %3523 = vst.msk [vmem:[%s5943_s2 + $0x38] sm:$0xff] %vm3515_vm2, %v5097_v52  ;;  %v3066_v49 = vpop.f32.mrb[20].mxu0 }
 0x20c   : > { %v4320_v19 = vadd.f32 %v3066_v49, %v2217_v47  ;;  %v4093_v23 = vpop.f32.mrb[21].mxu0  ;;  %v2233_v47 = vadd.f32 %v5917_v5, %v5740_v6 }
 0x20d   : > { %v3069_v45 = vpop.f32.mrb[22].mxu0 }
 0x20e   : > { %5102 = vtanh.f32 %v4320_v19  ;;  %v4322_v11 = vadd.f32 %v3069_v45, %v2220_v63  ;;  %v4094_v14 = vpop.f32.mrb[23].mxu0  ;;  %v2236_v63 = vadd.f32 %v5917_v5, %v5744_v10 }
 0x210   : > { %2864 = vmatmul.mubr.bf16.gmra.mrb[132].mxu1 %v5019_v54  ;;  %v5099_v55 = vpop.eup %5098  ;;  %5104 = vtanh.f32 %v4322_v11  ;;  %4200 = vmatmul.mubr.msk.bf16.gmra.mrb[128].mxu0 %vm1994_vm1, %v5020_v4  ;;  %v5027_v54 = vld [vmem:[%s5419_s26 + $0x580] ss:$20 sps:$4 sm:$0xff]  }
 0x211   : > { %2871 = vmatprep.mubr.bf16.mxu1 %v5021_v41  ;;  %3524 = vst.msk [vmem:[%s5943_s2 + $0x40] sm:$0xff] %vm3515_vm2, %v5099_v55  ;;  %4203 = vmatprep.mubr.msk.bf16.mxu0 %vm5289_vm0, %v5288_v40  ;;  %v5028_v4 = vld [vmem:[%s5419_s26 + $0x560] ss:$20 sps:$4 sm:$0xff]   ;;  %v2241_v55 = vadd.f32 %v5917_v5, %v5750_v13 }
 0x212   : > { %v5101_v59 = vpop.eup %5100  ;;  %v5029_v41 = vld [vmem:[%s5419_s26 + $0x5ac] ss:$20 sps:$4 sm:$0xff]  }
 0x213   : > { %3525 = vst.msk [vmem:[%s5943_s2 + $0x48] sm:$0xff] %vm3515_vm2, %v5101_v59  ;;  %v3074_v27 = vpop.f32.mrb[24].mxu0 }
 0x214   : > { %v4324_v37 = vadd.f32 %v3074_v27, %v2225_v24  ;;  %v4097_v34 = vpop.f32.mrb[25].mxu0  ;;  %v5031_v24 = vld [vmem:[%s5419_s26 + $0x5a8] ss:$20 sps:$4 sm:$0xff]   ;;  %v2244_v27 = vadd.f32 %v5917_v5, %v5754_v17 }
 0x215   : > { %v3077_v30 = vpop.f32.mrb[26].mxu0  ;;  %v5033_v34 = vld [vmem:[%s5419_s26 + $0x5d4] ss:$20 sps:$4 sm:$0xff]  }
 0x216   : > { %5106 = vtanh.f32 %v4324_v37  ;;  %v4326_v48 = vadd.f32 %v3077_v30, %v2228_v33  ;;  %v4098_v52 = vpop.f32.mrb[27].mxu0  ;;  %v5032_v37 = vld [vmem:[%s5419_s26 + $0x588] ss:$20 sps:$4 sm:$0xff]  }
 0x218   : > { %2872 = vmatmul.mubr.bf16.gmra.mrb[136].mxu1 %v5023_v18  ;;  %v5103_v62 = vpop.eup %5102  ;;  %5108 = vtanh.f32 %v4326_v48  ;;  %4204 = vmatmul.mubr.msk.bf16.gmra.mrb[132].mxu0 %vm1994_vm1, %v5024_v26  ;;  %v2249_v48 = vadd.f32 %v5917_v5, %v5760_v20 }
 0x219   : > { %2879 = vmatprep.mubr.bf16.mxu1 %v5025_v38  ;;  %3526 = vst.msk [vmem:[%s5943_s2 + $0x50] sm:$0xff] %vm3515_vm2, %v5103_v62  ;;  %4207 = vmatprep.mubr.msk.bf16.mxu0 %vm5289_vm0, %v5288_v40  ;;  %v5035_v62 = vld [vmem:[%s5419_s26 + $0x5d0] ss:$20 sps:$4 sm:$0xff]  }
 0x21a   : > { %v5105_v3 = vpop.eup %5104 }
 0x21b   : > { %3527 = vst.msk [vmem:[%s5943_s2 + $0x58] sm:$0xff] %vm3515_vm2, %v5105_v3  ;;  %v3082_v49 = vpop.f32.mrb[28].mxu0  ;;  %v2252_v3 = vadd.f32 %v5917_v5, %v5764_v25 }
 0x21c   : > { %v4328_v19 = vadd.f32 %v3082_v49, %v2233_v47  ;;  %v4101_v23 = vpop.f32.mrb[29].mxu0 }
 0x21d   : > { %v3085_v45 = vpop.f32.mrb[30].mxu0 }
 0x21e   : > { %5110 = vtanh.f32 %v4328_v19  ;;  %v4330_v11 = vadd.f32 %v3085_v45, %v2236_v63  ;;  %v4102_v14 = vpop.f32.mrb[31].mxu0  ;;  %v5037_v63 = vld [vmem:[%s5419_s26 + $0x5fc] ss:$20 sps:$4 sm:$0xff]  }
 0x21f   : > { %v2260_v14 = vadd.f32 %v5917_v5, %v5774_v35 }
 0x220   : > { %2880 = vmatmul.mubr.bf16.gmra.mrb[140].mxu1 %v5027_v54  ;;  %v5107_v6 = vpop.eup %5106  ;;  %5112 = vtanh.f32 %v4330_v11  ;;  %4208 = vmatmul.mubr.msk.bf16.gmra.mrb[136].mxu0 %vm1994_vm1, %v5028_v4  ;;  %v5036_v54 = vld [vmem:[%s5419_s26 + $0x5b0] ss:$20 sps:$4 sm:$0xff]   ;;  %v5039_v11 = vld [vmem:[%s5419_s26 + $0x5f8] ss:$20 sps:$4 sm:$0xff]  }
 0x221   : > { %2887 = vmatprep.mubr.bf16.mxu1 %v5029_v41  ;;  %3528 = vst.msk [vmem:[%s5943_s2 + $0x60] sm:$0xff] %vm3515_vm2, %v5107_v6  ;;  %4211 = vmatprep.mubr.msk.bf16.mxu0 %vm5289_vm0, %v5288_v40  ;;  %v2257_v41 = vadd.f32 %v5917_v5, %v5770_v29 }
 0x222   : > { %v5109_v10 = vpop.eup %5108 }
 0x223   : > { %3529 = vst.msk [vmem:[%s5943_s2 + $0x68] sm:$0xff] %vm3515_vm2, %v5109_v10  ;;  %v3090_v59 = vpop.f32.mrb[32].mxu0 }
 0x224   : > { %v4332_v18 = vadd.f32 %v3090_v59, %v2241_v55  ;;  %v4105_v33 = vpop.f32.mrb[33].mxu0  ;;  %v5040_v55 = vld [vmem:[%s5419_s26 + $0x5d8] ss:$20 sps:$4 sm:$0xff]  }
 0x225   : > { %v3093_v26 = vpop.f32.mrb[34].mxu0  ;;  %v5041_v59 = vld [vmem:[%s5419_s26 + $0x624] ss:$20 sps:$4 sm:$0xff]   ;;  %v2265_v33 = vadd.f32 %v5917_v5, %v5780_v39 }
 0x226   : > { %5114 = vtanh.f32 %v4332_v18  ;;  %v4334_v38 = vadd.f32 %v3093_v26, %v2244_v27  ;;  %v4106_v30 = vpop.f32.mrb[35].mxu0  ;;  %v2268_v26 = vadd.f32 %v5917_v5, %v5784_v46 }
 0x228   : > { %2888 = vmatmul.mubr.bf16.gmra.mrb[144].mxu1 %v5031_v24  ;;  %v5111_v13 = vpop.eup %5110  ;;  %5116 = vtanh.f32 %v4334_v38  ;;  %4212 = vmatmul.mubr.msk.bf16.gmra.mrb[140].mxu0 %vm1994_vm1, %v5032_v37 }
 0x229   : > { %2895 = vmatprep.mubr.bf16.mxu1 %v5033_v34  ;;  %3530 = vst.msk [vmem:[%s5943_s2 + $0x70] sm:$0xff] %vm3515_vm2, %v5111_v13  ;;  %4215 = vmatprep.mubr.msk.bf16.mxu0 %vm5289_vm0, %v5288_v40  ;;  %v5043_v34 = vld [vmem:[%s5419_s26 + $0x620] ss:$20 sps:$4 sm:$0xff]  }
 0x22a   : > { %v5113_v17 = vpop.eup %5112  ;;  %v5044_v13 = vld [vmem:[%s5419_s26 + $0x600] ss:$20 sps:$4 sm:$0xff]  }
 0x22b   : > { %3531 = vst.msk [vmem:[%s5943_s2 + $0x78] sm:$0xff] %vm3515_vm2, %v5113_v17  ;;  %v3098_v52 = vpop.f32.mrb[36].mxu0  ;;  %v5045_v17 = vld [vmem:[%s5419_s26 + $0x64c] ss:$20 sps:$4 sm:$0xff]  }
 0x22c   : > { %v4336_v47 = vadd.f32 %v3098_v52, %v2249_v48  ;;  %v4109_v49 = vpop.f32.mrb[37].mxu0 }
 0x22d   : > { %v3101_v19 = vpop.f32.mrb[38].mxu0  ;;  %v5047_v49 = vld [vmem:[%s5419_s26 + $0x648] ss:$20 sps:$4 sm:$0xff]  }
 0x22e   : > { %5118 = vtanh.f32 %v4336_v47  ;;  %v4338_v23 = vadd.f32 %v3101_v19, %v2252_v3  ;;  %v4110_v4 = vpop.f32.mrb[39].mxu0  ;;  %v2273_v3 = vadd.f32 %v5917_v5, %v5790_v50 }
 0x22f   : > { %v5049_v4 = vld [vmem:[%s5419_s26 + $0x674] ss:$20 sps:$4 sm:$0xff]  }
 0x230   : > { %2896 = vmatmul.mubr.bf16.gmra.mrb[148].mxu1 %v5035_v62  ;;  %v5115_v20 = vpop.eup %5114  ;;  %5120 = vtanh.f32 %v4338_v23  ;;  %4216 = vmatmul.mubr.msk.bf16.gmra.mrb[144].mxu0 %vm1994_vm1, %v5036_v54  ;;  %v2276_v54 = vadd.f32 %v5917_v5, %v5794_v56  ;;  %v5048_v23 = vld [vmem:[%s5419_s26 + $0x628] ss:$20 sps:$4 sm:$0xff]  }
 0x231   : > { %2903 = vmatprep.mubr.bf16.mxu1 %v5037_v63  ;;  %3532 = vst.msk [vmem:[%s5943_s2 + $0x80] sm:$0xff] %vm3515_vm2, %v5115_v20  ;;  %4219 = vmatprep.mubr.msk.bf16.mxu0 %vm5289_vm0, %v5288_v40 }
 0x232   : > { %v5117_v25 = vpop.eup %5116 }
 0x233   : > { %3533 = vst.msk [vmem:[%s5943_s2 + $0x88] sm:$0xff] %vm3515_vm2, %v5117_v25  ;;  %v3106_v45 = vpop.f32.mrb[40].mxu0 }
 0x234   : > { %v4340_v6 = vadd.f32 %v3106_v45, %v2257_v41  ;;  %v4113_v10 = vpop.f32.mrb[41].mxu0  ;;  %v2281_v45 = vadd.f32 %v5917_v5, %v5800_v60 }
 0x235   : > { %v3109_v24 = vpop.f32.mrb[42].mxu0 }
 0x236   : > { %5122 = vtanh.f32 %v4340_v6  ;;  %v4342_v27 = vadd.f32 %v3109_v24, %v2260_v14  ;;  %v4114_v18 = vpop.f32.mrb[43].mxu0  ;;  %v5051_v14 = vld [vmem:[%s5419_s26 + $0x670] ss:$20 sps:$4 sm:$0xff]   ;;  %v2284_v6 = vadd.f32 %v5917_v5, %v5804_v1 }
 0x237   : > { %v5053_v24 = vld [vmem:[%s5419_s26 + $0x69c] ss:$20 sps:$4 sm:$0xff]  }
 0x238   : > { %2904 = vmatmul.mubr.bf16.gmra.mrb[152].mxu1 %v5039_v11  ;;  %v5119_v29 = vpop.eup %5118  ;;  %5124 = vtanh.f32 %v4342_v27  ;;  %4220 = vmatmul.mubr.msk.bf16.gmra.mrb[148].mxu0 %vm1994_vm1, %v5040_v55 }
 0x239   : > { %2911 = vmatprep.mubr.bf16.mxu1 %v5041_v59  ;;  %3534 = vst.msk [vmem:[%s5943_s2 + $0x90] sm:$0xff] %vm3515_vm2, %v5119_v29  ;;  %4223 = vmatprep.mubr.msk.bf16.mxu0 %vm5289_vm0, %v5288_v40  ;;  %v5052_v59 = vld [vmem:[%s5419_s26 + $0x650] ss:$20 sps:$4 sm:$0xff]  }
 0x23a   : > { %v5121_v35 = vpop.eup %5120 }
 0x23b   : > { %3535 = vst.msk [vmem:[%s5943_s2 + $0x98] sm:$0xff] %vm3515_vm2, %v5121_v35  ;;  %v3114_v37 = vpop.f32.mrb[44].mxu0  ;;  %v2289_v35 = vadd.f32 %v5917_v5, %v5810_v7 }
 0x23c   : > { %v4344_v38 = vadd.f32 %v3114_v37, %v2265_v33  ;;  %v4117_v30 = vpop.f32.mrb[45].mxu0  ;;  %v5055_v37 = vld [vmem:[%s5419_s26 + $0x698] ss:$20 sps:$4 sm:$0xff]  }
 0x23d   : > { %v3117_v48 = vpop.f32.mrb[46].mxu0  ;;  %v5056_v30 = vld [vmem:[%s5419_s26 + $0x678] ss:$20 sps:$4 sm:$0xff]  }
 0x23e   : > { %5126 = vtanh.f32 %v4344_v38  ;;  %v4346_v52 = vadd.f32 %v3117_v48, %v2268_v26  ;;  %v4118_v62 = vpop.f32.mrb[47].mxu0 }
 0x23f   : > { %v2297_v62 = vadd.f32 %v5917_v5, %v5820_v16 }
 0x240   : > { %2912 = vmatmul.mubr.bf16.gmra.mrb[156].mxu1 %v5043_v34  ;;  %v5123_v39 = vpop.eup %5122  ;;  %5128 = vtanh.f32 %v4346_v52  ;;  %4224 = vmatmul.mubr.msk.bf16.gmra.mrb[152].mxu0 %vm1994_vm1, %v5044_v13  ;;  %v2292_v34 = vadd.f32 %v5917_v5, %v5814_v12  ;;  %v5057_v13 = vld [vmem:[%s5419_s26 + $0x6c4] ss:$20 sps:$4 sm:$0xff]  }
 0x241   : > { %2919 = vmatprep.mubr.bf16.mxu1 %v5045_v17  ;;  %3536 = vst.msk [vmem:[%s5943_s2 + $0xa0] sm:$0xff] %vm3515_vm2, %v5123_v39  ;;  %4227 = vmatprep.mubr.msk.bf16.mxu0 %vm5289_vm0, %v5288_v40 }
 0x242   : > { %v5125_v46 = vpop.eup %5124 }
 0x243   : > { %3537 = vst.msk [vmem:[%s5943_s2 + $0xa8] sm:$0xff] %vm3515_vm2, %v5125_v46  ;;  %v3122_v47 = vpop.f32.mrb[48].mxu0  ;;  %v5059_v46 = vld [vmem:[%s5419_s26 + $0x6c0] ss:$20 sps:$4 sm:$0xff]  }
 0x244   : > { %v4348_v63 = vadd.f32 %v3122_v47, %v2273_v3  ;;  %v4121_v19 = vpop.f32.mrb[49].mxu0  ;;  %v2300_v3 = vadd.f32 %v5917_v5, %v5824_v22 }
 0x245   : > { %v3125_v20 = vpop.f32.mrb[50].mxu0 }
 0x246   : > { %5130 = vtanh.f32 %v4348_v63  ;;  %v4350_v25 = vadd.f32 %v3125_v20, %v2276_v54  ;;  %v4122_v41 = vpop.f32.mrb[51].mxu0  ;;  %v5060_v54 = vld [vmem:[%s5419_s26 + $0x6a0] ss:$20 sps:$4 sm:$0xff]   ;;  %v2305_v20 = vadd.f32 %v5917_v5, %v5830_v28 }
 0x247   : > { %v5061_v63 = vld [vmem:[%s5419_s26 + $0x6ec] ss:$20 sps:$4 sm:$0xff]   ;;  %v5063_v41 = vld [vmem:[%s5419_s26 + $0x6e8] ss:$20 sps:$4 sm:$0xff]  }
 0x248   : > { %2920 = vmatmul.mubr.bf16.gmra.mrb[160].mxu1 %v5047_v49  ;;  %v5127_v50 = vpop.eup %5126  ;;  %5132 = vtanh.f32 %v4350_v25  ;;  %4228 = vmatmul.mubr.msk.bf16.gmra.mrb[156].mxu0 %vm1994_vm1, %v5048_v23 }
 0x249   : > { %2927 = vmatprep.mubr.bf16.mxu1 %v5049_v4  ;;  %3538 = vst.msk [vmem:[%s5943_s2 + $0xb0] sm:$0xff] %vm3515_vm2, %v5127_v50  ;;  %4231 = vmatprep.mubr.msk.bf16.mxu0 %vm5289_vm0, %v5288_v40  ;;  %v2308_v50 = vadd.f32 %v5917_v5, %v5834_v36 }
 0x24a   : > { %v5129_v56 = vpop.eup %5128 }
 0x24b   : > { %3539 = vst.msk [vmem:[%s5943_s2 + $0xb8] sm:$0xff] %vm3515_vm2, %v5129_v56  ;;  %v3130_v11 = vpop.f32.mrb[52].mxu0 }
 0x24c   : > { %v4352_v10 = vadd.f32 %v3130_v11, %v2281_v45  ;;  %v4125_v55 = vpop.f32.mrb[53].mxu0  ;;  %v5064_v11 = vld [vmem:[%s5419_s26 + $0x6c8] ss:$20 sps:$4 sm:$0xff]  }
 0x24d   : > { %v3133_v27 = vpop.f32.mrb[54].mxu0 }
 0x24e   : > { %5134 = vtanh.f32 %v4352_v10  ;;  %v4354_v18 = vadd.f32 %v3133_v27, %v2284_v6  ;;  %v4126_v29 = vpop.f32.mrb[55].mxu0  ;;  %v5067_v27 = vld [vmem:[%s5419_s26 + $0x710] ss:$20 sps:$4 sm:$0xff]  }
 0x250   : > { %2928 = vmatmul.mubr.bf16.gmra.mrb[164].mxu1 %v5051_v14  ;;  %v5131_v60 = vpop.eup %5130  ;;  %5136 = vtanh.f32 %v4354_v18  ;;  %4232 = vmatmul.mubr.msk.bf16.gmra.mrb[160].mxu0 %vm1994_vm1, %v5052_v59  ;;  %v5065_v14 = vld [vmem:[%s5419_s26 + $0x714] ss:$20 sps:$4 sm:$0xff]   ;;  %v2313_v59 = vadd.f32 %v5917_v5, %v5840_v43  ;;  %v2316_v18 = vadd.f32 %v5917_v5, %v5844_v51 }
 0x251   : > { %2935 = vmatprep.mubr.bf16.mxu1 %v5053_v24  ;;  %3540 = vst.msk [vmem:[%s5943_s2 + $0xc0] sm:$0xff] %vm3515_vm2, %v5131_v60  ;;  %4235 = vmatprep.mubr.msk.bf16.mxu0 %vm5289_vm0, %v5288_v40 }
 0x252   : > { %v5133_v1 = vpop.eup %5132 }
 0x253   : > { %3541 = vst.msk [vmem:[%s5943_s2 + $0xc8] sm:$0xff] %vm3515_vm2, %v5133_v1  ;;  %v3138_v33 = vpop.f32.mrb[56].mxu0  ;;  %v5068_v1 = vld [vmem:[%s5419_s26 + $0x6f0] ss:$20 sps:$4 sm:$0xff]  }
 0x254   : > { %v4356_v26 = vadd.f32 %v3138_v33, %v2289_v35  ;;  %v4129_v38 = vpop.f32.mrb[57].mxu0  ;;  %v5069_v35 = vld [vmem:[%s5419_s26 + $0x73c] ss:$20 sps:$4 sm:$0xff]  }
 0x255   : > { %v3141_v17 = vpop.f32.mrb[58].mxu0 }
 0x256   : > { %5138 = vtanh.f32 %v4356_v26  ;;  %v4358_v48 = vadd.f32 %v3141_v17, %v2292_v34  ;;  %v4130_v52 = vpop.f32.mrb[59].mxu0  ;;  %v2321_v26 = vadd.f32 %v5917_v5, %v5850_v57 }
 0x257   : > { %v5072_v52 = vld [vmem:[%s5419_s26 + $0x718] ss:$20 sps:$4 sm:$0xff]  }
 0x258   : > { %2936 = vmatmul.mubr.bf16.gmra.mrb[168].mxu1 %v5055_v37  ;;  %v5135_v7 = vpop.eup %5134  ;;  %5140 = vtanh.f32 %v4358_v48  ;;  %4236 = vmatmul.mubr.msk.bf16.gmra.mrb[164].mxu0 %vm1994_vm1, %v5056_v30  ;;  %v5071_v30 = vld [vmem:[%s5419_s26 + $0x738] ss:$20 sps:$4 sm:$0xff]  }
 0x259   : > { %2943 = vmatprep.mubr.bf16.mxu1 %v5057_v13  ;;  %3542 = vst.msk [vmem:[%s5943_s2 + $0xd0] sm:$0xff] %vm3515_vm2, %v5135_v7  ;;  %4239 = vmatprep.mubr.msk.bf16.mxu0 %vm5289_vm0, %v5288_v40  ;;  %v2324_v13 = vadd.f32 %v5917_v5, %v5854_v0  ;;  %v5073_v7 = vld [vmem:[%s5419_s26 + $0x764] ss:$20 sps:$4 sm:$0xff]  }
 0x25a   : > { %v5137_v12 = vpop.eup %5136 }
 0x25b   : > { %3543 = vst.msk [vmem:[%s5943_s2 + $0xd8] sm:$0xff] %vm3515_vm2, %v5137_v12  ;;  %v3146_v39 = vpop.f32.mrb[60].mxu0 }
 0x25c   : > { %v4360_v47 = vadd.f32 %v3146_v39, %v2297_v62  ;;  %v4133_v49 = vpop.f32.mrb[61].mxu0 }
 0x25d   : > { %v3149_v19 = vpop.f32.mrb[62].mxu0  ;;  %v2332_v49 = vadd.f32 %v5917_v5, %v5864_v15 }
 0x25e   : > { %5142 = vtanh.f32 %v4360_v47  ;;  %v4362_v23 = vadd.f32 %v3149_v19, %v2300_v3  ;;  %v4134_v4 = vpop.f32.mrb[63].mxu0  ;;  %v5075_v47 = vld [vmem:[%s5419_s26 + $0x760] ss:$20 sps:$4 sm:$0xff]  }
 0x25f   : > { %v5076_v19 = vld [vmem:[%s5419_s26 + $0x740] ss:$20 sps:$4 sm:$0xff]  }
 0x260   : > { %2944 = vmatmul.mubr.bf16.gmra.mrb[172].mxu1 %v5059_v46  ;;  %v5139_v16 = vpop.eup %5138  ;;  %5144 = vtanh.f32 %v4362_v23  ;;  %4240 = vmatmul.mubr.msk.bf16.gmra.mrb[168].mxu0 %vm1994_vm1, %v5060_v54  ;;  %v2329_v46 = vadd.f32 %v5917_v5, %v5860_v8  ;;  %v5077_v23 = vld [vmem:[%s5419_s26 + $0x78c] ss:$20 sps:$4 sm:$0xff]  }
 0x261   : > { %2951 = vmatprep.mubr.bf16.mxu1 %v5061_v63  ;;  %3544 = vst.msk [vmem:[%s5943_s2 + $0xe0] sm:$0xff] %vm3515_vm2, %v5139_v16  ;;  %4243 = vmatprep.mubr.msk.bf16.mxu0 %vm5289_vm0, %v5288_v40 }
 0x262   : > { %v5141_v22 = vpop.eup %5140 }
 0x263   : > { %3545 = vst.msk [vmem:[%s5943_s2 + $0xe8] sm:$0xff] %vm3515_vm2, %v5141_v22  ;;  %v3154_v25 = vpop.f32.mrb[64].mxu0 }
 0x264   : > { %v4364_v56 = vadd.f32 %v3154_v25, %v2305_v20  ;;  %v4137_v45 = vpop.f32.mrb[65].mxu0  ;;  %v2337_v20 = vadd.f32 %v5917_v5, %v5870_v21 }
 0x265   : > { %v3157_v6 = vpop.f32.mrb[66].mxu0 }
 0x266   : > { %5146 = vtanh.f32 %v4364_v56  ;;  %v4366_v10 = vadd.f32 %v3157_v6, %v2308_v50  ;;  %v4138_v55 = vpop.f32.mrb[67].mxu0  ;;  %v2340_v50 = vadd.f32 %v5917_v5, %v5874_v32  ;;  %v2345_v32 = vadd.f32 %v5917_v5, %v5880_v42 }
 0x268   : > { %2952 = vmatmul.mubr.bf16.gmra.mrb[176].mxu1 %v5063_v41  ;;  %v5143_v28 = vpop.eup %5142  ;;  %5148 = vtanh.f32 %v4366_v10  ;;  %4244 = vmatmul.mubr.msk.bf16.gmra.mrb[172].mxu0 %vm1994_vm1, %v5064_v11  ;;  %v5079_v41 = vld [vmem:[%s5419_s26 + $0x788] ss:$20 sps:$4 sm:$0xff]  }
 0x269   : > { %2959 = vmatprep.mubr.bf16.mxu1 %v5065_v14  ;;  %3546 = vst.msk [vmem:[%s5943_s2 + $0xf0] sm:$0xff] %vm3515_vm2, %v5143_v28  ;;  %4247 = vmatprep.mubr.msk.bf16.mxu0 %vm5289_vm0, %v5288_v40  ;;  %v5080_v11 = vld [vmem:[%s5419_s26 + $0x768] ss:$20 sps:$4 sm:$0xff]  }
 0x26a   : > { %v5145_v36 = vpop.eup %5144 }
 0x26b   : > { %3547 = vst.msk [vmem:[%s5943_s2 + $0xf8] sm:$0xff] %vm3515_vm2, %v5145_v36  ;;  %v3162_v24 = vpop.f32.mrb[68].mxu0  ;;  %v2348_v36 = vadd.f32 %v5917_v5, %v5884_v53 }
 0x26c   : > { %v4368_v29 = vadd.f32 %v3162_v24, %v2313_v59  ;;  %v4141_v60 = vpop.f32.mrb[69].mxu0 }
 0x26d   : > { %v3165_v33 = vpop.f32.mrb[70].mxu0 }
 0x26e   : > { %5150 = vtanh.f32 %v4368_v29  ;;  %v4370_v37 = vadd.f32 %v3165_v33, %v2316_v18  ;;  %v4142_v34 = vpop.f32.mrb[71].mxu0 }
 0x270   : > { %2960 = vmatmul.mubr.bf16.gmra.mrb[180].mxu1 %v5067_v27  ;;  %v5147_v43 = vpop.eup %5146  ;;  %5152 = vtanh.f32 %v4370_v37  ;;  %4248 = vmatmul.mubr.msk.bf16.gmra.mrb[176].mxu0 %vm1994_vm1, %v5068_v1  ;;  %v5081_v27 = vld [vmem:[%s5419_s26 + $0x790] ss:$20 sps:$4 sm:$0xff]   ;;  %v2353_v1 = vadd.f32 %v5917_v5, %v5890_v61  ;;  %v2361_v61 = vadd.f32 %v5917_v5, %v5900_v2  ;;  %v2369_v2 = vadd.f32 %v5917_v5, %v5910_v44 }
 0x271   : > { %2967 = vmatprep.mubr.bf16.mxu1 %v5069_v35  ;;  %3548 = vst.msk [vmem:[%s5943_s2 + $0x100] sm:$0xff] %vm3515_vm2, %v5147_v43  ;;  %4251 = vmatprep.mubr.msk.bf16.mxu0 %vm5289_vm0, %v5288_v40  ;;  %v2356_v35 = vadd.f32 %v5917_v5, %v5894_v9  ;;  %v2364_v9 = vadd.f32 %v5917_v5, %v5904_v31 }
 0x272   : > { %v5149_v51 = vpop.eup %5148 }
 0x273   : > { %3549 = vst.msk [vmem:[%s5943_s2 + $0x108] sm:$0xff] %vm3515_vm2, %v5149_v51  ;;  %v3170_v38 = vpop.f32.mrb[72].mxu0 }
 0x274   : > { %v4372_v17 = vadd.f32 %v3170_v38, %v2321_v26  ;;  %v4145_v48 = vpop.f32.mrb[73].mxu0 }
 0x275   : > { %v3173_v12 = vpop.f32.mrb[74].mxu0 }
 0x276   : > { %5154 = vtanh.f32 %v4372_v17  ;;  %v4374_v62 = vadd.f32 %v3173_v12, %v2324_v13  ;;  %v4146_v39 = vpop.f32.mrb[75].mxu0 }
 0x278   : > { %2968 = vmatmul.mubr.bf16.gmra.mrb[184].mxu1 %v5071_v30  ;;  %v5151_v57 = vpop.eup %5150  ;;  %5156 = vtanh.f32 %v4374_v62  ;;  %4252 = vmatmul.mubr.msk.bf16.gmra.mrb[180].mxu0 %vm1994_vm1, %v5072_v52 }
 0x279   : > { %2975 = vmatprep.mubr.bf16.mxu1 %v5073_v7  ;;  %3550 = vst.msk [vmem:[%s5943_s2 + $0x110] sm:$0xff] %vm3515_vm2, %v5151_v57  ;;  %4255 = vmatprep.mubr.msk.bf16.mxu0 %vm5289_vm0, %v5288_v40 }
 0x27a   : > { %v5153_v0 = vpop.eup %5152 }
 0x27b   : > { %3551 = vst.msk [vmem:[%s5943_s2 + $0x118] sm:$0xff] %vm3515_vm2, %v5153_v0  ;;  %v3178_v3 = vpop.f32.mrb[76].mxu0  ;;  %v2372_v0 = vadd.f32 %v5917_v5, %v5914_v58 }
 0x27c   : > { %v4376_v54 = vadd.f32 %v3178_v3, %v2329_v46  ;;  %v4149_v63 = vpop.f32.mrb[77].mxu0 }
 0x27d   : > { %v3181_v4 = vpop.f32.mrb[78].mxu0 }
 0x27e   : > { %5158 = vtanh.f32 %v4376_v54  ;;  %v4378_v16 = vadd.f32 %v3181_v4, %v2332_v49  ;;  %v4150_v22 = vpop.f32.mrb[79].mxu0 }
 0x280   : > { %2976 = vmatmul.mubr.bf16.gmra.mrb[188].mxu1 %v5075_v47  ;;  %v5155_v8 = vpop.eup %5154  ;;  %5160 = vtanh.f32 %v4378_v16  ;;  %4256 = vmatmul.mubr.msk.bf16.gmra.mrb[184].mxu0 %vm1994_vm1, %v5076_v19 }
 0x281   : > { %2983 = vmatprep.mubr.bf16.mxu1 %v5077_v23  ;;  %3552 = vst.msk [vmem:[%s5943_s2 + $0x120] sm:$0xff] %vm3515_vm2, %v5155_v8  ;;  %4259 = vmatprep.mubr.msk.bf16.mxu0 %vm5289_vm0, %v5288_v40 }
 0x282   : > { %v5157_v15 = vpop.eup %5156 }
 0x283   : > { %3553 = vst.msk [vmem:[%s5943_s2 + $0x128] sm:$0xff] %vm3515_vm2, %v5157_v15  ;;  %v3186_v25 = vpop.f32.mrb[80].mxu0 }
 0x284   : > { %v4380_v56 = vadd.f32 %v3186_v25, %v2337_v20  ;;  %v4153_v45 = vpop.f32.mrb[81].mxu0 }
 0x285   : > { %v3189_v14 = vpop.f32.mrb[82].mxu0 }
 0x286   : > { %5162 = vtanh.f32 %v4380_v56  ;;  %v4382_v6 = vadd.f32 %v3189_v14, %v2340_v50  ;;  %v4154_v10 = vpop.f32.mrb[83].mxu0 }
 0x288   : > { %2984 = vmatmul.mubr.bf16.gmra.mrb[192].mxu1 %v5079_v41  ;;  %v5159_v55 = vpop.eup %5158  ;;  %5164 = vtanh.f32 %v4382_v6  ;;  %4260 = vmatmul.mubr.msk.bf16.gmra.mrb[188].mxu0 %vm1994_vm1, %v5080_v11  ;;  %v6255_v6 = vld [vmem:[#allocation2] ss:$0 sm:$0xff] }
 0x289   : > { %3554 = vst.msk [vmem:[%s5943_s2 + $0x130] sm:$0xff] %vm3515_vm2, %v5159_v55  ;;  %4263 = vmatprep.mubr.msk.bf16.mxu0 %vm5289_vm0, %v5288_v40 }
 0x28a   : > { %v5161_v21 = vpop.eup %5160 }
 0x28b   : > { %3555 = vst.msk [vmem:[%s5943_s2 + $0x138] sm:$0xff] %vm3515_vm2, %v5161_v21  ;;  %v3194_v28 = vpop.f32.mrb[84].mxu0 }
 0x28c   : > { %v4384_v59 = vadd.f32 %v3194_v28, %v2345_v32  ;;  %v4157_v24 = vpop.f32.mrb[85].mxu0 }
 0x28d   : > { %v3197_v18 = vpop.f32.mrb[86].mxu0 }
 0x28e   : > { %5166 = vtanh.f32 %v4384_v59  ;;  %v4386_v29 = vadd.f32 %v3197_v18, %v2348_v36  ;;  %v4158_v60 = vpop.f32.mrb[87].mxu0 }
 0x290   : > { %v5163_v40 = vpop.eup %5162  ;;  %5168 = vtanh.f32 %v4386_v29  ;;  %4264 = vmatmul.mubr.msk.bf16.gmra.mrb[192].mxu0 %vm1994_vm1, %v5081_v27 }
 0x291   : > { %3556 = vst.msk [vmem:[%s5943_s2 + $0x140] sm:$0xff] %vm3515_vm2, %v5163_v40 }
 0x292   : > { %v5165_v42 = vpop.eup %5164 }
 0x293   : > { %3557 = vst.msk [vmem:[%s5943_s2 + $0x148] sm:$0xff] %vm3515_vm2, %v5165_v42  ;;  %v3202_v53 = vpop.f32.mrb[88].mxu0 }
 0x294   : > { %v4388_v33 = vadd.f32 %v3202_v53, %v2353_v1  ;;  %v4161_v37 = vpop.f32.mrb[89].mxu0 }
 0x295   : > { %v3205_v34 = vpop.f32.mrb[90].mxu0 }
 0x296   : > { %5170 = vtanh.f32 %v4388_v33  ;;  %v4390_v43 = vadd.f32 %v3205_v34, %v2356_v35  ;;  %v4162_v51 = vpop.f32.mrb[91].mxu0 }
 0x298   : > { %v5167_v26 = vpop.eup %5166  ;;  %5172 = vtanh.f32 %v4390_v43 }
 0x299   : > { %3558 = vst.msk [vmem:[%s5943_s2 + $0x150] sm:$0xff] %vm3515_vm2, %v5167_v26 }
 0x29a   : > { %v5169_v38 = vpop.eup %5168 }
 0x29b   : > { %3559 = vst.msk [vmem:[%s5943_s2 + $0x158] sm:$0xff] %vm3515_vm2, %v5169_v38  ;;  %v3210_v30 = vpop.f32.mrb[92].mxu0 }
 0x29c   : > { %v4392_v13 = vadd.f32 %v3210_v30, %v2361_v61  ;;  %v4165_v17 = vpop.f32.mrb[93].mxu0 }
 0x29d   : > { %v3213_v48 = vpop.f32.mrb[94].mxu0 }
 0x29e   : > { %5174 = vtanh.f32 %v4392_v13  ;;  %v4394_v52 = vadd.f32 %v3213_v48, %v2364_v9  ;;  %v4166_v7 = vpop.f32.mrb[95].mxu0 }
 0x2a0   : > { %v5171_v12 = vpop.eup %5170  ;;  %5176 = vtanh.f32 %v4394_v52 }
 0x2a1   : > { %3560 = vst.msk [vmem:[%s5943_s2 + $0x160] sm:$0xff] %vm3515_vm2, %v5171_v12 }
 0x2a2   : > { %v5173_v62 = vpop.eup %5172 }
 0x2a3   : > { %v2801_v39 = vpop.f32.mrb[100].mxu1  ;;  %3561 = vst.msk [vmem:[%s5943_s2 + $0x168] sm:$0xff] %vm3515_vm2, %v5173_v62  ;;  %v3218_v57 = vpop.f32.mrb[96].mxu0 }
 0x2a4   : > { %v2803_v31 = vpop.f32.mrb[101].mxu1  ;;  %v4396_v46 = vadd.f32 %v3218_v57, %v2369_v2  ;;  %v4169_v3 = vpop.f32.mrb[97].mxu0  ;;  %v4399_v4 = vadd.f32 %v5917_v5, %v2801_v39 }
 0x2a5   : > { %v2804_v47 = vpop.f32.mrb[102].mxu1  ;;  %v3221_v49 = vpop.f32.mrb[98].mxu0 }
 0x2a6   : > { %v2806_v54 = vpop.f32.mrb[103].mxu1  ;;  %5178 = vtanh.f32 %v4396_v46  ;;  %v4398_v63 = vadd.f32 %v3221_v49, %v2372_v0  ;;  %v4170_v19 = vpop.f32.mrb[99].mxu0  ;;  %v4401_v8 = vadd.f32 %v5917_v5, %v2804_v47 }
 0x2a8   : > { %v5175_v23 = vpop.eup %5174  ;;  %5180 = vtanh.f32 %v4398_v63 }
 0x2a9   : > { %3562 = vst.msk [vmem:[%s5943_s2 + $0x170] sm:$0xff] %vm3515_vm2, %v5175_v23 }
 0x2aa   : > { %v5177_v44 = vpop.eup %5176 }
 0x2ab   : > { %v2809_v16 = vpop.f32.mrb[104].mxu1  ;;  %3563 = vst.msk [vmem:[%s5943_s2 + $0x178] sm:$0xff] %vm3515_vm2, %v5177_v44  ;;  %v3226_v58 = vpop.f32.mrb[100].mxu0 }
 0x2ac   : > { %v2811_v22 = vpop.f32.mrb[105].mxu1  ;;  %v4400_v15 = vadd.f32 %v4399_v4, %v3226_v58  ;;  %v4173_v20 = vpop.f32.mrb[101].mxu0  ;;  %v4403_v10 = vadd.f32 %v6255_v6, %v2809_v16 }
 0x2ad   : > { %v2812_v25 = vpop.f32.mrb[106].mxu1  ;;  %v3229_v41 = vpop.f32.mrb[102].mxu0 }
 0x2ae   : > { %v2814_v50 = vpop.f32.mrb[107].mxu1  ;;  %5182 = vtanh.f32 %v4400_v15  ;;  %v4402_v56 = vadd.f32 %v4401_v8, %v3229_v41  ;;  %v4174_v45 = vpop.f32.mrb[103].mxu0  ;;  %v4405_v32 = vadd.f32 %v6255_v6, %v2812_v25 }
 0x2b0   : > { %v5179_v11 = vpop.eup %5178  ;;  %5184 = vtanh.f32 %v4402_v56 }
 0x2b1   : > { %3564 = vst.msk [vmem:[%s5943_s2 + $0x180] sm:$0xff] %vm3515_vm2, %v5179_v11 }
 0x2b2   : > { %v5181_v14 = vpop.eup %5180 }
 0x2b3   : > { %v2817_v5 = vpop.f32.mrb[108].mxu1  ;;  %3565 = vst.msk [vmem:[%s5943_s2 + $0x188] sm:$0xff] %vm3515_vm2, %v5181_v14  ;;  %v3234_v55 = vpop.f32.mrb[104].mxu0 }
 0x2b4   : > { %v2819_v21 = vpop.f32.mrb[109].mxu1  ;;  %v4404_v28 = vadd.f32 %v4403_v10, %v3234_v55  ;;  %v4177_v36 = vpop.f32.mrb[105].mxu0  ;;  %v4407_v42 = vadd.f32 %v6255_v6, %v2817_v5 }
 0x2b5   : > { %v2820_v59 = vpop.f32.mrb[110].mxu1  ;;  %v3237_v24 = vpop.f32.mrb[106].mxu0 }
 0x2b6   : > { %v2822_v27 = vpop.f32.mrb[111].mxu1  ;;  %5186 = vtanh.f32 %v4404_v28  ;;  %v4406_v18 = vadd.f32 %v4405_v32, %v3237_v24  ;;  %v4178_v29 = vpop.f32.mrb[107].mxu0  ;;  %v4409_v33 = vadd.f32 %v6255_v6, %v2820_v59 }
 0x2b8   : > { %v5183_v60 = vpop.eup %5182  ;;  %5188 = vtanh.f32 %v4406_v18 }
 0x2b9   : > { %3566 = vst.msk [vmem:[%s5943_s2 + $0x190] sm:$0xff] %vm3515_vm2, %v5183_v60 }
 0x2ba   : > { %v5185_v40 = vpop.eup %5184 }
 0x2bb   : > { %v2825_v1 = vpop.f32.mrb[112].mxu1  ;;  %3567 = vst.msk [vmem:[%s5943_s2 + $0x198] sm:$0xff] %vm3515_vm2, %v5185_v40  ;;  %v3242_v53 = vpop.f32.mrb[108].mxu0 }
 0x2bc   : > { %v2827_v35 = vpop.f32.mrb[113].mxu1  ;;  %v4408_v37 = vadd.f32 %v4407_v42, %v3242_v53  ;;  %v4181_v34 = vpop.f32.mrb[109].mxu0  ;;  %v4411_v13 = vadd.f32 %v6255_v6, %v2825_v1 }
 0x2bd   : > { %v2828_v43 = vpop.f32.mrb[114].mxu1  ;;  %v3245_v51 = vpop.f32.mrb[110].mxu0 }
 0x2be   : > { %v2830_v26 = vpop.f32.mrb[115].mxu1  ;;  %5190 = vtanh.f32 %v4408_v37  ;;  %v4410_v38 = vadd.f32 %v4409_v33, %v3245_v51  ;;  %v4182_v61 = vpop.f32.mrb[111].mxu0  ;;  %v4413_v7 = vadd.f32 %v6255_v6, %v2828_v43 }
 0x2c0   : > { %v5187_v30 = vpop.eup %5186  ;;  %5192 = vtanh.f32 %v4410_v38 }
 0x2c1   : > { %3568 = vst.msk [vmem:[%s5943_s2 + $0x1a0] sm:$0xff] %vm3515_vm2, %v5187_v30 }
 0x2c2   : > { %v5189_v9 = vpop.eup %5188 }
 0x2c3   : > { %v2833_v17 = vpop.f32.mrb[116].mxu1  ;;  %3569 = vst.msk [vmem:[%s5943_s2 + $0x1a8] sm:$0xff] %vm3515_vm2, %v5189_v9  ;;  %v3250_v48 = vpop.f32.mrb[112].mxu0 }
 0x2c4   : > { %v2835_v52 = vpop.f32.mrb[117].mxu1  ;;  %v4412_v12 = vadd.f32 %v4411_v13, %v3250_v48  ;;  %v4185_v62 = vpop.f32.mrb[113].mxu0  ;;  %v4415_v47 = vadd.f32 %v6255_v6, %v2833_v17 }
 0x2c5   : > { %v2836_v2 = vpop.f32.mrb[118].mxu1  ;;  %v3253_v39 = vpop.f32.mrb[114].mxu0 }
 0x2c6   : > { %v2838_v57 = vpop.f32.mrb[119].mxu1  ;;  %5194 = vtanh.f32 %v4412_v12  ;;  %v4414_v31 = vadd.f32 %v4413_v7, %v3253_v39  ;;  %v4186_v0 = vpop.f32.mrb[115].mxu0  ;;  %v4417_v19 = vadd.f32 %v6255_v6, %v2836_v2 }
 0x2c8   : > { %v5191_v46 = vpop.eup %5190  ;;  %5196 = vtanh.f32 %v4414_v31 }
 0x2c9   : > { %3570 = vst.msk [vmem:[%s5943_s2 + $0x1b0] sm:$0xff] %vm3515_vm2, %v5191_v46 }
 0x2ca   : > { %v5193_v3 = vpop.eup %5192 }
 0x2cb   : > { %v2841_v49 = vpop.f32.mrb[120].mxu1  ;;  %3571 = vst.msk [vmem:[%s5943_s2 + $0x1b8] sm:$0xff] %vm3515_vm2, %v5193_v3  ;;  %v3258_v54 = vpop.f32.mrb[116].mxu0 }
 0x2cc   : > { %v2843_v63 = vpop.f32.mrb[121].mxu1  ;;  %v4416_v23 = vadd.f32 %v4415_v47, %v3258_v54  ;;  %v4189_v44 = vpop.f32.mrb[117].mxu0  ;;  %v4419_v25 = vadd.f32 %v6255_v6, %v2841_v49 }
 0x2cd   : > { %v2844_v4 = vpop.f32.mrb[122].mxu1  ;;  %v3261_v16 = vpop.f32.mrb[118].mxu0 }
 0x2ce   : > { %v2846_v58 = vpop.f32.mrb[123].mxu1  ;;  %5198 = vtanh.f32 %v4416_v23  ;;  %v4418_v22 = vadd.f32 %v4417_v19, %v3261_v16  ;;  %v4190_v8 = vpop.f32.mrb[119].mxu0  ;;  %v4421_v45 = vadd.f32 %v6255_v6, %v2844_v4 }
 0x2d0   : > { %v5195_v15 = vpop.eup %5194  ;;  %5200 = vtanh.f32 %v4418_v22 }
 0x2d1   : > { %3572 = vst.msk [vmem:[%s5943_s2 + $0x1c0] sm:$0xff] %vm3515_vm2, %v5195_v15 }
 0x2d2   : > { %v5197_v20 = vpop.eup %5196 }
 0x2d3   : > { %v2849_v41 = vpop.f32.mrb[124].mxu1  ;;  %3573 = vst.msk [vmem:[%s5943_s2 + $0x1c8] sm:$0xff] %vm3515_vm2, %v5197_v20  ;;  %v3266_v50 = vpop.f32.mrb[120].mxu0 }
 0x2d4   : > { %v2851_v56 = vpop.f32.mrb[125].mxu1  ;;  %v4420_v11 = vadd.f32 %v4419_v25, %v3266_v50  ;;  %v4193_v14 = vpop.f32.mrb[121].mxu0  ;;  %v4423_v59 = vadd.f32 %v6255_v6, %v2849_v41 }
 0x2d5   : > { %v2852_v10 = vpop.f32.mrb[126].mxu1  ;;  %v3269_v5 = vpop.f32.mrb[122].mxu0 }
 0x2d6   : > { %v2854_v55 = vpop.f32.mrb[127].mxu1  ;;  %5202 = vtanh.f32 %v4420_v11  ;;  %v4422_v21 = vadd.f32 %v4421_v45, %v3269_v5  ;;  %v4194_v32 = vpop.f32.mrb[123].mxu0  ;;  %v4425_v29 = vadd.f32 %v6255_v6, %v2852_v10 }
 0x2d8   : > { %v5199_v28 = vpop.eup %5198  ;;  %5204 = vtanh.f32 %v4422_v21 }
 0x2d9   : > { %3574 = vst.msk [vmem:[%s5943_s2 + $0x1d0] sm:$0xff] %vm3515_vm2, %v5199_v28 }
 0x2da   : > { %v5201_v36 = vpop.eup %5200 }
 0x2db   : > { %v2857_v24 = vpop.f32.mrb[128].mxu1  ;;  %3575 = vst.msk [vmem:[%s5943_s2 + $0x1d8] sm:$0xff] %vm3515_vm2, %v5201_v36  ;;  %v3274_v27 = vpop.f32.mrb[124].mxu0 }
 0x2dc   : > { %v2859_v18 = vpop.f32.mrb[129].mxu1  ;;  %v4424_v60 = vadd.f32 %v4423_v59, %v3274_v27  ;;  %v4197_v40 = vpop.f32.mrb[125].mxu0  ;;  %v4427_v43 = vadd.f32 %v6255_v6, %v2857_v24 }
 0x2dd   : > { %v2860_v42 = vpop.f32.mrb[130].mxu1  ;;  %v3277_v1 = vpop.f32.mrb[126].mxu0 }
 0x2de   : > { %v2862_v53 = vpop.f32.mrb[131].mxu1  ;;  %5206 = vtanh.f32 %v4424_v60  ;;  %v4426_v35 = vadd.f32 %v4425_v29, %v3277_v1  ;;  %v4198_v33 = vpop.f32.mrb[127].mxu0  ;;  %v4429_v61 = vadd.f32 %v6255_v6, %v2860_v42 }
 0x2e0   : > { %v5203_v37 = vpop.eup %5202  ;;  %5208 = vtanh.f32 %v4426_v35 }
 0x2e1   : > { %3576 = vst.msk [vmem:[%s5943_s2 + $0x1e0] sm:$0xff] %vm3515_vm2, %v5203_v37 }
 0x2e2   : > { %v5205_v34 = vpop.eup %5204 }
 0x2e3   : > { %v2865_v51 = vpop.f32.mrb[132].mxu1  ;;  %3577 = vst.msk [vmem:[%s5943_s2 + $0x1e8] sm:$0xff] %vm3515_vm2, %v5205_v34  ;;  %v3282_v26 = vpop.f32.mrb[128].mxu0 }
 0x2e4   : > { %v2867_v38 = vpop.f32.mrb[133].mxu1  ;;  %v4428_v30 = vadd.f32 %v4427_v43, %v3282_v26  ;;  %v4201_v9 = vpop.f32.mrb[129].mxu0  ;;  %v4431_v2 = vadd.f32 %v6255_v6, %v2865_v51 }
 0x2e5   : > { %v2868_v13 = vpop.f32.mrb[134].mxu1  ;;  %v3285_v17 = vpop.f32.mrb[130].mxu0 }
 0x2e6   : > { %v2870_v48 = vpop.f32.mrb[135].mxu1  ;;  %5210 = vtanh.f32 %v4428_v30  ;;  %v4430_v52 = vadd.f32 %v4429_v61, %v3285_v17  ;;  %v4202_v7 = vpop.f32.mrb[131].mxu0  ;;  %v4433_v0 = vadd.f32 %v6255_v6, %v2868_v13 }
 0x2e8   : > { %v5207_v12 = vpop.eup %5206  ;;  %5212 = vtanh.f32 %v4430_v52 }
 0x2e9   : > { %3578 = vst.msk [vmem:[%s5943_s2 + $0x1f0] sm:$0xff] %vm3515_vm2, %v5207_v12 }
 0x2ea   : > { %v5209_v62 = vpop.eup %5208 }
 0x2eb   : > { %v2873_v39 = vpop.f32.mrb[136].mxu1  ;;  %3579 = vst.msk [vmem:[%s5943_s2 + $0x1f8] sm:$0xff] %vm3515_vm2, %v5209_v62  ;;  %v3290_v57 = vpop.f32.mrb[132].mxu0 }
 0x2ec   : > { %v2875_v31 = vpop.f32.mrb[137].mxu1  ;;  %v4432_v46 = vadd.f32 %v4431_v2, %v3290_v57  ;;  %v4205_v3 = vpop.f32.mrb[133].mxu0  ;;  %v4435_v4 = vadd.f32 %v6255_v6, %v2873_v39 }
 0x2ed   : > { %v2876_v47 = vpop.f32.mrb[138].mxu1  ;;  %v3293_v49 = vpop.f32.mrb[134].mxu0 }
 0x2ee   : > { %v2878_v54 = vpop.f32.mrb[139].mxu1  ;;  %5214 = vtanh.f32 %v4432_v46  ;;  %v4434_v63 = vadd.f32 %v4433_v0, %v3293_v49  ;;  %v4206_v19 = vpop.f32.mrb[135].mxu0  ;;  %v4437_v8 = vadd.f32 %v6255_v6, %v2876_v47 }
 0x2f0   : > { %v5211_v23 = vpop.eup %5210  ;;  %5216 = vtanh.f32 %v4434_v63 }
 0x2f1   : > { %3580 = vst.msk [vmem:[%s5943_s2 + $0x200] sm:$0xff] %vm3515_vm2, %v5211_v23 }
 0x2f2   : > { %v5213_v44 = vpop.eup %5212 }
 0x2f3   : > { %v2881_v16 = vpop.f32.mrb[140].mxu1  ;;  %3581 = vst.msk [vmem:[%s5943_s2 + $0x208] sm:$0xff] %vm3515_vm2, %v5213_v44  ;;  %v3298_v58 = vpop.f32.mrb[136].mxu0 }
 0x2f4   : > { %v2883_v22 = vpop.f32.mrb[141].mxu1  ;;  %v4436_v15 = vadd.f32 %v4435_v4, %v3298_v58  ;;  %v4209_v20 = vpop.f32.mrb[137].mxu0  ;;  %v4439_v10 = vadd.f32 %v6255_v6, %v2881_v16 }
 0x2f5   : > { %v2884_v25 = vpop.f32.mrb[142].mxu1  ;;  %v3301_v41 = vpop.f32.mrb[138].mxu0 }
 0x2f6   : > { %v2886_v50 = vpop.f32.mrb[143].mxu1  ;;  %5218 = vtanh.f32 %v4436_v15  ;;  %v4438_v56 = vadd.f32 %v4437_v8, %v3301_v41  ;;  %v4210_v45 = vpop.f32.mrb[139].mxu0  ;;  %v4441_v32 = vadd.f32 %v6255_v6, %v2884_v25 }
 0x2f8   : > { %v5215_v11 = vpop.eup %5214  ;;  %5220 = vtanh.f32 %v4438_v56 }
 0x2f9   : > { %3582 = vst.msk [vmem:[%s5943_s2 + $0x210] sm:$0xff] %vm3515_vm2, %v5215_v11 }
 0x2fa   : > { %v5217_v14 = vpop.eup %5216 }
 0x2fb   : > { %v2889_v5 = vpop.f32.mrb[144].mxu1  ;;  %3583 = vst.msk [vmem:[%s5943_s2 + $0x218] sm:$0xff] %vm3515_vm2, %v5217_v14  ;;  %v3306_v55 = vpop.f32.mrb[140].mxu0 }
 0x2fc   : > { %v2891_v21 = vpop.f32.mrb[145].mxu1  ;;  %v4440_v28 = vadd.f32 %v4439_v10, %v3306_v55  ;;  %v4213_v36 = vpop.f32.mrb[141].mxu0  ;;  %v4443_v42 = vadd.f32 %v6255_v6, %v2889_v5 }
 0x2fd   : > { %v2892_v59 = vpop.f32.mrb[146].mxu1  ;;  %v3309_v24 = vpop.f32.mrb[142].mxu0 }
 0x2fe   : > { %v2894_v27 = vpop.f32.mrb[147].mxu1  ;;  %5222 = vtanh.f32 %v4440_v28  ;;  %v4442_v18 = vadd.f32 %v4441_v32, %v3309_v24  ;;  %v4214_v29 = vpop.f32.mrb[143].mxu0  ;;  %v4445_v33 = vadd.f32 %v6255_v6, %v2892_v59 }
 0x300   : > { %v5219_v60 = vpop.eup %5218  ;;  %5224 = vtanh.f32 %v4442_v18 }
 0x301   : > { %3584 = vst.msk [vmem:[%s5943_s2 + $0x220] sm:$0xff] %vm3515_vm2, %v5219_v60 }
 0x302   : > { %v5221_v40 = vpop.eup %5220 }
 0x303   : > { %v2897_v1 = vpop.f32.mrb[148].mxu1  ;;  %3585 = vst.msk [vmem:[%s5943_s2 + $0x228] sm:$0xff] %vm3515_vm2, %v5221_v40  ;;  %v3314_v53 = vpop.f32.mrb[144].mxu0 }
 0x304   : > { %v2899_v35 = vpop.f32.mrb[149].mxu1  ;;  %v4444_v37 = vadd.f32 %v4443_v42, %v3314_v53  ;;  %v4217_v34 = vpop.f32.mrb[145].mxu0  ;;  %v4447_v13 = vadd.f32 %v6255_v6, %v2897_v1 }
 0x305   : > { %v2900_v43 = vpop.f32.mrb[150].mxu1  ;;  %v3317_v51 = vpop.f32.mrb[146].mxu0 }
 0x306   : > { %v2902_v26 = vpop.f32.mrb[151].mxu1  ;;  %5226 = vtanh.f32 %v4444_v37  ;;  %v4446_v38 = vadd.f32 %v4445_v33, %v3317_v51  ;;  %v4218_v61 = vpop.f32.mrb[147].mxu0  ;;  %v4449_v7 = vadd.f32 %v6255_v6, %v2900_v43 }
 0x308   : > { %v5223_v30 = vpop.eup %5222  ;;  %5228 = vtanh.f32 %v4446_v38 }
 0x309   : > { %3586 = vst.msk [vmem:[%s5943_s2 + $0x230] sm:$0xff] %vm3515_vm2, %v5223_v30 }
 0x30a   : > { %v5225_v9 = vpop.eup %5224 }
 0x30b   : > { %v2905_v17 = vpop.f32.mrb[152].mxu1  ;;  %3587 = vst.msk [vmem:[%s5943_s2 + $0x238] sm:$0xff] %vm3515_vm2, %v5225_v9  ;;  %v3322_v48 = vpop.f32.mrb[148].mxu0 }
 0x30c   : > { %v2907_v52 = vpop.f32.mrb[153].mxu1  ;;  %v4448_v12 = vadd.f32 %v4447_v13, %v3322_v48  ;;  %v4221_v62 = vpop.f32.mrb[149].mxu0  ;;  %v4451_v47 = vadd.f32 %v6255_v6, %v2905_v17 }
 0x30d   : > { %v2908_v2 = vpop.f32.mrb[154].mxu1  ;;  %v3325_v39 = vpop.f32.mrb[150].mxu0 }
 0x30e   : > { %v2910_v57 = vpop.f32.mrb[155].mxu1  ;;  %5230 = vtanh.f32 %v4448_v12  ;;  %v4450_v31 = vadd.f32 %v4449_v7, %v3325_v39  ;;  %v4222_v0 = vpop.f32.mrb[151].mxu0  ;;  %v4453_v19 = vadd.f32 %v6255_v6, %v2908_v2 }
 0x310   : > { %v5227_v46 = vpop.eup %5226  ;;  %5232 = vtanh.f32 %v4450_v31 }
 0x311   : > { %3588 = vst.msk [vmem:[%s5943_s2 + $0x240] sm:$0xff] %vm3515_vm2, %v5227_v46 }
 0x312   : > { %v5229_v3 = vpop.eup %5228 }
 0x313   : > { %v2913_v49 = vpop.f32.mrb[156].mxu1  ;;  %3589 = vst.msk [vmem:[%s5943_s2 + $0x248] sm:$0xff] %vm3515_vm2, %v5229_v3  ;;  %v3330_v54 = vpop.f32.mrb[152].mxu0 }
 0x314   : > { %v2915_v63 = vpop.f32.mrb[157].mxu1  ;;  %v4452_v23 = vadd.f32 %v4451_v47, %v3330_v54  ;;  %v4225_v44 = vpop.f32.mrb[153].mxu0  ;;  %v4455_v25 = vadd.f32 %v6255_v6, %v2913_v49 }
 0x315   : > { %v2916_v4 = vpop.f32.mrb[158].mxu1  ;;  %v3333_v16 = vpop.f32.mrb[154].mxu0 }
 0x316   : > { %v2918_v58 = vpop.f32.mrb[159].mxu1  ;;  %5234 = vtanh.f32 %v4452_v23  ;;  %v4454_v22 = vadd.f32 %v4453_v19, %v3333_v16  ;;  %v4226_v8 = vpop.f32.mrb[155].mxu0  ;;  %v4457_v45 = vadd.f32 %v6255_v6, %v2916_v4 }
 0x318   : > { %v5231_v15 = vpop.eup %5230  ;;  %5236 = vtanh.f32 %v4454_v22 }
 0x319   : > { %3590 = vst.msk [vmem:[%s5943_s2 + $0x250] sm:$0xff] %vm3515_vm2, %v5231_v15 }
 0x31a   : > { %v5233_v20 = vpop.eup %5232 }
 0x31b   : > { %v2921_v41 = vpop.f32.mrb[160].mxu1  ;;  %3591 = vst.msk [vmem:[%s5943_s2 + $0x258] sm:$0xff] %vm3515_vm2, %v5233_v20  ;;  %v3338_v50 = vpop.f32.mrb[156].mxu0 }
 0x31c   : > { %v2923_v56 = vpop.f32.mrb[161].mxu1  ;;  %v4456_v11 = vadd.f32 %v4455_v25, %v3338_v50  ;;  %v4229_v14 = vpop.f32.mrb[157].mxu0  ;;  %v4459_v59 = vadd.f32 %v6255_v6, %v2921_v41 }
 0x31d   : > { %v2924_v10 = vpop.f32.mrb[162].mxu1  ;;  %v3341_v5 = vpop.f32.mrb[158].mxu0 }
 0x31e   : > { %v2926_v55 = vpop.f32.mrb[163].mxu1  ;;  %5238 = vtanh.f32 %v4456_v11  ;;  %v4458_v21 = vadd.f32 %v4457_v45, %v3341_v5  ;;  %v4230_v32 = vpop.f32.mrb[159].mxu0  ;;  %v4461_v29 = vadd.f32 %v6255_v6, %v2924_v10 }
 0x320   : > { %v5235_v28 = vpop.eup %5234  ;;  %5240 = vtanh.f32 %v4458_v21 }
 0x321   : > { %3592 = vst.msk [vmem:[%s5943_s2 + $0x260] sm:$0xff] %vm3515_vm2, %v5235_v28 }
 0x322   : > { %v5237_v36 = vpop.eup %5236 }
 0x323   : > { %v2929_v24 = vpop.f32.mrb[164].mxu1  ;;  %3593 = vst.msk [vmem:[%s5943_s2 + $0x268] sm:$0xff] %vm3515_vm2, %v5237_v36  ;;  %v3346_v27 = vpop.f32.mrb[160].mxu0 }
 0x324   : > { %v2931_v18 = vpop.f32.mrb[165].mxu1  ;;  %v4460_v60 = vadd.f32 %v4459_v59, %v3346_v27  ;;  %v4233_v40 = vpop.f32.mrb[161].mxu0  ;;  %v4463_v43 = vadd.f32 %v6255_v6, %v2929_v24 }
 0x325   : > { %v2932_v42 = vpop.f32.mrb[166].mxu1  ;;  %v3349_v1 = vpop.f32.mrb[162].mxu0 }
 0x326   : > { %v2934_v53 = vpop.f32.mrb[167].mxu1  ;;  %5242 = vtanh.f32 %v4460_v60  ;;  %v4462_v35 = vadd.f32 %v4461_v29, %v3349_v1  ;;  %v4234_v33 = vpop.f32.mrb[163].mxu0  ;;  %v4465_v61 = vadd.f32 %v6255_v6, %v2932_v42 }
 0x328   : > { %v5239_v37 = vpop.eup %5238  ;;  %5244 = vtanh.f32 %v4462_v35 }
 0x329   : > { %3594 = vst.msk [vmem:[%s5943_s2 + $0x270] sm:$0xff] %vm3515_vm2, %v5239_v37 }
 0x32a   : > { %v5241_v34 = vpop.eup %5240 }
 0x32b   : > { %v2937_v51 = vpop.f32.mrb[168].mxu1  ;;  %3595 = vst.msk [vmem:[%s5943_s2 + $0x278] sm:$0xff] %vm3515_vm2, %v5241_v34  ;;  %v3354_v26 = vpop.f32.mrb[164].mxu0 }
 0x32c   : > { %v2939_v38 = vpop.f32.mrb[169].mxu1  ;;  %v4464_v30 = vadd.f32 %v4463_v43, %v3354_v26  ;;  %v4237_v9 = vpop.f32.mrb[165].mxu0  ;;  %v4467_v2 = vadd.f32 %v6255_v6, %v2937_v51 }
 0x32d   : > { %v2940_v13 = vpop.f32.mrb[170].mxu1  ;;  %v3357_v17 = vpop.f32.mrb[166].mxu0 }
 0x32e   : > { %v2942_v48 = vpop.f32.mrb[171].mxu1  ;;  %5246 = vtanh.f32 %v4464_v30  ;;  %v4466_v52 = vadd.f32 %v4465_v61, %v3357_v17  ;;  %v4238_v7 = vpop.f32.mrb[167].mxu0  ;;  %v4469_v0 = vadd.f32 %v6255_v6, %v2940_v13 }
 0x330   : > { %v5243_v12 = vpop.eup %5242  ;;  %5248 = vtanh.f32 %v4466_v52 }
 0x331   : > { %3596 = vst.msk [vmem:[%s5943_s2 + $0x280] sm:$0xff] %vm3515_vm2, %v5243_v12 }
 0x332   : > { %v5245_v62 = vpop.eup %5244 }
 0x333   : > { %v2945_v39 = vpop.f32.mrb[172].mxu1  ;;  %3597 = vst.msk [vmem:[%s5943_s2 + $0x288] sm:$0xff] %vm3515_vm2, %v5245_v62  ;;  %v3362_v57 = vpop.f32.mrb[168].mxu0 }
 0x334   : > { %v2947_v31 = vpop.f32.mrb[173].mxu1  ;;  %v4468_v46 = vadd.f32 %v4467_v2, %v3362_v57  ;;  %v4241_v3 = vpop.f32.mrb[169].mxu0  ;;  %v4471_v4 = vadd.f32 %v6255_v6, %v2945_v39 }
 0x335   : > { %v2948_v47 = vpop.f32.mrb[174].mxu1  ;;  %v3365_v49 = vpop.f32.mrb[170].mxu0 }
 0x336   : > { %v2950_v54 = vpop.f32.mrb[175].mxu1  ;;  %5250 = vtanh.f32 %v4468_v46  ;;  %v4470_v63 = vadd.f32 %v4469_v0, %v3365_v49  ;;  %v4242_v19 = vpop.f32.mrb[171].mxu0  ;;  %v4473_v8 = vadd.f32 %v6255_v6, %v2948_v47 }
 0x338   : > { %v5247_v23 = vpop.eup %5246  ;;  %5252 = vtanh.f32 %v4470_v63 }
 0x339   : > { %3598 = vst.msk [vmem:[%s5943_s2 + $0x290] sm:$0xff] %vm3515_vm2, %v5247_v23 }
 0x33a   : > { %v5249_v44 = vpop.eup %5248 }
 0x33b   : > { %v2953_v16 = vpop.f32.mrb[176].mxu1  ;;  %3599 = vst.msk [vmem:[%s5943_s2 + $0x298] sm:$0xff] %vm3515_vm2, %v5249_v44  ;;  %v3370_v58 = vpop.f32.mrb[172].mxu0 }
 0x33c   : > { %v2955_v22 = vpop.f32.mrb[177].mxu1  ;;  %v4472_v15 = vadd.f32 %v4471_v4, %v3370_v58  ;;  %v4245_v20 = vpop.f32.mrb[173].mxu0  ;;  %v4475_v10 = vadd.f32 %v6255_v6, %v2953_v16 }
 0x33d   : > { %v2956_v25 = vpop.f32.mrb[178].mxu1  ;;  %v3373_v41 = vpop.f32.mrb[174].mxu0 }
 0x33e   : > { %v2958_v50 = vpop.f32.mrb[179].mxu1  ;;  %5254 = vtanh.f32 %v4472_v15  ;;  %v4474_v56 = vadd.f32 %v4473_v8, %v3373_v41  ;;  %v4246_v45 = vpop.f32.mrb[175].mxu0  ;;  %v4477_v32 = vadd.f32 %v6255_v6, %v2956_v25 }
 0x340   : > { %v5251_v11 = vpop.eup %5250  ;;  %5256 = vtanh.f32 %v4474_v56 }
 0x341   : > { %3600 = vst.msk [vmem:[%s5943_s2 + $0x2a0] sm:$0xff] %vm3515_vm2, %v5251_v11 }
 0x342   : > { %v5253_v14 = vpop.eup %5252 }
 0x343   : > { %v2961_v5 = vpop.f32.mrb[180].mxu1  ;;  %3601 = vst.msk [vmem:[%s5943_s2 + $0x2a8] sm:$0xff] %vm3515_vm2, %v5253_v14  ;;  %v3378_v55 = vpop.f32.mrb[176].mxu0 }
 0x344   : > { %v2963_v21 = vpop.f32.mrb[181].mxu1  ;;  %v4476_v28 = vadd.f32 %v4475_v10, %v3378_v55  ;;  %v4249_v36 = vpop.f32.mrb[177].mxu0  ;;  %v4479_v42 = vadd.f32 %v6255_v6, %v2961_v5 }
 0x345   : > { %v2964_v59 = vpop.f32.mrb[182].mxu1  ;;  %v3381_v24 = vpop.f32.mrb[178].mxu0 }
 0x346   : > { %v2966_v27 = vpop.f32.mrb[183].mxu1  ;;  %5258 = vtanh.f32 %v4476_v28  ;;  %v4478_v18 = vadd.f32 %v4477_v32, %v3381_v24  ;;  %v4250_v29 = vpop.f32.mrb[179].mxu0  ;;  %v4481_v33 = vadd.f32 %v6255_v6, %v2964_v59 }
 0x348   : > { %v5255_v60 = vpop.eup %5254  ;;  %5260 = vtanh.f32 %v4478_v18 }
 0x349   : > { %3602 = vst.msk [vmem:[%s5943_s2 + $0x2b0] sm:$0xff] %vm3515_vm2, %v5255_v60 }
 0x34a   : > { %v5257_v40 = vpop.eup %5256 }
 0x34b   : > { %v2969_v1 = vpop.f32.mrb[184].mxu1  ;;  %3603 = vst.msk [vmem:[%s5943_s2 + $0x2b8] sm:$0xff] %vm3515_vm2, %v5257_v40  ;;  %v3386_v53 = vpop.f32.mrb[180].mxu0 }
 0x34c   : > { %v2971_v35 = vpop.f32.mrb[185].mxu1  ;;  %v4480_v37 = vadd.f32 %v4479_v42, %v3386_v53  ;;  %v4253_v34 = vpop.f32.mrb[181].mxu0  ;;  %v4483_v13 = vadd.f32 %v6255_v6, %v2969_v1 }
 0x34d   : > { %v2972_v43 = vpop.f32.mrb[186].mxu1  ;;  %v3389_v51 = vpop.f32.mrb[182].mxu0 }
 0x34e   : > { %v2974_v26 = vpop.f32.mrb[187].mxu1  ;;  %5262 = vtanh.f32 %v4480_v37  ;;  %v4482_v38 = vadd.f32 %v4481_v33, %v3389_v51  ;;  %v4254_v61 = vpop.f32.mrb[183].mxu0  ;;  %v4485_v7 = vadd.f32 %v6255_v6, %v2972_v43 }
 0x350   : > { %v5259_v30 = vpop.eup %5258  ;;  %5264 = vtanh.f32 %v4482_v38 }
 0x351   : > { %3604 = vst.msk [vmem:[%s5943_s2 + $0x2c0] sm:$0xff] %vm3515_vm2, %v5259_v30 }
 0x352   : > { %v5261_v9 = vpop.eup %5260 }
 0x353   : > { %v2977_v17 = vpop.f32.mrb[188].mxu1  ;;  %3605 = vst.msk [vmem:[%s5943_s2 + $0x2c8] sm:$0xff] %vm3515_vm2, %v5261_v9  ;;  %v3394_v48 = vpop.f32.mrb[184].mxu0 }
 0x354   : > { %v2979_v52 = vpop.f32.mrb[189].mxu1  ;;  %v4484_v12 = vadd.f32 %v4483_v13, %v3394_v48  ;;  %v4257_v62 = vpop.f32.mrb[185].mxu0  ;;  %v4487_v47 = vadd.f32 %v6255_v6, %v2977_v17 }
 0x355   : > { %v2980_v2 = vpop.f32.mrb[190].mxu1  ;;  %v3397_v39 = vpop.f32.mrb[186].mxu0 }
 0x356   : > { %v2982_v57 = vpop.f32.mrb[191].mxu1  ;;  %5266 = vtanh.f32 %v4484_v12  ;;  %v4486_v31 = vadd.f32 %v4485_v7, %v3397_v39  ;;  %v4258_v0 = vpop.f32.mrb[187].mxu0  ;;  %v4489_v19 = vadd.f32 %v6255_v6, %v2980_v2 }
 0x358   : > { %v5263_v46 = vpop.eup %5262  ;;  %5268 = vtanh.f32 %v4486_v31 }
 0x359   : > { %3606 = vst.msk [vmem:[%s5943_s2 + $0x2d0] sm:$0xff] %vm3515_vm2, %v5263_v46 }
 0x35a   : > { %v5265_v3 = vpop.eup %5264 }
 0x35b   : > { %v2985_v49 = vpop.f32.mrb[192].mxu1  ;;  %3607 = vst.msk [vmem:[%s5943_s2 + $0x2d8] sm:$0xff] %vm3515_vm2, %v5265_v3  ;;  %v3402_v54 = vpop.f32.mrb[188].mxu0 }
 0x35c   : > { %v2987_v63 = vpop.f32.mrb[193].mxu1  ;;  %v4488_v23 = vadd.f32 %v4487_v47, %v3402_v54  ;;  %v4261_v44 = vpop.f32.mrb[189].mxu0  ;;  %v4491_v25 = vadd.f32 %v6255_v6, %v2985_v49 }
 0x35d   : > { %v2988_v4 = vpop.f32.mrb[194].mxu1  ;;  %v3405_v16 = vpop.f32.mrb[190].mxu0 }
 0x35e   : > { %v2990_v58 = vpop.f32.mrb[195].mxu1  ;;  %5270 = vtanh.f32 %v4488_v23  ;;  %v4490_v22 = vadd.f32 %v4489_v19, %v3405_v16  ;;  %v4262_v8 = vpop.f32.mrb[191].mxu0  ;;  %v4493_v50 = vadd.f32 %v6255_v6, %v2988_v4 }
 0x360   : > { %v5267_v15 = vpop.eup %5266  ;;  %5272 = vtanh.f32 %v4490_v22 }
 0x361   : > { %3608 = vst.msk [vmem:[%s5943_s2 + $0x2e0] sm:$0xff] %vm3515_vm2, %v5267_v15 }
 0x362   : > { %v5269_v20 = vpop.eup %5268 }
 0x363   : > { %3609 = vst.msk [vmem:[%s5943_s2 + $0x2e8] sm:$0xff] %vm3515_vm2, %v5269_v20  ;;  %v3410_v41 = vpop.f32.mrb[192].mxu0 }
 0x364   : > { %v4492_v56 = vadd.f32 %v4491_v25, %v3410_v41  ;;  %v4265_v45 = vpop.f32.mrb[193].mxu0 }
 0x365   : > { %v3413_v11 = vpop.f32.mrb[194].mxu0 }
 0x366   : > { %5274 = vtanh.f32 %v4492_v56  ;;  %v4494_v14 = vadd.f32 %v4493_v50, %v3413_v11  ;;  %v4266_v10 = vpop.f32.mrb[195].mxu0 }
 0x368   : > { %v5271_v5 = vpop.eup %5270  ;;  %5276 = vtanh.f32 %v4494_v14 }
 0x369   : > { %3610 = vst.msk [vmem:[%s5943_s2 + $0x2f0] sm:$0xff] %vm3515_vm2, %v5271_v5 }
 0x36a   : > { %v5273_v55 = vpop.eup %5272 }
 0x36b   : > { %3611 = vst.msk [vmem:[%s5943_s2 + $0x2f8] sm:$0xff] %vm3515_vm2, %v5273_v55 }
 0x370   : > { %v5275_v21 = vpop.eup %5274 }
 0x371   : > { %3612 = vst.msk [vmem:[%s5943_s2 + $0x300] sm:$0xff] %vm3515_vm2, %v5275_v21 }
 0x372   : > { %v5277_v32 = vpop.eup %5276 }
 0x373   : > { %3613 = vst.msk [vmem:[%s5943_s2 + $0x308] sm:$0xff] %vm3515_vm2, %v5277_v32 }
 0x374 PF: > { %s15_s14 = sadd.s32 1, %s5285_s14  }
 0x375   : > { %p12_p4 = scmp.ge.s32.totalorder %s15_s14, 4  }
 0x377   :  { %14 = sbr.rel (!%p12_p4) target bundleno = 3 (0x3), region = 62 }

</bundles_post_ra>
